<compile_context>
chip_gen: v7x
topology: tpu7x:2x2x1
jax: 0.10.0
libtpu: 0.0.40
codegen_flags: <defaults>
</compile_context>

<pallas_src>
import functools

import jax
import jax.numpy as jnp
import numpy as np
from jax import lax
from jax.experimental import pallas as pl
from jax.experimental.pallas import tpu as pltpu

LANE = 128
BN_EPS = 1e-5
_TAPS = tuple((kh, kw) for kh in range(3) for kw in range(3))


# ----------------------------------------------------------------------------
# Pallas kernel: one image per grid step (grid over batch)
# ----------------------------------------------------------------------------
def _conv_block_kernel(xp_ref, w1_ref, b1_ref, w2_ref, b2_ref,
                       o_ref, hpad_ref, *, H, W, Cp):
    # xp_ref    : (H+2, W+2, Cp) bf16  spatially pre-padded, channel-padded input
    # w*_ref    : (9*Cp, Cp)     bf16  BN-folded conv weights (tap-major layout)
    # b*_ref    : (1, Cp)        f32   BN-folded biases
    # o_ref     : (H*W, Cp)      bf16  lane-dense flat output
    # hpad_ref  : (H+2, W+2, Cp) bf16  scratch for the padded intermediate

    # ---- conv1 + BN1 + ReLU: 9 accumulating MXU dots (no im2col buffer) -----
    acc = jnp.broadcast_to(b1_ref[...], (H * W, Cp))            # f32 seed
    for t, (kh, kw) in enumerate(_TAPS):
        patch = xp_ref[kh:kh + H, kw:kw + W, :].reshape(H * W, Cp)   # bf16
        acc = acc + jnp.dot(patch, w1_ref[t * Cp:(t + 1) * Cp, :],
                            preferred_element_type=jnp.float32)
    h1 = jnp.maximum(acc, 0.0)                                  # (H*W, Cp) f32

    # ---- stage h1 (bf16) into the padded scratch; zero only the 1-px border -
    # (border is tiny; re-zeroed every step so "parallel" batch semantics stay
    #  correct on multi-TensorCore chips — each core owns its own scratch)
    zero_row = jnp.zeros((1, W + 2, Cp), jnp.bfloat16)
    hpad_ref[0:1, :, :] = zero_row
    hpad_ref[H + 1:H + 2, :, :] = zero_row
    zero_col = jnp.zeros((H, 1, Cp), jnp.bfloat16)              # corners covered
    hpad_ref[1:H + 1, 0:1, :] = zero_col
    hpad_ref[1:H + 1, W + 1:W + 2, :] = zero_col
    hpad_ref[1:H + 1, 1:W + 1, :] = h1.astype(jnp.bfloat16).reshape(H, W, Cp)

    # ---- conv2 + BN2 + ReLU: 9 accumulating MXU dots from the scratch -------
    acc2 = jnp.broadcast_to(b2_ref[...], (H * W, Cp))
    for t, (kh, kw) in enumerate(_TAPS):
        patch = hpad_ref[kh:kh + H, kw:kw + W, :].reshape(H * W, Cp)
        acc2 = acc2 + jnp.dot(patch, w2_ref[t * Cp:(t + 1) * Cp, :],
                              preferred_element_type=jnp.float32)
    o_ref[...] = jnp.maximum(acc2, 0.0).astype(o_ref.dtype)


# ----------------------------------------------------------------------------
# Parameter init (deterministic, PyTorch-like shapes / init)
# ----------------------------------------------------------------------------
def init_params(key, ch_in, ch_out):
    ks = jax.random.split(key, 4)

    def conv_init(k, o, i):
        kw_, kb_ = jax.random.split(k)
        bound = 1.0 / np.sqrt(i * 9)
        w = jax.random.uniform(kw_, (o, i, 3, 3), jnp.float32, -bound, bound)
        b = jax.random.uniform(kb_, (o,), jnp.float32, -bound, bound)
        return w, b

    def bn_init(k, c):
        k1, k2, k3, k4 = jax.random.split(k, 4)
        gamma = 1.0 + 0.1 * jax.random.normal(k1, (c,), jnp.float32)
        beta = 0.1 * jax.random.normal(k2, (c,), jnp.float32)
        mean = 0.1 * jax.random.normal(k3, (c,), jnp.float32)
        var = 0.5 + jax.random.uniform(k4, (c,), jnp.float32)
        return (gamma, beta, mean, var)

    w1, b1 = conv_init(ks[0], ch_out, ch_in)
    w2, b2 = conv_init(ks[1], ch_out, ch_out)
    return {"conv1_w": w1, "conv1_b": b1, "bn1": bn_init(ks[2], ch_out),
            "conv2_w": w2, "conv2_b": b2, "bn2": bn_init(ks[3], ch_out)}


def _round_up(n, m):
    return (n + m - 1) // m * m


def _fold_conv_bn(conv_w, conv_b, bn, cp):
    """Fold inference-mode BN (+ conv bias) into a tap-major weight matrix.

    Returns w_mat (9*cp, cp) in bf16 and bias (1, cp) in f32, zero-padded to
    full 128-lane tiles so all MXU operands are lane-dense.
    """
    gamma, beta, mean, var = bn
    scale = gamma / jnp.sqrt(var + BN_EPS)                       # (Cout,)
    w_hwio = jnp.transpose(conv_w, (2, 3, 1, 0)) * scale[None, None, None, :]
    b_f = (conv_b - mean) * scale + beta                         # (Cout,)
    cin, cout = w_hwio.shape[2], w_hwio.shape[3]
    w_pad = jnp.zeros((3, 3, cp, cp), jnp.float32)
    w_pad = w_pad.at[:, :, :cin, :cout].set(w_hwio)
    b_pad = jnp.zeros((1, cp), jnp.float32).at[0, :cout].set(b_f)
    return w_pad.reshape(9 * cp, cp).astype(jnp.bfloat16), b_pad


# ----------------------------------------------------------------------------
# Wrapper (NCHW in / NCHW out, like the PyTorch module; output is bf16)
# ----------------------------------------------------------------------------
def conv_block_pallas(x_nchw, params):
    B, Cin, H, W = x_nchw.shape
    Cout = params["conv1_w"].shape[0]
    Cp = _round_up(max(Cin, Cout), LANE)       # lane-dense channel padding

    w1, b1 = _fold_conv_bn(params["conv1_w"], params["conv1_b"],
                           params["bn1"], Cp)
    w2, b2 = _fold_conv_bn(params["conv2_w"], params["conv2_b"],
                           params["bn2"], Cp)

    # NCHW -> NHWC, bf16, +1 px spatial halo, channel pad -- all in the wrapper.
    x_nhwc = jnp.transpose(x_nchw, (0, 2, 3, 1)).astype(jnp.bfloat16)
    x_pad = jnp.pad(x_nhwc, ((0, 0), (1, 1), (1, 1), (0, Cp - Cin)))

    kernel = functools.partial(_conv_block_kernel, H=H, W=W, Cp=Cp)

    flops = 2 * 2 * B * H * W * (9 * Cp) * Cp          # 2 convs, 2*M*K*N each
    bytes_accessed = (B * (H + 2) * (W + 2) * Cp * 2   # bf16 input
                      + B * H * W * Cp * 2             # bf16 output
                      + 2 * (9 * Cp * Cp) * 2          # bf16 weights
                      + 2 * Cp * 4)                    # f32 biases

    out = pl.pallas_call(
        kernel,
        out_shape=jax.ShapeDtypeStruct((B, H * W, Cp), jnp.bfloat16),
        grid_spec=pltpu.PrefetchScalarGridSpec(
            num_scalar_prefetch=0,
            grid=(B,),
            in_specs=[
                pl.BlockSpec((None, H + 2, W + 2, Cp), lambda b: (b, 0, 0, 0)),
                pl.BlockSpec((9 * Cp, Cp), lambda b: (0, 0)),
                pl.BlockSpec((1, Cp), lambda b: (0, 0)),
                pl.BlockSpec((9 * Cp, Cp), lambda b: (0, 0)),
                pl.BlockSpec((1, Cp), lambda b: (0, 0)),
            ],
            out_specs=pl.BlockSpec((None, H * W, Cp), lambda b: (b, 0, 0)),
            scratch_shapes=[
                pltpu.VMEM((H + 2, W + 2, Cp), jnp.bfloat16),   # padded h1
            ],
        ),
        compiler_params=pltpu.CompilerParams(
            dimension_semantics=("parallel",),
            vmem_limit_bytes=56 * 1024 * 1024),
        cost_estimate=pl.CostEstimate(flops=flops, transcendentals=0,
                                      bytes_accessed=bytes_accessed),
    )(x_pad, w1, b1, w2, b2)

    out = out.reshape(B, H, W, Cp)[:, :, :, :Cout]     # drop channel padding
    return jnp.transpose(out, (0, 3, 1, 2))            # back to NCHW (bf16)


# ----------------------------------------------------------------------------
# Pure-JAX reference (inference-mode BN), used only for verification
# ----------------------------------------------------------------------------
def ref_forward(x, p):
    def bn(y, stats):
        g, b, m, v = stats
        s = (g / jnp.sqrt(v + BN_EPS))[None, :, None, None]
        return (y - m[None, :, None, None]) * s + b[None, :, None, None]

    dn = ("NCHW", "OIHW", "NCHW")
    y = lax.conv_general_dilated(x, p["conv1_w"], (1, 1), ((1, 1), (1, 1)),
                                 dimension_numbers=dn)
    y = y + p["conv1_b"][None, :, None, None]
    y = jnp.maximum(bn(y, p["bn1"]), 0.0)
    y = lax.conv_general_dilated(y, p["conv2_w"], (1, 1), ((1, 1), (1, 1)),
                                 dimension_numbers=dn)
    y = y + p["conv2_b"][None, :, None, None]
    y = jnp.maximum(bn(y, p["bn2"]), 0.0)
    return y


if __name__ == "__main__":
    key = jax.random.PRNGKey(0)
    B, ch_in, ch_out, H, W = 2, 4, 8, 16, 16

    kp, kx = jax.random.split(key)
    params = init_params(kp, ch_in, ch_out)
    x = jax.random.normal(kx, (B, ch_in, H, W), jnp.float32)

    out = jax.block_until_ready(conv_block_pallas(x, params))
    ref = jax.block_until_ready(ref_forward(x, params))

    assert out.shape == ref.shape == (B, ch_out, H, W)
    # bf16 activations / weights / output with f32 MXU accumulation
    np.testing.assert_allclose(np.asarray(out.astype(jnp.float32)),
                               np.asarray(ref), rtol=3e-2, atol=3e-2)
    print("KERNEL_OK")
</pallas_src>

<mosaic_0001>
module attributes {stable_mosaic.version = 11 : i64} {
  func.func @_conv_block_kernel(%arg0: i32, %arg1: memref<1x18x18x128xbf16, #tpu.memory_space<vmem>>, %arg2: memref<1152x128xbf16, #tpu.memory_space<vmem>>, %arg3: memref<1x128xf32, #tpu.memory_space<vmem>>, %arg4: memref<1152x128xbf16, #tpu.memory_space<vmem>>, %arg5: memref<1x128xf32, #tpu.memory_space<vmem>>, %arg6: memref<1x256x128xbf16, #tpu.memory_space<vmem>>, %arg7: memref<18x18x128xbf16, #tpu.memory_space<vmem>>) attributes {dimension_semantics = [#tpu.dimension_semantics<parallel>], iteration_bounds = array<i64: 2>, scalar_prefetch = 0 : i64, scratch_operands = 1 : i64, tpu.core_type = #tpu.core_type<tc>, window_params = [{transform_indices = @transform_0, window_bounds = array<i64: 1, 18, 18, 128>}, {pipeline_mode = #tpu.pipeline_mode<synchronous>, transform_indices = @transform_1, window_bounds = array<i64: 1152, 128>}, {pipeline_mode = #tpu.pipeline_mode<synchronous>, transform_indices = @transform_2, window_bounds = array<i64: 1, 128>}, {pipeline_mode = #tpu.pipeline_mode<synchronous>, transform_indices = @transform_3, window_bounds = array<i64: 1152, 128>}, {pipeline_mode = #tpu.pipeline_mode<synchronous>, transform_indices = @transform_4, window_bounds = array<i64: 1, 128>}, {transform_indices = @transform_5, window_bounds = array<i64: 1, 256, 128>}]} {
    %c0 = arith.constant 0 : index
    %c0_0 = arith.constant 0 : index
    %0 = vector.load %arg3[%c0, %c0_0] : memref<1x128xf32, #tpu.memory_space<vmem>>, vector<1x128xf32>
    %1 = vector.shape_cast %0 : vector<1x128xf32> to vector<1x128xf32>
    %2 = vector.broadcast %1 : vector<1x128xf32> to vector<256x128xf32>
    %c0_1 = arith.constant 0 : index
    %c0_2 = arith.constant 0 : index
    %c0_3 = arith.constant 0 : index
    %c0_4 = arith.constant 0 : index
    %3 = vector.load %arg1[%c0_1, %c0_2, %c0_3, %c0_4] : memref<1x18x18x128xbf16, #tpu.memory_space<vmem>>, vector<1x16x16x128xbf16>
    %4 = vector.shape_cast %3 : vector<1x16x16x128xbf16> to vector<16x16x128xbf16>
    %5 = vector.shape_cast %4 : vector<16x16x128xbf16> to vector<256x128xbf16>
    %c0_5 = arith.constant 0 : index
    %c0_6 = arith.constant 0 : index
    %6 = vector.load %arg2[%c0_5, %c0_6] : memref<1152x128xbf16, #tpu.memory_space<vmem>>, vector<128x128xbf16>
    %cst = arith.constant dense<0.000000e+00> : vector<256x128xf32>
    %7 = tpu.matmul %5, %6, %cst {dimension_numbers = #tpu.dot_dimension_numbers<[1], [0], [0], [1], [0, 0, 1, 1], [], []>} : vector<256x128xbf16>, vector<128x128xbf16>, vector<256x128xf32> -> vector<256x128xf32>
    %8 = arith.addf %2, %7 : vector<256x128xf32>
    %c0_7 = arith.constant 0 : index
    %c0_8 = arith.constant 0 : index
    %c1 = arith.constant 1 : index
    %c0_9 = arith.constant 0 : index
    %9 = vector.load %arg1[%c0_7, %c0_8, %c1, %c0_9] : memref<1x18x18x128xbf16, #tpu.memory_space<vmem>>, vector<1x16x16x128xbf16>
    %10 = vector.shape_cast %9 : vector<1x16x16x128xbf16> to vector<16x16x128xbf16>
    %11 = vector.shape_cast %10 : vector<16x16x128xbf16> to vector<256x128xbf16>
    %c128 = arith.constant 128 : index
    %c0_10 = arith.constant 0 : index
    %12 = vector.load %arg2[%c128, %c0_10] : memref<1152x128xbf16, #tpu.memory_space<vmem>>, vector<128x128xbf16>
    %cst_11 = arith.constant dense<0.000000e+00> : vector<256x128xf32>
    %13 = tpu.matmul %11, %12, %cst_11 {dimension_numbers = #tpu.dot_dimension_numbers<[1], [0], [0], [1], [0, 0, 1, 1], [], []>} : vector<256x128xbf16>, vector<128x128xbf16>, vector<256x128xf32> -> vector<256x128xf32>
    %14 = arith.addf %8, %13 : vector<256x128xf32>
    %c0_12 = arith.constant 0 : index
    %c0_13 = arith.constant 0 : index
    %c2 = arith.constant 2 : index
    %c0_14 = arith.constant 0 : index
    %15 = vector.load %arg1[%c0_12, %c0_13, %c2, %c0_14] : memref<1x18x18x128xbf16, #tpu.memory_space<vmem>>, vector<1x16x16x128xbf16>
    %16 = vector.shape_cast %15 : vector<1x16x16x128xbf16> to vector<16x16x128xbf16>
    %17 = vector.shape_cast %16 : vector<16x16x128xbf16> to vector<256x128xbf16>
    %c256 = arith.constant 256 : index
    %c0_15 = arith.constant 0 : index
    %18 = vector.load %arg2[%c256, %c0_15] : memref<1152x128xbf16, #tpu.memory_space<vmem>>, vector<128x128xbf16>
    %cst_16 = arith.constant dense<0.000000e+00> : vector<256x128xf32>
    %19 = tpu.matmul %17, %18, %cst_16 {dimension_numbers = #tpu.dot_dimension_numbers<[1], [0], [0], [1], [0, 0, 1, 1], [], []>} : vector<256x128xbf16>, vector<128x128xbf16>, vector<256x128xf32> -> vector<256x128xf32>
    %20 = arith.addf %14, %19 : vector<256x128xf32>
    %c0_17 = arith.constant 0 : index
    %c1_18 = arith.constant 1 : index
    %c0_19 = arith.constant 0 : index
    %c0_20 = arith.constant 0 : index
    %21 = vector.load %arg1[%c0_17, %c1_18, %c0_19, %c0_20] : memref<1x18x18x128xbf16, #tpu.memory_space<vmem>>, vector<1x16x16x128xbf16>
    %22 = vector.shape_cast %21 : vector<1x16x16x128xbf16> to vector<16x16x128xbf16>
    %23 = vector.shape_cast %22 : vector<16x16x128xbf16> to vector<256x128xbf16>
    %c384 = arith.constant 384 : index
    %c0_21 = arith.constant 0 : index
    %24 = vector.load %arg2[%c384, %c0_21] : memref<1152x128xbf16, #tpu.memory_space<vmem>>, vector<128x128xbf16>
    %cst_22 = arith.constant dense<0.000000e+00> : vector<256x128xf32>
    %25 = tpu.matmul %23, %24, %cst_22 {dimension_numbers = #tpu.dot_dimension_numbers<[1], [0], [0], [1], [0, 0, 1, 1], [], []>} : vector<256x128xbf16>, vector<128x128xbf16>, vector<256x128xf32> -> vector<256x128xf32>
    %26 = arith.addf %20, %25 : vector<256x128xf32>
    %c0_23 = arith.constant 0 : index
    %c1_24 = arith.constant 1 : index
    %c1_25 = arith.constant 1 : index
    %c0_26 = arith.constant 0 : index
    %27 = vector.load %arg1[%c0_23, %c1_24, %c1_25, %c0_26] : memref<1x18x18x128xbf16, #tpu.memory_space<vmem>>, vector<1x16x16x128xbf16>
    %28 = vector.shape_cast %27 : vector<1x16x16x128xbf16> to vector<16x16x128xbf16>
    %29 = vector.shape_cast %28 : vector<16x16x128xbf16> to vector<256x128xbf16>
    %c512 = arith.constant 512 : index
    %c0_27 = arith.constant 0 : index
    %30 = vector.load %arg2[%c512, %c0_27] : memref<1152x128xbf16, #tpu.memory_space<vmem>>, vector<128x128xbf16>
    %cst_28 = arith.constant dense<0.000000e+00> : vector<256x128xf32>
    %31 = tpu.matmul %29, %30, %cst_28 {dimension_numbers = #tpu.dot_dimension_numbers<[1], [0], [0], [1], [0, 0, 1, 1], [], []>} : vector<256x128xbf16>, vector<128x128xbf16>, vector<256x128xf32> -> vector<256x128xf32>
    %32 = arith.addf %26, %31 : vector<256x128xf32>
    %c0_29 = arith.constant 0 : index
    %c1_30 = arith.constant 1 : index
    %c2_31 = arith.constant 2 : index
    %c0_32 = arith.constant 0 : index
    %33 = vector.load %arg1[%c0_29, %c1_30, %c2_31, %c0_32] : memref<1x18x18x128xbf16, #tpu.memory_space<vmem>>, vector<1x16x16x128xbf16>
    %34 = vector.shape_cast %33 : vector<1x16x16x128xbf16> to vector<16x16x128xbf16>
    %35 = vector.shape_cast %34 : vector<16x16x128xbf16> to vector<256x128xbf16>
    %c640 = arith.constant 640 : index
    %c0_33 = arith.constant 0 : index
    %36 = vector.load %arg2[%c640, %c0_33] : memref<1152x128xbf16, #tpu.memory_space<vmem>>, vector<128x128xbf16>
    %cst_34 = arith.constant dense<0.000000e+00> : vector<256x128xf32>
    %37 = tpu.matmul %35, %36, %cst_34 {dimension_numbers = #tpu.dot_dimension_numbers<[1], [0], [0], [1], [0, 0, 1, 1], [], []>} : vector<256x128xbf16>, vector<128x128xbf16>, vector<256x128xf32> -> vector<256x128xf32>
    %38 = arith.addf %32, %37 : vector<256x128xf32>
    %c0_35 = arith.constant 0 : index
    %c2_36 = arith.constant 2 : index
    %c0_37 = arith.constant 0 : index
    %c0_38 = arith.constant 0 : index
    %39 = vector.load %arg1[%c0_35, %c2_36, %c0_37, %c0_38] : memref<1x18x18x128xbf16, #tpu.memory_space<vmem>>, vector<1x16x16x128xbf16>
    %40 = vector.shape_cast %39 : vector<1x16x16x128xbf16> to vector<16x16x128xbf16>
    %41 = vector.shape_cast %40 : vector<16x16x128xbf16> to vector<256x128xbf16>
    %c768 = arith.constant 768 : index
    %c0_39 = arith.constant 0 : index
    %42 = vector.load %arg2[%c768, %c0_39] : memref<1152x128xbf16, #tpu.memory_space<vmem>>, vector<128x128xbf16>
    %cst_40 = arith.constant dense<0.000000e+00> : vector<256x128xf32>
    %43 = tpu.matmul %41, %42, %cst_40 {dimension_numbers = #tpu.dot_dimension_numbers<[1], [0], [0], [1], [0, 0, 1, 1], [], []>} : vector<256x128xbf16>, vector<128x128xbf16>, vector<256x128xf32> -> vector<256x128xf32>
    %44 = arith.addf %38, %43 : vector<256x128xf32>
    %c0_41 = arith.constant 0 : index
    %c2_42 = arith.constant 2 : index
    %c1_43 = arith.constant 1 : index
    %c0_44 = arith.constant 0 : index
    %45 = vector.load %arg1[%c0_41, %c2_42, %c1_43, %c0_44] : memref<1x18x18x128xbf16, #tpu.memory_space<vmem>>, vector<1x16x16x128xbf16>
    %46 = vector.shape_cast %45 : vector<1x16x16x128xbf16> to vector<16x16x128xbf16>
    %47 = vector.shape_cast %46 : vector<16x16x128xbf16> to vector<256x128xbf16>
    %c896 = arith.constant 896 : index
    %c0_45 = arith.constant 0 : index
    %48 = vector.load %arg2[%c896, %c0_45] : memref<1152x128xbf16, #tpu.memory_space<vmem>>, vector<128x128xbf16>
    %cst_46 = arith.constant dense<0.000000e+00> : vector<256x128xf32>
    %49 = tpu.matmul %47, %48, %cst_46 {dimension_numbers = #tpu.dot_dimension_numbers<[1], [0], [0], [1], [0, 0, 1, 1], [], []>} : vector<256x128xbf16>, vector<128x128xbf16>, vector<256x128xf32> -> vector<256x128xf32>
    %50 = arith.addf %44, %49 : vector<256x128xf32>
    %c0_47 = arith.constant 0 : index
    %c2_48 = arith.constant 2 : index
    %c2_49 = arith.constant 2 : index
    %c0_50 = arith.constant 0 : index
    %51 = vector.load %arg1[%c0_47, %c2_48, %c2_49, %c0_50] : memref<1x18x18x128xbf16, #tpu.memory_space<vmem>>, vector<1x16x16x128xbf16>
    %52 = vector.shape_cast %51 : vector<1x16x16x128xbf16> to vector<16x16x128xbf16>
    %53 = vector.shape_cast %52 : vector<16x16x128xbf16> to vector<256x128xbf16>
    %c1024 = arith.constant 1024 : index
    %c0_51 = arith.constant 0 : index
    %54 = vector.load %arg2[%c1024, %c0_51] : memref<1152x128xbf16, #tpu.memory_space<vmem>>, vector<128x128xbf16>
    %cst_52 = arith.constant dense<0.000000e+00> : vector<256x128xf32>
    %55 = tpu.matmul %53, %54, %cst_52 {dimension_numbers = #tpu.dot_dimension_numbers<[1], [0], [0], [1], [0, 0, 1, 1], [], []>} : vector<256x128xbf16>, vector<128x128xbf16>, vector<256x128xf32> -> vector<256x128xf32>
    %56 = arith.addf %50, %55 : vector<256x128xf32>
    %cst_53 = arith.constant 0.000000e+00 : f32
    %57 = vector.broadcast %cst_53 : f32 to vector<256x128xf32>
    %58 = arith.maximumf %56, %57 : vector<256x128xf32>
    %cst_54 = arith.constant 0.000000e+00 : bf16
    %59 = vector.broadcast %cst_54 : bf16 to vector<1x18x128xbf16>
    %c0_55 = arith.constant 0 : index
    %c0_56 = arith.constant 0 : index
    %c0_57 = arith.constant 0 : index
    %60 = vector.load %arg7[%c0_55, %c0_56, %c0_57] : memref<18x18x128xbf16, #tpu.memory_space<vmem>>, vector<1x18x128xbf16>
    tpu.vector_store %arg7[%c0_55, %c0_56, %c0_57], %59 {strides = array<i32>} : memref<18x18x128xbf16, #tpu.memory_space<vmem>>, vector<1x18x128xbf16>,
    %c17 = arith.constant 17 : index
    %c0_58 = arith.constant 0 : index
    %c0_59 = arith.constant 0 : index
    %61 = vector.load %arg7[%c17, %c0_58, %c0_59] : memref<18x18x128xbf16, #tpu.memory_space<vmem>>, vector<1x18x128xbf16>
    tpu.vector_store %arg7[%c17, %c0_58, %c0_59], %59 {strides = array<i32>} : memref<18x18x128xbf16, #tpu.memory_space<vmem>>, vector<1x18x128xbf16>,
    %cst_60 = arith.constant 0.000000e+00 : bf16
    %62 = vector.broadcast %cst_60 : bf16 to vector<16x1x128xbf16>
    %c1_61 = arith.constant 1 : index
    %c0_62 = arith.constant 0 : index
    %c0_63 = arith.constant 0 : index
    %63 = vector.load %arg7[%c1_61, %c0_62, %c0_63] : memref<18x18x128xbf16, #tpu.memory_space<vmem>>, vector<16x1x128xbf16>
    tpu.vector_store %arg7[%c1_61, %c0_62, %c0_63], %62 {strides = array<i32>} : memref<18x18x128xbf16, #tpu.memory_space<vmem>>, vector<16x1x128xbf16>,
    %c1_64 = arith.constant 1 : index
    %c17_65 = arith.constant 17 : index
    %c0_66 = arith.constant 0 : index
    %64 = vector.load %arg7[%c1_64, %c17_65, %c0_66] : memref<18x18x128xbf16, #tpu.memory_space<vmem>>, vector<16x1x128xbf16>
    tpu.vector_store %arg7[%c1_64, %c17_65, %c0_66], %62 {strides = array<i32>} : memref<18x18x128xbf16, #tpu.memory_space<vmem>>, vector<16x1x128xbf16>,
    %65 = arith.truncf %58 : vector<256x128xf32> to vector<256x128xbf16>
    %66 = vector.shape_cast %65 : vector<256x128xbf16> to vector<16x16x128xbf16>
    %c1_67 = arith.constant 1 : index
    %c1_68 = arith.constant 1 : index
    %c0_69 = arith.constant 0 : index
    %67 = vector.load %arg7[%c1_67, %c1_68, %c0_69] : memref<18x18x128xbf16, #tpu.memory_space<vmem>>, vector<16x16x128xbf16>
    tpu.vector_store %arg7[%c1_67, %c1_68, %c0_69], %66 {strides = array<i32>} : memref<18x18x128xbf16, #tpu.memory_space<vmem>>, vector<16x16x128xbf16>,
    %c0_70 = arith.constant 0 : index
    %c0_71 = arith.constant 0 : index
    %68 = vector.load %arg5[%c0_70, %c0_71] : memref<1x128xf32, #tpu.memory_space<vmem>>, vector<1x128xf32>
    %69 = vector.shape_cast %68 : vector<1x128xf32> to vector<1x128xf32>
    %70 = vector.broadcast %69 : vector<1x128xf32> to vector<256x128xf32>
    %c0_72 = arith.constant 0 : index
    %c0_73 = arith.constant 0 : index
    %c0_74 = arith.constant 0 : index
    %71 = vector.load %arg7[%c0_72, %c0_73, %c0_74] : memref<18x18x128xbf16, #tpu.memory_space<vmem>>, vector<16x16x128xbf16>
    %72 = vector.shape_cast %71 : vector<16x16x128xbf16> to vector<256x128xbf16>
    %c0_75 = arith.constant 0 : index
    %c0_76 = arith.constant 0 : index
    %73 = vector.load %arg4[%c0_75, %c0_76] : memref<1152x128xbf16, #tpu.memory_space<vmem>>, vector<128x128xbf16>
    %cst_77 = arith.constant dense<0.000000e+00> : vector<256x128xf32>
    %74 = tpu.matmul %72, %73, %cst_77 {dimension_numbers = #tpu.dot_dimension_numbers<[1], [0], [0], [1], [0, 0, 1, 1], [], []>} : vector<256x128xbf16>, vector<128x128xbf16>, vector<256x128xf32> -> vector<256x128xf32>
    %75 = arith.addf %70, %74 : vector<256x128xf32>
    %c0_78 = arith.constant 0 : index
    %c1_79 = arith.constant 1 : index
    %c0_80 = arith.constant 0 : index
    %76 = vector.load %arg7[%c0_78, %c1_79, %c0_80] : memref<18x18x128xbf16, #tpu.memory_space<vmem>>, vector<16x16x128xbf16>
    %77 = vector.shape_cast %76 : vector<16x16x128xbf16> to vector<256x128xbf16>
    %c128_81 = arith.constant 128 : index
    %c0_82 = arith.constant 0 : index
    %78 = vector.load %arg4[%c128_81, %c0_82] : memref<1152x128xbf16, #tpu.memory_space<vmem>>, vector<128x128xbf16>
    %cst_83 = arith.constant dense<0.000000e+00> : vector<256x128xf32>
    %79 = tpu.matmul %77, %78, %cst_83 {dimension_numbers = #tpu.dot_dimension_numbers<[1], [0], [0], [1], [0, 0, 1, 1], [], []>} : vector<256x128xbf16>, vector<128x128xbf16>, vector<256x128xf32> -> vector<256x128xf32>
    %80 = arith.addf %75, %79 : vector<256x128xf32>
    %c0_84 = arith.constant 0 : index
    %c2_85 = arith.constant 2 : index
    %c0_86 = arith.constant 0 : index
    %81 = vector.load %arg7[%c0_84, %c2_85, %c0_86] : memref<18x18x128xbf16, #tpu.memory_space<vmem>>, vector<16x16x128xbf16>
    %82 = vector.shape_cast %81 : vector<16x16x128xbf16> to vector<256x128xbf16>
    %c256_87 = arith.constant 256 : index
    %c0_88 = arith.constant 0 : index
    %83 = vector.load %arg4[%c256_87, %c0_88] : memref<1152x128xbf16, #tpu.memory_space<vmem>>, vector<128x128xbf16>
    %cst_89 = arith.constant dense<0.000000e+00> : vector<256x128xf32>
    %84 = tpu.matmul %82, %83, %cst_89 {dimension_numbers = #tpu.dot_dimension_numbers<[1], [0], [0], [1], [0, 0, 1, 1], [], []>} : vector<256x128xbf16>, vector<128x128xbf16>, vector<256x128xf32> -> vector<256x128xf32>
    %85 = arith.addf %80, %84 : vector<256x128xf32>
    %c1_90 = arith.constant 1 : index
    %c0_91 = arith.constant 0 : index
    %c0_92 = arith.constant 0 : index
    %86 = vector.load %arg7[%c1_90, %c0_91, %c0_92] : memref<18x18x128xbf16, #tpu.memory_space<vmem>>, vector<16x16x128xbf16>
    %87 = vector.shape_cast %86 : vector<16x16x128xbf16> to vector<256x128xbf16>
    %c384_93 = arith.constant 384 : index
    %c0_94 = arith.constant 0 : index
    %88 = vector.load %arg4[%c384_93, %c0_94] : memref<1152x128xbf16, #tpu.memory_space<vmem>>, vector<128x128xbf16>
    %cst_95 = arith.constant dense<0.000000e+00> : vector<256x128xf32>
    %89 = tpu.matmul %87, %88, %cst_95 {dimension_numbers = #tpu.dot_dimension_numbers<[1], [0], [0], [1], [0, 0, 1, 1], [], []>} : vector<256x128xbf16>, vector<128x128xbf16>, vector<256x128xf32> -> vector<256x128xf32>
    %90 = arith.addf %85, %89 : vector<256x128xf32>
    %c1_96 = arith.constant 1 : index
    %c1_97 = arith.constant 1 : index
    %c0_98 = arith.constant 0 : index
    %91 = vector.load %arg7[%c1_96, %c1_97, %c0_98] : memref<18x18x128xbf16, #tpu.memory_space<vmem>>, vector<16x16x128xbf16>
    %92 = vector.shape_cast %91 : vector<16x16x128xbf16> to vector<256x128xbf16>
    %c512_99 = arith.constant 512 : index
    %c0_100 = arith.constant 0 : index
    %93 = vector.load %arg4[%c512_99, %c0_100] : memref<1152x128xbf16, #tpu.memory_space<vmem>>, vector<128x128xbf16>
    %cst_101 = arith.constant dense<0.000000e+00> : vector<256x128xf32>
    %94 = tpu.matmul %92, %93, %cst_101 {dimension_numbers = #tpu.dot_dimension_numbers<[1], [0], [0], [1], [0, 0, 1, 1], [], []>} : vector<256x128xbf16>, vector<128x128xbf16>, vector<256x128xf32> -> vector<256x128xf32>
    %95 = arith.addf %90, %94 : vector<256x128xf32>
    %c1_102 = arith.constant 1 : index
    %c2_103 = arith.constant 2 : index
    %c0_104 = arith.constant 0 : index
    %96 = vector.load %arg7[%c1_102, %c2_103, %c0_104] : memref<18x18x128xbf16, #tpu.memory_space<vmem>>, vector<16x16x128xbf16>
    %97 = vector.shape_cast %96 : vector<16x16x128xbf16> to vector<256x128xbf16>
    %c640_105 = arith.constant 640 : index
    %c0_106 = arith.constant 0 : index
    %98 = vector.load %arg4[%c640_105, %c0_106] : memref<1152x128xbf16, #tpu.memory_space<vmem>>, vector<128x128xbf16>
    %cst_107 = arith.constant dense<0.000000e+00> : vector<256x128xf32>
    %99 = tpu.matmul %97, %98, %cst_107 {dimension_numbers = #tpu.dot_dimension_numbers<[1], [0], [0], [1], [0, 0, 1, 1], [], []>} : vector<256x128xbf16>, vector<128x128xbf16>, vector<256x128xf32> -> vector<256x128xf32>
    %100 = arith.addf %95, %99 : vector<256x128xf32>
    %c2_108 = arith.constant 2 : index
    %c0_109 = arith.constant 0 : index
    %c0_110 = arith.constant 0 : index
    %101 = vector.load %arg7[%c2_108, %c0_109, %c0_110] : memref<18x18x128xbf16, #tpu.memory_space<vmem>>, vector<16x16x128xbf16>
    %102 = vector.shape_cast %101 : vector<16x16x128xbf16> to vector<256x128xbf16>
    %c768_111 = arith.constant 768 : index
    %c0_112 = arith.constant 0 : index
    %103 = vector.load %arg4[%c768_111, %c0_112] : memref<1152x128xbf16, #tpu.memory_space<vmem>>, vector<128x128xbf16>
    %cst_113 = arith.constant dense<0.000000e+00> : vector<256x128xf32>
    %104 = tpu.matmul %102, %103, %cst_113 {dimension_numbers = #tpu.dot_dimension_numbers<[1], [0], [0], [1], [0, 0, 1, 1], [], []>} : vector<256x128xbf16>, vector<128x128xbf16>, vector<256x128xf32> -> vector<256x128xf32>
    %105 = arith.addf %100, %104 : vector<256x128xf32>
    %c2_114 = arith.constant 2 : index
    %c1_115 = arith.constant 1 : index
    %c0_116 = arith.constant 0 : index
    %106 = vector.load %arg7[%c2_114, %c1_115, %c0_116] : memref<18x18x128xbf16, #tpu.memory_space<vmem>>, vector<16x16x128xbf16>
    %107 = vector.shape_cast %106 : vector<16x16x128xbf16> to vector<256x128xbf16>
    %c896_117 = arith.constant 896 : index
    %c0_118 = arith.constant 0 : index
    %108 = vector.load %arg4[%c896_117, %c0_118] : memref<1152x128xbf16, #tpu.memory_space<vmem>>, vector<128x128xbf16>
    %cst_119 = arith.constant dense<0.000000e+00> : vector<256x128xf32>
    %109 = tpu.matmul %107, %108, %cst_119 {dimension_numbers = #tpu.dot_dimension_numbers<[1], [0], [0], [1], [0, 0, 1, 1], [], []>} : vector<256x128xbf16>, vector<128x128xbf16>, vector<256x128xf32> -> vector<256x128xf32>
    %110 = arith.addf %105, %109 : vector<256x128xf32>
    %c2_120 = arith.constant 2 : index
    %c2_121 = arith.constant 2 : index
    %c0_122 = arith.constant 0 : index
    %111 = vector.load %arg7[%c2_120, %c2_121, %c0_122] : memref<18x18x128xbf16, #tpu.memory_space<vmem>>, vector<16x16x128xbf16>
    %112 = vector.shape_cast %111 : vector<16x16x128xbf16> to vector<256x128xbf16>
    %c1024_123 = arith.constant 1024 : index
    %c0_124 = arith.constant 0 : index
    %113 = vector.load %arg4[%c1024_123, %c0_124] : memref<1152x128xbf16, #tpu.memory_space<vmem>>, vector<128x128xbf16>
    %cst_125 = arith.constant dense<0.000000e+00> : vector<256x128xf32>
    %114 = tpu.matmul %112, %113, %cst_125 {dimension_numbers = #tpu.dot_dimension_numbers<[1], [0], [0], [1], [0, 0, 1, 1], [], []>} : vector<256x128xbf16>, vector<128x128xbf16>, vector<256x128xf32> -> vector<256x128xf32>
    %115 = arith.addf %110, %114 : vector<256x128xf32>
    %cst_126 = arith.constant 0.000000e+00 : f32
    %116 = vector.broadcast %cst_126 : f32 to vector<256x128xf32>
    %117 = arith.maximumf %115, %116 : vector<256x128xf32>
    %118 = arith.truncf %117 : vector<256x128xf32> to vector<256x128xbf16>
    %c0_127 = arith.constant 0 : index
    %c0_128 = arith.constant 0 : index
    %c0_129 = arith.constant 0 : index
    %119 = vector.load %arg6[%c0_127, %c0_128, %c0_129] : memref<1x256x128xbf16, #tpu.memory_space<vmem>>, vector<1x256x128xbf16>
    %120 = vector.shape_cast %119 : vector<1x256x128xbf16> to vector<256x128xbf16>
    %121 = vector.shape_cast %118 : vector<256x128xbf16> to vector<1x256x128xbf16>
    tpu.vector_store %arg6[%c0_127, %c0_128, %c0_129], %121 {strides = array<i32>} : memref<1x256x128xbf16, #tpu.memory_space<vmem>>, vector<1x256x128xbf16>,
    return
  }
  func.func @transform_0(%arg0: i32) -> (i32, i32, i32, i32) {
    %c0_i32 = arith.constant 0 : i32
    %c0_i32_0 = arith.constant 0 : i32
    %c0_i32_1 = arith.constant 0 : i32
    %c0_i32_2 = arith.constant 0 : i32
    return %arg0, %c0_i32, %c0_i32_0, %c0_i32_1 : i32, i32, i32, i32
  }
  func.func @transform_1(%arg0: i32) -> (i32, i32) {
    %c0_i32 = arith.constant 0 : i32
    %c0_i32_0 = arith.constant 0 : i32
    %c0_i32_1 = arith.constant 0 : i32
    return %c0_i32, %c0_i32_0 : i32, i32
  }
  func.func @transform_2(%arg0: i32) -> (i32, i32) {
    %c0_i32 = arith.constant 0 : i32
    %c0_i32_0 = arith.constant 0 : i32
    %c0_i32_1 = arith.constant 0 : i32
    return %c0_i32, %c0_i32_0 : i32, i32
  }
  func.func @transform_3(%arg0: i32) -> (i32, i32) {
    %c0_i32 = arith.constant 0 : i32
    %c0_i32_0 = arith.constant 0 : i32
    %c0_i32_1 = arith.constant 0 : i32
    return %c0_i32, %c0_i32_0 : i32, i32
  }
  func.func @transform_4(%arg0: i32) -> (i32, i32) {
    %c0_i32 = arith.constant 0 : i32
    %c0_i32_0 = arith.constant 0 : i32
    %c0_i32_1 = arith.constant 0 : i32
    return %c0_i32, %c0_i32_0 : i32, i32
  }
  func.func @transform_5(%arg0: i32) -> (i32, i32, i32) {
    %c0_i32 = arith.constant 0 : i32
    %c0_i32_0 = arith.constant 0 : i32
    %c0_i32_1 = arith.constant 0 : i32
    return %arg0, %c0_i32, %c0_i32_0 : i32, i32, i32
  }
}

</mosaic_0001>

<bundles_post_ra>
// kernel: tpu_custom_call.1
= control target key start
LH: loop header
LB: loop body
LE: loop exit
PB: predicated region body
PF: predicated region fallthrough
CT: control target
= control target key end

     0   :  { %10 = vsyncpa [#allocation4], 0  ;;  %s18177_s0 = inlined_call_operand.vmem [shape: bf16[2,18,18,128], index: 0, kind: input, shape index: {}]   ;;  %s18178_s1 = inlined_call_operand.vmem [shape: bf16[1152,128], index: 1, kind: input, shape index: {}]   ;;  %s18179_s2 = inlined_call_operand.vmem [shape: f32[1,128], index: 2, kind: input, shape index: {}]   ;;  %s18180_s3 = inlined_call_operand.hbm [shape: bf16[1152,128], index: 3, kind: input, shape index: {}]   ;;  %s18181_s4 = inlined_call_operand.vmem [shape: f32[1,128], index: 4, kind: input, shape index: {}]   ;;  %s18182_s5 = inlined_call_operand.hbm [shape: bf16[2,256,128], index: 5, kind: output, shape index: {}]  }
   0x1   :  { %11 = vsyncpa [#allocation5], 0 }
   0x2   :  { %13 = vsyncpa [#allocation5 + $0x1], 0  ;;  %s14302_s18 = smov 0   ;;  %s14304_s19 = smov 0  }
   0x3   :  { %s14306_s20 = smov 0   ;;  %s14308_s21 = smov 0  }
   0x4 LB: > { %s14323_s22 = sadd.s32 4294967295, %s14263_s21   ;;  %s11025_s23 = sadd.s32 4294967294, %s14263_s21   ;;  %s14263_s21 = sphi %s14308_s21, %s18615_s21   ;;  %s14259_s20 = sphi %s14306_s20, %s18614_s20   ;;  %s14255_s19 = sphi %s14304_s19, %s18613_s19   ;;  %s14251_s18 = sphi %s14302_s18, %s18612_s18  }
   0x5   : > { %s14327_s24 = sadd.s32 1, %s14263_s21   ;;  %s136_s25 = sadd.s32 1, %s14259_s20 }
   0x6   : > { %s133_s26 = ssub.s32 %s14263_s21, %s14327_s24  ;;  %p146_p0 = scmp.ne.s32.totalorder %s14259_s20, %s14255_s19 }
   0x7   : > { %p134_p1 = scmp.eq.s32.totalorder %s133_s26, 0  ;;  %p147_p2 = scmp.eq.s32.totalorder %s14323_s22, 1 }
   0x8   : > { %p152_p3 = scmp.ne.s32.totalorder %s14255_s19, %s14251_s18  ;;  %p153_p4 = scmp.eq.s32.totalorder %s11025_s23, 1 }
   0x9   : > { %s14338_s27 = scalar_select %p134_p1, %s14259_s20, %s136_s25  }
   0xa   : > { %p14340_p5 = por %p147_p2, %p146_p0  ;;  %p14344_p6 = por %p153_p4, %p152_p3 }
   0xb   : > { %p11026_p7 = scmp.ge.s32.totalorder %s14263_s21, 1  ;;  %p160_p8 = scmp.lt.s32.totalorder %s14263_s21, 3 }
   0xc   : > { %s18296_s28 = scalar_select %p14340_p5, 1, 0 }
   0xd   : > { %s18297_s29 = scalar_select %p14344_p6, 1, 0 }
   0xe   : > { %p18183_p9 = scmp.eq.s32.totalorder %s14323_s22, 0  ;;  %p14351_p10 = pnand %p11026_p7, %p160_p8 }
   0xf   : > { %s14265_s6 = smov [#allocation3]   ;;  %s14169_s11 = scalar_lea.hbm %s18180_s3, 9216 }
  0x10   : > { %s18298_s30 = scalar_select %p14351_p10, 1, 0 }
  0x11   : > { %s178_s7 = sshll.u32 %s14265_s6, 4  ;;  %p13863_p11 = pneg %p14351_p10  ;;  %s179_s7 = int_to_ptr.vmem [resolvable:$true] %s178_s7 }
  0x12   : > { %p14170_p13 = scmp.ne.s32.totalorder %s18180_s3, %s14169_s11  ;;  %p14176_p3 = scmp.lt.u32.totalorder %s14169_s11, %s18180_s3 }
  0x13   : > { %p14359_p12 = pnand %p18183_p9, %p13863_p11 }
  0x15   : > { %p14171_p0 = pneg %p14359_p12 }
  0x17   : > { %p14172_p1 = pnand %p14171_p0, %p14170_p13 }
  0x19   : > { %p14173_p2 = pneg %p14172_p1 }
  0x1b   : > { %p14178_p4 = pnand %p14176_p3, %p14173_p2 }
  0x1d   : > { %14181 = shalt.err (!%p14178_p4)
}
  0x1e   : > { %s14182_s16 = scalar_lea.vmem %s179_s7, 9216  ;;  %p14190_p9 = scmp.lt.s32.totalorder %s179_s7, %s179_s7 }
  0x1f   : > { %p14183_p7 = scmp.ne.s32.totalorder %s179_s7, %s14182_s16  ;;  %p14191_p6 = scmp.lt.s32.totalorder %s14182_s16, %s14182_s16 }
  0x21   : > { %p14185_p8 = pnand %p14183_p7, %p14171_p0  ;;  %p14192_p5 = por %p14191_p6, %p14190_p9 }
  0x23   : > { %p14186_p11 = pneg %p14185_p8 }
  0x25   : > { %p14193_p10 = pnand %p14192_p5, %p14186_p11 }
  0x27   : > { %14196 = shalt.err (!%p14193_p10)
}
  0x28   : > { %s14266_s17 = smov 64   ;;  %s14267_s23 = smov 4  }
  0x29   : > { %13866 = dma.hbm_to_vmem [thread:$0]  (!%p14359_p12), %s18180_s3, 9216, %s179_s7, [#allocation4], %s14266_s17, %s14266_s17, %s14267_s23  }
  0x2a   : > { %p18300_p13 = scmp.ne.s32.totalorder %s18298_s30, 0 }
  0x2c   : > { %205 = sbr.rel (%p18300_p13) target bundleno = 1653 (0x675), region = 40 }
  0x33   : > { %p18301_p1 = scmp.eq.s32.totalorder %s14323_s22, 0 }
  0x35   : > { %14242 = dma.done.wait (%p18301_p1), [#allocation4], 9216   ;;  %p18302_p0 = pmov %p18301_p1 }
  0x36   : > { %p233_p5 = scmp.lt.s32.totalorder %s14323_s22, 1  ;;  %v13912_v0 = vld [vmem:[%s18178_s1] sm:$0xff]   ;;  %v13913_v1 = vld [vmem:[%s18178_s1 + $0x8] sm:$0xff]   ;;  %v13914_v2 = vld [vmem:[%s18178_s1 + $0x10] sm:$0xff]   ;;  %vm679_vm0 = vsmask.f32 3328 }
  0x37   : > { %14244 = vsyncadd (%p18302_p0), [#allocation4], 4294958080  ;;  %12416 = vmatprep.subr.bf16.mxu0 %v13912_v0  ;;  %v13915_v3 = vld [vmem:[%s18178_s1 + $0x18] sm:$0xff]   ;;  %v13916_v5 = vld [vmem:[%s18178_s1 + $0x20] sm:$0xff]   ;;  %vm680_vm1 = vsmask.f32 7440 }
  0x38   : > { %s234_s6 = scalar_select %p233_p5, %s14323_s22, 1  ;;  %12417 = vmatpush3.bf16.msra.mxu0 %v13912_v0  ;;  %v13917_v6 = vld [vmem:[%s18178_s1 + $0x28] sm:$0xff]   ;;  %v13918_v7 = vld [vmem:[%s18178_s1 + $0x30] sm:$0xff]   ;;  %v13919_v8 = vld [vmem:[%s18178_s1 + $0x38] sm:$0xff]   ;;  %vm1451_vm3 = vcmask 1042432   ;;  %vm1452_vm4 = vcmask 1046532  }
  0x39   : > { %12418 = vmatprep.subr.bf16.mxu0 %v13913_v1  ;;  %v13922_v9 = vld [vmem:[%s18178_s1 + $0x40] sm:$0xff]   ;;  %v13925_v12 = vld [vmem:[%s18178_s1 + $0x48] sm:$0xff]   ;;  %v13928_v15 = vld [vmem:[%s18178_s1 + $0x50] sm:$0xff]   ;;  %vm5199_vm6 = vcmask 1040384   ;;  %vm5200_vm7 = vsmask.f32 256 }
  0x3a   : > { %s13856_s30 = smul.u32 216, %s234_s6  ;;  %v13931_v24 = vld [vmem:[%s18178_s1 + $0x58] sm:$0xff]   ;;  %v13934_v35 = vld [vmem:[%s18178_s1 + $0x60] sm:$0xff]   ;;  %v13937_v55 = vld [vmem:[%s18178_s1 + $0x68] sm:$0xff]   ;;  %vm5250_vm9 = vsmask.f32 7938 }
  0x3b   : > { %vm14471_vm2 = vmor %vm679_vm0, %vm680_vm1  ;;  %vm5718_vm11 = vcmask 1043456   ;;  %vm5396_vm12 = vsmask.f32 4368  ;;  %s230_s9 = sand.u32 1, %s14255_s19   ;;  %s11888_s11 = sshll.u32 %s14323_s22, 11 }
  0x3c   : > { %s14399_s15 = scalar_lea.vmem %s18177_s0, %s13856_s30  ;;  %12419 = vmatpush3.bf16.msra.mxu0 %v13913_v1  ;;  %vm14813_vm5 = vmor %vm1451_vm3, %vm1452_vm4  ;;  %s11031_s10 = sshll.u32 %s230_s9, 7 }
  0x3d   : > { %12420 = vmatprep.subr.bf16.mxu0 %v13914_v2  ;;  %v13920_v4 = vld [vmem:[%s14399_s15] sm:$0xff]   ;;  %v13921_v10 = vld [vmem:[%s14399_s15 + $0xc] sm:$0xff]   ;;  %v13923_v11 = vld [vmem:[%s14399_s15 + $0x18] sm:$0xff]   ;;  %s18079_s8 = scalar_lea.vmem [#allocation6], %s11031_s10  ;;  %s18128_s13 = scalar_lea.hbm %s18182_s5, %s11888_s11 }
  0x3e   : > { %12432 = vmatprep.mubr.bf16.mxu0 %v13920_v4  ;;  %v631_v13 = vld [vmem:[%s14399_s15] sm:$0xf]  ;;  %v632_v14 = vld [vmem:[%s14399_s15 + $0x4] sm:$0xf]  ;;  %v634_v18 = vld [vmem:[%s14399_s15 + $0xc] sm:$0xf] }
  0x3f   : > { %v683_v16 = vshrl.u32 %v631_v13, 16  ;;  %v686_v17 = vshll.u32 %v631_v13, 16  ;;  %v635_v19 = vld [vmem:[%s14399_s15 + $0x10] sm:$0xf]  ;;  %v13924_v20 = vld [vmem:[%s14399_s15 + $0x24] sm:$0xff]   ;;  %v692_v21 = vshll.u32 %v632_v14, 16  ;;  %vm16379_vm8 = vmand %vm5199_vm6, %vm5200_vm7 }
  0x40   : > { %12421 = vmatpush3.bf16.msra.mxu0 %v13914_v2  ;;  %v696_v22 = vshrl.u32 %v632_v14, 16  ;;  %v13926_v23 = vld [vmem:[%s14399_s15 + $0x30] sm:$0xff]   ;;  %v707_v25 = vshrl.u32 %v634_v18, 16  ;;  %v710_v26 = vshll.u32 %v634_v18, 16  ;;  %v716_v27 = vshll.u32 %v635_v19, 16  ;;  %v13927_v46 = vld [vmem:[%s14399_s15 + $0x3c] sm:$0xff]   ;;  %vm16386_vm10 = vmand %vm5199_vm6, %vm5250_vm9 }
  0x41   : > { %12422 = vmatprep.subr.bf16.mxu0 %v13915_v3  ;;  %v720_v28 = vshrl.u32 %v635_v19, 16  ;;  %v637_v29 = vld [vmem:[%s14399_s15 + $0x18] sm:$0xf]  ;;  %v685_v30 = vrot.slane %v683_v16, 4  ;;  %v688_v31 = vrot.slane %v686_v17, 5  ;;  %v14438_v32 = vrot.slane %v692_v21, 5  ;;  %vm16474_vm13 = vmand %vm5718_vm11, %vm5250_vm9 }
  0x42   : > { %v698_v33 = vrot.slane %v696_v22, 4  ;;  %v14441_v34 = vld [vmem:[%s14399_s15 + $0x1c] sm:$0xf]  ;;  %v633_v36 = vld [vmem:[%s14399_s15 + $0x8] sm:$0x1]  ;;  %v731_v37 = vshrl.u32 %v637_v29, 16  ;;  %vm16481_vm14 = vmor %vm5200_vm7, %vm5396_vm12 }
  0x43   : > { %v734_v38 = vshll.u32 %v637_v29, 16  ;;  %v636_v39 = vld [vmem:[%s14399_s15 + $0x14] sm:$0x1]  ;;  %v709_v40 = vrot.slane %v707_v25, 4  ;;  %v712_v41 = vrot.slane %v710_v26, 5  ;;  %v14448_v42 = vrot.slane %v716_v27, 5 }
  0x44   : > { %12423 = vmatpush3.bf16.msra.mxu0 %v13915_v3  ;;  %v722_v43 = vrot.slane %v720_v28, 4  ;;  %v740_v44 = vshll.u32 %v14441_v34, 16  ;;  %v744_v45 = vshrl.u32 %v14441_v34, 16  ;;  %v689_v47 = vor.u32 %v688_v31, %v685_v30  ;;  %v640_v50 = vld [vmem:[%s14399_s15 + $0x24] sm:$0xf]  ;;  %v13929_v51 = vld [vmem:[%s14399_s15 + $0x48] sm:$0xff]  }
  0x45   : > { %12424 = vmatprep.subr.bf16.mxu0 %v13916_v5  ;;  %v699_v48 = vor.u32 %v698_v33, %v14438_v32  ;;  %v702_v49 = vshll.u32 %v633_v36, 16  ;;  %v726_v52 = vshll.u32 %v636_v39, 16  ;;  %v733_v53 = vrot.slane %v731_v37, 4  ;;  %v14461_v58 = vld [vmem:[%s14399_s15 + $0x28] sm:$0xf]  ;;  %v13930_v18 = vld [vmem:[%s14399_s15 + $0x54] sm:$0xff]  }
  0x46   : > { %v736_v54 = vrot.slane %v734_v38, 5  ;;  %v713_v56 = vor.u32 %v712_v41, %v709_v40  ;;  %v723_v57 = vor.u32 %v722_v43, %v14448_v42  ;;  %v14463_v59 = vrot.slane %v740_v44, 5  ;;  %v643_v63 = vld [vmem:[%s14399_s15 + $0x30] sm:$0xf]  ;;  %v14467_v3 = vld [vmem:[%s14399_s15 + $0x20] sm:$0x1] }
  0x47   : > { %v746_v60 = vrot.slane %v744_v45, 4  ;;  %v755_v61 = vshrl.u32 %v640_v50, 16  ;;  %v758_v62 = vshll.u32 %v640_v50, 16  ;;  %v690_v0 = vrot.slane %v689_v47, 4  ;;  %v13932_v21 = vld [vmem:[%s14399_s15 + $0x60] sm:$0xff]   ;;  %v13943_v27 = vld [vmem:[%s18178_s1 + $0x78] sm:$0xff]  }
  0x48   : > { %12425 = vmatpush3.bf16.msra.mxu0 %v13916_v5  ;;  %v700_v1 = vrot.slane %v699_v48, 4  ;;  %v704_v2 = vrot.slane %v702_v49, 5  ;;  %v728_v5 = vrot.slane %v726_v52, 5  ;;  %v782_v13 = vshll.u32 %v643_v63, 16  ;;  %v14495_v26 = vld [vmem:[%s14399_s15 + $0x34] sm:$0xf] }
  0x49   : > { %12426 = vmatprep.subr.bf16.mxu0 %v13917_v6  ;;  %v747_v14 = vor.u32 %v746_v60, %v14463_v59  ;;  %v757_v16 = vrot.slane %v755_v61, 4  ;;  %v760_v17 = vrot.slane %v758_v62, 5  ;;  %v695_v19 = vsel %vm14471_vm2, %v690_v0, %v14438_v32  ;;  %v14506_v36 = vld [vmem:[%s14399_s15 + $0x38] sm:$0x1]  ;;  %v646_v37 = vld [vmem:[%s14399_s15 + $0x3c] sm:$0xf] }
  0x4a   : > { %v705_v22 = vsel %vm14471_vm2, %v700_v1, %v704_v2  ;;  %v784_v31 = vrot.slane %v782_v13, 5  ;;  %v788_v40 = vshll.u32 %v14495_v26, 16  ;;  %v14514_v41 = vld [vmem:[%s14399_s15 + $0x40] sm:$0xf]  ;;  %v14525_v47 = vld [vmem:[%s14399_s15 + $0x4c] sm:$0xf] }
  0x4b   : > { %v748_v32 = vrot.slane %v747_v14, 4  ;;  %v14509_v38 = vcombine.low %v695_v19, %v705_v22  ;;  %v14530_v48 = vld [vmem:[%s18178_s1 + $0x80] sm:$0xff]   ;;  %v798_v50 = vshll.u32 %v14506_v36, 16  ;;  %v806_v52 = vshll.u32 %v646_v37, 16  ;;  %v652_v0 = vld [vmem:[%s14399_s15 + $0x54] sm:$0xf] }
  0x4c   : > { %12427 = vmatpush3.bf16.msra.mxu0 %v13917_v6  ;;  %v737_v6 = vor.u32 %v736_v54, %v733_v53  ;;  %v13933_v53 = vld [vmem:[%s14399_s15 + $0x6c] sm:$0xff]   ;;  %v13935_v54 = vld [vmem:[%s14399_s15 + $0x78] sm:$0xff]   ;;  %v14543_v61 = vrot.slane %v788_v40, 5  ;;  %v655_v13 = vld [vmem:[%s14399_s15 + $0x60] sm:$0xf]  ;;  %v851_v22 = vshrl.u32 %v652_v0, 16 }
  0x4d   : > { %12428 = vmatprep.subr.bf16.mxu0 %v13918_v7  ;;  %s10951_s30 = sshll.u32 %s18079_s8, 4  ;;  %s18136_s22 = scalar_lea.sflag [#allocation5], %s230_s9  ;;  %s18130_s30 = int_to_ptr.vmem [resolvable:$true] %s10951_s30 }
  0x4e   : > { %s14197_s14 = scalar_lea.vmem %s18130_s30, 2048  ;;  %p18610_p9 = scmp.ne.s32.totalorder %s18296_s28, 0 }
  0x4f   : > { %p14198_p6 = scmp.ne.s32.totalorder %s18130_s30, %s14197_s14  ;;  %s14269_s16 = smov [#allocation6]  }
  0x50   : > { %12429 = vmatpush3.bf16.msra.mxu0 %v13918_v7  ;;  %v764_v7 = vshll.u32 %v14461_v58, 16  ;;  %s14201_s17 = sshll.u32 %s14269_s16, 4  ;;  %s14202_s17 = int_to_ptr.vmem [resolvable:$false] %s14201_s17 }
  0x51   : > { %12430 = vmatprep.subr.bf16.mxu0 %v13919_v8  ;;  %p14199_p10 = pnand %p14198_p6, %p18610_p9  ;;  %s14203_s23 = scalar_lea.vmem %s14202_s17, 4096 }
  0x52   : > { %p14204_p2 = scmp.lt.s32.totalorder %s18130_s30, %s14202_s17  ;;  %p14205_p3 = scmp.lt.s32.totalorder %s14203_s23, %s14197_s14 }
  0x53   : > { %p14200_p12 = pneg %p14199_p10 }
  0x54   : > { %12431 = vmatpush3.bf16.msra.mxu0 %v13919_v8  ;;  %v768_v8 = vshrl.u32 %v14461_v58, 16  ;;  %p14206_p4 = por %p14205_p3, %p14204_p2 }
  0x55   : > { %12464 = vmatprep.subr.bf16.mxu0 %v13922_v9 }
  0x56   : > { %v770_v25 = vrot.slane %v768_v8, 4  ;;  %p14207_p7 = pnand %p14206_p4, %p14200_p12 }
  0x57   : > { %12433 = vmatmul.mubr.bf16.vlgmr.msra.gmra.mrb[0].mxu0 %v13921_v10  ;;  %v714_v10 = vrot.slane %v713_v56, 4 }
  0x58   : > { %12465 = vmatpush3.bf16.msra.mxu0 %v13922_v9  ;;  %12436 = vmatprep.mubr.bf16.mxu0 %v13923_v11  ;;  %v13940_v9 = vld [vmem:[%s18178_s1 + $0x70] sm:$0xff]   ;;  %v724_v11 = vrot.slane %v723_v57, 4  ;;  %v812_v57 = vshll.u32 %v14514_v41, 16 }
  0x59   : > { %12466 = vmatprep.subr.bf16.mxu0 %v13925_v12  ;;  %v719_v28 = vsel %vm14471_vm2, %v714_v10, %v14448_v42  ;;  %v649_v42 = vld [vmem:[%s14399_s15 + $0x48] sm:$0xf]  ;;  %v14559_v10 = vld [vmem:[%s14399_s15 + $0x44] sm:$0x1] }
  0x5a   : > { %v729_v29 = vsel %vm14471_vm2, %v724_v11, %v728_v5  ;;  %v827_v62 = vshrl.u32 %v649_v42, 16  ;;  %v836_v5 = vshll.u32 %v14525_v47, 16 }
  0x5b   : > { %v14517_v43 = vcombine.low %v719_v28, %v729_v29 }
  0x5c   : > { %12467 = vmatpush3.bf16.msra.mxu0 %v13925_v12  ;;  %v779_v12 = vshrl.u32 %v643_v63, 16  ;;  %v830_v63 = vshll.u32 %v649_v42, 16  ;;  %v829_v19 = vrot.slane %v827_v62, 4 }
  0x5d   : > { %12468 = vmatprep.subr.bf16.mxu0 %v13928_v15 }
  0x5e   : > { %v781_v30 = vrot.slane %v779_v12, 4  ;;  %v808_v12 = vrot.slane %v806_v52, 5  ;;  %v658_v52 = vld [vmem:[%s14399_s15 + $0x6c] sm:$0xf] }
  0x5f   : > { %12437 = vmatmul.mubr.bf16.gmra.mrb[4].mxu0 %v13924_v20  ;;  %v14487_v20 = vld [vmem:[%s14399_s15 + $0x2c] sm:$0x1] }
  0x60   : > { %12440 = vmatprep.mubr.bf16.mxu0 %v13926_v23  ;;  %12469 = vmatpush3.bf16.msra.mxu0 %v13928_v15  ;;  %v750_v15 = vshll.u32 %v14467_v3, 16  ;;  %v738_v23 = vrot.slane %v737_v6, 4  ;;  %v774_v39 = vshll.u32 %v14487_v20, 16  ;;  %v785_v49 = vor.u32 %v784_v31, %v781_v30 }
  0x61   : > { %12470 = vmatprep.subr.bf16.mxu0 %v13931_v24  ;;  %v840_v6 = vshrl.u32 %v14525_v47, 16  ;;  %v875_v31 = vshrl.u32 %v655_v13, 16 }
  0x62   : > { %v752_v33 = vrot.slane %v750_v15, 5  ;;  %v743_v44 = vsel %vm14471_vm2, %v738_v23, %v14463_v59  ;;  %v816_v59 = vshrl.u32 %v14514_v41, 16  ;;  %v14541_v60 = vrot.slane %v774_v39, 5 }
  0x63   : > { %v14554_v8 = vrot.slane %v785_v49, 4  ;;  %v854_v23 = vshll.u32 %v652_v0, 16  ;;  %v842_v28 = vrot.slane %v840_v6, 4  ;;  %v877_v62 = vrot.slane %v875_v31, 4 }
  0x64   : > { %12471 = vmatpush3.bf16.msra.mxu0 %v13931_v24  ;;  %v14492_v24 = vrot.slane %v764_v7, 5  ;;  %v14551_v7 = vld [vmem:[%s14399_s15 + $0x58] sm:$0xf] }
  0x65   : > { %12472 = vmatprep.subr.bf16.mxu0 %v13934_v35  ;;  %v860_v29 = vshll.u32 %v14551_v7, 16  ;;  %v864_v30 = vshrl.u32 %v14551_v7, 16  ;;  %v791_v31 = vsel %vm14471_vm2, %v14554_v8, %v14543_v61 }
  0x66   : > { %v771_v45 = vor.u32 %v770_v25, %v14492_v24  ;;  %v14574_v25 = vld [vmem:[%s14399_s15 + $0x50] sm:$0x1] }
  0x67   : > { %12441 = vmatmul.mubr.bf16.gmra.mrb[8].mxu0 %v13927_v46  ;;  %v792_v46 = vshrl.u32 %v14495_v26, 16  ;;  %v846_v49 = vshll.u32 %v14574_v25, 16 }
  0x68   : > { %12444 = vmatprep.mubr.bf16.mxu0 %v13929_v51  ;;  %12473 = vmatpush3.bf16.msra.mxu0 %v13934_v35  ;;  %v761_v35 = vor.u32 %v760_v17, %v757_v16  ;;  %v803_v51 = vshrl.u32 %v646_v37, 16  ;;  %v14546_v1 = vrot.slane %v771_v45, 4  ;;  %v14568_v16 = vrot.slane %v812_v57, 5  ;;  %v13936_v37 = vld [vmem:[%s14399_s15 + $0x84] sm:$0xff]   ;;  %v13938_v45 = vld [vmem:[%s14399_s15 + $0x90] sm:$0xff]  }
  0x69   : > { %12474 = vmatprep.subr.bf16.mxu0 %v13937_v55  ;;  %v794_v2 = vrot.slane %v792_v46, 4  ;;  %v818_v17 = vrot.slane %v816_v59, 4  ;;  %v866_v57 = vrot.slane %v864_v30, 4  ;;  %v14597_v59 = vld [vmem:[%s14399_s15 + $0x5c] sm:$0x1] }
  0x6a   : > { %v14537_v56 = vrot.slane %v761_v35, 4  ;;  %v805_v11 = vrot.slane %v803_v51, 4  ;;  %v856_v51 = vrot.slane %v854_v23, 5  ;;  %v13939_v30 = vld [vmem:[%s14399_s15 + $0x9c] sm:$0xff]  }
  0x6b   : > { %v795_v39 = vor.u32 %v794_v2, %v14543_v61  ;;  %v819_v42 = vor.u32 %v818_v17, %v14568_v16 }
  0x6c   : > { %12475 = vmatpush3.bf16.msra.mxu0 %v13937_v55  ;;  %v753_v55 = vsel %vm14471_vm2, %v748_v32, %v752_v33  ;;  %v767_v15 = vsel %vm14471_vm2, %v14537_v56, %v14492_v24  ;;  %v878_v32 = vshll.u32 %v655_v13, 16  ;;  %v809_v40 = vor.u32 %v808_v12, %v805_v11  ;;  %v14602_v11 = vld [vmem:[%s14399_s15 + $0x68] sm:$0x1]  ;;  %v667_v56 = vld [vmem:[%s14399_s15 + $0x90] sm:$0xf] }
  0x6d   : > { %12476 = vmatprep.subr.bf16.mxu0 %v13940_v9  ;;  %v14562_v14 = vcombine.low %v743_v44, %v753_v55  ;;  %v822_v44 = vshll.u32 %v14559_v10, 16  ;;  %v14594_v55 = vrot.slane %v860_v29, 5  ;;  %18306 = vst [vmem:[#allocation10_spill] sm:$0xff] %v14602_v11  ;;  %v899_v12 = vshrl.u32 %v658_v52, 16  ;;  %v14607_v29 = vld [vmem:[%s14399_s15 + $0x70] sm:$0xf] }
  0x6e   : > { %v810_v6 = vrot.slane %v809_v40, 4  ;;  %18307 = vst [vmem:[#allocation11_spill] sm:$0xff] %v14607_v29 }
  0x6f   : > { %12445 = vmatmul.mubr.bf16.gmra.mrb[12].mxu0 %v13930_v18  ;;  %v14571_v18 = vld [vmem:[%s14399_s15 + $0x64] sm:$0xf]  ;;  %v824_v13 = vrot.slane %v822_v44, 5  ;;  %v867_v23 = vor.u32 %v866_v57, %v14594_v55  ;;  %v901_v40 = vrot.slane %v899_v12, 4  ;;  %v661_v44 = vld [vmem:[%s14399_s15 + $0x78] sm:$0xf] }
  0x70   : > { %12448 = vmatprep.mubr.bf16.mxu0 %v13932_v21  ;;  %12477 = vmatpush3.bf16.msra.mxu0 %v13940_v9  ;;  %v14556_v9 = vrot.slane %v798_v50, 5  ;;  %18305 = vst [vmem:[#allocation9_spill] sm:$0xff] %v14571_v18  ;;  %v832_v21 = vrot.slane %v830_v63, 5  ;;  %v884_v33 = vshll.u32 %v14571_v18, 16  ;;  %v888_v35 = vshrl.u32 %v14571_v18, 16 }
  0x71   : > { %12478 = vmatprep.subr.bf16.mxu0 %v13943_v27  ;;  %v853_v50 = vrot.slane %v851_v22, 4  ;;  %v880_v63 = vrot.slane %v878_v32, 5 }
  0x72   : > { %v833_v46 = vor.u32 %v832_v21, %v829_v19  ;;  %v14599_v0 = vrot.slane %v884_v33, 5  ;;  %v890_v2 = vrot.slane %v888_v35, 4  ;;  %v848_v19 = vrot.slane %v846_v49, 5  ;;  %v13941_v49 = vld [vmem:[%s14399_s15 + $0xa8] sm:$0xff]  }
  0x73   : > { %v857_v22 = vor.u32 %v856_v51, %v853_v50  ;;  %v881_v32 = vor.u32 %v880_v63, %v877_v62  ;;  %v894_v35 = vshll.u32 %v14602_v11, 16  ;;  %v14638_v51 = vrot.slane %v867_v23, 4 }
  0x74   : > { %12479 = vmatpush3.bf16.msra.mxu0 %v13943_v27  ;;  %v14576_v27 = vrot.slane %v836_v5, 5  ;;  %v796_v5 = vrot.slane %v795_v39, 4  ;;  %v834_v17 = vrot.slane %v833_v46, 4  ;;  %v891_v33 = vor.u32 %v890_v2, %v14599_v0 }
  0x75   : > { %12512 = vmatprep.subr.bf16.mxu0 %v14530_v48  ;;  %v815_v39 = vsel %vm14471_vm2, %v810_v6, %v14568_v16  ;;  %v912_v46 = vshrl.u32 %v14607_v29, 16  ;;  %v14636_v50 = vrot.slane %v857_v22, 4  ;;  %v14649_v62 = vrot.slane %v894_v35, 5  ;;  %v670_v35 = vld [vmem:[%s14399_s15 + $0x9c] sm:$0xf] }
  0x76   : > { %v839_v8 = vsel %vm14471_vm2, %v834_v17, %v14576_v27  ;;  %v14647_v57 = vrot.slane %v891_v33, 4  ;;  %v923_v63 = vshrl.u32 %v661_v44, 16 }
  0x77   : > { %12449 = vmatmul.mubr.bf16.gmra.mrb[16].mxu0 %v13933_v53  ;;  %v777_v53 = vsel %vm14471_vm2, %v14546_v1, %v14541_v60  ;;  %v902_v60 = vshll.u32 %v658_v52, 16  ;;  %v820_v1 = vrot.slane %v819_v42, 4  ;;  %v914_v17 = vrot.slane %v912_v46, 4 }
  0x78   : > { %12452 = vmatprep.mubr.bf16.mxu0 %v13935_v54  ;;  %v843_v54 = vor.u32 %v842_v28, %v14576_v27  ;;  %v870_v28 = vshll.u32 %v14597_v59, 16  ;;  %v14645_v27 = vrot.slane %v881_v32, 4  ;;  %v14694_v32 = vld [vmem:[%s14399_s15 + $0x80] sm:$0x1]  ;;  %v925_v33 = vrot.slane %v923_v63, 4 }
  0x79   : > { %v904_v42 = vrot.slane %v902_v60, 5  ;;  %v825_v61 = vsel %vm14471_vm2, %v820_v1, %v824_v13  ;;  %v664_v60 = vld [vmem:[%s14399_s15 + $0x84] sm:$0xf]  ;;  %v14659_v1 = vcombine.low %v767_v15, %v777_v53  ;;  %v14679_v15 = vld [vmem:[%s14399_s15 + $0x94] sm:$0xf]  ;;  %18314 = vst [vmem:[#allocation18_spill] sm:$0xff] %v14694_v32 }
  0x7a   : > { %v844_v21 = vrot.slane %v843_v54, 4  ;;  %v14640_v52 = vrot.slane %v870_v28, 5  ;;  %v14643_v54 = vld [vmem:[%s14399_s15 + $0x74] sm:$0x1]  ;;  %v14669_v23 = vcombine.low %v815_v39, %v825_v61  ;;  %18313 = vst [vmem:[#allocation17_spill] sm:$0xff] %v14679_v15  ;;  %v947_v46 = vshrl.u32 %v664_v60, 16 }
  0x7b   : > { %18309 = vst [vmem:[#allocation13_spill] sm:$0xff] %v14643_v54  ;;  %v905_v2 = vor.u32 %v904_v42, %v901_v40  ;;  %v13942_v61 = vld [vmem:[%s14399_s15 + $0xb4] sm:$0xff]   ;;  %v942_v24 = vshll.u32 %v14694_v32, 16  ;;  %v673_v53 = vld [vmem:[%s14399_s15 + $0xa8] sm:$0xf] }
  0x7c   : > { %v849_v16 = vsel %vm14471_vm2, %v844_v21, %v848_v19  ;;  %v918_v19 = vshll.u32 %v14643_v54, 16  ;;  %v14665_v21 = vld [vmem:[%s14399_s15 + $0x88] sm:$0xf]  ;;  %18311 = vst [vmem:[#allocation15_spill] sm:$0xff] %v14669_v23  ;;  %v14731_v32 = vld [vmem:[%s14399_s15 + $0xa4] sm:$0x1] }
  0x7d   : > { %18310 = vst [vmem:[#allocation14_spill] sm:$0xff] %v14665_v21  ;;  %v14671_v28 = vcombine.low %v839_v8, %v849_v16  ;;  %v956_v16 = vshll.u32 %v14665_v21, 16  ;;  %v960_v63 = vshrl.u32 %v14665_v21, 16  ;;  %v949_v21 = vrot.slane %v947_v46, 4  ;;  %v14748_v23 = vld [vmem:[%s14399_s15 + $0xb0] sm:$0x1] }
  0x7f   : > { %12453 = vmatmul.mubr.bf16.gmra.mrb[20].mxu0 %v13936_v37  ;;  %v801_v37 = vsel %vm14471_vm2, %v796_v5, %v14556_v9  ;;  %v14631_v9 = vld [vmem:[%s14399_s15 + $0x7c] sm:$0xf]  ;;  %v926_v5 = vshll.u32 %v661_v44, 16  ;;  %18312 = vst [vmem:[#allocation16_spill] sm:$0xff] %v14671_v28  ;;  %v14702_v44 = vld [vmem:[%s14399_s15 + $0xa0] sm:$0xf] }
  0x80   : > { %12456 = vmatprep.mubr.bf16.mxu0 %v13938_v45  ;;  %v908_v45 = vshll.u32 %v14607_v29, 16  ;;  %18308 = vst [vmem:[#allocation12_spill] sm:$0xff] %v14631_v9  ;;  %v932_v6 = vshll.u32 %v14631_v9, 16  ;;  %v936_v12 = vshrl.u32 %v14631_v9, 16  ;;  %v14667_v22 = vcombine.low %v791_v31, %v801_v37  ;;  %18315 = vst [vmem:[#allocation19_spill] sm:$0xff] %v14702_v44 }
  0x81   : > { %v14697_v37 = vrot.slane %v905_v2, 4  ;;  %v928_v39 = vrot.slane %v926_v5, 5  ;;  %v971_v2 = vshrl.u32 %v667_v56, 16  ;;  %v974_v5 = vshll.u32 %v667_v56, 16  ;;  %v14720_v56 = vld [vmem:[%s14399_s15 + $0x8c] sm:$0x1] }
  0x82   : > { %v14661_v13 = vrot.slane %v908_v45, 5  ;;  %v14699_v40 = vrot.slane %v932_v6, 5  ;;  %v938_v42 = vrot.slane %v936_v12, 4  ;;  %v14706_v45 = vrot.slane %v918_v19, 5  ;;  %v14723_v9 = vld [vmem:[%s14399_s15 + $0x98] sm:$0x1] }
  0x83   : > { %v980_v6 = vshll.u32 %v14679_v15, 16  ;;  %v984_v12 = vshrl.u32 %v14679_v15, 16  ;;  %v998_v31 = vshll.u32 %v670_v35, 16  ;;  %v929_v19 = vor.u32 %v928_v39, %v925_v33  ;;  %v14736_v28 = vld [vmem:[%s14399_s15 + $0xac] sm:$0xf] }
  0x84   : > { %v915_v8 = vor.u32 %v914_v17, %v14661_v13  ;;  %v1008_v54 = vshrl.u32 %v14702_v44, 16  ;;  %v14728_v33 = vrot.slane %v956_v16, 5  ;;  %v962_v39 = vrot.slane %v960_v63, 4 }
  0x85   : > { %v976_v17 = vrot.slane %v974_v5, 5  ;;  %v986_v29 = vrot.slane %v984_v12, 4  ;;  %v1019_v16 = vshrl.u32 %v673_v53, 16  ;;  %v1022_v63 = vshll.u32 %v673_v53, 16 }
  0x86   : > { %18316 = vst [vmem:[#allocation20_spill] sm:$0xff] %v14728_v33  ;;  %v990_v18 = vshll.u32 %v14723_v9, 16 }
  0x87   : > { %12457 = vmatmul.mubr.bf16.gmra.mrb[24].mxu0 %v13939_v30  ;;  %v995_v30 = vshrl.u32 %v670_v35, 16  ;;  %v1004_v35 = vshll.u32 %v14702_v44, 16  ;;  %v14738_v44 = vrot.slane %v915_v8, 4 }
  0x88   : > { %12460 = vmatprep.mubr.bf16.mxu0 %v13941_v49  ;;  %v950_v49 = vshll.u32 %v664_v60, 16  ;;  %v939_v60 = vor.u32 %v938_v42, %v14699_v40  ;;  %v973_v42 = vrot.slane %v971_v2, 4  ;;  %v930_v2 = vrot.slane %v929_v19, 4 }
  0x89   : > { %v997_v46 = vrot.slane %v995_v30, 4  ;;  %v14742_v11 = vrot.slane %v1004_v35, 5  ;;  %v963_v30 = vor.u32 %v962_v39, %v14728_v33  ;;  %v1032_v35 = vshrl.u32 %v14736_v28, 16  ;;  %v676_v39 = vld [vmem:[%s14399_s15 + $0xb4] sm:$0xf] }
  0x8a   : > { %v952_v15 = vrot.slane %v950_v49, 5  ;;  %v1000_v49 = vrot.slane %v998_v31, 5  ;;  %v940_v5 = vrot.slane %v939_v60, 4  ;;  %v966_v31 = vshll.u32 %v14720_v56, 16 }
  0x8b   : > { %18317 = vst [vmem:[#allocation21_spill] sm:$0xff] %v14742_v11  ;;  %v977_v53 = vor.u32 %v976_v17, %v973_v42  ;;  %v1028_v60 = vshll.u32 %v14736_v28, 16  ;;  %v921_v33 = vsel %vm14471_vm2, %v14738_v44, %v14706_v45  ;;  %v1038_v42 = vshll.u32 %v14748_v23, 16 }
  0x8c   : > { %v953_v12 = vor.u32 %v952_v15, %v949_v21  ;;  %v1001_v19 = vor.u32 %v1000_v49, %v997_v46  ;;  %v1021_v21 = vrot.slane %v1019_v16, 4  ;;  %v1024_v15 = vrot.slane %v1022_v63, 5  ;;  %v14769_v46 = vld [vmem:[%s14399_s15 + $0xb8] sm:$0xf] }
  0x8d   : > { %v1389_v49 = vld [vmem:[%s14399_s15 + $0x18] sm:$0xe]  ;;  %v14782_v45 = vrot.slane %v963_v30, 4  ;;  %v14784_v16 = vrot.slane %v966_v31, 5 }
  0x8e   : > { %v14780_v44 = vrot.slane %v953_v12, 4  ;;  %v1390_v12 = vld [vmem:[%s14399_s15 + $0x24] sm:$0xe]  ;;  %v13947_v30 = vld [vmem:[%s18178_s1 + $0x98] sm:$0xff]  }
  0x8f   : > { %12461 = vmatmul.mubr.bf16.gmra.mrb[28].mxu0 %v13942_v61  ;;  %v14733_v61 = vrot.slane %v980_v6, 5  ;;  %v1010_v6 = vrot.slane %v1008_v54, 4  ;;  %v1014_v54 = vshll.u32 %v14731_v32, 16 }
  0x90   : > { %12480 = vmatprep.mubr.bf16.mxu0 %v14509_v38  ;;  %v14740_v38 = vrot.slane %v942_v24, 5  ;;  %v13945_v24 = vld [vmem:[%s18178_s1 + $0x88] sm:$0xff]  }
  0x91   : > { %v987_v8 = vor.u32 %v986_v29, %v14733_v61  ;;  %v935_v29 = vsel %vm14471_vm2, %v930_v2, %v14699_v40  ;;  %v1011_v17 = vor.u32 %v1010_v6, %v14742_v11  ;;  %v14792_v2 = vrot.slane %v1001_v19, 4  ;;  %v1391_v19 = vld [vmem:[%s14399_s15 + $0x30] sm:$0xe] }
  0x92   : > { %v945_v40 = vsel %vm14471_vm2, %v940_v5, %v14740_v38  ;;  %v14794_v6 = vrot.slane %v1014_v54, 5  ;;  %v1025_v11 = vor.u32 %v1024_v15, %v1021_v21  ;;  %v14796_v38 = vrot.slane %v1028_v60, 5  ;;  %v1400_v21 = vld [vmem:[%s14399_s15 + $0x9c] sm:$0xe] }
  0x93   : > { %v14788_v63 = vrot.slane %v987_v8, 4  ;;  %v14798_v5 = vrot.slane %v1032_v35, 4  ;;  %v14804_v31 = vrot.slane %v1011_v17, 4  ;;  %v1046_v8 = vshll.u32 %v676_v39, 16 }
  0x94   : > { %v18318_v15 = vmov 0  ;;  %v11084_v60 = vrot.slane %v1389_v49, 9  ;;  %v1470_v35 = vrot.slane %v14441_v34, 5  ;;  %v18324_v34 = vsel %vm14471_vm2, %v14645_v27, %v14599_v0 }
  0x95   : > { %v18319_v15 = vsel %vm14813_vm5, 4294967295, %v18318_v15  ;;  %v1543_v54 = vrot.slane %v14723_v9, 5  ;;  %v1557_v9 = vrot.slane %v14748_v23, 5 }
  0x96   : > { %18320 = vst [vmem:[#allocation22_spill] sm:$0xff] %v18319_v15  ;;  %v14858_v0 = vsel %vm14813_vm5, %v11084_v60, %v1470_v35  ;;  %v1472_v27 = vrot.slane %v1470_v35, 4  ;;  %v11086_v60 = vrot.slane %v1391_v19, 9  ;;  %v1487_v35 = vrot.slane %v14506_v36, 5 }
  0x97   : > { %12481 = vmatmul.mubr.bf16.vlgmr.msra.gmra.mrb[0].mxu0 %v14517_v43  ;;  %v13946_v43 = vld [vmem:[%s18178_s1 + $0x90] sm:$0xff]   ;;  %v1491_v19 = vrot.slane %v14514_v41, 5 }
  0x98   : > { %12513 = vmatpush3.bf16.msra.mxu0 %v14530_v48  ;;  %12484 = vmatprep.mubr.bf16.mxu0 %v14562_v14  ;;  %v14786_v48 = vrot.slane %v977_v53, 4  ;;  %v14790_v14 = vrot.slane %v990_v18, 5  ;;  %v14806_v53 = vrot.slane %v1038_v42, 5  ;;  %v1043_v18 = vshrl.u32 %v676_v39, 16 }
  0x99   : > { %12514 = vmatprep.subr.bf16.mxu0 %v13945_v24  ;;  %v18322_v39 = vsel %vm14471_vm2, %v14636_v50, %v14594_v55  ;;  %v18323_v42 = vsel %vm14471_vm2, %v14647_v57, %v14649_v62  ;;  %v14849_v50 = vcombine.low %v935_v29, %v945_v40  ;;  %v1393_v62 = vld [vmem:[%s14399_s15 + $0x48] sm:$0xe]  ;;  %v1480_v29 = vrot.slane %v14487_v20, 5 }
  0x9a   : > { %v14840_v49 = vcombine.low %v18324_v34, %v18323_v42  ;;  %v14869_v40 = vrot.slane %v1043_v18, 4  ;;  %v14874_v42 = vrot.slane %v1046_v8, 5  ;;  %v13949_v18 = vld [vmem:[%s18178_s1 + $0xa8] sm:$0xff]   ;;  %v1494_v34 = vrot.slane %v14559_v10, 5 }
  0x9c   : > { %12515 = vmatpush3.bf16.msra.mxu0 %v13945_v24  ;;  %v18321_v24 = vsel %vm14471_vm2, %v14638_v51, %v14640_v52  ;;  %v18325_v51 = vsel %vm14471_vm2, %v14697_v37, %v14661_v13  ;;  %v1392_v52 = vld [vmem:[%s14399_s15 + $0x3c] sm:$0xe]  ;;  %v13948_v13 = vld [vmem:[%s18178_s1 + $0xa0] sm:$0xff]   ;;  %v1473_v37 = vrot.slane %v14467_v3, 5 }
  0x9d   : > { %12516 = vmatprep.subr.bf16.mxu0 %v13946_v43  ;;  %v14828_v17 = vcombine.low %v18322_v39, %v18321_v24  ;;  %v14847_v55 = vcombine.low %v18325_v51, %v921_v33  ;;  %v14852_v24 = vrot.slane %v1025_v11, 4  ;;  %v11085_v11 = vrot.slane %v1390_v12, 9  ;;  %v1394_v39 = vld [vmem:[%s14399_s15 + $0x54] sm:$0xe]  ;;  %v1395_v12 = vld [vmem:[%s14399_s15 + $0x60] sm:$0xe] }
  0x9e   : > { %v1477_v33 = vrot.slane %v14461_v58, 5  ;;  %v14878_v58 = vsel %vm14813_vm5, %v1472_v27, %v1473_v37  ;;  %v11088_v51 = vrot.slane %v1393_v62, 9  ;;  %v1498_v37 = vrot.slane %v14525_v47, 5  ;;  %v1398_v27 = vld [vmem:[%s14399_s15 + $0x84] sm:$0xe] }
  0x9f   : > { %12485 = vmatmul.mubr.bf16.gmra.mrb[4].mxu0 %v14659_v1  ;;  %v1484_v1 = vrot.slane %v14495_v26, 5  ;;  %v11089_v62 = vrot.slane %v1394_v39, 9 }
  0xa0   : > { %12488 = vmatprep.mubr.bf16.mxu0 %v14667_v22  ;;  %12517 = vmatpush3.bf16.msra.mxu0 %v13946_v43  ;;  %v14882_v3 = vsel %vm14813_vm5, %v11085_v11, %v1477_v33  ;;  %v1479_v20 = vrot.slane %v1477_v33, 4  ;;  %v11087_v43 = vrot.slane %v1392_v52, 9  ;;  %v1501_v11 = vrot.slane %v14574_v25, 5  ;;  %v1396_v33 = vld [vmem:[%s14399_s15 + $0x6c] sm:$0xe]  ;;  %v18333_v22 = vld [vmem:[#allocation18_spill] sm:$0xff] }
  0xa1   : > { %12518 = vmatprep.subr.bf16.mxu0 %v13947_v30  ;;  %v14888_v26 = vsel %vm14813_vm5, %v11086_v60, %v1484_v1  ;;  %v1486_v36 = vrot.slane %v1484_v1, 4  ;;  %v14918_v60 = vsel %vm14813_vm5, %v11088_v51, %v1498_v37  ;;  %v1500_v47 = vrot.slane %v1498_v37, 4  ;;  %v18329_v51 = vld [vmem:[#allocation16_spill] sm:$0xff] }
  0xa2   : > { %v14896_v8 = vsel %vm14813_vm5, %v1479_v20, %v1480_v29  ;;  %v14913_v10 = vsel %vm14813_vm5, %v11087_v43, %v1491_v19  ;;  %v1397_v29 = vld [vmem:[%s14399_s15 + $0x78] sm:$0xe]  ;;  %v1505_v25 = vrot.slane %v14551_v7, 5  ;;  %v1508_v1 = vrot.slane %v14597_v59, 5  ;;  %v13950_v7 = vld [vmem:[%s18178_s1 + $0xb0] sm:$0xff]  }
  0xa3   : > { %v14904_v52 = vsel %vm14813_vm5, %v1486_v36, %v1487_v35  ;;  %v18326_v35 = vld [vmem:[#allocation15_spill] sm:$0xff]  ;;  %v11090_v36 = vrot.slane %v1395_v12, 9  ;;  %v18327_v43 = vld [vmem:[#allocation9_spill] sm:$0xff]  ;;  %v11092_v59 = vrot.slane %v1397_v29, 9  ;;  %v1529_v57 = vrot.slane %v18333_v22, 5 }
  0xa4   : > { %12519 = vmatpush3.bf16.msra.mxu0 %v13947_v30  ;;  %v1493_v30 = vrot.slane %v1491_v19, 4  ;;  %v1512_v39 = vrot.slane %v18327_v43, 5  ;;  %v18328_v19 = vld [vmem:[#allocation10_spill] sm:$0xff]  ;;  %v14942_v12 = vsel %vm14813_vm5, %v11089_v62, %v1505_v25  ;;  %v1507_v37 = vrot.slane %v1505_v25, 4  ;;  %v18330_v62 = vld [vmem:[#allocation11_spill] sm:$0xff] }
  0xa5   : > { %12520 = vmatprep.subr.bf16.mxu0 %v13948_v13  ;;  %v1515_v41 = vrot.slane %v18328_v19, 5  ;;  %v11091_v43 = vrot.slane %v1396_v33, 9  ;;  %v1399_v19 = vld [vmem:[%s14399_s15 + $0x90] sm:$0xe] }
  0xa6   : > { %v14925_v20 = vsel %vm14813_vm5, %v1493_v30, %v1494_v34  ;;  %v14938_v34 = vsel %vm14813_vm5, %v1500_v47, %v1501_v11  ;;  %v14948_v30 = vsel %vm14813_vm5, %v11090_v36, %v1512_v39  ;;  %v14953_v11 = vsel %vm14813_vm5, %v1507_v37, %v1508_v1 }
  0xa7   : > { %12489 = vmatmul.mubr.bf16.gmra.mrb[8].mxu0 %v18326_v35  ;;  %v1514_v35 = vrot.slane %v1512_v39, 4  ;;  %v1519_v47 = vrot.slane %v18330_v62, 5  ;;  %v18332_v39 = vld [vmem:[#allocation12_spill] sm:$0xff]  ;;  %v11093_v62 = vrot.slane %v1398_v27, 9  ;;  %v1536_v1 = vrot.slane %v14720_v56, 5 }
  0xa8   : > { %12492 = vmatprep.mubr.bf16.mxu0 %v18329_v51  ;;  %12521 = vmatpush3.bf16.msra.mxu0 %v13948_v13  ;;  %v18331_v51 = vld [vmem:[#allocation13_spill] sm:$0xff]  ;;  %v1526_v33 = vrot.slane %v18332_v39, 5  ;;  %v11094_v27 = vrot.slane %v1399_v19, 9 }
  0xa9   : > { %12522 = vmatprep.subr.bf16.mxu0 %v13949_v18  ;;  %v1522_v25 = vrot.slane %v18331_v51, 5  ;;  %v14961_v36 = vsel %vm14813_vm5, %v1514_v35, %v1515_v41  ;;  %v14970_v37 = vsel %vm14813_vm5, %v11091_v43, %v1519_v47  ;;  %v1521_v29 = vrot.slane %v1519_v47, 4  ;;  %v1401_v51 = vld [vmem:[%s14399_s15 + $0xa8] sm:$0xe]  ;;  %v13951_v41 = vld [vmem:[%s18178_s1 + $0xb8] sm:$0xff]   ;;  %v18334_v35 = vld [vmem:[#allocation14_spill] sm:$0xff] }
  0xaa   : > { %v14978_v22 = vsel %vm14813_vm5, %v11092_v59, %v1526_v33  ;;  %v1533_v39 = vrot.slane %v18334_v35, 5  ;;  %v18335_v47 = vld [vmem:[#allocation17_spill] sm:$0xff]  ;;  %v1402_v35 = vld [vmem:[%s14399_s15 + $0xb4] sm:$0xe] }
  0xab   : > { %v14984_v43 = vsel %vm14813_vm5, %v1521_v29, %v1522_v25  ;;  %v1540_v13 = vrot.slane %v18335_v47, 5  ;;  %v11095_v29 = vrot.slane %v1400_v21, 9  ;;  %v1554_v47 = vrot.slane %v14736_v28, 5  ;;  %v18337_v21 = vld [vmem:[#allocation20_spill] sm:$0xff] }
  0xac   : > { %12523 = vmatpush3.bf16.msra.mxu0 %v13949_v18  ;;  %v1528_v18 = vrot.slane %v1526_v33, 4  ;;  %v11107_v59 = vcombine.low %v14970_v37, %v14984_v43  ;;  %v14997_v56 = vsel %vm14813_vm5, %v11093_v62, %v1533_v39  ;;  %v1535_v25 = vrot.slane %v1533_v39, 4  ;;  %v15011_v62 = vld [vmem:[%s18178_s1 + $0xc0] sm:$0xff]  }
  0xad   : > { %12524 = vmatprep.subr.bf16.mxu0 %v13950_v7  ;;  %v1542_v19 = vrot.slane %v1540_v13, 4  ;;  %v1550_v39 = vrot.slane %v14731_v32, 5  ;;  %v959_v23 = vsel %vm14471_vm2, %v14780_v44, %v18337_v21  ;;  %v18338_v44 = vshll.u32 %v14769_v46, 16 }
  0xae   : > { %v14993_v33 = vsel %vm14813_vm5, %v1528_v18, %v1529_v57  ;;  %v678_v57 = vld [vmem:[%s14399_s15 + $0xbc] sm:$0x1] }
  0xaf   : > { %12493 = vmatmul.mubr.bf16.gmra.mrb[12].mxu0 %v14828_v17  ;;  %v15004_v17 = vsel %vm14813_vm5, %v11094_v27, %v1540_v13  ;;  %v11096_v27 = vrot.slane %v1401_v51, 9  ;;  %v15023_v13 = vsel %vm14813_vm5, %v1542_v19, %v1543_v54  ;;  %v11097_v51 = vrot.slane %v1402_v35, 9 }
  0xb0   : > { %12496 = vmatprep.mubr.bf16.mxu0 %v14840_v49  ;;  %12525 = vmatpush3.bf16.msra.mxu0 %v13950_v7  ;;  %v15015_v49 = vsel %vm14813_vm5, %v1535_v25, %v1536_v1  ;;  %v18336_v7 = vld [vmem:[#allocation19_spill] sm:$0xff]  ;;  %v11110_v1 = vcombine.low %v15004_v17, %v15023_v13  ;;  %v1556_v54 = vrot.slane %v1554_v47, 4  ;;  %v1561_v19 = vrot.slane %v14769_v46, 5 }
  0xb1   : > { %12526 = vmatprep.subr.bf16.mxu0 %v13951_v41  ;;  %v1547_v18 = vrot.slane %v18336_v7, 5  ;;  %v15035_v7 = vsel %vm14813_vm5, %v11096_v27, %v1554_v47  ;;  %v1564_v28 = vrot.slane %v678_v57, 5  ;;  %v1054_v21 = vrot.slane %v18338_v44, 5  ;;  %v11185_v17 = vld [vmem:[%s14399_s15 + $0x28] sm:$0xf] }
  0xb2   : > { %v15051_v35 = vsel %vm14813_vm5, %v1556_v54, %v1557_v9  ;;  %v1563_v27 = vrot.slane %v1561_v19, 4  ;;  %v969_v9 = vsel %vm14471_vm2, %v14782_v45, %v14784_v16  ;;  %v14152_v54 = vld [vmem:[%s14399_s15 + $0x4] sm:$0xf]  ;;  %v993_v45 = vsel %vm14471_vm2, %v14788_v63, %v14790_v14  ;;  %v18341_v63 = vld [vmem:[#allocation21_spill] sm:$0xff] }
  0xb3   : > { %v15031_v25 = vsel %vm14813_vm5, %v11095_v29, %v1547_v18  ;;  %v1549_v32 = vrot.slane %v1547_v18, 4  ;;  %v15055_v18 = vsel %vm14813_vm5, %v11097_v51, %v1561_v19  ;;  %v1456_v19 = vrot.slane %v14152_v54, 5 }
  0xb4   : > { %12527 = vmatpush3.bf16.msra.mxu0 %v13951_v41  ;;  %v11112_v41 = vcombine.low %v15035_v7, %v15051_v35  ;;  %v1007_v14 = vsel %vm14471_vm2, %v14792_v2, %v18341_v63  ;;  %v1388_v2 = vld [vmem:[%s14399_s15 + $0xc] sm:$0xe]  ;;  %v18343_v63 = vcombine.low %v14882_v3, %v14896_v8  ;;  %v18345_v3 = vcombine.low %v14913_v10, %v14925_v20  ;;  %v13958_v8 = vld [vmem:[%s18178_s1 + $0xf0] sm:$0xff]   ;;  %v15167_v20 = vld [vmem:[%s18178_s1 + $0x100] sm:$0xff]  }
  0xb5   : > { %12560 = vmatprep.subr.bf16.mxu0 %v15011_v62  ;;  %v15045_v29 = vsel %vm14813_vm5, %v1549_v32, %v1550_v39  ;;  %v18339_v39 = vshrl.u32 %v14769_v46, 16  ;;  %v1062_v32 = vshll.u32 %v678_v57, 16  ;;  %v15075_v46 = vsel %vm14813_vm5, %v1563_v27, %v1564_v28  ;;  %v11189_v7 = vld [vmem:[%s14399_s15 + $0x38] sm:$0x1] }
  0xb6   : > { %v11113_v16 = vcombine.low %v15055_v18, %v15075_v46  ;;  %v11069_v57 = vcombine.low %v959_v23, %v969_v9  ;;  %v1049_v28 = vor.u32 %v14874_v42, %v14869_v40  ;;  %v1017_v40 = vsel %vm14471_vm2, %v14804_v31, %v14794_v6  ;;  %v13963_v18 = vld [vmem:[%s14399_s15 + $0x24] sm:$0xff]  }
  0xb7   : > { %12497 = vmatmul.mubr.bf16.gmra.mrb[16].mxu0 %v14847_v55  ;;  %v1058_v47 = vrot.slane %v18339_v39, 4  ;;  %v18340_v55 = vor.u32 %v14798_v5, %v14796_v38  ;;  %v1387_v5 = vld [vmem:[%s14399_s15] sm:$0xe]  ;;  %v1064_v39 = vrot.slane %v1062_v32, 5  ;;  %v11071_v9 = vcombine.low %v1007_v14, %v1017_v40 }
  0xb8   : > { %12500 = vmatprep.mubr.bf16.mxu0 %v14849_v50  ;;  %v983_v50 = vsel %vm14471_vm2, %v14786_v48, %v14733_v61  ;;  %v1458_v61 = vrot.slane %v1456_v19, 4  ;;  %v14153_v48 = vld [vmem:[%s14399_s15 + $0x8] sm:$0x1]  ;;  %v1050_v42 = vrot.slane %v1049_v28, 4  ;;  %v14155_v28 = vld [vmem:[%s14399_s15 + $0x14] sm:$0x1]  ;;  %v18347_v10 = vcombine.low %v14942_v12, %v14953_v11 }
  0xb9   : > { %v1036_v51 = vrot.slane %v18340_v55, 4  ;;  %v11070_v44 = vcombine.low %v983_v50, %v993_v45  ;;  %v1059_v27 = vor.u32 %v1058_v47, %v1054_v21  ;;  %v11082_v55 = vrot.slane %v1387_v5, 9  ;;  %v14154_v45 = vld [vmem:[%s14399_s15 + $0x10] sm:$0xf]  ;;  %v11181_v11 = vld [vmem:[%s14399_s15 + $0x18] sm:$0xf] }
  0xba   : > { %v1459_v54 = vrot.slane %v14153_v48, 5  ;;  %v1031_v47 = vsel %vm14471_vm2, %v14852_v24, %v14796_v38  ;;  %v1055_v6 = vsel %vm14471_vm2, %v1050_v42, %v1054_v21  ;;  %v1463_v5 = vrot.slane %v14154_v45, 5  ;;  %v11179_v12 = vld [vmem:[%s14399_s15 + $0x10] sm:$0xf]  ;;  %v11183_v45 = vld [vmem:[%s14399_s15 + $0x20] sm:$0x1] }
  0xbb   : > { %v1060_v23 = vrot.slane %v1059_v27, 4  ;;  %v1041_v32 = vsel %vm14471_vm2, %v1036_v51, %v14806_v53  ;;  %v1457_v38 = vsel %vm14813_vm5, %v11082_v55, %v1456_v19  ;;  %v1466_v27 = vrot.slane %v14155_v28, 5  ;;  %v13953_v19 = vld [vmem:[%s18178_s1 + $0xc8] sm:$0xff]  }
  0xbc   : > { %v11072_v50 = vcombine.low %v1031_v47, %v1041_v32  ;;  %v1460_v53 = vsel %vm14813_vm5, %v1458_v61, %v1459_v54  ;;  %v18342_v55 = vcombine.low %v14858_v0, %v14878_v58  ;;  %v13954_v61 = vld [vmem:[%s18178_s1 + $0xd0] sm:$0xff]   ;;  %v13955_v54 = vld [vmem:[%s18178_s1 + $0xd8] sm:$0xff]   ;;  %v13956_v0 = vld [vmem:[%s18178_s1 + $0xe0] sm:$0xff]   ;;  %v2331_v40 = vshll.u32 %v11179_v12, 16 }
  0xbd   : > { %v1065_v31 = vsel %vm14471_vm2, %v1060_v23, %v1064_v39  ;;  %v11098_v51 = vcombine.low %v1457_v38, %v1460_v53  ;;  %v13957_v58 = vld [vmem:[%s18178_s1 + $0xe8] sm:$0xff]   ;;  %v2335_v42 = vshrl.u32 %v11179_v12, 16  ;;  %v2346_v23 = vshrl.u32 %v11181_v11, 16  ;;  %v11182_v32 = vld [vmem:[%s14399_s15 + $0x1c] sm:$0xf] }
  0xbe   : > { %v11073_v24 = vcombine.low %v1055_v6, %v1065_v31  ;;  %v2349_v47 = vshll.u32 %v11181_v11, 16  ;;  %v15180_v43 = vrot.slane %v2331_v40, 5  ;;  %v2355_v6 = vshll.u32 %v11182_v32, 16  ;;  %v11191_v11 = vld [vmem:[%s14399_s15 + $0x40] sm:$0xf] }
  0xbf   : > { %12501 = vmatmul.mubr.bf16.gmra.mrb[20].mxu0 %v11069_v57  ;;  %v11083_v57 = vrot.slane %v1388_v2, 9  ;;  %v2359_v31 = vshrl.u32 %v11182_v32, 16  ;;  %v18351_v13 = vcombine.low %v15031_v25, %v15045_v29  ;;  %v11187_v25 = vld [vmem:[%s14399_s15 + $0x30] sm:$0xf]  ;;  %v2379_v29 = vshll.u32 %v11185_v17, 16 }
  0xc0   : > { %12504 = vmatprep.mubr.bf16.mxu0 %v11070_v44  ;;  %v1465_v44 = vrot.slane %v1463_v5, 4  ;;  %v2351_v2 = vrot.slane %v2349_v47, 5  ;;  %v11192_v40 = vld [vmem:[%s14399_s15 + $0x44] sm:$0x1]  ;;  %v2413_v32 = vshll.u32 %v11189_v7, 16  ;;  %v2427_v46 = vshll.u32 %v11191_v11, 16 }
  0xc1   : > { %v1464_v21 = vsel %vm14813_vm5, %v11083_v57, %v1463_v5  ;;  %v11184_v5 = vld [vmem:[%s14399_s15 + $0x24] sm:$0xf]  ;;  %v2365_v57 = vshll.u32 %v11183_v45, 16  ;;  %v15219_v35 = vrot.slane %v2379_v29, 5  ;;  %v11195_v29 = vld [vmem:[%s14399_s15 + $0x50] sm:$0x1] }
  0xc2   : > { %v1467_v39 = vsel %vm14813_vm5, %v1465_v44, %v1466_v27  ;;  %v2370_v44 = vshrl.u32 %v11184_v5, 16  ;;  %v2373_v28 = vshll.u32 %v11184_v5, 16  ;;  %v13968_v5 = vld [vmem:[%s18178_s1 + $0x110] sm:$0xff]  }
  0xc3   : > { %v11099_v48 = vcombine.low %v1464_v21, %v1467_v39 }
  0xc7   : > { %12505 = vmatmul.mubr.bf16.gmra.mrb[24].mxu0 %v11071_v9 }
  0xc8   : > { %12508 = vmatprep.mubr.bf16.mxu0 %v11072_v50  ;;  %v18350_v50 = vcombine.low %v14997_v56, %v15015_v49  ;;  %v15192_v56 = vrot.slane %v2355_v6, 5  ;;  %v2361_v49 = vrot.slane %v2359_v31, 4 }
  0xcf   : > { %12509 = vmatmul.mubr.bf16.gmra.mrb[28].mxu0 %v11073_v24 }
  0xd0   : > { %12528 = vmatprep.mubr.bf16.mxu0 %v11098_v51 }
  0xd7   : > { %12529 = vmatmul.mubr.bf16.vlgmr.msra.gmra.mrb[0].mxu0 %v11099_v48  ;;  %v15206_v48 = vrot.slane %v2365_v57, 5  ;;  %v13964_v57 = vld [vmem:[%s14399_s15 + $0x30] sm:$0xff]  }
  0xd8   : > { %12561 = vmatpush3.bf16.msra.mxu0 %v15011_v62  ;;  %12532 = vmatprep.mubr.bf16.mxu0 %v18342_v55  ;;  %v18344_v62 = vcombine.low %v14888_v26, %v14904_v52  ;;  %v18346_v26 = vcombine.low %v14918_v60, %v14938_v34  ;;  %v13959_v52 = vld [vmem:[%s18178_s1 + $0xf8] sm:$0xff]   ;;  %v18348_v60 = vcombine.low %v14948_v30, %v14961_v36  ;;  %v11178_v34 = vld [vmem:[%s14399_s15 + $0xc] sm:$0xf]  ;;  %v2372_v55 = vrot.slane %v2370_v44, 4 }
  0xd9   : > { %12562 = vmatprep.subr.bf16.mxu0 %v13953_v19  ;;  %v18349_v30 = vcombine.low %v14978_v22, %v14993_v33  ;;  %v2322_v36 = vshrl.u32 %v11178_v34, 16  ;;  %v2325_v14 = vshll.u32 %v11178_v34, 16  ;;  %v11180_v22 = vld [vmem:[%s14399_s15 + $0x14] sm:$0x1]  ;;  %v2348_v33 = vrot.slane %v2346_v23, 4  ;;  %v13961_v23 = vld [vmem:[%s14399_s15 + $0x18] sm:$0xff]  }
  0xda   : > { %v2341_v24 = vshll.u32 %v11180_v22, 16 }
  0xdb   : > { %v2324_v9 = vrot.slane %v2322_v36, 4  ;;  %v2327_v37 = vrot.slane %v2325_v14, 5  ;;  %v2352_v51 = vor.u32 %v2351_v2, %v2348_v33 }
  0xdc   : > { %12563 = vmatpush3.bf16.msra.mxu0 %v13953_v19  ;;  %v15202_v21 = vrot.slane %v2341_v24, 5  ;;  %v2362_v19 = vor.u32 %v2361_v49, %v15192_v56  ;;  %v15247_v24 = vrot.slane %v2427_v46, 5 }
  0xdd   : > { %12564 = vmatprep.subr.bf16.mxu0 %v13954_v61  ;;  %v2328_v38 = vor.u32 %v2327_v37, %v2324_v9  ;;  %v15204_v39 = vrot.slane %v2352_v51, 4 }
  0xdf   : > { %12533 = vmatmul.mubr.bf16.gmra.mrb[4].mxu0 %v18343_v63  ;;  %v15194_v27 = vrot.slane %v2328_v38, 4  ;;  %v11188_v63 = vld [vmem:[%s14399_s15 + $0x34] sm:$0xf] }
  0xe0   : > { %12536 = vmatprep.mubr.bf16.mxu0 %v18344_v62  ;;  %12565 = vmatpush3.bf16.msra.mxu0 %v13954_v61  ;;  %v2375_v61 = vrot.slane %v2373_v28, 5  ;;  %v13960_v62 = vld [vmem:[%s14399_s15 + $0xc] sm:$0xff]  }
  0xe1   : > { %12566 = vmatprep.subr.bf16.mxu0 %v13955_v54 }
  0xe4   : > { %12567 = vmatpush3.bf16.msra.mxu0 %v13955_v54  ;;  %v2383_v54 = vshrl.u32 %v11185_v17, 16  ;;  %v13966_v17 = vld [vmem:[%s14399_s15 + $0x3c] sm:$0xff]  }
  0xe5   : > { %12568 = vmatprep.subr.bf16.mxu0 %v13956_v0 }
  0xe7   : > { %12537 = vmatmul.mubr.bf16.gmra.mrb[8].mxu0 %v18345_v3  ;;  %v2397_v3 = vshll.u32 %v11187_v25, 16 }
  0xe8   : > { %12540 = vmatprep.mubr.bf16.mxu0 %v18346_v26  ;;  %12569 = vmatpush3.bf16.msra.mxu0 %v13956_v0  ;;  %v11186_v0 = vld [vmem:[%s14399_s15 + $0x2c] sm:$0x1]  ;;  %v15216_v26 = vrot.slane %v2362_v19, 4 }
  0xe9   : > { %12570 = vmatprep.subr.bf16.mxu0 %v13957_v58  ;;  %v2389_v34 = vshll.u32 %v11186_v0, 16  ;;  %v11194_v19 = vld [vmem:[%s14399_s15 + $0x4c] sm:$0xf] }
  0xec   : > { %12571 = vmatpush3.bf16.msra.mxu0 %v13957_v58  ;;  %v2394_v58 = vshrl.u32 %v11187_v25, 16 }
  0xed   : > { %12572 = vmatprep.subr.bf16.mxu0 %v13958_v8 }
  0xee   : > { %v2396_v12 = vrot.slane %v2394_v58, 4 }
  0xef   : > { %12541 = vmatmul.mubr.bf16.gmra.mrb[12].mxu0 %v18347_v10  ;;  %v11190_v10 = vld [vmem:[%s14399_s15 + $0x3c] sm:$0xf] }
  0xf0   : > { %12544 = vmatprep.mubr.bf16.mxu0 %v18348_v60  ;;  %12573 = vmatpush3.bf16.msra.mxu0 %v13958_v8  ;;  %v2376_v8 = vor.u32 %v2375_v61, %v2372_v55  ;;  %v2385_v60 = vrot.slane %v2383_v54, 4  ;;  %v2418_v9 = vshrl.u32 %v11190_v10, 16  ;;  %v2421_v37 = vshll.u32 %v11190_v10, 16  ;;  %v13971_v61 = vld [vmem:[%s18178_s1 + $0x118] sm:$0xff]  }
  0xf1   : > { %12574 = vmatprep.subr.bf16.mxu0 %v13959_v52  ;;  %v3127_v10 = vrot.slane %v11194_v19, 5 }
  0xf2   : > { %v15226_v36 = vrot.slane %v2376_v8, 4  ;;  %v2386_v33 = vor.u32 %v2385_v60, %v15219_v35  ;;  %v2420_v31 = vrot.slane %v2418_v9, 4  ;;  %v2423_v45 = vrot.slane %v2421_v37, 5  ;;  %v15290_v9 = vld [vmem:[%s14399_s15 + $0x58] sm:$0xf] }
  0xf3   : > { %v2455_v8 = vshrl.u32 %v11194_v19, 16  ;;  %v3130_v60 = vrot.slane %v11195_v29, 5 }
  0xf4   : > { %12575 = vmatpush3.bf16.msra.mxu0 %v13959_v52  ;;  %v2407_v52 = vshrl.u32 %v11188_v63, 16  ;;  %v15243_v38 = vrot.slane %v2386_v33, 4  ;;  %v2424_v25 = vor.u32 %v2423_v45, %v2420_v31  ;;  %v13970_v45 = vld [vmem:[%s14399_s15 + $0x60] sm:$0xff]  }
  0xf5   : > { %12608 = vmatprep.subr.bf16.mxu0 %v15167_v20 }
  0xf6   : > { %v2409_v47 = vrot.slane %v2407_v52, 4  ;;  %v15271_v0 = vrot.slane %v2424_v25, 4  ;;  %v11255_v52 = vld [vmem:[%s14399_s15 + $0x48] sm:$0xe] }
  0xf7   : > { %12545 = vmatmul.mubr.bf16.gmra.mrb[16].mxu0 %v11107_v59  ;;  %v2337_v59 = vrot.slane %v2335_v42, 4  ;;  %v11193_v42 = vld [vmem:[%s14399_s15 + $0x48] sm:$0xf] }
  0xf8   : > { %12548 = vmatprep.mubr.bf16.mxu0 %v18349_v30  ;;  %v2399_v30 = vrot.slane %v2397_v3, 5  ;;  %v2442_v22 = vshrl.u32 %v11193_v42, 16  ;;  %v2445_v55 = vshll.u32 %v11193_v42, 16  ;;  %v2451_v3 = vshll.u32 %v11194_v19, 16 }
  0xf9   : > { %v2338_v53 = vor.u32 %v2337_v59, %v15180_v43  ;;  %v13965_v59 = vld [vmem:[%s18178_s1 + $0x108] sm:$0xff]   ;;  %v3129_v42 = vrot.slane %v3127_v10, 4 }
  0xfa   : > { %v2400_v2 = vor.u32 %v2399_v30, %v2396_v12  ;;  %v15256_v28 = vrot.slane %v2442_v22, 4  ;;  %v2447_v58 = vrot.slane %v2445_v55, 5  ;;  %v11271_v30 = vrot.slane %v11255_v52, 9  ;;  %v13983_v55 = vld [vmem:[%s18178_s1 + $0x138] sm:$0xff]  }
  0xfb   : > { %v15297_v46 = vrot.slane %v2451_v3, 5  ;;  %v15342_v3 = vld [vmem:[%s14399_s15 + $0x7c] sm:$0xf] }
  0xfc   : > { %v15250_v49 = vrot.slane %v2400_v2, 4  ;;  %v11257_v2 = vld [vmem:[%s14399_s15 + $0x60] sm:$0xe]  ;;  %v2448_v25 = vor.u32 %v2447_v58, %v15256_v28  ;;  %v15345_v28 = vld [vmem:[%s14399_s15 + $0x80] sm:$0x1]  ;;  %v3155_v52 = vrot.slane %v15342_v3, 5 }
  0xfe   : > { %v15347_v58 = vrot.slane %v2448_v25, 4 }
  0xff   : > { %12549 = vmatmul.mubr.bf16.gmra.mrb[20].mxu0 %v18350_v50  ;;  %v2437_v50 = vshll.u32 %v11192_v40, 16 }
 0x100   : > { %12552 = vmatprep.mubr.bf16.mxu0 %v11110_v1  ;;  %v15200_v1 = vrot.slane %v2338_v53, 4  ;;  %v15245_v53 = vrot.slane %v2389_v34, 5  ;;  %v13967_v34 = vld [vmem:[%s14399_s15 + $0x48] sm:$0xff]  }
 0x107   : > { %12553 = vmatmul.mubr.bf16.gmra.mrb[24].mxu0 %v18351_v13  ;;  %v15259_v13 = vrot.slane %v2437_v50, 5  ;;  %v15305_v50 = vld [vmem:[%s14399_s15 + $0x68] sm:$0x1] }
 0x108   : > { %12556 = vmatprep.mubr.bf16.mxu0 %v11112_v41  ;;  %v2403_v41 = vshll.u32 %v11188_v63, 16  ;;  %v11196_v63 = vld [vmem:[%s14399_s15 + $0x54] sm:$0xf]  ;;  %v3144_v31 = vrot.slane %v15305_v50, 5 }
 0x109   : > { %v2466_v12 = vshrl.u32 %v11196_v63, 16  ;;  %v2469_v40 = vshll.u32 %v11196_v63, 16  ;;  %v15336_v63 = vld [vmem:[%s18178_s1 + $0x140] sm:$0xff]  }
 0x10a   : > { %v15228_v14 = vrot.slane %v2403_v41, 5  ;;  %v2461_v41 = vshll.u32 %v11195_v29, 16 }
 0x10b   : > { %v15309_v33 = vrot.slane %v2466_v12, 4 }
 0x10c   : > { %v2410_v6 = vor.u32 %v2409_v47, %v15228_v14  ;;  %v15283_v47 = vsel %vm14813_vm5, %v11271_v30, %v3127_v10  ;;  %v15307_v22 = vrot.slane %v2461_v41, 5  ;;  %v11259_v41 = vld [vmem:[%s14399_s15 + $0x78] sm:$0xe]  ;;  %v3158_v10 = vrot.slane %v15345_v28, 5  ;;  %v13975_v30 = vld [vmem:[%s14399_s15 + $0x84] sm:$0xff]  }
 0x10d   : > { %18352 = vst [vmem:[#allocation15_spill] sm:$0xff] %v15283_v47  ;;  %v11275_v12 = vrot.slane %v11259_v41, 9  ;;  %v11261_v41 = vld [vmem:[%s14399_s15 + $0x90] sm:$0xe]  ;;  %v13982_v47 = vld [vmem:[%s14399_s15 + $0xc0] sm:$0xff]  }
 0x10e   : > { %v15252_v44 = vrot.slane %v2410_v6, 4 }
 0x10f   : > { %12557 = vmatmul.mubr.bf16.gmra.mrb[28].mxu0 %v11113_v16  ;;  %v2431_v16 = vshrl.u32 %v11191_v11, 16  ;;  %v13969_v11 = vld [vmem:[%s14399_s15 + $0x54] sm:$0xff]  }
 0x110   : > { %12576 = vmatprep.mubr.bf16.mxu0 %v13960_v62  ;;  %v13974_v62 = vld [vmem:[%s18178_s1 + $0x120] sm:$0xff]  }
 0x111   : > { %v2433_v51 = vrot.slane %v2431_v16, 4  ;;  %v15299_v16 = vrot.slane %v2455_v8, 4  ;;  %v2479_v8 = vshrl.u32 %v15290_v9, 16 }
 0x113   : > { %v2434_v54 = vor.u32 %v2433_v51, %v15247_v24  ;;  %v11273_v51 = vrot.slane %v11257_v2, 9 }
 0x115   : > { %v15273_v7 = vrot.slane %v2434_v54, 4 }
 0x117   : > { %12577 = vmatmul.mubr.bf16.vlgmr.msra.gmra.mrb[0].mxu0 %v13961_v23  ;;  %v13977_v23 = vld [vmem:[%s18178_s1 + $0x128] sm:$0xff]  }
 0x118   : > { %12609 = vmatpush3.bf16.msra.mxu0 %v15167_v20  ;;  %12580 = vmatprep.mubr.bf16.mxu0 %v13963_v18  ;;  %v15254_v20 = vrot.slane %v2413_v32, 5  ;;  %v15287_v32 = vsel %vm14813_vm5, %v3129_v42, %v3130_v60  ;;  %v13980_v18 = vld [vmem:[%s18178_s1 + $0x130] sm:$0xff]   ;;  %v13973_v60 = vld [vmem:[%s14399_s15 + $0x78] sm:$0xff]   ;;  %v15359_v42 = vld [vmem:[%s14399_s15 + $0x60] sm:$0xf] }
 0x119   : > { %12610 = vmatprep.subr.bf16.mxu0 %v13965_v59  ;;  %18353 = vst [vmem:[#allocation9_spill] sm:$0xff] %v15287_v32 }
 0x11c   : > { %12611 = vmatpush3.bf16.msra.mxu0 %v13965_v59  ;;  %v15302_v59 = vld [vmem:[%s14399_s15 + $0x64] sm:$0xf] }
 0x11d   : > { %12612 = vmatprep.subr.bf16.mxu0 %v13968_v5  ;;  %v3141_v6 = vrot.slane %v15302_v59, 5 }
 0x11f   : > { %12581 = vmatmul.mubr.bf16.gmra.mrb[4].mxu0 %v13964_v57  ;;  %v13972_v57 = vld [vmem:[%s14399_s15 + $0x6c] sm:$0xff]   ;;  %v3143_v19 = vrot.slane %v3141_v6, 4 }
 0x120   : > { %12584 = vmatprep.mubr.bf16.mxu0 %v13966_v17  ;;  %12613 = vmatpush3.bf16.msra.mxu0 %v13968_v5  ;;  %v15315_v5 = vrot.slane %v2469_v40, 5  ;;  %v2475_v17 = vshll.u32 %v15290_v9, 16  ;;  %v3157_v40 = vrot.slane %v3155_v52, 4  ;;  %v15366_v9 = vld [vmem:[%s14399_s15 + $0x88] sm:$0xf] }
 0x121   : > { %12614 = vmatprep.subr.bf16.mxu0 %v13971_v61  ;;  %v15329_v29 = vsel %vm14813_vm5, %v3143_v19, %v3144_v31 }
 0x122   : > { %18355 = vst [vmem:[#allocation16_spill] sm:$0xff] %v15329_v29  ;;  %v15373_v2 = vsel %vm14813_vm5, %v3157_v40, %v3158_v10  ;;  %v13976_v10 = vld [vmem:[%s14399_s15 + $0x90] sm:$0xff]   ;;  %v13978_v40 = vld [vmem:[%s14399_s15 + $0x9c] sm:$0xff]   ;;  %v15453_v29 = vld [vmem:[%s14399_s15 + $0xb8] sm:$0xf] }
 0x123   : > { %18357 = vst [vmem:[#allocation13_spill] sm:$0xff] %v15373_v2  ;;  %v2493_v2 = vshll.u32 %v15359_v42, 16 }
 0x124   : > { %12615 = vmatpush3.bf16.msra.mxu0 %v13971_v61  ;;  %v15324_v61 = vsel %vm14813_vm5, %v11273_v51, %v3141_v6  ;;  %v15377_v6 = vld [vmem:[%s14399_s15 + $0x94] sm:$0xf]  ;;  %v15384_v51 = vld [vmem:[%s14399_s15 + $0x98] sm:$0x1] }
 0x125   : > { %12616 = vmatprep.subr.bf16.mxu0 %v13974_v62  ;;  %18354 = vst [vmem:[#allocation10_spill] sm:$0xff] %v15324_v61  ;;  %v2499_v61 = vshll.u32 %v15302_v59, 16 }
 0x127   : > { %12585 = vmatmul.mubr.bf16.gmra.mrb[8].mxu0 %v13967_v34  ;;  %v15354_v34 = vrot.slane %v2475_v17, 5  ;;  %v3162_v17 = vrot.slane %v15366_v9, 5 }
 0x128   : > { %12588 = vmatprep.mubr.bf16.mxu0 %v13969_v11  ;;  %12617 = vmatpush3.bf16.msra.mxu0 %v13974_v62  ;;  %v15339_v62 = vld [vmem:[%s14399_s15 + $0x5c] sm:$0x1]  ;;  %v15410_v11 = vld [vmem:[%s14399_s15 + $0xa0] sm:$0xf] }
 0x129   : > { %12618 = vmatprep.subr.bf16.mxu0 %v13977_v23 }
 0x12c   : > { %12619 = vmatpush3.bf16.msra.mxu0 %v13977_v23  ;;  %v15363_v23 = vsel %vm14813_vm5, %v11275_v12, %v3155_v52  ;;  %v3169_v52 = vrot.slane %v15377_v6, 5  ;;  %v11277_v12 = vrot.slane %v11261_v41, 9  ;;  %v15413_v41 = vld [vmem:[%s14399_s15 + $0xa4] sm:$0x1] }
 0x12d   : > { %12620 = vmatprep.subr.bf16.mxu0 %v13980_v18  ;;  %18356 = vst [vmem:[#allocation11_spill] sm:$0xff] %v15363_v23 }
 0x12e   : > { %v3171_v54 = vrot.slane %v3169_v52, 4  ;;  %v15407_v37 = vsel %vm14813_vm5, %v11277_v12, %v3169_v52  ;;  %v15427_v52 = vld [vmem:[%s14399_s15 + $0xb0] sm:$0x1]  ;;  %v3176_v12 = vrot.slane %v15410_v11, 5 }
 0x12f   : > { %12589 = vmatmul.mubr.bf16.gmra.mrb[12].mxu0 %v13970_v45  ;;  %v2458_v45 = vor.u32 %v15299_v16, %v15297_v46  ;;  %v3172_v16 = vrot.slane %v15384_v51, 5  ;;  %18360 = vst [vmem:[#allocation14_spill] sm:$0xff] %v15407_v37 }
 0x130   : > { %12592 = vmatprep.mubr.bf16.mxu0 %v13972_v57  ;;  %12621 = vmatpush3.bf16.msra.mxu0 %v13980_v18  ;;  %v15369_v18 = vld [vmem:[%s14399_s15 + $0x8c] sm:$0x1]  ;;  %v11260_v57 = vld [vmem:[%s14399_s15 + $0x84] sm:$0xe] }
 0x131   : > { %12622 = vmatprep.subr.bf16.mxu0 %v13983_v55  ;;  %v3165_v19 = vrot.slane %v15369_v18, 5  ;;  %v11276_v25 = vrot.slane %v11260_v57, 9  ;;  %v15395_v31 = vrot.slane %v2458_v45, 4  ;;  %v15432_v45 = vrot.slane %v2479_v8, 4 }
 0x134   : > { %12623 = vmatpush3.bf16.msra.mxu0 %v13983_v55  ;;  %v3179_v55 = vrot.slane %v15413_v41, 5 }
 0x135   : > { %12656 = vmatprep.subr.bf16.mxu0 %v15336_v63 }
 0x137   : > { %12593 = vmatmul.mubr.bf16.gmra.mrb[16].mxu0 %v13973_v60  ;;  %v3164_v60 = vrot.slane %v3162_v17, 4 }
 0x138   : > { %12596 = vmatprep.mubr.bf16.mxu0 %v13975_v30  ;;  %v15399_v30 = vsel %vm14813_vm5, %v11276_v25, %v3162_v17  ;;  %v15419_v17 = vsel %vm14813_vm5, %v3171_v54, %v3172_v16  ;;  %v15422_v25 = vld [vmem:[%s14399_s15 + $0xac] sm:$0xf]  ;;  %v11263_v16 = vld [vmem:[%s14399_s15 + $0xa8] sm:$0xe] }
 0x139   : > { %18358 = vst [vmem:[#allocation12_spill] sm:$0xff] %v15399_v30  ;;  %v15403_v57 = vsel %vm14813_vm5, %v3164_v60, %v3165_v19  ;;  %18361 = vst [vmem:[#allocation17_spill] sm:$0xff] %v15419_v17  ;;  %v11262_v60 = vld [vmem:[%s14399_s15 + $0x9c] sm:$0xe]  ;;  %v3186_v19 = vrot.slane %v15427_v52, 5  ;;  %v3178_v17 = vrot.slane %v3176_v12, 4 }
 0x13a   : > { %18359 = vst [vmem:[#allocation18_spill] sm:$0xff] %v15403_v57  ;;  %v11278_v54 = vrot.slane %v11262_v60, 9  ;;  %v3183_v57 = vrot.slane %v15422_v25, 5  ;;  %v11279_v37 = vrot.slane %v11263_v16, 9  ;;  %v13981_v30 = vld [vmem:[%s14399_s15 + $0xb4] sm:$0xff]  }
 0x13b   : > { %v15446_v60 = vsel %vm14813_vm5, %v3178_v17, %v3179_v55  ;;  %v15456_v16 = vld [vmem:[%s14399_s15 + $0xbc] sm:$0x1]  ;;  %v3190_v17 = vrot.slane %v15453_v29, 5  ;;  %v2344_v55 = vsel %vm14471_vm2, %v15200_v1, %v15202_v21 }
 0x13c   : > { %v3185_v8 = vrot.slane %v3183_v57, 4  ;;  %18363 = vst [vmem:[#allocation20_spill] sm:$0xff] %v15446_v60  ;;  %v15450_v23 = vsel %vm14813_vm5, %v11279_v37, %v3183_v57  ;;  %18365 = vst [vmem:[#allocation23_spill] sm:$0xff] %v15456_v16  ;;  %v15470_v37 = vld [vmem:[%s14399_s15 + $0xc8] sm:$0x1]  ;;  %v3193_v32 = vrot.slane %v15456_v16, 5 }
 0x13d   : > { %18364 = vst [vmem:[#allocation21_spill] sm:$0xff] %v15450_v23  ;;  %18368 = vst [vmem:[#allocation26_spill] sm:$0xff] %v15470_v37  ;;  %v11264_v57 = vld [vmem:[%s14399_s15 + $0xb4] sm:$0xe]  ;;  %v11202_v16 = vld [vmem:[%s14399_s15 + $0x6c] sm:$0xf] }
 0x13e   : > { %v11280_v60 = vrot.slane %v11264_v57, 9  ;;  %v2503_v57 = vshrl.u32 %v15302_v59, 16 }
 0x13f   : > { %12597 = vmatmul.mubr.bf16.gmra.mrb[20].mxu0 %v13976_v10  ;;  %v13979_v10 = vld [vmem:[%s14399_s15 + $0xa8] sm:$0xff]  }
 0x140   : > { %12600 = vmatprep.mubr.bf16.mxu0 %v13978_v40  ;;  %v15442_v40 = vsel %vm14813_vm5, %v11278_v54, %v3176_v12  ;;  %v15462_v12 = vsel %vm14813_vm5, %v3185_v8, %v3186_v19  ;;  %v15465_v54 = vld [vmem:[%s14399_s15 + $0xc4] sm:$0xf]  ;;  %v11265_v19 = vld [vmem:[%s14399_s15 + $0xc0] sm:$0xe]  ;;  %v15491_v23 = vsel %vm14813_vm5, %v11280_v60, %v3190_v17 }
 0x141   : > { %18362 = vst [vmem:[#allocation19_spill] sm:$0xff] %v15442_v40  ;;  %18366 = vst [vmem:[#allocation24_spill] sm:$0xff] %v15462_v12  ;;  %v3197_v8 = vrot.slane %v15465_v54, 5  ;;  %v3200_v40 = vrot.slane %v15470_v37, 5  ;;  %v11281_v12 = vrot.slane %v11265_v19, 9  ;;  %v2358_v19 = vsel %vm14471_vm2, %v15204_v39, %v15192_v56  ;;  %v13985_v39 = vld [vmem:[%s18178_s1 + $0x148] sm:$0xff]  }
 0x142   : > { %18367 = vst [vmem:[#allocation25_spill] sm:$0xff] %v15465_v54 }
 0x143   : > { %v3199_v37 = vrot.slane %v3197_v8, 4 }
 0x145   : > { %v15506_v21 = vsel %vm14813_vm5, %v3199_v37, %v3200_v40  ;;  %v2368_v40 = vsel %vm14471_vm2, %v15216_v26, %v15206_v48  ;;  %v2517_v37 = vshll.u32 %v11202_v16, 16  ;;  %v2472_v26 = vor.u32 %v15315_v5, %v15309_v33 }
 0x146   : > { %v11227_v56 = vcombine.low %v2358_v19, %v2368_v40  ;;  %v2440_v33 = vsel %vm14471_vm2, %v15273_v7, %v15259_v13  ;;  %v2547_v7 = vshll.u32 %v15342_v3, 16 }
 0x147   : > { %12601 = vmatmul.mubr.bf16.gmra.mrb[24].mxu0 %v13979_v10  ;;  %v2334_v10 = vsel %vm14471_vm2, %v15194_v27, %v15180_v43  ;;  %v15500_v43 = vsel %vm14813_vm5, %v11281_v12, %v3197_v8  ;;  %v15512_v12 = vrot.slane %v2499_v61, 5  ;;  %v2382_v61 = vsel %vm14471_vm2, %v15226_v36, %v15219_v35 }
 0x148   : > { %12604 = vmatprep.mubr.bf16.mxu0 %v13981_v30  ;;  %v3192_v30 = vrot.slane %v3190_v17, 4  ;;  %v11226_v27 = vcombine.low %v2334_v10, %v2344_v55  ;;  %v11297_v59 = vcombine.low %v15500_v43, %v15506_v21  ;;  %v2495_v17 = vrot.slane %v2493_v2, 5  ;;  %v15531_v2 = vld [vmem:[%s14399_s15 + $0x70] sm:$0xf]  ;;  %v14006_v43 = vld [vmem:[%s14399_s15 + $0x48] sm:$0xff]  }
 0x149   : > { %v2505_v55 = vrot.slane %v2503_v57, 4  ;;  %v2406_v35 = vsel %vm14471_vm2, %v15250_v49, %v15228_v14  ;;  %v2416_v36 = vsel %vm14471_vm2, %v15252_v44, %v15254_v20  ;;  %v2523_v14 = vshll.u32 %v15531_v2, 16  ;;  %v15805_v21 = vld [vmem:[%s14399_s15 + $0x58] sm:$0xf] }
 0x14a   : > { %v15496_v54 = vsel %vm14813_vm5, %v3192_v30, %v3193_v32  ;;  %v18369_v32 = vshrl.u32 %v15359_v42, 16  ;;  %v2392_v42 = vsel %vm14471_vm2, %v15243_v38, %v15245_v53  ;;  %v2482_v38 = vor.u32 %v15432_v45, %v15354_v34 }
 0x14b   : > { %v11296_v1 = vcombine.low %v15491_v23, %v15496_v54  ;;  %v11228_v48 = vcombine.low %v2382_v61, %v2392_v42  ;;  %v2430_v53 = vsel %vm14471_vm2, %v15271_v0, %v15247_v24  ;;  %v2527_v49 = vshrl.u32 %v15531_v2, 16  ;;  %v13986_v24 = vld [vmem:[%s18178_s1 + $0x150] sm:$0xff]   ;;  %v13987_v61 = vld [vmem:[%s18178_s1 + $0x158] sm:$0xff]  }
 0x14c   : > { %v2492_v60 = vrot.slane %v18369_v32, 4  ;;  %v2473_v44 = vrot.slane %v2472_v26, 4  ;;  %v18370_v20 = vshll.u32 %v15339_v62, 16  ;;  %v2519_v8 = vrot.slane %v2517_v37, 5  ;;  %v14008_v23 = vld [vmem:[%s18178_s1 + $0x1d0] sm:$0xff]   ;;  %v14004_v54 = vld [vmem:[%s14399_s15 + $0x3c] sm:$0xff]  }
 0x14d   : > { %v2483_v10 = vrot.slane %v2482_v38, 4  ;;  %v2506_v57 = vor.u32 %v2505_v55, %v15512_v12  ;;  %v11229_v32 = vcombine.low %v2406_v35, %v2416_v36  ;;  %v11230_v19 = vcombine.low %v2430_v53, %v2440_v33  ;;  %v11208_v55 = vld [vmem:[%s14399_s15 + $0x84] sm:$0xf] }
 0x14e   : > { %v2487_v5 = vrot.slane %v18370_v20, 5  ;;  %v2496_v30 = vor.u32 %v2495_v17, %v2492_v60  ;;  %v15569_v40 = vrot.slane %v2523_v14, 5  ;;  %v2454_v37 = vsel %vm14471_vm2, %v15347_v58, %v15297_v46  ;;  %v15583_v60 = vld [vmem:[%s14399_s15 + $0x74] sm:$0x1]  ;;  %v11211_v20 = vld [vmem:[%s14399_s15 + $0x90] sm:$0xf] }
 0x14f   : > { %12605 = vmatmul.mubr.bf16.gmra.mrb[28].mxu0 %v13982_v47  ;;  %v2514_v47 = vshrl.u32 %v11202_v16, 16  ;;  %v11205_v16 = vld [vmem:[%s14399_s15 + $0x78] sm:$0xf]  ;;  %v15589_v58 = vrot.slane %v2547_v7, 5  ;;  %v2533_v26 = vshll.u32 %v15583_v60, 16  ;;  %v2565_v35 = vshll.u32 %v11208_v55, 16 }
 0x150   : > { %12624 = vmatprep.mubr.bf16.mxu0 %v11226_v27  ;;  %v2538_v0 = vshrl.u32 %v11205_v16, 16  ;;  %v2541_v13 = vshll.u32 %v11205_v16, 16  ;;  %v2509_v27 = vshll.u32 %v15305_v50, 16  ;;  %v2478_v50 = vsel %vm14471_vm2, %v2473_v44, %v15354_v34  ;;  %v13988_v44 = vld [vmem:[%s18178_s1 + $0x160] sm:$0xff]  }
 0x151   : > { %v2516_v45 = vrot.slane %v2514_v47, 4  ;;  %v2529_v47 = vrot.slane %v2527_v49, 4  ;;  %v2562_v16 = vshrl.u32 %v11208_v55, 16  ;;  %v2571_v36 = vshll.u32 %v15366_v9, 16 }
 0x152   : > { %v2540_v42 = vrot.slane %v2538_v0, 4  ;;  %v2543_v46 = vrot.slane %v2541_v13, 5  ;;  %v2511_v34 = vrot.slane %v2509_v27, 5  ;;  %v2575_v38 = vshrl.u32 %v15366_v9, 16 }
 0x153   : > { %v2520_v17 = vor.u32 %v2519_v8, %v2516_v45  ;;  %v2557_v49 = vshll.u32 %v15345_v28, 16  ;;  %v2535_v0 = vrot.slane %v2533_v26, 5  ;;  %v2564_v13 = vrot.slane %v2562_v16, 4 }
 0x154   : > { %v2544_v33 = vor.u32 %v2543_v46, %v2540_v42  ;;  %v2567_v7 = vrot.slane %v2565_v35, 5  ;;  %v15609_v28 = vrot.slane %v2571_v36, 5  ;;  %v2623_v42 = vshrl.u32 %v15410_v11, 16 }
 0x155   : > { %v2521_v53 = vrot.slane %v2520_v17, 4 }
 0x156   : > { %v2568_v46 = vor.u32 %v2567_v7, %v2564_v13 }
 0x157   : > { %12625 = vmatmul.mubr.bf16.vlgmr.msra.gmra.mrb[0].mxu0 %v11227_v56  ;;  %v2526_v27 = vsel %vm14471_vm2, %v2521_v53, %v15569_v40  ;;  %v2625_v53 = vrot.slane %v2623_v42, 4 }
 0x158   : > { %12657 = vmatpush3.bf16.msra.mxu0 %v15336_v63  ;;  %12628 = vmatprep.mubr.bf16.mxu0 %v11228_v48  ;;  %v2551_v63 = vshrl.u32 %v15342_v3, 16  ;;  %v2464_v3 = vsel %vm14471_vm2, %v15395_v31, %v15307_v22  ;;  %v2488_v22 = vsel %vm14471_vm2, %v2483_v10, %v2487_v5  ;;  %v2497_v31 = vrot.slane %v2496_v30, 4 }
 0x159   : > { %12658 = vmatprep.subr.bf16.mxu0 %v13985_v39  ;;  %v2530_v48 = vor.u32 %v2529_v47, %v15569_v40  ;;  %v11231_v5 = vcombine.low %v2454_v37, %v2464_v3  ;;  %v11232_v45 = vcombine.low %v2478_v50, %v2488_v22  ;;  %v2577_v10 = vrot.slane %v2575_v38, 4  ;;  %v13989_v47 = vld [vmem:[%s18178_s1 + $0x168] sm:$0xff]  }
 0x15a   : > { %v2553_v56 = vrot.slane %v2551_v63, 4  ;;  %v2502_v8 = vsel %vm14471_vm2, %v2497_v31, %v15512_v12  ;;  %v11214_v63 = vld [vmem:[%s14399_s15 + $0x9c] sm:$0xf]  ;;  %v2586_v30 = vshrl.u32 %v11211_v20, 16  ;;  %v2595_v37 = vshll.u32 %v15377_v6, 16 }
 0x15b   : > { %v2599_v3 = vshrl.u32 %v15377_v6, 16  ;;  %v2610_v50 = vshrl.u32 %v11214_v63, 16  ;;  %v2613_v17 = vshll.u32 %v11214_v63, 16  ;;  %v2581_v40 = vshll.u32 %v15369_v18, 16 }
 0x15c   : > { %12659 = vmatpush3.bf16.msra.mxu0 %v13985_v39  ;;  %v2507_v39 = vrot.slane %v2506_v57, 4  ;;  %v2554_v14 = vor.u32 %v2553_v56, %v15589_v58  ;;  %v2589_v57 = vshll.u32 %v11211_v20, 16  ;;  %v2578_v56 = vor.u32 %v2577_v10, %v15609_v28 }
 0x15d   : > { %12660 = vmatprep.subr.bf16.mxu0 %v13986_v24  ;;  %v2588_v22 = vrot.slane %v2586_v30, 4  ;;  %v2612_v26 = vrot.slane %v2610_v50, 4  ;;  %v2615_v16 = vrot.slane %v2613_v17, 5  ;;  %v2583_v36 = vrot.slane %v2581_v40, 5 }
 0x15e   : > { %v2512_v9 = vsel %vm14471_vm2, %v2507_v39, %v2511_v34  ;;  %v2555_v12 = vrot.slane %v2554_v14, 4  ;;  %v2591_v6 = vrot.slane %v2589_v57, 5  ;;  %v15633_v34 = vrot.slane %v2595_v37, 5 }
 0x15f   : > { %12629 = vmatmul.mubr.bf16.gmra.mrb[4].mxu0 %v11229_v32  ;;  %v2545_v32 = vrot.slane %v2544_v33, 4  ;;  %v11233_v31 = vcombine.low %v2502_v8, %v2512_v9  ;;  %v2569_v33 = vrot.slane %v2568_v46, 4  ;;  %v2579_v14 = vrot.slane %v2578_v56, 4 }
 0x160   : > { %12632 = vmatprep.mubr.bf16.mxu0 %v11230_v19  ;;  %12661 = vmatpush3.bf16.msra.mxu0 %v13986_v24  ;;  %v2531_v24 = vrot.slane %v2530_v48, 4  ;;  %v2559_v19 = vrot.slane %v2557_v49, 5  ;;  %v2601_v48 = vrot.slane %v2599_v3, 4  ;;  %v2592_v49 = vor.u32 %v2591_v6, %v2588_v22  ;;  %v11223_v22 = vld [vmem:[%s14399_s15 + $0xc0] sm:$0xf] }
 0x161   : > { %12662 = vmatprep.subr.bf16.mxu0 %v13987_v61  ;;  %v2550_v39 = vsel %vm14471_vm2, %v2545_v32, %v15589_v58  ;;  %v11217_v58 = vld [vmem:[%s14399_s15 + $0xa8] sm:$0xf]  ;;  %v2616_v8 = vor.u32 %v2615_v16, %v2612_v26  ;;  %v2629_v9 = vshll.u32 %v15413_v41, 16  ;;  %v2647_v63 = vshrl.u32 %v15422_v25, 16 }
 0x162   : > { %v2536_v55 = vsel %vm14471_vm2, %v2531_v24, %v2535_v0  ;;  %v2560_v18 = vsel %vm14471_vm2, %v2555_v12, %v2559_v19  ;;  %v2634_v24 = vshrl.u32 %v11217_v58, 16  ;;  %v11220_v0 = vld [vmem:[%s14399_s15 + $0xb4] sm:$0xf]  ;;  %v2637_v7 = vshll.u32 %v11217_v58, 16 }
 0x163   : > { %v11234_v35 = vcombine.low %v2526_v27, %v2536_v55  ;;  %v11235_v20 = vcombine.low %v2550_v39, %v2560_v18  ;;  %v2574_v10 = vsel %vm14471_vm2, %v2569_v33, %v15609_v28  ;;  %v2584_v30 = vsel %vm14471_vm2, %v2579_v14, %v2583_v36  ;;  %v18371_v36 = vld [vmem:[#allocation25_spill] sm:$0xff] }
 0x164   : > { %12663 = vmatpush3.bf16.msra.mxu0 %v13987_v61  ;;  %v2619_v61 = vshll.u32 %v15410_v11, 16  ;;  %v13990_v11 = vld [vmem:[%s18178_s1 + $0x170] sm:$0xff]   ;;  %v2593_v57 = vrot.slane %v2592_v49, 4  ;;  %v2658_v27 = vshrl.u32 %v11220_v0, 16  ;;  %v2661_v32 = vshll.u32 %v11220_v0, 16 }
 0x165   : > { %12664 = vmatprep.subr.bf16.mxu0 %v13988_v44  ;;  %v2667_v12 = vshll.u32 %v15453_v29, 16  ;;  %v2671_v19 = vshrl.u32 %v15453_v29, 16  ;;  %v2631_v37 = vrot.slane %v2629_v9, 5  ;;  %v2636_v3 = vrot.slane %v2634_v24, 4 }
 0x166   : > { %v15635_v38 = vrot.slane %v2619_v61, 5  ;;  %v2639_v17 = vrot.slane %v2637_v7, 5  ;;  %v2649_v40 = vrot.slane %v2647_v63, 4  ;;  %v11236_v61 = vcombine.low %v2574_v10, %v2584_v30 }
 0x167   : > { %12633 = vmatmul.mubr.bf16.gmra.mrb[8].mxu0 %v11231_v5  ;;  %v13991_v5 = vld [vmem:[%s18178_s1 + $0x178] sm:$0xff]   ;;  %v2660_v42 = vrot.slane %v2658_v27, 4  ;;  %v2663_v46 = vrot.slane %v2661_v32, 5  ;;  %v2669_v29 = vrot.slane %v2667_v12, 5  ;;  %v2673_v56 = vrot.slane %v2671_v19, 4 }
 0x168   : > { %12636 = vmatprep.mubr.bf16.mxu0 %v11232_v45  ;;  %12665 = vmatpush3.bf16.msra.mxu0 %v13988_v44  ;;  %v2605_v44 = vshll.u32 %v15384_v51, 16  ;;  %v2602_v45 = vor.u32 %v2601_v48, %v15633_v34  ;;  %v2626_v13 = vor.u32 %v2625_v53, %v15635_v38  ;;  %v2643_v51 = vshll.u32 %v15422_v25, 16  ;;  %v15658_v25 = vld [vmem:[%s18178_s1 + $0x180] sm:$0xff]   ;;  %v14156_v12 = vld [vmem:[%s14399_s15 + $0x10] sm:$0xf] }
 0x169   : > { %12666 = vmatprep.subr.bf16.mxu0 %v13989_v47  ;;  %v2598_v6 = vsel %vm14471_vm2, %v2593_v57, %v15633_v34  ;;  %v2653_v39 = vshll.u32 %v15427_v52, 16  ;;  %v2640_v48 = vor.u32 %v2639_v17, %v2636_v3  ;;  %v2682_v16 = vshrl.u32 %v11223_v22, 16  ;;  %v18372_v52 = vld [vmem:[#allocation23_spill] sm:$0xff]  ;;  %v18373_v57 = vld [vmem:[#allocation26_spill] sm:$0xff] }
 0x16a   : > { %v2607_v41 = vrot.slane %v2605_v44, 5  ;;  %v2603_v28 = vrot.slane %v2602_v45, 4  ;;  %v2627_v50 = vrot.slane %v2626_v13, 4  ;;  %v2645_v55 = vrot.slane %v2643_v51, 5 }
 0x16b   : > { %v2691_v34 = vshll.u32 %v18371_v36, 16  ;;  %v2695_v53 = vshrl.u32 %v18371_v36, 16  ;;  %v2664_v58 = vor.u32 %v2663_v46, %v2660_v42  ;;  %v2674_v33 = vor.u32 %v2673_v56, %v2669_v29  ;;  %v14158_v56 = vld [vmem:[%s14399_s15 + $0x1c] sm:$0xf] }
 0x16c   : > { %12667 = vmatpush3.bf16.msra.mxu0 %v13989_v47  ;;  %v2617_v47 = vrot.slane %v2616_v8, 4  ;;  %v2650_v26 = vor.u32 %v2649_v40, %v2645_v55  ;;  %v2677_v14 = vshll.u32 %v18372_v52, 16  ;;  %v2684_v45 = vrot.slane %v2682_v16, 4  ;;  %v14161_v52 = vld [vmem:[%s14399_s15 + $0x2c] sm:$0x1] }
 0x16d   : > { %12668 = vmatprep.subr.bf16.mxu0 %v13990_v11  ;;  %v2693_v9 = vrot.slane %v2691_v34, 5  ;;  %v2697_v24 = vrot.slane %v2695_v53, 4  ;;  %v2665_v0 = vrot.slane %v2664_v58, 4  ;;  %v2675_v13 = vrot.slane %v2674_v33, 4  ;;  %v14160_v34 = vld [vmem:[%s14399_s15 + $0x20] sm:$0x1] }
 0x16e   : > { %v2622_v18 = vsel %vm14471_vm2, %v2617_v47, %v15635_v38  ;;  %v2651_v38 = vrot.slane %v2650_v26, 4  ;;  %v2679_v7 = vrot.slane %v2677_v14, 5  ;;  %v3092_v19 = vrot.slane %v14156_v12, 5 }
 0x16f   : > { %12637 = vmatmul.mubr.bf16.gmra.mrb[12].mxu0 %v11233_v31  ;;  %v2608_v31 = vsel %vm14471_vm2, %v2603_v28, %v2607_v41  ;;  %v2698_v30 = vor.u32 %v2697_v24, %v2693_v9  ;;  %v2701_v41 = vshll.u32 %v18373_v57, 16  ;;  %v2670_v27 = vsel %vm14471_vm2, %v2665_v0, %v2669_v29  ;;  %v11250_v28 = vld [vmem:[%s14399_s15 + $0xc] sm:$0xe]  ;;  %v11254_v0 = vld [vmem:[%s14399_s15 + $0x3c] sm:$0xe] }
 0x170   : > { %12640 = vmatprep.mubr.bf16.mxu0 %v11234_v35  ;;  %12669 = vmatpush3.bf16.msra.mxu0 %v13990_v11  ;;  %v2632_v11 = vsel %vm14471_vm2, %v2627_v50, %v2631_v37  ;;  %v2685_v35 = vshll.u32 %v11223_v22, 16  ;;  %v11237_v49 = vcombine.low %v2598_v6, %v2608_v31  ;;  %v2680_v32 = vsel %vm14471_vm2, %v2675_v13, %v2679_v7  ;;  %v13993_v57 = vld [vmem:[%s18178_s1 + $0x188] sm:$0xff]  }
 0x171   : > { %12670 = vmatprep.subr.bf16.mxu0 %v13991_v5  ;;  %v11238_v44 = vcombine.low %v2622_v18, %v2632_v11  ;;  %v11240_v37 = vcombine.low %v2670_v27, %v2680_v32  ;;  %v2699_v50 = vrot.slane %v2698_v30, 4  ;;  %v2703_v17 = vrot.slane %v2701_v41, 5  ;;  %v14159_v18 = vld [vmem:[%s14399_s15 + $0x28] sm:$0xf]  ;;  %v14165_v32 = vld [vmem:[%s14399_s15 + $0x44] sm:$0x1] }
 0x172   : > { %v2687_v8 = vrot.slane %v2685_v35, 5  ;;  %v3094_v40 = vrot.slane %v3092_v19, 4  ;;  %v3099_v22 = vrot.slane %v14158_v56, 5  ;;  %v3106_v11 = vrot.slane %v14159_v18, 5 }
 0x173   : > { %v2704_v29 = vsel %vm14471_vm2, %v2699_v50, %v2703_v17  ;;  %v3102_v53 = vrot.slane %v14160_v34, 5  ;;  %v3109_v14 = vrot.slane %v14161_v52, 5  ;;  %v11270_v41 = vrot.slane %v11254_v0, 9  ;;  %v14166_v50 = vld [vmem:[%s14399_s15 + $0x58] sm:$0xf]  ;;  %v18378_v52 = vld [vmem:[#allocation16_spill] sm:$0xff] }
 0x174   : > { %12671 = vmatpush3.bf16.msra.mxu0 %v13991_v5  ;;  %v2655_v5 = vrot.slane %v2653_v39, 5  ;;  %v2688_v10 = vor.u32 %v2687_v8, %v2684_v45  ;;  %v11251_v39 = vld [vmem:[%s14399_s15 + $0x18] sm:$0xe]  ;;  %v3101_v36 = vrot.slane %v3099_v22, 4  ;;  %v3108_v33 = vrot.slane %v3106_v11, 4 }
 0x175   : > { %12704 = vmatprep.subr.bf16.mxu0 %v15658_v25  ;;  %v11267_v35 = vrot.slane %v11251_v39, 9  ;;  %v11253_v8 = vld [vmem:[%s14399_s15 + $0x30] sm:$0xe]  ;;  %v3123_v12 = vrot.slane %v14165_v32, 5  ;;  %v11256_v17 = vld [vmem:[%s14399_s15 + $0x54] sm:$0xe] }
 0x176   : > { %v2656_v63 = vsel %vm14471_vm2, %v2651_v38, %v2655_v5  ;;  %v2689_v3 = vrot.slane %v2688_v10, 4  ;;  %v3110_v45 = vsel %vm14813_vm5, %v3108_v33, %v3109_v14  ;;  %v14164_v10 = vld [vmem:[%s14399_s15 + $0x38] sm:$0x1]  ;;  %v18377_v33 = vld [vmem:[#allocation10_spill] sm:$0xff]  ;;  %v14005_v32 = vld [vmem:[%s18178_s1 + $0x1c8] sm:$0xff]  }
 0x177   : > { %12641 = vmatmul.mubr.bf16.gmra.mrb[16].mxu0 %v11235_v20  ;;  %v2641_v20 = vrot.slane %v2640_v48, 4  ;;  %v11252_v48 = vld [vmem:[%s14399_s15 + $0x24] sm:$0xe]  ;;  %v3116_v30 = vrot.slane %v14164_v10, 5  ;;  %v18379_v14 = vcombine.low %v18377_v33, %v18378_v52  ;;  %v18393_v10 = vld [vmem:[#allocation24_spill] sm:$0xff] }
 0x178   : > { %12644 = vmatprep.mubr.bf16.mxu0 %v11236_v61  ;;  %v14157_v61 = vld [vmem:[%s14399_s15 + $0x14] sm:$0x1]  ;;  %v2694_v46 = vsel %vm14471_vm2, %v2689_v3, %v2693_v9  ;;  %v11268_v58 = vrot.slane %v11252_v48, 9  ;;  %v14163_v9 = vld [vmem:[%s14399_s15 + $0x40] sm:$0xf]  ;;  %v3151_v48 = vrot.slane %v15583_v60, 5 }
 0x179   : > { %v2646_v51 = vsel %vm14471_vm2, %v2641_v20, %v2645_v55  ;;  %v11266_v55 = vrot.slane %v11250_v28, 9  ;;  %v3095_v42 = vrot.slane %v14157_v61, 5  ;;  %v11241_v26 = vcombine.low %v2694_v46, %v2704_v29  ;;  %v14162_v20 = vld [vmem:[%s14399_s15 + $0x34] sm:$0xf]  ;;  %v13995_v29 = vld [vmem:[%s18178_s1 + $0x198] sm:$0xff]  }
 0x17a   : > { %v11239_v47 = vcombine.low %v2646_v51, %v2656_v63  ;;  %v3113_v38 = vrot.slane %v14162_v20, 5  ;;  %v3107_v5 = vsel %vm14813_vm5, %v11268_v58, %v3106_v11  ;;  %v3120_v24 = vrot.slane %v14163_v9, 5  ;;  %v13994_v3 = vld [vmem:[%s18178_s1 + $0x190] sm:$0xff]   ;;  %v13999_v58 = vld [vmem:[%s18178_s1 + $0x1b8] sm:$0xff]   ;;  %v18386_v9 = vld [vmem:[#allocation14_spill] sm:$0xff] }
 0x17b   : > { %v3093_v6 = vsel %vm14813_vm5, %v11266_v55, %v3092_v19  ;;  %v3096_v31 = vsel %vm14813_vm5, %v3094_v40, %v3095_v42  ;;  %v11284_v7 = vcombine.low %v3107_v5, %v3110_v45  ;;  %v11269_v51 = vrot.slane %v11253_v8, 9  ;;  %v13998_v60 = vld [vmem:[%s18178_s1 + $0x1b0] sm:$0xff]   ;;  %v18381_v20 = vld [vmem:[#allocation13_spill] sm:$0xff]  ;;  %v18384_v45 = vld [vmem:[#allocation18_spill] sm:$0xff] }
 0x17c   : > { %v11282_v16 = vcombine.low %v3093_v6, %v3096_v31  ;;  %v3115_v63 = vrot.slane %v3113_v38, 4  ;;  %v3122_v27 = vrot.slane %v3120_v24, 4  ;;  %v11272_v61 = vrot.slane %v11256_v17, 9  ;;  %v11258_v31 = vld [vmem:[%s14399_s15 + $0x6c] sm:$0xe]  ;;  %v18383_v5 = vld [vmem:[#allocation12_spill] sm:$0xff] }
 0x17d   : > { %v3114_v19 = vsel %vm14813_vm5, %v11269_v51, %v3113_v38  ;;  %v3137_v46 = vrot.slane %v15339_v62, 5  ;;  %v3148_v6 = vrot.slane %v15531_v2, 5  ;;  %v13996_v62 = vld [vmem:[%s18178_s1 + $0x1a0] sm:$0xff]   ;;  %v11274_v18 = vrot.slane %v11258_v31, 9  ;;  %v15819_v17 = vld [vmem:[%s14399_s15 + $0x1c] sm:$0xf] }
 0x17e   : > { %v3117_v28 = vsel %vm14813_vm5, %v3115_v63, %v3116_v30  ;;  %v18385_v8 = vcombine.low %v18383_v5, %v18384_v45  ;;  %v18392_v63 = vld [vmem:[#allocation21_spill] sm:$0xff]  ;;  %v3971_v31 = vshrl.u32 %v15819_v17, 16 }
 0x17f   : > { %12645 = vmatmul.mubr.bf16.gmra.mrb[20].mxu0 %v11237_v49  ;;  %v3100_v49 = vsel %vm14813_vm5, %v11267_v35, %v3099_v22  ;;  %v11285_v55 = vcombine.low %v3114_v19, %v3117_v28  ;;  %v3150_v11 = vrot.slane %v3148_v6, 4  ;;  %v18375_v35 = vld [vmem:[#allocation9_spill] sm:$0xff]  ;;  %v3149_v2 = vsel %vm14813_vm5, %v11274_v18, %v3148_v6 }
 0x180   : > { %12648 = vmatprep.mubr.bf16.mxu0 %v11238_v44  ;;  %v3103_v44 = vsel %vm14813_vm5, %v3101_v36, %v3102_v53  ;;  %v18394_v30 = vcombine.low %v18392_v63, %v18393_v10  ;;  %v4763_v19 = vrot.slane %v15805_v21, 5  ;;  %v3973_v52 = vrot.slane %v3971_v31, 4  ;;  %v14012_v45 = vld [vmem:[%s14399_s15 + $0x78] sm:$0xff]   ;;  %v14015_v31 = vld [vmem:[%s14399_s15 + $0x90] sm:$0xff]  }
 0x181   : > { %v11283_v13 = vcombine.low %v3100_v49, %v3103_v44  ;;  %v3152_v34 = vsel %vm14813_vm5, %v3150_v11, %v3151_v48  ;;  %v14002_v49 = vld [vmem:[%s18178_s1 + $0x1c0] sm:$0xff]   ;;  %v18380_v44 = vld [vmem:[#allocation11_spill] sm:$0xff]  ;;  %v15842_v11 = vld [vmem:[%s14399_s15 + $0x70] sm:$0xf] }
 0x182   : > { %v11290_v53 = vcombine.low %v3149_v2, %v3152_v34  ;;  %v18382_v38 = vcombine.low %v18380_v44, %v18381_v20  ;;  %v15845_v48 = vld [vmem:[%s14399_s15 + $0x74] sm:$0x1]  ;;  %v15859_v44 = vld [vmem:[%s14399_s15 + $0x20] sm:$0x1] }
 0x183   : > { %v4780_v2 = vrot.slane %v15845_v48, 5  ;;  %v14020_v34 = vld [vmem:[%s18178_s1 + $0x1f0] sm:$0xff]  }
 0x187   : > { %12649 = vmatmul.mubr.bf16.gmra.mrb[24].mxu0 %v11239_v47  ;;  %v3121_v47 = vsel %vm14813_vm5, %v11270_v41, %v3120_v24  ;;  %v18387_v24 = vld [vmem:[#allocation17_spill] sm:$0xff]  ;;  %v14001_v41 = vld [vmem:[%s14399_s15 + $0x24] sm:$0xff]  }
 0x188   : > { %12652 = vmatprep.mubr.bf16.mxu0 %v11240_v37  ;;  %v3124_v37 = vsel %vm14813_vm5, %v3122_v27, %v3123_v12  ;;  %v18388_v0 = vcombine.low %v18386_v9, %v18387_v24  ;;  %v14003_v27 = vld [vmem:[%s14399_s15 + $0x30] sm:$0xff]  }
 0x189   : > { %v11286_v40 = vcombine.low %v3121_v47, %v3124_v37  ;;  %v11439_v12 = vld [vmem:[%s14399_s15 + $0x54] sm:$0xe]  ;;  %v14014_v47 = vld [vmem:[%s18178_s1 + $0x1e0] sm:$0xff]  }
 0x18a   : > { %v11455_v37 = vrot.slane %v11439_v12, 9 }
 0x18f   : > { %12653 = vmatmul.mubr.bf16.gmra.mrb[28].mxu0 %v11241_v26  ;;  %v13997_v26 = vld [vmem:[%s18178_s1 + $0x1a8] sm:$0xff]  }
 0x190   : > { %12672 = vmatprep.mubr.bf16.mxu0 %v11282_v16  ;;  %v18374_v16 = vld [vmem:[#allocation15_spill] sm:$0xff] }
 0x191   : > { %v18376_v36 = vcombine.low %v18374_v16, %v18375_v35  ;;  %v11441_v35 = vld [vmem:[%s14399_s15 + $0x6c] sm:$0xe] }
 0x197   : > { %12673 = vmatmul.mubr.bf16.vlgmr.msra.gmra.mrb[0].mxu0 %v11283_v13  ;;  %v18389_v13 = vld [vmem:[#allocation19_spill] sm:$0xff] }
 0x198   : > { %12705 = vmatpush3.bf16.msra.mxu0 %v15658_v25  ;;  %12676 = vmatprep.mubr.bf16.mxu0 %v11284_v7  ;;  %v3134_v25 = vrot.slane %v14166_v50, 5  ;;  %v18390_v7 = vld [vmem:[#allocation20_spill] sm:$0xff]  ;;  %v4765_v50 = vrot.slane %v4763_v19, 4 }
 0x199   : > { %12706 = vmatprep.subr.bf16.mxu0 %v13993_v57  ;;  %v18391_v51 = vcombine.low %v18389_v13, %v18390_v7  ;;  %v14023_v13 = vld [vmem:[%s18178_s1 + $0x1f8] sm:$0xff]   ;;  %v11368_v7 = vld [vmem:[%s14399_s15 + $0x30] sm:$0xf] }
 0x19a   : > { %v3136_v42 = vrot.slane %v3134_v25, 4  ;;  %v3135_v56 = vsel %vm14813_vm5, %v11272_v61, %v3134_v25  ;;  %v14007_v25 = vld [vmem:[%s14399_s15 + $0x54] sm:$0xff]   ;;  %v11365_v61 = vld [vmem:[%s14399_s15 + $0x24] sm:$0xf] }
 0x19b   : > { %v3985_v18 = vshll.u32 %v11365_v61, 16 }
 0x19c   : > { %12707 = vmatpush3.bf16.msra.mxu0 %v13993_v57  ;;  %v3138_v22 = vsel %vm14813_vm5, %v3136_v42, %v3137_v46  ;;  %v14000_v57 = vld [vmem:[%s14399_s15 + $0x18] sm:$0xff]   ;;  %v14017_v46 = vld [vmem:[%s18178_s1 + $0x1e8] sm:$0xff]  }
 0x19d   : > { %12708 = vmatprep.subr.bf16.mxu0 %v13994_v3  ;;  %v11288_v39 = vcombine.low %v3135_v56, %v3138_v22  ;;  %v15835_v56 = vld [vmem:[%s14399_s15 + $0x28] sm:$0xf]  ;;  %v11447_v22 = vld [vmem:[%s14399_s15 + $0xb4] sm:$0xe] }
 0x19e   : > { %v3995_v16 = vshrl.u32 %v15835_v56, 16 }
 0x19f   : > { %12677 = vmatmul.mubr.bf16.gmra.mrb[4].mxu0 %v11285_v55  ;;  %v15823_v55 = vsel %vm14813_vm5, %v11455_v37, %v4763_v19  ;;  %v15897_v19 = vld [vmem:[%s18178_s1 + $0x200] sm:$0xff]  }
 0x1a0   : > { %12680 = vmatprep.mubr.bf16.mxu0 %v11286_v40  ;;  %12709 = vmatpush3.bf16.msra.mxu0 %v13994_v3  ;;  %v11362_v3 = vld [vmem:[%s14399_s15 + $0x18] sm:$0xf]  ;;  %18395 = vst [vmem:[#allocation25_spill] sm:$0xff] %v15823_v55  ;;  %v14009_v40 = vld [vmem:[%s14399_s15 + $0x60] sm:$0xff]   ;;  %v3997_v24 = vrot.slane %v3995_v16, 4  ;;  %v14022_v55 = vld [vmem:[%s14399_s15 + $0xcc] sm:$0xff]  }
 0x1a1   : > { %12710 = vmatprep.subr.bf16.mxu0 %v13995_v29  ;;  %v3961_v6 = vshll.u32 %v11362_v3, 16 }
 0x1a4   : > { %12711 = vmatpush3.bf16.msra.mxu0 %v13995_v29  ;;  %v3958_v29 = vshrl.u32 %v11362_v3, 16 }
 0x1a5   : > { %12712 = vmatprep.subr.bf16.mxu0 %v13996_v62 }
 0x1a7   : > { %12681 = vmatmul.mubr.bf16.gmra.mrb[8].mxu0 %v18376_v36  ;;  %v4777_v36 = vrot.slane %v15842_v11, 5 }
 0x1a8   : > { %12684 = vmatprep.mubr.bf16.mxu0 %v11288_v39  ;;  %12713 = vmatpush3.bf16.msra.mxu0 %v13996_v62  ;;  %v3967_v62 = vshll.u32 %v15819_v17, 16  ;;  %v3982_v39 = vshrl.u32 %v11365_v61, 16  ;;  %v14013_v61 = vld [vmem:[%s14399_s15 + $0x84] sm:$0xff]  }
 0x1a9   : > { %12714 = vmatprep.subr.bf16.mxu0 %v13997_v26 }
 0x1aa   : > { %v15855_v33 = vrot.slane %v3967_v62, 5  ;;  %v3984_v20 = vrot.slane %v3982_v39, 4 }
 0x1ac   : > { %12715 = vmatpush3.bf16.msra.mxu0 %v13997_v26  ;;  %v3991_v26 = vshll.u32 %v15835_v56, 16  ;;  %v3974_v10 = vor.u32 %v3973_v52, %v15855_v33  ;;  %v15942_v52 = vld [vmem:[%s14399_s15 + $0x98] sm:$0x1] }
 0x1ad   : > { %12716 = vmatprep.subr.bf16.mxu0 %v13998_v60 }
 0x1ae   : > { %v15869_v9 = vrot.slane %v3991_v26, 5  ;;  %v15904_v3 = vrot.slane %v3974_v10, 4 }
 0x1af   : > { %12685 = vmatmul.mubr.bf16.gmra.mrb[12].mxu0 %v18379_v14  ;;  %v4779_v14 = vrot.slane %v4777_v36, 4 }
 0x1b0   : > { %12688 = vmatprep.mubr.bf16.mxu0 %v11290_v53  ;;  %12717 = vmatpush3.bf16.msra.mxu0 %v13998_v60  ;;  %v3960_v60 = vrot.slane %v3958_v29, 4  ;;  %v11457_v53 = vrot.slane %v11441_v35, 9 }
 0x1b1   : > { %12718 = vmatprep.subr.bf16.mxu0 %v13999_v58 }
 0x1b2   : > { %v15863_v5 = vsel %vm14813_vm5, %v11457_v53, %v4777_v36  ;;  %v15931_v36 = vld [vmem:[%s14399_s15 + $0x40] sm:$0xf]  ;;  %v15936_v53 = vld [vmem:[%s14399_s15 + $0x38] sm:$0x1] }
 0x1b3   : > { %18397 = vst [vmem:[#allocation26_spill] sm:$0xff] %v15863_v5 }
 0x1b4   : > { %12719 = vmatpush3.bf16.msra.mxu0 %v13999_v58  ;;  %v3963_v58 = vrot.slane %v3961_v6, 5  ;;  %v4009_v6 = vshll.u32 %v11368_v7, 16 }
 0x1b5   : > { %12752 = vmatprep.subr.bf16.mxu0 %v14002_v49 }
 0x1b6   : > { %v3964_v63 = vor.u32 %v3963_v58, %v3960_v60  ;;  %v15939_v58 = vld [vmem:[%s14399_s15 + $0x94] sm:$0xf]  ;;  %v16017_v60 = vld [vmem:[%s14399_s15 + $0xbc] sm:$0x1] }
 0x1b7   : > { %12689 = vmatmul.mubr.bf16.gmra.mrb[16].mxu0 %v18382_v38  ;;  %v3987_v38 = vrot.slane %v3985_v18, 5 }
 0x1b8   : > { %12692 = vmatprep.mubr.bf16.mxu0 %v18385_v8  ;;  %v15867_v8 = vld [vmem:[%s14399_s15 + $0x2c] sm:$0x1]  ;;  %v15902_v37 = vrot.slane %v3964_v63, 4 }
 0x1bf   : > { %12693 = vmatmul.mubr.bf16.gmra.mrb[20].mxu0 %v18388_v0  ;;  %v15873_v0 = vsel %vm14813_vm5, %v4779_v14, %v4780_v2  ;;  %v15945_v14 = vld [vmem:[%s14399_s15 + $0xa0] sm:$0xf] }
 0x1c0   : > { %12696 = vmatprep.mubr.bf16.mxu0 %v18391_v51  ;;  %18398 = vst [vmem:[#allocation15_spill] sm:$0xff] %v15873_v0  ;;  %v4805_v63 = vrot.slane %v15945_v14, 5  ;;  %v11446_v51 = vld [vmem:[%s14399_s15 + $0xa8] sm:$0xe] }
 0x1c7   : > { %12697 = vmatmul.mubr.bf16.gmra.mrb[24].mxu0 %v18394_v30  ;;  %v3977_v30 = vshll.u32 %v15859_v44, 16 }
 0x1c8   : > { %12700 = vmatprep.mubr.bf16.mxu0 %v11296_v1  ;;  %v14011_v1 = vld [vmem:[%s18178_s1 + $0x1d8] sm:$0xff]  }
 0x1cf   : > { %12701 = vmatmul.mubr.bf16.gmra.mrb[28].mxu0 %v11297_v59  ;;  %v15808_v59 = vld [vmem:[%s14399_s15 + $0x5c] sm:$0x1] }
 0x1d0   : > { %12720 = vmatprep.mubr.bf16.mxu0 %v14000_v57  ;;  %v4766_v28 = vrot.slane %v15808_v59, 5  ;;  %v3988_v57 = vor.u32 %v3987_v38, %v3984_v20  ;;  %v11444_v20 = vld [vmem:[%s14399_s15 + $0x90] sm:$0xe]  ;;  %v4798_v38 = vrot.slane %v15939_v58, 5 }
 0x1d2   : > { %v15829_v42 = vsel %vm14813_vm5, %v4765_v50, %v4766_v28  ;;  %v15900_v28 = vld [vmem:[%s14399_s15 + $0x34] sm:$0xf]  ;;  %v15906_v50 = vrot.slane %v3977_v30, 5  ;;  %v4011_v30 = vrot.slane %v4009_v6, 5 }
 0x1d3   : > { %18396 = vst [vmem:[#allocation23_spill] sm:$0xff] %v15829_v42  ;;  %v4015_v26 = vshll.u32 %v15900_v28, 16  ;;  %v4019_v35 = vshrl.u32 %v15900_v28, 16  ;;  %v16100_v42 = vld [vmem:[%s14399_s15 + $0x64] sm:$0xf] }
 0x1d4   : > { %18412 = vst [vmem:[#allocation27_spill] sm:$0xff] %v16100_v42 }
 0x1d7   : > { %12721 = vmatmul.mubr.bf16.vlgmr.msra.gmra.mrb[0].mxu0 %v14001_v41  ;;  %v4001_v41 = vshll.u32 %v15867_v8, 16 }
 0x1d8   : > { %12753 = vmatpush3.bf16.msra.mxu0 %v14002_v49  ;;  %12724 = vmatprep.mubr.bf16.mxu0 %v14003_v27  ;;  %v14010_v49 = vld [vmem:[%s14399_s15 + $0x6c] sm:$0xff]   ;;  %v15885_v27 = vld [vmem:[%s14399_s15 + $0x88] sm:$0xf] }
 0x1d9   : > { %12754 = vmatprep.subr.bf16.mxu0 %v14005_v32  ;;  %v15912_v29 = vrot.slane %v4001_v41, 5  ;;  %v4800_v41 = vrot.slane %v4798_v38, 4 }
 0x1dc   : > { %12755 = vmatpush3.bf16.msra.mxu0 %v14005_v32  ;;  %v15888_v32 = vld [vmem:[%s14399_s15 + $0x8c] sm:$0x1] }
 0x1dd   : > { %12756 = vmatprep.subr.bf16.mxu0 %v14008_v23  ;;  %v4794_v12 = vrot.slane %v15888_v32, 5 }
 0x1df   : > { %12725 = vmatmul.mubr.bf16.gmra.mrb[4].mxu0 %v14004_v54  ;;  %v4006_v54 = vshrl.u32 %v11368_v7, 16  ;;  %v11445_v7 = vld [vmem:[%s14399_s15 + $0x9c] sm:$0xe] }
 0x1e0   : > { %12728 = vmatprep.mubr.bf16.mxu0 %v14006_v43  ;;  %12757 = vmatpush3.bf16.msra.mxu0 %v14008_v23  ;;  %v3998_v23 = vor.u32 %v3997_v24, %v15869_v9  ;;  %v11443_v43 = vld [vmem:[%s14399_s15 + $0x84] sm:$0xe]  ;;  %v4039_v24 = vshll.u32 %v15931_v36, 16 }
 0x1e1   : > { %12758 = vmatprep.subr.bf16.mxu0 %v14011_v1  ;;  %v15921_v18 = vrot.slane %v4006_v54, 4  ;;  %v4021_v54 = vrot.slane %v4019_v35, 4 }
 0x1e2   : > { %v15919_v39 = vrot.slane %v3998_v23, 4  ;;  %v11461_v23 = vrot.slane %v11445_v7, 9  ;;  %v15993_v7 = vld [vmem:[%s14399_s15 + $0x4c] sm:$0xf] }
 0x1e3   : > { %18406 = vst [vmem:[#allocation14_spill] sm:$0xff] %v15993_v7 }
 0x1e4   : > { %12759 = vmatpush3.bf16.msra.mxu0 %v14011_v1  ;;  %v4791_v1 = vrot.slane %v15885_v27, 5 }
 0x1e5   : > { %12760 = vmatprep.subr.bf16.mxu0 %v14014_v47 }
 0x1e7   : > { %12729 = vmatmul.mubr.bf16.gmra.mrb[8].mxu0 %v14007_v25  ;;  %v11371_v25 = vld [vmem:[%s14399_s15 + $0x3c] sm:$0xf] }
 0x1e8   : > { %12732 = vmatprep.mubr.bf16.mxu0 %v14009_v40  ;;  %12761 = vmatpush3.bf16.msra.mxu0 %v14014_v47  ;;  %v11459_v47 = vrot.slane %v11443_v43, 9  ;;  %v4793_v40 = vrot.slane %v4791_v1, 4  ;;  %v4030_v2 = vshrl.u32 %v11371_v25, 16  ;;  %v15960_v43 = vld [vmem:[%s14399_s15 + $0x44] sm:$0x1] }
 0x1e9   : > { %12762 = vmatprep.subr.bf16.mxu0 %v14017_v46  ;;  %18401 = vst [vmem:[#allocation16_spill] sm:$0xff] %v15960_v43 }
 0x1ea   : > { %v15916_v62 = vsel %vm14813_vm5, %v11459_v47, %v4791_v1  ;;  %v15926_v16 = vsel %vm14813_vm5, %v4793_v40, %v4794_v12  ;;  %v11374_v1 = vld [vmem:[%s14399_s15 + $0x48] sm:$0xf]  ;;  %v4807_v47 = vrot.slane %v4805_v63, 4  ;;  %v4025_v40 = vshll.u32 %v15936_v53, 16 }
 0x1eb   : > { %18399 = vst [vmem:[#allocation9_spill] sm:$0xff] %v15916_v62  ;;  %18400 = vst [vmem:[#allocation10_spill] sm:$0xff] %v15926_v16 }
 0x1ec   : > { %12763 = vmatpush3.bf16.msra.mxu0 %v14017_v46  ;;  %v15910_v46 = vrot.slane %v3988_v57, 4  ;;  %v15957_v57 = vrot.slane %v4015_v26, 5  ;;  %v14018_v26 = vld [vmem:[%s14399_s15 + $0xa8] sm:$0xff]  }
 0x1ed   : > { %12764 = vmatprep.subr.bf16.mxu0 %v14020_v34 }
 0x1ef   : > { %12733 = vmatmul.mubr.bf16.gmra.mrb[12].mxu0 %v14010_v49  ;;  %v15948_v49 = vld [vmem:[%s14399_s15 + $0xa4] sm:$0x1] }
 0x1f0   : > { %12736 = vmatprep.mubr.bf16.mxu0 %v14012_v45  ;;  %12765 = vmatpush3.bf16.msra.mxu0 %v14020_v34  ;;  %v4033_v34 = vshll.u32 %v11371_v25, 16  ;;  %v4801_v45 = vrot.slane %v15942_v52, 5  ;;  %v4808_v10 = vrot.slane %v15948_v49, 5  ;;  %v14016_v25 = vld [vmem:[%s14399_s15 + $0x9c] sm:$0xff]  }
 0x1f1   : > { %12766 = vmatprep.subr.bf16.mxu0 %v14023_v13 }
 0x1f2   : > { %v15973_v6 = vsel %vm14813_vm5, %v4800_v41, %v4801_v45  ;;  %v15980_v35 = vrot.slane %v4033_v34, 5  ;;  %v4043_v45 = vshrl.u32 %v15931_v36, 16  ;;  %v4012_v41 = vor.u32 %v4011_v30, %v15921_v18 }
 0x1f3   : > { %18403 = vst [vmem:[#allocation13_spill] sm:$0xff] %v15973_v6  ;;  %v3980_v34 = vsel %vm14471_vm2, %v15904_v3, %v15906_v50  ;;  %v4057_v18 = vshll.u32 %v11374_v1, 16  ;;  %v11462_v30 = vrot.slane %v11446_v51, 9  ;;  %v4063_v3 = vshll.u32 %v15993_v7, 16 }
 0x1f4   : > { %12767 = vmatpush3.bf16.msra.mxu0 %v14023_v13  ;;  %v11460_v13 = vrot.slane %v11444_v20, 9  ;;  %v15982_v20 = vrot.slane %v4039_v24, 5  ;;  %v3970_v24 = vsel %vm14471_vm2, %v15902_v37, %v15855_v33  ;;  %v4067_v50 = vshrl.u32 %v15993_v7, 16 }
 0x1f5   : > { %12800 = vmatprep.subr.bf16.mxu0 %v15897_v19  ;;  %v16027_v6 = vrot.slane %v4012_v41, 4  ;;  %v4045_v62 = vrot.slane %v4043_v45, 4  ;;  %v4135_v7 = vshll.u32 %v15842_v11, 16 }
 0x1f6   : > { %v15965_v12 = vsel %vm14813_vm5, %v11460_v13, %v4798_v38  ;;  %v15988_v38 = vsel %vm14813_vm5, %v4807_v47, %v4808_v10  ;;  %v4049_v13 = vshll.u32 %v15960_v43, 16  ;;  %v16003_v10 = vld [vmem:[%s14399_s15 + $0xac] sm:$0xf]  ;;  %v16009_v47 = vld [vmem:[%s14399_s15 + $0xb8] sm:$0xf]  ;;  %v4087_v43 = vshll.u32 %v15805_v21, 16 }
 0x1f7   : > { %12737 = vmatmul.mubr.bf16.gmra.mrb[16].mxu0 %v14013_v61  ;;  %18402 = vst [vmem:[#allocation11_spill] sm:$0xff] %v15965_v12  ;;  %v15969_v61 = vrot.slane %v4030_v2, 4  ;;  %18405 = vst [vmem:[#allocation18_spill] sm:$0xff] %v15988_v38  ;;  %v4022_v2 = vor.u32 %v4021_v54, %v15957_v57  ;;  %v4812_v33 = vrot.slane %v16003_v10, 5  ;;  %v4822_v38 = vrot.slane %v16017_v60, 5 }
 0x1f8   : > { %12740 = vmatprep.mubr.bf16.mxu0 %v14015_v31  ;;  %v15977_v31 = vsel %vm14813_vm5, %v11461_v23, %v4805_v63  ;;  %v4054_v63 = vshrl.u32 %v11374_v1, 16  ;;  %v16006_v23 = vld [vmem:[%s14399_s15 + $0xb0] sm:$0x1]  ;;  %v16029_v12 = vrot.slane %v4025_v40, 5  ;;  %v14021_v40 = vld [vmem:[%s14399_s15 + $0xc0] sm:$0xff]   ;;  %v16047_v41 = vrot.slane %v4049_v13, 5 }
 0x1f9   : > { %18404 = vst [vmem:[#allocation12_spill] sm:$0xff] %v15977_v31  ;;  %v4815_v37 = vrot.slane %v16006_v23, 5  ;;  %v4814_v54 = vrot.slane %v4812_v33, 4  ;;  %v11463_v31 = vrot.slane %v11447_v22, 9  ;;  %v16033_v51 = vsel %vm14813_vm5, %v11462_v30, %v4812_v33  ;;  %v11377_v30 = vld [vmem:[%s14399_s15 + $0x54] sm:$0xf] }
 0x1fa   : > { %18407 = vst [vmem:[#allocation17_spill] sm:$0xff] %v16033_v51  ;;  %v16036_v16 = vrot.slane %v4022_v2, 4  ;;  %v4056_v33 = vrot.slane %v4054_v63, 4  ;;  %v11410_v63 = vcombine.low %v3970_v24, %v3980_v34  ;;  %v3994_v2 = vsel %vm14471_vm2, %v15910_v46, %v15869_v9  ;;  %v16088_v34 = vld [vmem:[%s14399_s15 + $0xd4] sm:$0x1] }
 0x1fb   : > { %v16040_v0 = vsel %vm14813_vm5, %v4814_v54, %v4815_v37  ;;  %v16057_v37 = vld [vmem:[%s14399_s15 + $0x50] sm:$0x1]  ;;  %v4069_v54 = vrot.slane %v4067_v50, 4  ;;  %v16077_v50 = vld [vmem:[%s14399_s15 + $0xc8] sm:$0x1]  ;;  %v4018_v9 = vsel %vm14471_vm2, %v16027_v6, %v15957_v57  ;;  %v4046_v46 = vor.u32 %v4045_v62, %v15982_v20 }
 0x1fc   : > { %18408 = vst [vmem:[#allocation19_spill] sm:$0xff] %v16040_v0  ;;  %18411 = vst [vmem:[#allocation24_spill] sm:$0xff] %v16057_v37  ;;  %v4073_v62 = vshll.u32 %v16057_v37, 16  ;;  %v11380_v6 = vld [vmem:[%s14399_s15 + $0x60] sm:$0xf]  ;;  %v4081_v5 = vshll.u32 %v11377_v30, 16 }
 0x1fd   : > { %v14033_v37 = vld [vmem:[#allocation3 + $0x8] sm:$0xff]  }
 0x1ff   : > { %12741 = vmatmul.mubr.bf16.gmra.mrb[20].mxu0 %v14016_v25  ;;  %v4819_v25 = vrot.slane %v16009_v47, 5 }
 0x200   : > { %12744 = vmatprep.mubr.bf16.mxu0 %v14018_v26  ;;  %v14019_v26 = vld [vmem:[%s14399_s15 + $0xb4] sm:$0xff]  }
 0x201   : > { %v4821_v1 = vrot.slane %v4819_v25, 4  ;;  %v16044_v22 = vsel %vm14813_vm5, %v11463_v31, %v4819_v25  ;;  %v4059_v31 = vrot.slane %v4057_v18, 5  ;;  %v16059_v25 = vrot.slane %v4063_v3, 5  ;;  %v16074_v3 = vld [vmem:[%s14399_s15 + $0xc4] sm:$0xf] }
 0x202   : > { %18409 = vst [vmem:[#allocation20_spill] sm:$0xff] %v16044_v22  ;;  %v4036_v18 = vor.u32 %v15980_v35, %v15969_v61  ;;  %v4829_v61 = vrot.slane %v16077_v50, 5  ;;  %v4078_v35 = vshrl.u32 %v11377_v30, 16 }
 0x203   : > { %v16054_v45 = vsel %vm14813_vm5, %v4821_v1, %v4822_v38  ;;  %v4004_v38 = vsel %vm14471_vm2, %v15919_v39, %v15912_v29  ;;  %v16080_v1 = vld [vmem:[%s14399_s15 + $0xd0] sm:$0xf]  ;;  %v11448_v29 = vld [vmem:[%s14399_s15 + $0xc0] sm:$0xe]  ;;  %v4826_v39 = vrot.slane %v16074_v3, 5  ;;  %v4060_v57 = vor.u32 %v4059_v31, %v4056_v33 }
 0x204   : > { %18410 = vst [vmem:[#allocation21_spill] sm:$0xff] %v16054_v45  ;;  %v11464_v24 = vrot.slane %v11448_v29, 9  ;;  %v4833_v13 = vrot.slane %v16080_v1, 5  ;;  %v4836_v45 = vrot.slane %v16088_v34, 5  ;;  %v4070_v51 = vor.u32 %v4069_v54, %v16059_v25 }
 0x205   : > { %v4828_v22 = vrot.slane %v4826_v39, 4  ;;  %v4091_v33 = vshrl.u32 %v15805_v21, 16  ;;  %v4102_v54 = vshrl.u32 %v11380_v6, 16  ;;  %v4028_v21 = vsel %vm14471_vm2, %v16036_v16, %v16029_v12 }
 0x206   : > { %v4835_v29 = vrot.slane %v4833_v13, 4  ;;  %v4083_v16 = vrot.slane %v4081_v5, 5  ;;  %v16140_v12 = vrot.slane %v4087_v43, 5  ;;  %v11386_v5 = vld [vmem:[%s14399_s15 + $0x78] sm:$0xf] }
 0x207   : > { %12745 = vmatmul.mubr.bf16.gmra.mrb[24].mxu0 %v14019_v26  ;;  %v11449_v26 = vld [vmem:[%s14399_s15 + $0xcc] sm:$0xe]  ;;  %v16111_v31 = vsel %vm14813_vm5, %v4828_v22, %v4829_v61  ;;  %v16127_v22 = vrot.slane %v4036_v18, 4  ;;  %v4111_v61 = vshll.u32 %v16100_v42, 16  ;;  %v4093_v18 = vrot.slane %v4091_v33, 4 }
 0x208   : > { %12748 = vmatprep.mubr.bf16.mxu0 %v14021_v40  ;;  %v11465_v0 = vrot.slane %v11449_v26, 9  ;;  %v16104_v40 = vsel %vm14813_vm5, %v11464_v24, %v4826_v39  ;;  %18414 = vst [vmem:[#allocation29_spill] sm:$0xff] %v16111_v31  ;;  %v4105_v26 = vshll.u32 %v11380_v6, 16  ;;  %v16121_v24 = vsel %vm14813_vm5, %v4835_v29, %v4836_v45  ;;  %v11383_v29 = vld [vmem:[%s14399_s15 + $0x6c] sm:$0xf] }
 0x209   : > { %18413 = vst [vmem:[#allocation28_spill] sm:$0xff] %v16104_v40  ;;  %18416 = vst [vmem:[#allocation31_spill] sm:$0xff] %v16121_v24  ;;  %v16134_v6 = vrot.slane %v4073_v62, 5  ;;  %v4080_v39 = vrot.slane %v4078_v35, 4  ;;  %v4115_v45 = vshrl.u32 %v16100_v42, 16  ;;  %v16138_v31 = vrot.slane %v4060_v57, 4 }
 0x20a   : > { %v16115_v30 = vsel %vm14813_vm5, %v11465_v0, %v4833_v13  ;;  %v16132_v13 = vrot.slane %v4046_v46, 4  ;;  %v14032_v40 = vld [vmem:[#allocation3] sm:$0xff]   ;;  %v4071_v46 = vrot.slane %v4070_v51, 4  ;;  %v4097_v62 = vshll.u32 %v15808_v59, 16  ;;  %v16144_v42 = vld [vmem:[%s14399_s15 + $0x68] sm:$0x1] }
 0x20b   : > { %18415 = vst [vmem:[#allocation30_spill] sm:$0xff] %v16115_v30  ;;  %v4104_v0 = vrot.slane %v4102_v54, 4  ;;  %v4107_v35 = vrot.slane %v4105_v26, 5  ;;  %v11411_v24 = vcombine.low %v3994_v2, %v4004_v38  ;;  %v11412_v30 = vcombine.low %v4018_v9, %v4028_v21  ;;  %12848 = vmatprep.subr.bf16.mxu1 %v14032_v40 }
 0x20c   : > { %v4126_v57 = vshrl.u32 %v11383_v29, 16  ;;  %v4117_v43 = vrot.slane %v4115_v45, 4  ;;  %v4129_v33 = vshll.u32 %v11383_v29, 16  ;;  %v4139_v51 = vshrl.u32 %v15842_v11, 16  ;;  %12849 = vmatpush3.bf16.msra.mxu1 %v14032_v40  ;;  %v16162_v11 = vld [vmem:[%s14399_s15 + $0x7c] sm:$0xf] }
 0x20d   : > { %v4042_v59 = vsel %vm14471_vm2, %v16127_v22, %v15982_v20  ;;  %v4052_v2 = vsel %vm14471_vm2, %v16132_v13, %v16047_v41  ;;  %v4094_v38 = vor.u32 %v4093_v18, %v16140_v12  ;;  %12850 = vmatprep.subr.bf16.mxu1 %v14033_v37  ;;  %v4108_v9 = vor.u32 %v4107_v35, %v4104_v0  ;;  %v14025_v20 = vld [vmem:[%s18178_s1 + $0x208] sm:$0xff]   ;;  %v11389_v29 = vld [vmem:[%s14399_s15 + $0x84] sm:$0xf] }
 0x20e   : > { %v4121_v54 = vshll.u32 %v16144_v42, 16  ;;  %v4150_v40 = vshrl.u32 %v11386_v5, 16  ;;  %v4153_v26 = vshll.u32 %v11386_v5, 16  ;;  %v4066_v41 = vsel %vm14471_vm2, %v16138_v31, %v16059_v25 }
 0x20f   : > { %12749 = vmatmul.mubr.bf16.gmra.mrb[28].mxu0 %v14022_v55  ;;  %v16146_v55 = vrot.slane %v4111_v61, 5  ;;  %v16174_v21 = vrot.slane %v4097_v62, 5  ;;  %v4128_v22 = vrot.slane %v4126_v57, 4  ;;  %v4131_v0 = vrot.slane %v4129_v33, 5 }
 0x210   : > { %12768 = vmatprep.mubr.bf16.mxu0 %v11410_v63  ;;  %v4084_v63 = vor.u32 %v4083_v16, %v4080_v39  ;;  %v4076_v39 = vsel %vm14471_vm2, %v4071_v46, %v16134_v6  ;;  %v16177_v13 = vrot.slane %v4135_v7, 5  ;;  %v4141_v45 = vrot.slane %v4139_v51, 4  ;;  %12851 = vmatpush3.bf16.msra.mxu1 %v14033_v37  ;;  %v14026_v7 = vld [vmem:[%s18178_s1 + $0x210] sm:$0xff]  }
 0x211   : > { %v4118_v61 = vor.u32 %v4117_v43, %v16146_v55  ;;  %v4095_v18 = vrot.slane %v4094_v38, 4  ;;  %v4159_v25 = vshll.u32 %v16162_v11, 16  ;;  %v4163_v31 = vshrl.u32 %v16162_v11, 16 }
 0x212   : > { %v4085_v16 = vrot.slane %v4084_v63, 4  ;;  %v4109_v6 = vrot.slane %v4108_v9, 4  ;;  %v4123_v46 = vrot.slane %v4121_v54, 5  ;;  %v4152_v62 = vrot.slane %v4150_v40, 4 }
 0x213   : > { %v4155_v35 = vrot.slane %v4153_v26, 5  ;;  %v4174_v37 = vshrl.u32 %v11389_v29, 16  ;;  %v4183_v57 = vshll.u32 %v15885_v27, 16  ;;  %v4187_v5 = vshrl.u32 %v15885_v27, 16  ;;  %v16202_v26 = vld [vmem:[%s14399_s15 + $0x80] sm:$0x1] }
 0x214   : > { %v4119_v43 = vrot.slane %v4118_v61, 4  ;;  %v4145_v33 = vshll.u32 %v15845_v48, 16  ;;  %v11413_v51 = vcombine.low %v4042_v59, %v4052_v2  ;;  %v11414_v63 = vcombine.low %v4066_v41, %v4076_v39  ;;  %v11392_v59 = vld [vmem:[%s14399_s15 + $0x90] sm:$0xf]  ;;  %v14027_v2 = vld [vmem:[%s18178_s1 + $0x218] sm:$0xff]  }
 0x215   : > { %v16190_v38 = vrot.slane %v4159_v25, 5  ;;  %v4165_v9 = vrot.slane %v4163_v31, 4  ;;  %v4090_v54 = vsel %vm14471_vm2, %v4085_v16, %v16140_v12  ;;  %v4100_v27 = vsel %vm14471_vm2, %v4095_v18, %v16174_v21 }
 0x216   : > { %v4114_v40 = vsel %vm14471_vm2, %v4109_v6, %v16146_v55  ;;  %v4156_v48 = vor.u32 %v4155_v35, %v4152_v62  ;;  %v16208_v12 = vrot.slane %v4183_v57, 5  ;;  %v4189_v39 = vrot.slane %v4187_v5, 4  ;;  %v14028_v35 = vld [vmem:[%s18178_s1 + $0x220] sm:$0xff]  }
 0x217   : > { %12769 = vmatmul.mubr.bf16.vlgmr.msra.gmra.mrb[0].mxu0 %v11411_v24  ;;  %v4177_v24 = vshll.u32 %v11389_v29, 16  ;;  %v4124_v21 = vsel %vm14471_vm2, %v4119_v43, %v4123_v46  ;;  %v4147_v55 = vrot.slane %v4145_v33, 5  ;;  %v4198_v29 = vshrl.u32 %v11392_v59, 16  ;;  %v11398_v33 = vld [vmem:[%s14399_s15 + $0xa8] sm:$0xf] }
 0x218   : > { %12801 = vmatpush3.bf16.msra.mxu0 %v15897_v19  ;;  %12772 = vmatprep.mubr.bf16.mxu0 %v11412_v30  ;;  %v4132_v19 = vor.u32 %v4131_v0, %v4128_v22  ;;  %v4142_v30 = vor.u32 %v4141_v45, %v16177_v13  ;;  %v4166_v0 = vor.u32 %v4165_v9, %v16190_v38  ;;  %v4169_v45 = vshll.u32 %v16202_v26, 16 }
 0x219   : > { %12802 = vmatprep.subr.bf16.mxu0 %v14025_v20  ;;  %v4179_v41 = vrot.slane %v4177_v24, 5  ;;  %v4201_v16 = vshll.u32 %v11392_v59, 16  ;;  %v4207_v18 = vshll.u32 %v15939_v58, 16  ;;  %v4211_v25 = vshrl.u32 %v15939_v58, 16 }
 0x21a   : > { %v4133_v22 = vrot.slane %v4132_v19, 4  ;;  %v4143_v61 = vrot.slane %v4142_v30, 4  ;;  %v4157_v31 = vrot.slane %v4156_v48, 4  ;;  %v4190_v46 = vor.u32 %v4189_v39, %v16208_v12  ;;  %v14029_v48 = vld [vmem:[%s18178_s1 + $0x228] sm:$0xff]  }
 0x21b   : > { %v4193_v62 = vshll.u32 %v15888_v32, 16  ;;  %v11415_v24 = vcombine.low %v4090_v54, %v4100_v27  ;;  %v11416_v57 = vcombine.low %v4114_v40, %v4124_v21  ;;  %v4167_v5 = vrot.slane %v4166_v0, 4 }
 0x21c   : > { %12803 = vmatpush3.bf16.msra.mxu0 %v14025_v20  ;;  %v4176_v20 = vrot.slane %v4174_v37, 4  ;;  %v11395_v37 = vld [vmem:[%s14399_s15 + $0x9c] sm:$0xf]  ;;  %v4148_v58 = vsel %vm14471_vm2, %v4143_v61, %v4147_v55  ;;  %v4171_v43 = vrot.slane %v4169_v45, 5  ;;  %v4200_v19 = vrot.slane %v4198_v29, 4 }
 0x21d   : > { %12804 = vmatprep.subr.bf16.mxu0 %v14026_v7  ;;  %v4203_v30 = vrot.slane %v4201_v16, 5  ;;  %v16228_v32 = vrot.slane %v4207_v18, 5  ;;  %v4225_v9 = vshll.u32 %v11395_v37, 16  ;;  %v4162_v54 = vsel %vm14471_vm2, %v4157_v31, %v16190_v38 }
 0x21e   : > { %v4180_v6 = vor.u32 %v4179_v41, %v4176_v20  ;;  %v4195_v40 = vrot.slane %v4193_v62, 5  ;;  %v4231_v59 = vshll.u32 %v15945_v14, 16  ;;  %v4246_v20 = vshrl.u32 %v11398_v33, 16 }
 0x21f   : > { %12773 = vmatmul.mubr.bf16.gmra.mrb[4].mxu0 %v11413_v51  ;;  %v4213_v51 = vrot.slane %v4211_v25, 4  ;;  %v4249_v41 = vshll.u32 %v11398_v33, 16  ;;  %v4172_v39 = vsel %vm14471_vm2, %v4167_v5, %v4171_v43  ;;  %v4217_v38 = vshll.u32 %v15942_v52, 16  ;;  %v14031_v5 = vld [vmem:[%s18178_s1 + $0x238] sm:$0xff]  }
 0x220   : > { %12776 = vmatprep.mubr.bf16.mxu0 %v11414_v63  ;;  %12805 = vmatpush3.bf16.msra.mxu0 %v14026_v7  ;;  %v4138_v7 = vsel %vm14471_vm2, %v4133_v22, %v16177_v13  ;;  %v4222_v63 = vshrl.u32 %v11395_v37, 16  ;;  %v4181_v27 = vrot.slane %v4180_v6, 4  ;;  %v4191_v13 = vrot.slane %v4190_v46, 4 }
 0x221   : > { %12806 = vmatprep.subr.bf16.mxu0 %v14027_v2  ;;  %v4255_v21 = vshll.u32 %v16003_v10, 16  ;;  %v4259_v22 = vshrl.u32 %v16003_v10, 16  ;;  %v4204_v61 = vor.u32 %v4203_v30, %v4200_v19  ;;  %v4214_v55 = vor.u32 %v4213_v51, %v16228_v32  ;;  %v14030_v10 = vld [vmem:[%s18178_s1 + $0x230] sm:$0xff]   ;;  %v11404_v51 = vld [vmem:[%s14399_s15 + $0xc0] sm:$0xf] }
 0x222   : > { %v4224_v0 = vrot.slane %v4222_v63, 4  ;;  %v11417_v45 = vcombine.low %v4138_v7, %v4148_v58  ;;  %v4186_v29 = vsel %vm14471_vm2, %v4181_v27, %v16208_v12  ;;  %v4196_v52 = vsel %vm14471_vm2, %v4191_v13, %v4195_v40  ;;  %v11401_v12 = vld [vmem:[%s14399_s15 + $0xb4] sm:$0xf] }
 0x223   : > { %v16252_v16 = vrot.slane %v4231_v59, 5  ;;  %v4248_v25 = vrot.slane %v4246_v20, 4  ;;  %v4251_v31 = vrot.slane %v4249_v41, 5  ;;  %v11418_v6 = vcombine.low %v4162_v54, %v4172_v39 }
 0x224   : > { %12807 = vmatpush3.bf16.msra.mxu0 %v14027_v2  ;;  %v4235_v2 = vshrl.u32 %v15945_v14, 16  ;;  %v4227_v14 = vrot.slane %v4225_v9, 5  ;;  %v4219_v46 = vrot.slane %v4217_v38, 5  ;;  %v16254_v62 = vrot.slane %v4255_v21, 5 }
 0x225   : > { %12808 = vmatprep.subr.bf16.mxu0 %v14028_v35  ;;  %v4205_v37 = vrot.slane %v4204_v61, 4  ;;  %v4241_v7 = vshll.u32 %v15948_v49, 16  ;;  %v11419_v58 = vcombine.low %v4186_v29, %v4196_v52  ;;  %v4252_v19 = vor.u32 %v4251_v31, %v4248_v25  ;;  %v11407_v52 = vld [vmem:[%s14399_s15 + $0xcc] sm:$0xf] }
 0x226   : > { %v4237_v18 = vrot.slane %v4235_v2, 4  ;;  %v4265_v30 = vshll.u32 %v16006_v23, 16  ;;  %v4270_v33 = vshrl.u32 %v11401_v12, 16  ;;  %v4273_v9 = vshll.u32 %v11401_v12, 16 }
 0x227   : > { %12777 = vmatmul.mubr.bf16.gmra.mrb[8].mxu0 %v11415_v24  ;;  %v4215_v24 = vrot.slane %v4214_v55, 4  ;;  %v4279_v49 = vshll.u32 %v16009_v47, 16  ;;  %v4283_v54 = vshrl.u32 %v16009_v47, 16  ;;  %v4210_v27 = vsel %vm14471_vm2, %v4205_v37, %v16228_v32 }
 0x228   : > { %12780 = vmatprep.mubr.bf16.mxu0 %v11416_v57  ;;  %12809 = vmatpush3.bf16.msra.mxu0 %v14028_v35  ;;  %v4261_v35 = vrot.slane %v4259_v22, 4  ;;  %v4228_v57 = vor.u32 %v4227_v14, %v4224_v0  ;;  %v4238_v43 = vor.u32 %v4237_v18, %v16252_v16  ;;  %v4243_v23 = vrot.slane %v4241_v7, 5 }
 0x229   : > { %12810 = vmatprep.subr.bf16.mxu0 %v14029_v48  ;;  %v4220_v13 = vsel %vm14471_vm2, %v4215_v24, %v4219_v46  ;;  %v4297_v59 = vshll.u32 %v11404_v51, 16  ;;  %v4303_v2 = vshll.u32 %v16074_v3, 16  ;;  %v4307_v20 = vshrl.u32 %v16074_v3, 16 }
 0x22a   : > { %v4262_v63 = vor.u32 %v4261_v35, %v16254_v62  ;;  %v4229_v40 = vrot.slane %v4228_v57, 4  ;;  %v4239_v47 = vrot.slane %v4238_v43, 4  ;;  %v4253_v41 = vrot.slane %v4252_v19, 4 }
 0x22b   : > { %v4267_v39 = vrot.slane %v4265_v30, 5  ;;  %v4272_v38 = vrot.slane %v4270_v33, 4  ;;  %v4275_v32 = vrot.slane %v4273_v9, 5  ;;  %v4281_v22 = vrot.slane %v4279_v49, 5 }
 0x22c   : > { %12811 = vmatpush3.bf16.msra.mxu0 %v14029_v48  ;;  %v4294_v48 = vshrl.u32 %v11404_v51, 16  ;;  %v4263_v21 = vrot.slane %v4262_v63, 4  ;;  %v4285_v61 = vrot.slane %v4283_v54, 4  ;;  %v11420_v55 = vcombine.low %v4210_v27, %v4220_v13 }
 0x22d   : > { %12812 = vmatprep.subr.bf16.mxu0 %v14030_v10  ;;  %v4299_v14 = vrot.slane %v4297_v59, 5  ;;  %v4309_v29 = vrot.slane %v4307_v20, 4  ;;  %v4234_v3 = vsel %vm14471_vm2, %v4229_v40, %v16252_v16  ;;  %v4289_v18 = vshll.u32 %v16017_v60, 16  ;;  %v11434_v59 = vld [vmem:[%s14399_s15 + $0x18] sm:$0xe] }
 0x22e   : > { %v4296_v0 = vrot.slane %v4294_v48, 4  ;;  %v4258_v25 = vsel %vm14471_vm2, %v4253_v41, %v16254_v62  ;;  %v4268_v31 = vsel %vm14471_vm2, %v4263_v21, %v4267_v39  ;;  %v4286_v46 = vor.u32 %v4285_v61, %v4281_v22 }
 0x22f   : > { %12781 = vmatmul.mubr.bf16.gmra.mrb[12].mxu0 %v11417_v45  ;;  %v4305_v45 = vrot.slane %v4303_v2, 5  ;;  %v4318_v35 = vshrl.u32 %v11407_v52, 16  ;;  %v4321_v12 = vshll.u32 %v11407_v52, 16  ;;  %v4327_v16 = vshll.u32 %v16080_v1, 16 }
 0x230   : > { %12784 = vmatprep.mubr.bf16.mxu0 %v11418_v6  ;;  %12813 = vmatpush3.bf16.msra.mxu0 %v14030_v10  ;;  %v4244_v10 = vsel %vm14471_vm2, %v4239_v47, %v4243_v23  ;;  %v4276_v6 = vor.u32 %v4275_v32, %v4272_v38  ;;  %v4331_v37 = vshrl.u32 %v16080_v1, 16  ;;  %v4300_v24 = vor.u32 %v4299_v14, %v4296_v0  ;;  %v11435_v0 = vld [vmem:[%s14399_s15 + $0x24] sm:$0xe] }
 0x231   : > { %12814 = vmatprep.subr.bf16.mxu0 %v14031_v5  ;;  %v4310_v57 = vor.u32 %v4309_v29, %v4305_v45  ;;  %v4313_v60 = vshll.u32 %v16077_v50, 16  ;;  %v11421_v7 = vcombine.low %v4234_v3, %v4244_v10  ;;  %v4287_v62 = vrot.slane %v4286_v46, 4 }
 0x232   : > { %v4291_v43 = vrot.slane %v4289_v18, 5  ;;  %v4320_v19 = vrot.slane %v4318_v35, 4  ;;  %v4323_v30 = vrot.slane %v4321_v12, 5  ;;  %v4329_v33 = vrot.slane %v4327_v16, 5  ;;  %v11437_v35 = vld [vmem:[%s14399_s15 + $0x3c] sm:$0xe] }
 0x233   : > { %v4333_v51 = vrot.slane %v4331_v37, 4  ;;  %v4301_v63 = vrot.slane %v4300_v24, 4  ;;  %v4311_v9 = vrot.slane %v4310_v57, 4  ;;  %v4315_v49 = vrot.slane %v4313_v60, 5  ;;  %v18417_v12 = vld [vmem:[#allocation14_spill] sm:$0xff] }
 0x234   : > { %12815 = vmatpush3.bf16.msra.mxu0 %v14031_v5  ;;  %v4277_v5 = vrot.slane %v4276_v6, 4  ;;  %v4292_v50 = vsel %vm14471_vm2, %v4287_v62, %v4291_v43  ;;  %v4324_v54 = vor.u32 %v4323_v30, %v4320_v19  ;;  %v4337_v13 = vshll.u32 %v16088_v34, 16 }
 0x235   : > { %v4334_v27 = vor.u32 %v4333_v51, %v4329_v33  ;;  %v4306_v40 = vsel %vm14471_vm2, %v4301_v63, %v4305_v45  ;;  %v4316_v23 = vsel %vm14471_vm2, %v4311_v9, %v4315_v49  ;;  %v4728_v48 = vrot.slane %v15819_v17, 5  ;;  %v18420_v63 = vld [vmem:[#allocation27_spill] sm:$0xff]  ;;  %v11440_v49 = vld [vmem:[%s14399_s15 + $0x60] sm:$0xe] }
 0x236   : > { %v4282_v1 = vsel %vm14471_vm2, %v4277_v5, %v4281_v22  ;;  %v11424_v20 = vcombine.low %v4306_v40, %v4316_v23  ;;  %v4325_v47 = vrot.slane %v4324_v54, 4  ;;  %v4339_v39 = vrot.slane %v4337_v13, 5 }
 0x237   : > { %12785 = vmatmul.mubr.bf16.gmra.mrb[16].mxu0 %v11419_v58  ;;  %v11422_v58 = vcombine.low %v4258_v25, %v4268_v31  ;;  %v11423_v2 = vcombine.low %v4282_v1, %v4292_v50  ;;  %v4335_v41 = vrot.slane %v4334_v27, 4  ;;  %v11450_v38 = vrot.slane %v11434_v59, 9  ;;  %v11442_v59 = vld [vmem:[%s14399_s15 + $0x78] sm:$0xe] }
 0x238   : > { %12788 = vmatprep.mubr.bf16.mxu0 %v11420_v55  ;;  %v4730_v21 = vrot.slane %v4728_v48, 4  ;;  %v4731_v34 = vrot.slane %v15859_v44, 5  ;;  %v4330_v32 = vsel %vm14471_vm2, %v4325_v47, %v4329_v33  ;;  %v4735_v22 = vrot.slane %v15835_v56, 5  ;;  %v11436_v44 = vld [vmem:[%s14399_s15 + $0x30] sm:$0xe] }
 0x239   : > { %v4340_v17 = vsel %vm14471_vm2, %v4335_v41, %v4339_v39  ;;  %v4729_v61 = vsel %vm14813_vm5, %v11450_v38, %v4728_v48  ;;  %v4742_v14 = vrot.slane %v15900_v28, 5  ;;  %v11451_v52 = vrot.slane %v11435_v0, 9  ;;  %v18421_v39 = vld [vmem:[#allocation25_spill] sm:$0xff]  ;;  %v18422_v38 = vld [vmem:[#allocation23_spill] sm:$0xff] }
 0x23a   : > { %v4732_v55 = vsel %vm14813_vm5, %v4730_v21, %v4731_v34  ;;  %v11425_v45 = vcombine.low %v4330_v32, %v4340_v17  ;;  %v4737_v3 = vrot.slane %v4735_v22, 4  ;;  %v4738_v10 = vrot.slane %v15867_v8, 5  ;;  %v18424_v17 = vld [vmem:[#allocation26_spill] sm:$0xff]  ;;  %v18430_v0 = vld [vmem:[#allocation11_spill] sm:$0xff] }
 0x23b   : > { %v11466_v29 = vcombine.low %v4729_v61, %v4732_v55  ;;  %v11452_v18 = vrot.slane %v11436_v44, 9  ;;  %v4744_v56 = vrot.slane %v4742_v14, 4  ;;  %v4745_v25 = vrot.slane %v15936_v53, 5  ;;  %v11438_v53 = vld [vmem:[%s14399_s15 + $0x48] sm:$0xe]  ;;  %v18427_v61 = vld [vmem:[#allocation9_spill] sm:$0xff] }
 0x23c   : > { %v4736_v31 = vsel %vm14813_vm5, %v11451_v52, %v4735_v22  ;;  %v4739_v28 = vsel %vm14813_vm5, %v4737_v3, %v4738_v10  ;;  %v4749_v6 = vrot.slane %v15931_v36, 5  ;;  %v4756_v16 = vrot.slane %v18417_v12, 5  ;;  %v18419_v36 = vld [vmem:[#allocation24_spill] sm:$0xff]  ;;  %v18428_v55 = vld [vmem:[#allocation10_spill] sm:$0xff]  ;;  %v18436_v3 = vld [vmem:[#allocation17_spill] sm:$0xff] }
 0x23d   : > { %v4743_v46 = vsel %vm14813_vm5, %v11452_v18, %v4742_v14  ;;  %v4746_v8 = vsel %vm14813_vm5, %v4744_v56, %v4745_v25  ;;  %v11467_v37 = vcombine.low %v4736_v31, %v4739_v28  ;;  %v11453_v57 = vrot.slane %v11437_v35, 9  ;;  %v18431_v14 = vld [vmem:[#allocation13_spill] sm:$0xff]  ;;  %v18437_v10 = vld [vmem:[#allocation19_spill] sm:$0xff]  ;;  %v18439_v56 = vld [vmem:[#allocation20_spill] sm:$0xff] }
 0x23e   : > { %v11468_v24 = vcombine.low %v4743_v46, %v4746_v8  ;;  %v4751_v60 = vrot.slane %v4749_v6, 4  ;;  %v11454_v5 = vrot.slane %v11438_v53, 9  ;;  %v4758_v62 = vrot.slane %v4756_v16, 4  ;;  %v18440_v25 = vld [vmem:[#allocation21_spill] sm:$0xff]  ;;  %v18442_v28 = vld [vmem:[#allocation28_spill] sm:$0xff]  ;;  %v18445_v8 = vld [vmem:[#allocation30_spill] sm:$0xff] }
 0x23f   : > { %12789 = vmatmul.mubr.bf16.gmra.mrb[20].mxu0 %v11421_v7  ;;  %v18418_v7 = vld [vmem:[#allocation16_spill] sm:$0xff]  ;;  %v4759_v43 = vrot.slane %v18419_v36, 5  ;;  %v4750_v19 = vsel %vm14813_vm5, %v11453_v57, %v4749_v6  ;;  %v4770_v9 = vrot.slane %v18420_v63, 5  ;;  %v11456_v54 = vrot.slane %v11440_v49, 9  ;;  %v18443_v6 = vld [vmem:[#allocation29_spill] sm:$0xff]  ;;  %v18446_v35 = vld [vmem:[#allocation31_spill] sm:$0xff] }
 0x240   : > { %12792 = vmatprep.mubr.bf16.mxu0 %v11422_v58  ;;  %v4752_v58 = vrot.slane %v18418_v7, 5  ;;  %v4757_v33 = vsel %vm14813_vm5, %v11454_v5, %v4756_v16  ;;  %v4773_v13 = vrot.slane %v16144_v42, 5  ;;  %v4784_v48 = vrot.slane %v16162_v11, 5  ;;  %v18425_v11 = vld [vmem:[#allocation15_spill] sm:$0xff]  ;;  %v14035_v7 = vld [vmem:[#allocation3 + $0x18] sm:$0xff]   ;;  %v14036_v63 = vld [vmem:[#allocation3 + $0x20] sm:$0xff]  }
 0x241   : > { %v4760_v51 = vsel %vm14813_vm5, %v4758_v62, %v4759_v43  ;;  %v4772_v27 = vrot.slane %v4770_v9, 4  ;;  %v4771_v40 = vsel %vm14813_vm5, %v11456_v54, %v4770_v9  ;;  %v4787_v41 = vrot.slane %v16202_v26, 5  ;;  %v14034_v16 = vld [vmem:[#allocation3 + $0x10] sm:$0xff]   ;;  %v5255_v5 = vld [vmem:[#allocation2 + $0x20] sm:$0x1] }
 0x242   : > { %v4753_v30 = vsel %vm14813_vm5, %v4751_v60, %v4752_v58  ;;  %v11470_v50 = vcombine.low %v4757_v33, %v4760_v51  ;;  %v4786_v47 = vrot.slane %v4784_v48, 4  ;;  %v18423_v21 = vcombine.low %v18421_v39, %v18422_v38  ;;  %12852 = vmatprep.subr.bf16.mxu1 %v14034_v16  ;;  %v5202_v60 = vld [vmem:[#allocation2 + $0xc] sm:$0x1]  ;;  %v5252_v36 = vld [vmem:[#allocation2 + $0x14] sm:$0x1]  ;;  %v14037_v9 = vld [vmem:[#allocation3 + $0x28] sm:$0xff]  }
 0x243   : > { %v11469_v1 = vcombine.low %v4750_v19, %v4753_v30  ;;  %v4774_v23 = vsel %vm14813_vm5, %v4772_v27, %v4773_v13  ;;  %v18426_v22 = vcombine.low %v18424_v17, %v18425_v11  ;;  %v18429_v26 = vcombine.low %v18427_v61, %v18428_v55  ;;  %12853 = vmatpush3.bf16.msra.mxu1 %v14034_v16  ;;  %v5211_v19 = vld [vmem:[#allocation2 + $0x30] sm:$0x1]  ;;  %v5208_v33 = vld [vmem:[#allocation2 + $0x24] sm:$0x1]  ;;  %v5261_v49 = vld [vmem:[#allocation2 + $0x38] sm:$0x1] }
 0x244   : > { %v4788_v34 = vsel %vm14813_vm5, %v4786_v47, %v4787_v41  ;;  %v18432_v44 = vcombine.low %v18430_v0, %v18431_v14  ;;  %v18438_v18 = vcombine.low %v18436_v3, %v18437_v10  ;;  %v18441_v31 = vcombine.low %v18439_v56, %v18440_v25  ;;  %12854 = vmatprep.subr.bf16.mxu1 %v14035_v7  ;;  %v14038_v27 = vld [vmem:[#allocation3 + $0x30] sm:$0xff]   ;;  %v5264_v41 = vld [vmem:[#allocation2 + $0x44] sm:$0x1]  ;;  %v5229_v55 = vld [vmem:[#allocation2 + $0x78] sm:$0x1] }
 0x245   : > { %v18444_v46 = vcombine.low %v18442_v28, %v18443_v6  ;;  %v18447_v12 = vcombine.low %v18445_v8, %v18446_v35  ;;  %v5203_v58 = vsel %vm16379_vm8, 0, %v5202_v60  ;;  %v5256_v62 = vsel %vm16386_vm10, 0, %v5255_v5  ;;  %v5273_v17 = vld [vmem:[#allocation2 + $0x68] sm:$0x1]  ;;  %v5226_v0 = vld [vmem:[#allocation2 + $0x6c] sm:$0x1] }
 0x246   : > { %5204 = vst [vmem:[#allocation2 + $0xc] sm:$0x1] %v5203_v58  ;;  %5257 = vst [vmem:[#allocation2 + $0x20] sm:$0x1] %v5256_v62  ;;  %v5253_v43 = vsel %vm16386_vm10, 0, %v5252_v36  ;;  %v5212_v30 = vsel %vm16379_vm8, 0, %v5211_v19 }
 0x247   : > { %12793 = vmatmul.mubr.bf16.gmra.mrb[24].mxu0 %v11423_v2  ;;  %v11472_v2 = vcombine.low %v4771_v40, %v4774_v23  ;;  %12855 = vmatpush3.bf16.msra.mxu1 %v14035_v7  ;;  %5254 = vst [vmem:[#allocation2 + $0x14] sm:$0x1] %v5253_v43  ;;  %5213 = vst [vmem:[#allocation2 + $0x30] sm:$0x1] %v5212_v30  ;;  %v5209_v51 = vsel %vm16379_vm8, 0, %v5208_v33  ;;  %v14268_v13 = vmov 0  }
 0x248   : > { %12796 = vmatprep.mubr.bf16.mxu0 %v11424_v20  ;;  %v11458_v20 = vrot.slane %v11442_v59, 9  ;;  %5210 = vst [vmem:[#allocation2 + $0x24] sm:$0x1] %v5209_v51  ;;  %12856 = vmatprep.subr.bf16.mxu1 %v14036_v63  ;;  %5191 = vst [vmem:[#allocation2] sm:$0xf] %v14268_v13  ;;  %v5265_v39 = vsel %vm16386_vm10, 0, %v5264_v41 }
 0x249   : > { %5192 = vst [vmem:[#allocation2 + $0x4] sm:$0xf] %v14268_v13  ;;  %5193 = vst [vmem:[#allocation2 + $0x8] sm:$0x1] %v14268_v13  ;;  %v5217_v40 = vld [vmem:[#allocation2 + $0x48] sm:$0x1] }
 0x24a   : > { %v4785_v42 = vsel %vm14813_vm5, %v11458_v20, %v4784_v48  ;;  %5195 = vst [vmem:[#allocation2 + $0xcc] sm:$0xf] %v14268_v13  ;;  %5196 = vst [vmem:[#allocation2 + $0xd0] sm:$0xf] %v14268_v13  ;;  %v5218_v23 = vsel %vm16379_vm8, 0, %v5217_v40  ;;  %v14039_v20 = vld [vmem:[#allocation3 + $0x38] sm:$0xff]  }
 0x24b   : > { %v11474_v32 = vcombine.low %v4785_v42, %v4788_v34  ;;  %12857 = vmatpush3.bf16.msra.mxu1 %v14036_v63  ;;  %5197 = vst [vmem:[#allocation2 + $0xd4] sm:$0x1] %v14268_v13  ;;  %v5214_v48 = vld [vmem:[#allocation2 + $0x3c] sm:$0x1]  ;;  %5219 = vst [vmem:[#allocation2 + $0x48] sm:$0x1] %v5218_v23 }
 0x24c   : > { %12858 = vmatprep.subr.bf16.mxu1 %v14037_v9  ;;  %v5215_v59 = vsel %vm16379_vm8, 0, %v5214_v48  ;;  %5266 = vst [vmem:[#allocation2 + $0x44] sm:$0x1] %v5265_v39  ;;  %v5220_v34 = vld [vmem:[#allocation2 + $0x54] sm:$0x1]  ;;  %v5274_v11 = vsel %vm16386_vm10, 0, %v5273_v17 }
 0x24d   : > { %5216 = vst [vmem:[#allocation2 + $0x3c] sm:$0x1] %v5215_v59  ;;  %5275 = vst [vmem:[#allocation2 + $0x68] sm:$0x1] %v5274_v11  ;;  %v5227_v14 = vsel %vm16379_vm8, 0, %v5226_v0 }
 0x24e   : > { %5228 = vst [vmem:[#allocation2 + $0x6c] sm:$0x1] %v5227_v14  ;;  %v5235_v10 = vld [vmem:[#allocation2 + $0x90] sm:$0x1]  ;;  %v5232_v56 = vld [vmem:[#allocation2 + $0x84] sm:$0x1] }
 0x24f   : > { %12797 = vmatmul.mubr.bf16.gmra.mrb[28].mxu0 %v11425_v45  ;;  %v18433_v45 = vld [vmem:[#allocation12_spill] sm:$0xff]  ;;  %12859 = vmatpush3.bf16.msra.mxu1 %v14037_v9  ;;  %v5233_v25 = vsel %vm16379_vm8, 0, %v5232_v56  ;;  %v5282_v6 = vld [vmem:[#allocation2 + $0x8c] sm:$0x1]  ;;  %v5241_v8 = vld [vmem:[#allocation2 + $0xa8] sm:$0x1] }
 0x250   : > { %12816 = vmatprep.mubr.bf16.mxu0 %v11466_v29  ;;  %v18434_v29 = vld [vmem:[#allocation18_spill] sm:$0xff]  ;;  %12860 = vmatprep.subr.bf16.mxu1 %v14038_v27  ;;  %5234 = vst [vmem:[#allocation2 + $0x84] sm:$0x1] %v5233_v25  ;;  %v5242_v35 = vsel %vm16379_vm8, 0, %v5241_v8  ;;  %v5244_v62 = vld [vmem:[#allocation2 + $0xb4] sm:$0x1] }
 0x251   : > { %v18435_v52 = vcombine.low %v18433_v45, %v18434_v29  ;;  %v14040_v38 = vld [vmem:[#allocation2] sm:$0xff]   ;;  %5243 = vst [vmem:[#allocation2 + $0xa8] sm:$0x1] %v5242_v35  ;;  %v5245_v36 = vsel %vm16379_vm8, 0, %v5244_v62  ;;  %v5297_v43 = vld [vmem:[#allocation2 + $0xc8] sm:$0x1] }
 0x252   : > { %12864 = vmatprep.mubr.bf16.mxu1 %v14040_v38  ;;  %v5279_v45 = vld [vmem:[#allocation2 + $0x80] sm:$0x1]  ;;  %v5288_v60 = vld [vmem:[#allocation2 + $0xa4] sm:$0x1]  ;;  %5246 = vst [vmem:[#allocation2 + $0xb4] sm:$0x1] %v5245_v36 }
 0x253   : > { %12861 = vmatpush3.bf16.msra.mxu1 %v14038_v27  ;;  %v5280_v29 = vsel %vm16386_vm10, 0, %v5279_v45  ;;  %v5289_v7 = vsel %vm16386_vm10, 0, %v5288_v60  ;;  %v5247_v58 = vld [vmem:[#allocation2 + $0xc0] sm:$0x1]  ;;  %v5298_v19 = vsel %vm16386_vm10, 0, %v5297_v43 }
 0x254   : > { %12862 = vmatprep.subr.bf16.mxu1 %v14039_v20  ;;  %5281 = vst [vmem:[#allocation2 + $0x80] sm:$0x1] %v5280_v29  ;;  %5290 = vst [vmem:[#allocation2 + $0xa4] sm:$0x1] %v5289_v7  ;;  %v5248_v5 = vsel %vm16379_vm8, 0, %v5247_v58 }
 0x255   : > { %5249 = vst [vmem:[#allocation2 + $0xc0] sm:$0x1] %v5248_v5  ;;  %v5294_v30 = vld [vmem:[#allocation2 + $0xbc] sm:$0x1]  ;;  %5299 = vst [vmem:[#allocation2 + $0xc8] sm:$0x1] %v5298_v19 }
 0x256   : > { %v5295_v33 = vsel %vm16386_vm10, 0, %v5294_v30  ;;  %v6224_v51 = vld [vmem:[#allocation2] sm:$0xf]  ;;  %v6225_v63 = vld [vmem:[#allocation2 + $0x4] sm:$0xf] }
 0x257   : > { %12817 = vmatmul.mubr.bf16.vlgmr.msra.gmra.mrb[0].mxu0 %v11467_v37  ;;  %v5205_v37 = vld [vmem:[#allocation2 + $0x18] sm:$0x1]  ;;  %12863 = vmatpush3.bf16.msra.mxu1 %v14039_v20  ;;  %5296 = vst [vmem:[#allocation2 + $0xbc] sm:$0x1] %v5295_v33  ;;  %v6273_v9 = vshrl.u32 %v6224_v51, 16 }
 0x258   : > { %12820 = vmatprep.mubr.bf16.mxu0 %v11468_v24  ;;  %v5206_v24 = vsel %vm16379_vm8, 0, %v5205_v37  ;;  %v5291_v37 = vld [vmem:[#allocation2 + $0xb0] sm:$0x1]  ;;  %v6226_v38 = vld [vmem:[#allocation2 + $0x8] sm:$0x1] }
 0x259   : > { %5207 = vst [vmem:[#allocation2 + $0x18] sm:$0x1] %v5206_v24  ;;  %v5292_v24 = vsel %vm16386_vm10, 0, %v5291_v37  ;;  %v6275_v27 = vrot.slane %v6273_v9, 4  ;;  %v5720_v58 = vld [vmem:[#allocation2 + $0xc] sm:$0xf] }
 0x25a   : > { %5293 = vst [vmem:[#allocation2 + $0xb0] sm:$0x1] %v5292_v24  ;;  %v5731_v33 = vld [vmem:[#allocation2 + $0x20] sm:$0x1] }
 0x25f   : > { %12821 = vmatmul.mubr.bf16.gmra.mrb[4].mxu0 %v11469_v1  ;;  %v5262_v1 = vsel %vm16386_vm10, 0, %v5261_v49  ;;  %v6276_v49 = vshll.u32 %v6224_v51, 16 }
 0x260   : > { %12824 = vmatprep.mubr.bf16.mxu0 %v11470_v50  ;;  %v5258_v50 = vld [vmem:[#allocation2 + $0x2c] sm:$0x1]  ;;  %5263 = vst [vmem:[#allocation2 + $0x38] sm:$0x1] %v5262_v1  ;;  %v6282_v1 = vshll.u32 %v6225_v63, 16 }
 0x261   : > { %v5259_v54 = vsel %vm16386_vm10, 0, %v5258_v50  ;;  %v6286_v50 = vshrl.u32 %v6225_v63, 16  ;;  %v6278_v13 = vrot.slane %v6276_v49, 5  ;;  %v5727_v8 = vld [vmem:[#allocation2 + $0x18] sm:$0xf] }
 0x262   : > { %5260 = vst [vmem:[#allocation2 + $0x2c] sm:$0x1] %v5259_v54  ;;  %v16458_v54 = vld [vmem:[%s18179_s2] ss:$0 sm:$0xff]  ;;  %v16460_v40 = vrot.slane %v6282_v1, 5 }
 0x263   : > { %v6288_v23 = vrot.slane %v6286_v50, 4  ;;  %v5724_v50 = vld [vmem:[#allocation2 + $0x14] sm:$0x1] }
 0x267   : > { %12825 = vmatmul.mubr.bf16.gmra.mrb[8].mxu0 %v18423_v21  ;;  %v5223_v21 = vld [vmem:[#allocation2 + $0x60] sm:$0x1] }
 0x268   : > { %12828 = vmatprep.mubr.bf16.mxu0 %v11472_v2  ;;  %v5267_v2 = vld [vmem:[#allocation2 + $0x50] sm:$0x1]  ;;  %v5224_v42 = vsel %vm16379_vm8, 0, %v5223_v21  ;;  %v6279_v21 = vor.u32 %v6278_v13, %v6275_v27 }
 0x269   : > { %v5268_v47 = vsel %vm16386_vm10, 0, %v5267_v2  ;;  %5225 = vst [vmem:[#allocation2 + $0x60] sm:$0x1] %v5224_v42  ;;  %v6289_v42 = vor.u32 %v6288_v23, %v16460_v40 }
 0x26a   : > { %5269 = vst [vmem:[#allocation2 + $0x50] sm:$0x1] %v5268_v47  ;;  %v16467_v14 = vrot.slane %v6279_v21, 4 }
 0x26b   : > { %v16469_v45 = vrot.slane %v6289_v42, 4 }
 0x26f   : > { %12829 = vmatmul.mubr.bf16.gmra.mrb[12].mxu0 %v18426_v22  ;;  %v5270_v22 = vld [vmem:[#allocation2 + $0x5c] sm:$0x1] }
 0x270   : > { %12832 = vmatprep.mubr.bf16.mxu0 %v11474_v32  ;;  %v5221_v32 = vsel %vm16379_vm8, 0, %v5220_v34  ;;  %v5271_v61 = vsel %vm16386_vm10, 0, %v5270_v22 }
 0x271   : > { %5222 = vst [vmem:[#allocation2 + $0x54] sm:$0x1] %v5221_v32  ;;  %5272 = vst [vmem:[#allocation2 + $0x5c] sm:$0x1] %v5271_v61 }
 0x277   : > { %12833 = vmatmul.mubr.bf16.gmra.mrb[16].mxu0 %v18429_v26  ;;  %v5230_v26 = vsel %vm16379_vm8, 0, %v5229_v55  ;;  %v6292_v55 = vshll.u32 %v6226_v38, 16 }
 0x278   : > { %12836 = vmatprep.mubr.bf16.mxu0 %v18432_v44  ;;  %5231 = vst [vmem:[#allocation2 + $0x78] sm:$0x1] %v5230_v26  ;;  %v16424_v44 = vld [vmem:[#allocation3 + $0x40] sm:$0xff]  }
 0x279   : > { %12896 = vmatprep.subr.bf16.mxu1 %v16424_v44 }
 0x27f   : > { %12837 = vmatmul.mubr.bf16.gmra.mrb[20].mxu0 %v18435_v52  ;;  %v5276_v52 = vld [vmem:[#allocation2 + $0x74] sm:$0x1] }
 0x280   : > { %12840 = vmatprep.mubr.bf16.mxu0 %v18438_v18  ;;  %v5277_v3 = vsel %vm16386_vm10, 0, %v5276_v52  ;;  %v5236_v18 = vsel %vm16379_vm8, 0, %v5235_v10 }
 0x281   : > { %5278 = vst [vmem:[#allocation2 + $0x74] sm:$0x1] %v5277_v3  ;;  %5237 = vst [vmem:[#allocation2 + $0x90] sm:$0x1] %v5236_v18 }
 0x287   : > { %12841 = vmatmul.mubr.bf16.gmra.mrb[24].mxu0 %v18441_v31  ;;  %v5285_v31 = vld [vmem:[#allocation2 + $0x98] sm:$0x1] }
 0x288   : > { %12844 = vmatprep.mubr.bf16.mxu0 %v18444_v46  ;;  %v5286_v28 = vsel %vm16386_vm10, 0, %v5285_v31  ;;  %v5283_v46 = vsel %vm16386_vm10, 0, %v5282_v6 }
 0x289   : > { %5287 = vst [vmem:[#allocation2 + $0x98] sm:$0x1] %v5286_v28  ;;  %5284 = vst [vmem:[#allocation2 + $0x8c] sm:$0x1] %v5283_v46 }
 0x28f   : > { %12845 = vmatmul.mubr.bf16.gmra.mrb[28].mxu0 %v18447_v12  ;;  %v5238_v12 = vld [vmem:[#allocation2 + $0x9c] sm:$0x1] }
 0x290   : > { %v5239_v16 = vsel %vm16379_vm8, 0, %v5238_v12 }
 0x291   : > { %5240 = vst [vmem:[#allocation2 + $0x9c] sm:$0x1] %v5239_v16 }
 0x32a   : > { %v12818_v48 = vpop.f32.mrb[0].mxu0 }
 0x32b   : > { %v13280_v57 = vadd.f32 %v12818_v48, %v16458_v54  ;;  %v5000_v59 = vpop.f32.mrb[1].mxu0 }
 0x32c   : > { %v13281_v2 = vadd.f32 %v16458_v54, %v5000_v59  ;;  %v12819_v20 = vpop.f32.mrb[2].mxu0 }
 0x32d   : > { %v5161_v47 = vmax.f32 %v13280_v57, 0.0  ;;  %v13282_v41 = vadd.f32 %v12819_v20, %v16458_v54  ;;  %v5003_v39 = vpop.f32.mrb[3].mxu0 }
 0x32e   : > { %v5159_v34 = vmax.f32 %v13281_v2, 0.0  ;;  %v13283_v32 = vadd.f32 %v16458_v54, %v5003_v39 }
 0x32f   : > { %v11826_v17 = vpack.c.bf16 %v5161_v47, %v5161_v47  ;;  %v5162_v11 = vmax.f32 %v13282_v41, 0.0  ;;  %v16493_v47 = vrot.slane %v6292_v55, 5 }
 0x330   : > { %v11824_v22 = vpack.c.bf16 %v5159_v34, %v5159_v34  ;;  %v5160_v61 = vmax.f32 %v13283_v32, 0.0 }
 0x331   : > { %v5416_v26 = vshrl.u32 %v11826_v17, 16  ;;  %v11827_v0 = vpack.c.bf16 %v5162_v11, %v5162_v11  ;;  %v5419_v29 = vshll.u32 %v11826_v17, 16 }
 0x332   : > { %v5399_v52 = vshrl.u32 %v11824_v22, 16  ;;  %v5402_v3 = vshll.u32 %v11824_v22, 16  ;;  %v11825_v10 = vpack.c.bf16 %v5160_v61, %v5160_v61  ;;  %v12822_v18 = vpop.f32.mrb[4].mxu0  ;;  %v5741_v61 = vld [vmem:[#allocation2 + $0x30] sm:$0xf] }
 0x333   : > { %v5418_v56 = vrot.slane %v5416_v26, 7  ;;  %v5424_v25 = vshrl.u32 %v11827_v0, 16  ;;  %v5427_v31 = vshll.u32 %v11827_v0, 16  ;;  %v13284_v28 = vadd.f32 %v12822_v18, %v16458_v54  ;;  %v5016_v6 = vpop.f32.mrb[5].mxu0  ;;  %v5734_v18 = vld [vmem:[#allocation2 + $0x24] sm:$0xf] }
 0x334   : > { %v5401_v35 = vrot.slane %v5399_v52, 7  ;;  %v5407_v12 = vshrl.u32 %v11825_v10, 16  ;;  %v5410_v16 = vshll.u32 %v11825_v10, 16  ;;  %v13285_v37 = vadd.f32 %v16458_v54, %v5016_v6  ;;  %v12823_v24 = vpop.f32.mrb[6].mxu0 }
 0x335   : > { %v5421_v60 = vor.u32 %v5419_v29, %v5418_v56  ;;  %v5422_v7 = vrot.slane %v5418_v56, 4  ;;  %v5426_v5 = vrot.slane %v5424_v25, 7  ;;  %v5165_v62 = vmax.f32 %v13284_v28, 0.0  ;;  %v5019_v36 = vpop.f32.mrb[7].mxu0 }
 0x336   : > { %v5404_v43 = vor.u32 %v5402_v3, %v5401_v35  ;;  %v5405_v19 = vrot.slane %v5401_v35, 4  ;;  %v5409_v51 = vrot.slane %v5407_v12, 7  ;;  %v5163_v63 = vmax.f32 %v13285_v37, 0.0 }
 0x337   : > { %v5728_v9 = vsel %vm16474_vm13, %v5421_v60, %v5727_v8  ;;  %v5429_v49 = vor.u32 %v5427_v31, %v5426_v5  ;;  %v5431_v1 = vrot.slane %v5426_v5, 4  ;;  %v11830_v27 = vpack.c.bf16 %v5165_v62, %v5165_v62  ;;  %v14045_v62 = vld [vmem:[#allocation3 + $0x48] sm:$0xff]  }
 0x338   : > { %5729 = vst [vmem:[#allocation2 + $0x18] sm:$0xf] %v5728_v9  ;;  %v5721_v13 = vsel %vm16474_vm13, %v5404_v43, %v5720_v58  ;;  %v5412_v23 = vor.u32 %v5410_v16, %v5409_v51  ;;  %v5414_v48 = vrot.slane %v5409_v51, 4  ;;  %v11828_v57 = vpack.c.bf16 %v5163_v63, %v5163_v63  ;;  %v5745_v51 = vld [vmem:[#allocation2 + $0x38] sm:$0x1] }
 0x339   : > { %5722 = vst [vmem:[#allocation2 + $0xc] sm:$0xf] %v5721_v13  ;;  %v5430_v59 = vsel %vm16481_vm14, %v5422_v7, %v5429_v49  ;;  %v5732_v2 = vsel %vm16379_vm8, %v5431_v1, %v5731_v33  ;;  %v5450_v20 = vshrl.u32 %v11830_v27, 16  ;;  %v5453_v38 = vshll.u32 %v11830_v27, 16  ;;  %v5738_v63 = vld [vmem:[#allocation2 + $0x2c] sm:$0x1] }
 0x33a   : > { %5730 = vst [vmem:[#allocation2 + $0x1c] sm:$0xf] %v5430_v59  ;;  %5733 = vst [vmem:[#allocation2 + $0x20] sm:$0x1] %v5732_v2  ;;  %v5413_v41 = vsel %vm16481_vm14, %v5405_v19, %v5412_v23  ;;  %v5725_v39 = vsel %vm16379_vm8, %v5414_v48, %v5724_v50  ;;  %v5433_v21 = vshrl.u32 %v11828_v57, 16  ;;  %v12826_v42 = vpop.f32.mrb[8].mxu0  ;;  %v13286_v32 = vadd.f32 %v12823_v24, %v16458_v54 }
 0x33b   : > { %5723 = vst [vmem:[#allocation2 + $0x10] sm:$0xf] %v5413_v41  ;;  %5726 = vst [vmem:[#allocation2 + $0x14] sm:$0x1] %v5725_v39  ;;  %v16499_v34 = vrot.slane %v5450_v20, 7  ;;  %v13287_v17 = vadd.f32 %v16458_v54, %v5019_v36  ;;  %v13288_v11 = vadd.f32 %v12826_v42, %v16458_v54  ;;  %v5032_v22 = vpop.f32.mrb[9].mxu0  ;;  %v6285_v52 = vsel %vm14471_vm2, %v16467_v14, %v16460_v40 }
 0x33c   : > { %v16504_v55 = vrot.slane %v5433_v21, 7  ;;  %v5436_v26 = vshll.u32 %v11828_v57, 16  ;;  %v13289_v0 = vadd.f32 %v16458_v54, %v5032_v22  ;;  %v12827_v29 = vpop.f32.mrb[10].mxu0  ;;  %v5166_v56 = vmax.f32 %v13286_v32, 0.0  ;;  %v5755_v57 = vld [vmem:[#allocation2 + $0x48] sm:$0xf] }
 0x33d   : > { %v5455_v3 = vor.u32 %v5453_v38, %v16499_v34  ;;  %v5456_v10 = vrot.slane %v16499_v34, 4  ;;  %v5164_v25 = vmax.f32 %v13287_v17, 0.0  ;;  %v5035_v31 = vpop.f32.mrb[11].mxu0  ;;  %v5169_v8 = vmax.f32 %v13288_v11, 0.0 }
 0x33e   : > { %v5438_v28 = vor.u32 %v5436_v26, %v16504_v55  ;;  %v5439_v6 = vrot.slane %v16504_v55, 4  ;;  %v5167_v35 = vmax.f32 %v13289_v0, 0.0  ;;  %v11831_v16 = vpack.c.bf16 %v5166_v56, %v5166_v56 }
 0x33f   : > { %v5742_v12 = vsel %vm16474_vm13, %v5455_v3, %v5741_v61  ;;  %v11829_v37 = vpack.c.bf16 %v5164_v25, %v5164_v25  ;;  %v13290_v24 = vadd.f32 %v12827_v29, %v16458_v54  ;;  %v11834_v7 = vpack.c.bf16 %v5169_v8, %v5169_v8  ;;  %v5748_v61 = vld [vmem:[#allocation2 + $0x3c] sm:$0xf] }
 0x340   : > { %5743 = vst [vmem:[#allocation2 + $0x30] sm:$0xf] %v5742_v12  ;;  %v5735_v60 = vsel %vm16474_vm13, %v5438_v28, %v5734_v18  ;;  %v11832_v58 = vpack.c.bf16 %v5167_v35, %v5167_v35  ;;  %v13291_v5 = vadd.f32 %v16458_v54, %v5035_v31  ;;  %v5458_v36 = vshrl.u32 %v11831_v16, 16  ;;  %v14048_v18 = vld [vmem:[#allocation3 + $0x50] sm:$0xff]  }
 0x341   : > { %5736 = vst [vmem:[#allocation2 + $0x24] sm:$0xf] %v5735_v60  ;;  %v5461_v43 = vshll.u32 %v11831_v16, 16  ;;  %v5441_v19 = vshrl.u32 %v11829_v37, 16  ;;  %v5444_v33 = vshll.u32 %v11829_v37, 16  ;;  %v5484_v9 = vshrl.u32 %v11834_v7, 16 }
 0x342   : > { %v5487_v49 = vshll.u32 %v11834_v7, 16  ;;  %v5467_v1 = vshrl.u32 %v11832_v58, 16  ;;  %v5470_v50 = vshll.u32 %v11832_v58, 16  ;;  %v12830_v27 = vpop.f32.mrb[12].mxu0  ;;  %v14041_v13 = vld [vmem:[#allocation2 + $0xc] sm:$0xff]   ;;  %v5460_v23 = vrot.slane %v5458_v36, 7 }
 0x343   : > { %v5443_v48 = vrot.slane %v5441_v19, 7  ;;  %v5170_v59 = vmax.f32 %v13290_v24, 0.0  ;;  %v5168_v2 = vmax.f32 %v13291_v5, 0.0  ;;  %v5048_v20 = vpop.f32.mrb[13].mxu0  ;;  %v14043_v41 = vld [vmem:[#allocation2 + $0x18] sm:$0xff]   ;;  %v16521_v39 = vrot.slane %v5484_v9, 7  ;;  %12865 = vmatmul.mubr.bf16.vlgmr.msra.gmra.mrb[0].mxu1 %v14041_v13 }
 0x344   : > { %v16523_v38 = vrot.slane %v5467_v1, 7  ;;  %v13292_v21 = vadd.f32 %v12830_v27, %v16458_v54  ;;  %v13293_v42 = vadd.f32 %v16458_v54, %v5048_v20  ;;  %v12831_v34 = vpop.f32.mrb[14].mxu0  ;;  %v5463_v32 = vor.u32 %v5461_v43, %v5460_v23  ;;  %12868 = vmatprep.mubr.bf16.mxu1 %v14043_v41  ;;  %12897 = vmatpush3.bf16.msra.mxu1 %v16424_v44  ;;  %v14051_v36 = vld [vmem:[#allocation3 + $0x58] sm:$0xff]   ;;  %v5752_v19 = vld [vmem:[#allocation2 + $0x44] sm:$0x1]  ;;  %v14054_v20 = vld [vmem:[#allocation3 + $0x60] sm:$0xff]  }
 0x345   : > { %v5465_v17 = vrot.slane %v5460_v23, 4  ;;  %v5446_v11 = vor.u32 %v5444_v33, %v5443_v48  ;;  %v5448_v22 = vrot.slane %v5443_v48, 4  ;;  %v5051_v55 = vpop.f32.mrb[15].mxu0  ;;  %v5489_v26 = vor.u32 %v5487_v49, %v16521_v39  ;;  %12898 = vmatprep.subr.bf16.mxu1 %v14045_v62  ;;  %v5759_v43 = vld [vmem:[#allocation2 + $0x50] sm:$0x1] }
 0x346   : > { %v5490_v0 = vrot.slane %v16521_v39, 4  ;;  %v5472_v29 = vor.u32 %v5470_v50, %v16523_v38  ;;  %v5473_v3 = vrot.slane %v16523_v38, 4  ;;  %v5464_v56 = vsel %vm16481_vm14, %v5456_v10, %v5463_v32  ;;  %v5769_v32 = vld [vmem:[#allocation2 + $0x60] sm:$0xf] }
 0x347   : > { %v5746_v25 = vsel %vm16379_vm8, %v5465_v17, %v5745_v51  ;;  %v5447_v31 = vsel %vm16481_vm14, %v5439_v6, %v5446_v11  ;;  %v5739_v44 = vsel %vm16379_vm8, %v5448_v22, %v5738_v63  ;;  %5744 = vst [vmem:[#allocation2 + $0x34] sm:$0xf] %v5464_v56  ;;  %v5756_v28 = vsel %vm16474_vm13, %v5489_v26, %v5755_v57  ;;  %v5762_v17 = vld [vmem:[#allocation2 + $0x54] sm:$0xf] }
 0x348   : > { %5747 = vst [vmem:[#allocation2 + $0x38] sm:$0x1] %v5746_v25  ;;  %5737 = vst [vmem:[#allocation2 + $0x28] sm:$0xf] %v5447_v31  ;;  %v5749_v8 = vsel %vm16474_vm13, %v5472_v29, %v5748_v61  ;;  %v11835_v10 = vpack.c.bf16 %v5170_v59, %v5170_v59  ;;  %v11833_v35 = vpack.c.bf16 %v5168_v2, %v5168_v2  ;;  %v5173_v12 = vmax.f32 %v13292_v21, 0.0 }
 0x349   : > { %5740 = vst [vmem:[#allocation2 + $0x2c] sm:$0x1] %v5739_v44  ;;  %5757 = vst [vmem:[#allocation2 + $0x48] sm:$0xf] %v5756_v28  ;;  %v5171_v16 = vmax.f32 %v13293_v42, 0.0  ;;  %v13294_v6 = vadd.f32 %v12831_v34, %v16458_v54  ;;  %v13295_v37 = vadd.f32 %v16458_v54, %v5051_v55  ;;  %12899 = vmatpush3.bf16.msra.mxu1 %v14045_v62 }
 0x34a   : > { %5750 = vst [vmem:[#allocation2 + $0x3c] sm:$0xf] %v5749_v8  ;;  %v5492_v24 = vshrl.u32 %v11835_v10, 16  ;;  %v5495_v60 = vshll.u32 %v11835_v10, 16  ;;  %v5475_v7 = vshrl.u32 %v11833_v35, 16  ;;  %v5478_v58 = vshll.u32 %v11833_v35, 16  ;;  %12900 = vmatprep.subr.bf16.mxu1 %v14048_v18 }
 0x34b   : > { %v12834_v5 = vpop.f32.mrb[16].mxu0  ;;  %v11838_v33 = vpack.c.bf16 %v5173_v12, %v5173_v12  ;;  %v11836_v51 = vpack.c.bf16 %v5171_v16, %v5171_v16  ;;  %v5174_v63 = vmax.f32 %v13294_v6, 0.0  ;;  %v5172_v9 = vmax.f32 %v13295_v37, 0.0 }
 0x34c   : > { %v5064_v49 = vpop.f32.mrb[17].mxu0  ;;  %v5494_v1 = vrot.slane %v5492_v24, 7  ;;  %v5477_v50 = vrot.slane %v5475_v7, 7  ;;  %v13296_v27 = vadd.f32 %v12834_v5, %v16458_v54 }
 0x34d   : > { %v13297_v62 = vadd.f32 %v16458_v54, %v5064_v49  ;;  %v12835_v13 = vpop.f32.mrb[18].mxu0  ;;  %v5518_v23 = vshrl.u32 %v11838_v33, 16  ;;  %v5521_v48 = vshll.u32 %v11838_v33, 16  ;;  %v5501_v57 = vshrl.u32 %v11836_v51, 16  ;;  %12901 = vmatpush3.bf16.msra.mxu1 %v14048_v18  ;;  %v5766_v33 = vld [vmem:[#allocation2 + $0x5c] sm:$0x1] }
 0x34e   : > { %v5504_v59 = vshll.u32 %v11836_v51, 16  ;;  %v5067_v2 = vpop.f32.mrb[19].mxu0  ;;  %v5497_v41 = vor.u32 %v5495_v60, %v5494_v1  ;;  %v5499_v21 = vrot.slane %v5494_v1, 4  ;;  %v5480_v42 = vor.u32 %v5478_v58, %v5477_v50  ;;  %12902 = vmatprep.subr.bf16.mxu1 %v14051_v36  ;;  %v14046_v29 = vld [vmem:[#allocation2 + $0x30] sm:$0xff]   ;;  %v14057_v60 = vld [vmem:[#allocation3 + $0x68] sm:$0xff]  }
 0x34f   : > { %v5482_v34 = vrot.slane %v5477_v50, 4  ;;  %v5520_v11 = vrot.slane %v5518_v23, 7  ;;  %v5503_v22 = vrot.slane %v5501_v57, 7  ;;  %v11839_v61 = vpack.c.bf16 %v5174_v63, %v5174_v63  ;;  %v14044_v26 = vld [vmem:[#allocation2 + $0x24] sm:$0xff]   ;;  %v16700_v40 = vld [vmem:[#allocation2 + $0x38] sm:$0x1] }
 0x350   : > { %v11837_v55 = vpack.c.bf16 %v5172_v9, %v5172_v9  ;;  %v5498_v56 = vsel %vm16481_vm14, %v5490_v0, %v5497_v41  ;;  %v5760_v18 = vsel %vm16379_vm8, %v5499_v21, %v5759_v43  ;;  %v5481_v25 = vsel %vm16481_vm14, %v5473_v3, %v5480_v42  ;;  %12869 = vmatmul.mubr.bf16.gmra.mrb[4].mxu1 %v14044_v26  ;;  %v5776_v26 = vld [vmem:[#allocation2 + $0x6c] sm:$0xf] }
 0x351   : > { %v5753_v31 = vsel %vm16379_vm8, %v5482_v34, %v5752_v19  ;;  %5758 = vst [vmem:[#allocation2 + $0x4c] sm:$0xf] %v5498_v56  ;;  %5761 = vst [vmem:[#allocation2 + $0x50] sm:$0x1] %v5760_v18  ;;  %v5523_v44 = vor.u32 %v5521_v48, %v5520_v11  ;;  %v5524_v39 = vrot.slane %v5520_v11, 4  ;;  %v5506_v28 = vor.u32 %v5504_v59, %v5503_v22  ;;  %v14060_v48 = vld [vmem:[#allocation3 + $0x70] sm:$0xff]  }
 0x352   : > { %5751 = vst [vmem:[#allocation2 + $0x40] sm:$0xf] %v5481_v25  ;;  %5754 = vst [vmem:[#allocation2 + $0x44] sm:$0x1] %v5753_v31  ;;  %v5507_v8 = vrot.slane %v5503_v22, 4  ;;  %v5526_v0 = vshrl.u32 %v11839_v61, 16  ;;  %12872 = vmatprep.mubr.bf16.mxu1 %v14046_v29  ;;  %12903 = vmatpush3.bf16.msra.mxu1 %v14051_v36  ;;  %v13298_v5 = vadd.f32 %v12835_v13, %v16458_v54 }
 0x353   : > { %v5529_v10 = vshll.u32 %v11839_v61, 16  ;;  %v5509_v35 = vshrl.u32 %v11837_v55, 16  ;;  %v5512_v12 = vshll.u32 %v11837_v55, 16  ;;  %v12838_v38 = vpop.f32.mrb[20].mxu0  ;;  %v5770_v3 = vsel %vm16474_vm13, %v5523_v44, %v5769_v32  ;;  %12904 = vmatprep.subr.bf16.mxu1 %v14054_v20  ;;  %v5773_v19 = vld [vmem:[#allocation2 + $0x68] sm:$0x1] }
 0x354   : > { %v5763_v16 = vsel %vm16474_vm13, %v5506_v28, %v5762_v17  ;;  %v5177_v6 = vmax.f32 %v13296_v27, 0.0  ;;  %v5175_v37 = vmax.f32 %v13297_v62, 0.0  ;;  %v5080_v24 = vpop.f32.mrb[21].mxu0  ;;  %5771 = vst [vmem:[#allocation2 + $0x60] sm:$0xf] %v5770_v3  ;;  %v5528_v7 = vrot.slane %v5526_v0, 7 }
 0x355   : > { %5764 = vst [vmem:[#allocation2 + $0x54] sm:$0xf] %v5763_v16  ;;  %v5511_v58 = vrot.slane %v5509_v35, 7  ;;  %v13299_v43 = vadd.f32 %v16458_v54, %v5067_v2  ;;  %v12839_v36 = vpop.f32.mrb[22].mxu0  ;;  %v13300_v9 = vadd.f32 %v12838_v38, %v16458_v54  ;;  %v13301_v49 = vadd.f32 %v16458_v54, %v5080_v24  ;;  %v5783_v32 = vld [vmem:[#allocation2 + $0x78] sm:$0xf] }
 0x356   : > { %v11842_v51 = vpack.c.bf16 %v5177_v6, %v5177_v6  ;;  %v11840_v63 = vpack.c.bf16 %v5175_v37, %v5175_v37  ;;  %v5083_v1 = vpop.f32.mrb[23].mxu0  ;;  %v5531_v50 = vor.u32 %v5529_v10, %v5528_v7  ;;  %v5533_v27 = vrot.slane %v5528_v7, 4  ;;  %12905 = vmatpush3.bf16.msra.mxu1 %v14054_v20  ;;  %v14063_v16 = vld [vmem:[#allocation3 + $0x78] sm:$0xff]  }
 0x357   : > { %v5514_v62 = vor.u32 %v5512_v12, %v5511_v58  ;;  %v5516_v23 = vrot.slane %v5511_v58, 4  ;;  %12906 = vmatprep.subr.bf16.mxu1 %v14057_v60  ;;  %v5178_v22 = vmax.f32 %v13298_v5, 0.0  ;;  %v5176_v61 = vmax.f32 %v13299_v43, 0.0 }
 0x358   : > { %v5552_v57 = vshrl.u32 %v11842_v51, 16  ;;  %v5555_v13 = vshll.u32 %v11842_v51, 16  ;;  %v5535_v59 = vshrl.u32 %v11840_v63, 16  ;;  %v5538_v2 = vshll.u32 %v11840_v63, 16  ;;  %v14049_v55 = vld [vmem:[#allocation2 + $0x48] sm:$0xff]  }
 0x359   : > { %v5532_v41 = vsel %vm16481_vm14, %v5524_v39, %v5531_v50  ;;  %v5774_v21 = vsel %vm16379_vm8, %v5533_v27, %v5773_v19  ;;  %v5515_v42 = vsel %vm16481_vm14, %v5507_v8, %v5514_v62  ;;  %v5767_v34 = vsel %vm16379_vm8, %v5516_v23, %v5766_v33  ;;  %v14047_v20 = vld [vmem:[#allocation2 + $0x3c] sm:$0xff]   ;;  %v5780_v33 = vld [vmem:[#allocation2 + $0x74] sm:$0x1]  ;;  %v5797_v27 = vld [vmem:[#allocation2 + $0x90] sm:$0xf] }
 0x35a   : > { %5772 = vst [vmem:[#allocation2 + $0x64] sm:$0xf] %v5532_v41  ;;  %5775 = vst [vmem:[#allocation2 + $0x68] sm:$0x1] %v5774_v21  ;;  %v16576_v17 = vrot.slane %v5552_v57, 7  ;;  %v16578_v11 = vrot.slane %v5535_v59, 7  ;;  %v13302_v18 = vadd.f32 %v12839_v36, %v16458_v54  ;;  %v13303_v25 = vadd.f32 %v16458_v54, %v5083_v1  ;;  %12873 = vmatmul.mubr.bf16.gmra.mrb[8].mxu1 %v14047_v20 }
 0x35b   : > { %5765 = vst [vmem:[#allocation2 + $0x58] sm:$0xf] %v5515_v42  ;;  %5768 = vst [vmem:[#allocation2 + $0x5c] sm:$0x1] %v5767_v34  ;;  %v5181_v29 = vmax.f32 %v13300_v9, 0.0  ;;  %v5179_v56 = vmax.f32 %v13301_v49, 0.0  ;;  %12876 = vmatprep.mubr.bf16.mxu1 %v14049_v55  ;;  %12907 = vmatpush3.bf16.msra.mxu1 %v14057_v60  ;;  %v11843_v10 = vpack.c.bf16 %v5178_v22, %v5178_v22 }
 0x35c   : > { %v12842_v31 = vpop.f32.mrb[24].mxu0  ;;  %v5557_v44 = vor.u32 %v5555_v13, %v16576_v17  ;;  %v5558_v39 = vrot.slane %v16576_v17, 4  ;;  %v5540_v28 = vor.u32 %v5538_v2, %v16578_v11  ;;  %v5541_v8 = vrot.slane %v16578_v11, 4  ;;  %12908 = vmatprep.subr.bf16.mxu1 %v14060_v48  ;;  %v5787_v19 = vld [vmem:[#allocation2 + $0x80] sm:$0x1]  ;;  %v16594_v13 = vld [vmem:[#allocation3 + $0x80] sm:$0xff]  }
 0x35d   : > { %v5096_v0 = vpop.f32.mrb[25].mxu0  ;;  %v11841_v35 = vpack.c.bf16 %v5176_v61, %v5176_v61  ;;  %v11846_v12 = vpack.c.bf16 %v5181_v29, %v5181_v29  ;;  %v11844_v38 = vpack.c.bf16 %v5179_v56, %v5179_v56  ;;  %v5182_v24 = vmax.f32 %v13302_v18, 0.0  ;;  %v5790_v17 = vld [vmem:[#allocation2 + $0x84] sm:$0xf] }
 0x35e   : > { %v16586_v3 = vpop.f32.mrb[26].mxu0  ;;  %v5784_v6 = vsel %vm16474_vm13, %v5557_v44, %v5783_v32  ;;  %v5777_v37 = vsel %vm16474_vm13, %v5540_v28, %v5776_v26  ;;  %v5180_v7 = vmax.f32 %v13303_v25, 0.0  ;;  %v5560_v60 = vshrl.u32 %v11843_v10, 16 }
 0x35f   : > { %v16592_v58 = vpop.f32.mrb[27].mxu0  ;;  %5785 = vst [vmem:[#allocation2 + $0x78] sm:$0xf] %v5784_v6  ;;  %5778 = vst [vmem:[#allocation2 + $0x6c] sm:$0xf] %v5777_v37  ;;  %v5563_v5 = vshll.u32 %v11843_v10, 16  ;;  %12909 = vmatpush3.bf16.msra.mxu1 %v14060_v48  ;;  %v11847_v62 = vpack.c.bf16 %v5182_v24, %v5182_v24  ;;  %v13304_v41 = vadd.f32 %v12842_v31, %v16458_v54 }
 0x360   : > { %v5543_v43 = vshrl.u32 %v11841_v35, 16  ;;  %v5546_v36 = vshll.u32 %v11841_v35, 16  ;;  %v5586_v51 = vshrl.u32 %v11846_v12, 16  ;;  %v5589_v63 = vshll.u32 %v11846_v12, 16  ;;  %12910 = vmatprep.subr.bf16.mxu1 %v14063_v16 }
 0x361   : > { %v5569_v9 = vshrl.u32 %v11844_v38, 16  ;;  %v5572_v49 = vshll.u32 %v11844_v38, 16  ;;  %v5562_v1 = vrot.slane %v5560_v60, 7  ;;  %v11845_v23 = vpack.c.bf16 %v5180_v7, %v5180_v7  ;;  %v14052_v42 = vld [vmem:[#allocation2 + $0x60] sm:$0xff]   ;;  %v5801_v60 = vld [vmem:[#allocation2 + $0x98] sm:$0x1] }
 0x362   : > { %v5545_v50 = vrot.slane %v5543_v43, 7  ;;  %v14050_v57 = vld [vmem:[#allocation2 + $0x54] sm:$0xff]   ;;  %v5588_v59 = vrot.slane %v5586_v51, 7  ;;  %v13305_v21 = vadd.f32 %v16458_v54, %v5096_v0  ;;  %v12846_v11 = vpop.f32.mrb[28].mxu0  ;;  %v5594_v0 = vshrl.u32 %v11847_v62, 16 }
 0x363   : > { %v16596_v2 = vrot.slane %v5569_v9, 7  ;;  %v5565_v34 = vor.u32 %v5563_v5, %v5562_v1  ;;  %v5567_v32 = vrot.slane %v5562_v1, 4  ;;  %12877 = vmatmul.mubr.bf16.gmra.mrb[12].mxu1 %v14050_v57  ;;  %v5112_v29 = vpop.f32.mrb[29].mxu0  ;;  %v5597_v10 = vshll.u32 %v11847_v62, 16 }
 0x364   : > { %v5548_v48 = vor.u32 %v5546_v36, %v5545_v50  ;;  %v5550_v20 = vrot.slane %v5545_v50, 4  ;;  %v5591_v22 = vor.u32 %v5589_v63, %v5588_v59  ;;  %v5592_v61 = vrot.slane %v5588_v59, 4  ;;  %12880 = vmatprep.mubr.bf16.mxu1 %v14052_v42  ;;  %12911 = vmatpush3.bf16.msra.mxu1 %v14063_v16  ;;  %v16610_v44 = vpop.f32.mrb[30].mxu0  ;;  %v5794_v63 = vld [vmem:[#allocation2 + $0x8c] sm:$0x1] }
 0x365   : > { %v5574_v55 = vor.u32 %v5572_v49, %v16596_v2  ;;  %v5575_v26 = vrot.slane %v16596_v2, 4  ;;  %v5566_v56 = vsel %vm16481_vm14, %v5558_v39, %v5565_v34  ;;  %v5788_v18 = vsel %vm16379_vm8, %v5567_v32, %v5787_v19  ;;  %12944 = vmatprep.subr.bf16.mxu1 %v16594_v13  ;;  %v5804_v42 = vld [vmem:[#allocation2 + $0x9c] sm:$0xf] }
 0x366   : > { %v5549_v25 = vsel %vm16481_vm14, %v5541_v8, %v5548_v48  ;;  %v5781_v31 = vsel %vm16379_vm8, %v5550_v20, %v5780_v33  ;;  %5786 = vst [vmem:[#allocation2 + $0x7c] sm:$0xf] %v5566_v56  ;;  %5789 = vst [vmem:[#allocation2 + $0x80] sm:$0x1] %v5788_v18  ;;  %v5798_v39 = vsel %vm16474_vm13, %v5591_v22, %v5797_v27  ;;  %v16617_v8 = vpop.f32.mrb[31].mxu0  ;;  %v5577_v35 = vshrl.u32 %v11845_v23, 16 }
 0x367   : > { %5779 = vst [vmem:[#allocation2 + $0x70] sm:$0xf] %v5549_v25  ;;  %5782 = vst [vmem:[#allocation2 + $0x74] sm:$0x1] %v5781_v31  ;;  %v5791_v28 = vsel %vm16474_vm13, %v5574_v55, %v5790_v17  ;;  %v5580_v12 = vshll.u32 %v11845_v23, 16  ;;  %v5185_v38 = vmax.f32 %v13304_v41, 0.0  ;;  %v13306_v37 = vadd.f32 %v16586_v3, %v16458_v54 }
 0x368   : > { %5799 = vst [vmem:[#allocation2 + $0x90] sm:$0xf] %v5798_v39  ;;  %5792 = vst [vmem:[#allocation2 + $0x84] sm:$0xf] %v5791_v28  ;;  %v5183_v16 = vmax.f32 %v13305_v21, 0.0  ;;  %v5596_v6 = vrot.slane %v5594_v0, 7  ;;  %v13307_v24 = vadd.f32 %v16458_v54, %v16592_v58  ;;  %v13308_v7 = vadd.f32 %v12846_v11, %v16458_v54 }
 0x369   : > { %v5579_v5 = vrot.slane %v5577_v35, 7  ;;  %v11850_v43 = vpack.c.bf16 %v5185_v38, %v5185_v38  ;;  %v13309_v19 = vadd.f32 %v16458_v54, %v5112_v29  ;;  %v5186_v9 = vmax.f32 %v13306_v37, 0.0  ;;  %v5811_v23 = vld [vmem:[#allocation2 + $0xa8] sm:$0xf] }
 0x36a   : > { %v11848_v36 = vpack.c.bf16 %v5183_v16, %v5183_v16  ;;  %v5599_v33 = vor.u32 %v5597_v10, %v5596_v6  ;;  %v5601_v51 = vrot.slane %v5596_v6, 4  ;;  %v5184_v49 = vmax.f32 %v13307_v24, 0.0  ;;  %v5808_v16 = vld [vmem:[#allocation2 + $0xa4] sm:$0x1] }
 0x36b   : > { %v5582_v1 = vor.u32 %v5580_v12, %v5579_v5  ;;  %v5584_v50 = vrot.slane %v5579_v5, 4  ;;  %v5620_v27 = vshrl.u32 %v11850_v43, 16  ;;  %v5623_v3 = vshll.u32 %v11850_v43, 16  ;;  %v5815_v12 = vld [vmem:[#allocation2 + $0xb0] sm:$0x1] }
 0x36c   : > { %v5600_v58 = vsel %vm16481_vm14, %v5592_v61, %v5599_v33  ;;  %v5802_v62 = vsel %vm16379_vm8, %v5601_v51, %v5801_v60  ;;  %v5603_v57 = vshrl.u32 %v11848_v36, 16  ;;  %v5606_v59 = vshll.u32 %v11848_v36, 16  ;;  %v6227_v43 = vld [vmem:[#allocation2 + $0xc] sm:$0xf] }
 0x36d   : > { %5800 = vst [vmem:[#allocation2 + $0x94] sm:$0xf] %v5600_v58  ;;  %5803 = vst [vmem:[#allocation2 + $0x98] sm:$0x1] %v5802_v62  ;;  %v5583_v2 = vsel %vm16481_vm14, %v5575_v26, %v5582_v1  ;;  %v5795_v41 = vsel %vm16379_vm8, %v5584_v50, %v5794_v63  ;;  %v5622_v21 = vrot.slane %v5620_v27, 7  ;;  %v11851_v34 = vpack.c.bf16 %v5186_v9, %v5186_v9  ;;  %v14055_v22 = vld [vmem:[#allocation2 + $0x78] sm:$0xff]  }
 0x36e   : > { %v14053_v32 = vld [vmem:[#allocation2 + $0x6c] sm:$0xff]   ;;  %5793 = vst [vmem:[#allocation2 + $0x88] sm:$0xf] %v5583_v2  ;;  %5796 = vst [vmem:[#allocation2 + $0x8c] sm:$0x1] %v5795_v41  ;;  %v5605_v48 = vrot.slane %v5603_v57, 7  ;;  %v11849_v20 = vpack.c.bf16 %v5184_v49, %v5184_v49  ;;  %v13310_v6 = vadd.f32 %v16610_v44, %v16458_v54  ;;  %v13311_v37 = vadd.f32 %v16458_v54, %v16617_v8 }
 0x36f   : > { %v5189_v17 = vmax.f32 %v13308_v7, 0.0  ;;  %v5187_v11 = vmax.f32 %v13309_v19, 0.0  ;;  %v5625_v61 = vor.u32 %v5623_v3, %v5622_v21  ;;  %v5626_v55 = vrot.slane %v5622_v21, 4  ;;  %12881 = vmatmul.mubr.bf16.gmra.mrb[16].mxu1 %v14053_v32  ;;  %v5825_v50 = vld [vmem:[#allocation2 + $0xc0] sm:$0xf] }
 0x370   : > { %v5628_v29 = vshrl.u32 %v11851_v34, 16  ;;  %v5631_v56 = vshll.u32 %v11851_v34, 16  ;;  %v5608_v26 = vor.u32 %v5606_v59, %v5605_v48  ;;  %v5609_v18 = vrot.slane %v5605_v48, 4  ;;  %12884 = vmatprep.mubr.bf16.mxu1 %v14055_v22  ;;  %v6230_v41 = vld [vmem:[#allocation2 + $0x18] sm:$0xf] }
 0x371   : > { %v5611_v25 = vshrl.u32 %v11849_v20, 16  ;;  %v5614_v31 = vshll.u32 %v11849_v20, 16  ;;  %v5812_v39 = vsel %vm16474_vm13, %v5625_v61, %v5811_v23  ;;  %v11854_v0 = vpack.c.bf16 %v5189_v17, %v5189_v17  ;;  %v5818_v23 = vld [vmem:[#allocation2 + $0xb4] sm:$0xf]  ;;  %v16653_v32 = vld [vmem:[#allocation2 + $0x10] sm:$0xf] }
 0x372   : > { %v5630_v28 = vrot.slane %v5628_v29, 7  ;;  %v11852_v10 = vpack.c.bf16 %v5187_v11, %v5187_v11  ;;  %5813 = vst [vmem:[#allocation2 + $0xa8] sm:$0xf] %v5812_v39  ;;  %v5805_v35 = vsel %vm16474_vm13, %v5608_v26, %v5804_v42  ;;  %v5190_v49 = vmax.f32 %v13310_v6, 0.0  ;;  %v16655_v48 = vld [vmem:[#allocation2 + $0x14] sm:$0x1] }
 0x373   : > { %v5613_v38 = vrot.slane %v5611_v25, 7  ;;  %5806 = vst [vmem:[#allocation2 + $0x9c] sm:$0xf] %v5805_v35  ;;  %v5654_v60 = vshrl.u32 %v11854_v0, 16  ;;  %v5657_v5 = vshll.u32 %v11854_v0, 16  ;;  %v5188_v3 = vmax.f32 %v13311_v37, 0.0 }
 0x374   : > { %v5633_v24 = vor.u32 %v5631_v56, %v5630_v28  ;;  %v5635_v7 = vrot.slane %v5630_v28, 4  ;;  %v5637_v33 = vshrl.u32 %v11852_v10, 16  ;;  %v5640_v51 = vshll.u32 %v11852_v10, 16  ;;  %v14058_v58 = vld [vmem:[#allocation2 + $0x90] sm:$0xff]   ;;  %v5829_v29 = vld [vmem:[#allocation2 + $0xc8] sm:$0x1] }
 0x375   : > { %v5616_v36 = vor.u32 %v5614_v31, %v5613_v38  ;;  %v5618_v19 = vrot.slane %v5613_v38, 4  ;;  %v5656_v44 = vrot.slane %v5654_v60, 7  ;;  %v14056_v1 = vld [vmem:[#allocation2 + $0x84] sm:$0xff]   ;;  %v11855_v57 = vpack.c.bf16 %v5190_v49, %v5190_v49  ;;  %v5822_v31 = vld [vmem:[#allocation2 + $0xbc] sm:$0x1] }
 0x376   : > { %v5634_v63 = vsel %vm16481_vm14, %v5626_v55, %v5633_v24  ;;  %v5816_v9 = vsel %vm16379_vm8, %v5635_v7, %v5815_v12  ;;  %v5639_v27 = vrot.slane %v5637_v33, 7  ;;  %v6295_v59 = vsel %vm14471_vm2, %v16469_v45, %v16493_v47  ;;  %v16664_v12 = vld [vmem:[#allocation2 + $0x1c] sm:$0xf]  ;;  %v16666_v38 = vld [vmem:[#allocation2 + $0x20] sm:$0x1] }
 0x377   : > { %5814 = vst [vmem:[#allocation2 + $0xac] sm:$0xf] %v5634_v63  ;;  %5817 = vst [vmem:[#allocation2 + $0xb0] sm:$0x1] %v5816_v9  ;;  %v5617_v54 = vsel %vm16481_vm14, %v5609_v18, %v5616_v36  ;;  %v5809_v8 = vsel %vm16379_vm8, %v5618_v19, %v5808_v16  ;;  %v5659_v62 = vor.u32 %v5657_v5, %v5656_v44  ;;  %12885 = vmatmul.mubr.bf16.gmra.mrb[20].mxu1 %v14056_v1  ;;  %v6233_v49 = vld [vmem:[#allocation2 + $0x24] sm:$0xf] }
 0x378   : > { %5807 = vst [vmem:[#allocation2 + $0xa0] sm:$0xf] %v5617_v54  ;;  %5810 = vst [vmem:[#allocation2 + $0xa4] sm:$0x1] %v5809_v8  ;;  %v6297_v2 = vshrl.u32 %v6227_v43, 16  ;;  %v5660_v21 = vrot.slane %v5656_v44, 4  ;;  %v5642_v42 = vor.u32 %v5640_v51, %v5639_v27  ;;  %v11853_v34 = vpack.c.bf16 %v5188_v3, %v5188_v3  ;;  %12888 = vmatprep.mubr.bf16.mxu1 %v14058_v58 }
 0x379   : > { %v6300_v20 = vshll.u32 %v6227_v43, 16  ;;  %v5826_v17 = vsel %vm16474_vm13, %v5659_v62, %v5825_v50  ;;  %v5662_v11 = vshrl.u32 %v11855_v57, 16  ;;  %v5665_v22 = vshll.u32 %v11855_v57, 16  ;;  %v16672_v1 = vld [vmem:[#allocation2 + $0x28] sm:$0xf] }
 0x37a   : > { %v6299_v61 = vrot.slane %v6297_v2, 4  ;;  %5827 = vst [vmem:[#allocation2 + $0xc0] sm:$0xf] %v5826_v17  ;;  %v5819_v55 = vsel %vm16474_vm13, %v5642_v42, %v5818_v23  ;;  %v5645_v56 = vshrl.u32 %v11853_v34, 16  ;;  %v5648_v26 = vshll.u32 %v11853_v34, 16 }
 0x37b   : > { %v6302_v18 = vrot.slane %v6300_v20, 5  ;;  %5820 = vst [vmem:[#allocation2 + $0xb4] sm:$0xf] %v5819_v55  ;;  %v5664_v25 = vrot.slane %v5662_v11, 7  ;;  %v6306_v39 = vshll.u32 %v16653_v32, 16  ;;  %v6310_v28 = vshrl.u32 %v16653_v32, 16 }
 0x37c   : > { %v6316_v0 = vshll.u32 %v16655_v48, 16  ;;  %v5647_v10 = vrot.slane %v5645_v56, 7  ;;  %v6321_v46 = vshrl.u32 %v6230_v41, 16  ;;  %v6324_v16 = vshll.u32 %v6230_v41, 16  ;;  %v16681_v57 = vld [vmem:[#allocation2 + $0x2c] sm:$0x1] }
 0x37d   : > { %v6303_v35 = vor.u32 %v6302_v18, %v6299_v61  ;;  %v5667_v6 = vor.u32 %v5665_v22, %v5664_v25  ;;  %v5669_v37 = vrot.slane %v5664_v25, 4  ;;  %v6308_v24 = vrot.slane %v6306_v39, 5  ;;  %v6236_v17 = vld [vmem:[#allocation2 + $0x30] sm:$0xf]  ;;  %v6239_v25 = vld [vmem:[#allocation2 + $0x3c] sm:$0xf] }
 0x37e   : > { %v6312_v7 = vrot.slane %v6310_v28, 4  ;;  %v5643_v60 = vrot.slane %v5639_v27, 4  ;;  %v5650_v5 = vor.u32 %v5648_v26, %v5647_v10  ;;  %v5652_v43 = vrot.slane %v5647_v10, 4  ;;  %v14061_v63 = vld [vmem:[#allocation2 + $0xa8] sm:$0xff]  }
 0x37f   : > { %v14059_v36 = vld [vmem:[#allocation2 + $0x9c] sm:$0xff]   ;;  %v6304_v19 = vrot.slane %v6303_v35, 4  ;;  %v5668_v33 = vsel %vm16481_vm14, %v5660_v21, %v5667_v6  ;;  %v5830_v51 = vsel %vm16379_vm8, %v5669_v37, %v5829_v29  ;;  %v6323_v44 = vrot.slane %v6321_v46, 4  ;;  %v16696_v29 = vld [vmem:[#allocation2 + $0x34] sm:$0xf] }
 0x380   : > { %v6313_v9 = vor.u32 %v6312_v7, %v6308_v24  ;;  %5828 = vst [vmem:[#allocation2 + $0xc4] sm:$0xf] %v5668_v33  ;;  %5831 = vst [vmem:[#allocation2 + $0xc8] sm:$0x1] %v5830_v51  ;;  %v5651_v54 = vsel %vm16481_vm14, %v5643_v60, %v5650_v5  ;;  %v5823_v8 = vsel %vm16379_vm8, %v5652_v43, %v5822_v31  ;;  %12889 = vmatmul.mubr.bf16.gmra.mrb[24].mxu1 %v14059_v36  ;;  %v16708_v5 = vld [vmem:[#allocation2 + $0x40] sm:$0xf] }
 0x381   : > { %v6318_v50 = vrot.slane %v6316_v0, 5  ;;  %v6326_v27 = vrot.slane %v6324_v16, 5  ;;  %5821 = vst [vmem:[#allocation2 + $0xb8] sm:$0xf] %v5651_v54  ;;  %5824 = vst [vmem:[#allocation2 + $0xbc] sm:$0x1] %v5823_v8  ;;  %12892 = vmatprep.mubr.bf16.mxu1 %v14061_v63  ;;  %v11547_v21 = vcombine.low %v6285_v52, %v6295_v59  ;;  %v6309_v14 = vsel %vm14471_vm2, %v6304_v19, %v6308_v24 }
 0x382   : > { %v6314_v3 = vrot.slane %v6313_v9, 4  ;;  %v6330_v58 = vshll.u32 %v16664_v12, 16  ;;  %v6334_v62 = vshrl.u32 %v16664_v12, 16  ;;  %v6340_v23 = vshll.u32 %v16666_v38, 16  ;;  %v16715_v51 = vld [vmem:[#allocation2 + $0x44] sm:$0x1] }
 0x383   : > { %v6327_v30 = vor.u32 %v6326_v27, %v6323_v44  ;;  %v6345_v2 = vshrl.u32 %v6233_v49, 16  ;;  %v6348_v41 = vshll.u32 %v6233_v49, 16  ;;  %v6354_v53 = vshll.u32 %v16672_v1, 16  ;;  %v6242_v63 = vld [vmem:[#allocation2 + $0x48] sm:$0xf] }
 0x384   : > { %v6319_v42 = vsel %vm14471_vm2, %v6314_v3, %v6318_v50  ;;  %v6332_v34 = vrot.slane %v6330_v58, 5  ;;  %v6336_v20 = vrot.slane %v6334_v62, 4  ;;  %v6342_v22 = vrot.slane %v6340_v23, 5  ;;  %v16717_v8 = vld [vmem:[#allocation2 + $0x4c] sm:$0xf] }
 0x385   : > { %v6328_v11 = vrot.slane %v6327_v30, 4  ;;  %v6347_v61 = vrot.slane %v6345_v2, 4  ;;  %v6350_v55 = vrot.slane %v6348_v41, 5  ;;  %v6356_v45 = vrot.slane %v6354_v53, 5 }
 0x386   : > { %v6337_v56 = vor.u32 %v6336_v20, %v6332_v34  ;;  %v6358_v47 = vshrl.u32 %v16672_v1, 16  ;;  %v6364_v26 = vshll.u32 %v16681_v57, 16  ;;  %v6369_v59 = vshrl.u32 %v6236_v17, 16  ;;  %v6245_v20 = vld [vmem:[#allocation2 + $0x54] sm:$0xf] }
 0x387   : > { %v6351_v52 = vor.u32 %v6350_v55, %v6347_v61  ;;  %v6372_v18 = vshll.u32 %v6236_v17, 16  ;;  %v11548_v31 = vcombine.low %v6309_v14, %v6319_v42  ;;  %v6378_v0 = vshll.u32 %v16696_v29, 16  ;;  %v14065_v55 = vld [vmem:[#allocation3 + $0x88] sm:$0xff]  }
 0x388   : > { %v6338_v39 = vrot.slane %v6337_v56, 4  ;;  %v6360_v28 = vrot.slane %v6358_v47, 4  ;;  %v14062_v10 = vld [vmem:[#allocation2 + $0xb4] sm:$0xff]   ;;  %v6333_v35 = vsel %vm14471_vm2, %v6328_v11, %v6332_v34  ;;  %v6371_v16 = vrot.slane %v6369_v59, 4  ;;  %v16725_v34 = vld [vmem:[#allocation2 + $0x50] sm:$0x1] }
 0x389   : > { %v6352_v46 = vrot.slane %v6351_v52, 4  ;;  %v6374_v6 = vrot.slane %v6372_v18, 5  ;;  %v6366_v7 = vrot.slane %v6364_v26, 5  ;;  %v6380_v60 = vrot.slane %v6378_v0, 5  ;;  %12893 = vmatmul.mubr.bf16.gmra.mrb[28].mxu1 %v14062_v10  ;;  %v14101_v15 = vld [vmem:[#allocation2 + $0xb4] sm:$0xff]  }
 0x38a   : > { %v6361_v37 = vor.u32 %v6360_v28, %v6356_v45  ;;  %v6382_v24 = vshrl.u32 %v16696_v29, 16  ;;  %v6343_v43 = vsel %vm14471_vm2, %v6338_v39, %v6342_v22  ;;  %v6388_v33 = vshll.u32 %v16700_v40, 16  ;;  %12912 = vmatprep.mubr.bf16.mxu1 %v11547_v21 }
 0x38b   : > { %v6357_v36 = vsel %vm14471_vm2, %v6352_v46, %v6356_v45  ;;  %v6375_v19 = vor.u32 %v6374_v6, %v6371_v16  ;;  %v6393_v49 = vshrl.u32 %v6239_v25, 16  ;;  %v6396_v54 = vshll.u32 %v6239_v25, 16  ;;  %v16734_v25 = vld [vmem:[#allocation2 + $0x58] sm:$0xf]  ;;  %v6248_v46 = vld [vmem:[#allocation2 + $0x60] sm:$0xf] }
 0x38c   : > { %v6362_v9 = vrot.slane %v6361_v37, 4  ;;  %v6384_v44 = vrot.slane %v6382_v24, 4  ;;  %v6390_v27 = vrot.slane %v6388_v33, 5  ;;  %v6402_v3 = vshll.u32 %v16708_v5, 16  ;;  %v14066_v6 = vld [vmem:[#allocation3 + $0x90] sm:$0xff]  }
 0x38d   : > { %v6376_v50 = vrot.slane %v6375_v19, 4  ;;  %v6406_v58 = vshrl.u32 %v16708_v5, 16  ;;  %v6395_v30 = vrot.slane %v6393_v49, 4  ;;  %v6398_v2 = vrot.slane %v6396_v54, 5  ;;  %v16740_v24 = vld [vmem:[#allocation2 + $0x64] sm:$0xf] }
 0x38e   : > { %v6367_v62 = vsel %vm14471_vm2, %v6362_v9, %v6366_v7  ;;  %v6385_v23 = vor.u32 %v6384_v44, %v6380_v60  ;;  %v11549_v41 = vcombine.low %v6333_v35, %v6343_v43  ;;  %v6404_v21 = vrot.slane %v6402_v3, 5  ;;  %v16736_v35 = vld [vmem:[#allocation2 + $0x5c] sm:$0x1]  ;;  %v16748_v3 = vld [vmem:[#allocation2 + $0x68] sm:$0x1] }
 0x38f   : > { %v16723_v53 = vcombine.low %v6357_v36, %v6367_v62  ;;  %v6408_v42 = vrot.slane %v6406_v58, 4  ;;  %v6399_v11 = vor.u32 %v6398_v2, %v6395_v30  ;;  %v6412_v22 = vshll.u32 %v16715_v51, 16  ;;  %v6251_v58 = vld [vmem:[#allocation2 + $0x6c] sm:$0xf] }
 0x390   : > { %v6386_v17 = vrot.slane %v6385_v23, 4  ;;  %v6417_v61 = vshrl.u32 %v6242_v63, 16  ;;  %v6420_v45 = vshll.u32 %v6242_v63, 16  ;;  %v6426_v47 = vshll.u32 %v16717_v8, 16 }
 0x391   : > { %v6409_v56 = vor.u32 %v6408_v42, %v6404_v21  ;;  %v6430_v26 = vshrl.u32 %v16717_v8, 16  ;;  %v6381_v14 = vsel %vm14471_vm2, %v6376_v50, %v6380_v60  ;;  %v6400_v59 = vrot.slane %v6399_v11, 4  ;;  %12913 = vmatmul.mubr.bf16.vlgmr.msra.gmra.mrb[0].mxu1 %v11548_v31 }
 0x392   : > { %v6391_v52 = vsel %vm14471_vm2, %v6386_v17, %v6390_v27  ;;  %v6419_v18 = vrot.slane %v6417_v61, 4  ;;  %v6414_v28 = vrot.slane %v6412_v22, 5  ;;  %v6422_v0 = vrot.slane %v6420_v45, 5  ;;  %12916 = vmatprep.mubr.bf16.mxu1 %v11549_v41  ;;  %12945 = vmatpush3.bf16.msra.mxu1 %v16594_v13  ;;  %v14067_v27 = vld [vmem:[#allocation3 + $0x98] sm:$0xff]  }
 0x393   : > { %v6410_v39 = vrot.slane %v6409_v56, 4  ;;  %v6428_v10 = vrot.slane %v6426_v47, 5  ;;  %v11551_v16 = vcombine.low %v6381_v14, %v6391_v52  ;;  %v6432_v37 = vrot.slane %v6430_v26, 4  ;;  %12946 = vmatprep.subr.bf16.mxu1 %v14065_v55 }
 0x394   : > { %v6436_v7 = vshll.u32 %v16725_v34, 16  ;;  %v6441_v60 = vshrl.u32 %v6245_v20, 16  ;;  %v6405_v31 = vsel %vm14471_vm2, %v6400_v59, %v6404_v21  ;;  %v6423_v43 = vor.u32 %v6422_v0, %v6419_v18  ;;  %v16761_v0 = vld [vmem:[#allocation2 + $0x74] sm:$0x1] }
 0x395   : > { %v6444_v36 = vshll.u32 %v6245_v20, 16  ;;  %v6450_v19 = vshll.u32 %v16734_v25, 16  ;;  %v6415_v33 = vsel %vm14471_vm2, %v6410_v39, %v6414_v28  ;;  %v6433_v13 = vor.u32 %v6432_v37, %v6428_v10 }
 0x396   : > { %v6438_v63 = vrot.slane %v6436_v7, 5  ;;  %v6443_v9 = vrot.slane %v6441_v60, 4  ;;  %v6424_v44 = vrot.slane %v6423_v43, 4  ;;  %v6454_v50 = vshrl.u32 %v16734_v25, 16  ;;  %12947 = vmatpush3.bf16.msra.mxu1 %v14065_v55  ;;  %v16756_v55 = vld [vmem:[#allocation2 + $0x70] sm:$0xf] }
 0x397   : > { %v6446_v49 = vrot.slane %v6444_v36, 5  ;;  %v6452_v54 = vrot.slane %v6450_v19, 5  ;;  %v6434_v62 = vrot.slane %v6433_v13, 4  ;;  %v6460_v23 = vshll.u32 %v16736_v35, 16  ;;  %12948 = vmatprep.subr.bf16.mxu1 %v14066_v6  ;;  %v6254_v60 = vld [vmem:[#allocation2 + $0x78] sm:$0xf] }
 0x398   : > { %v6465_v30 = vshrl.u32 %v6248_v46, 16  ;;  %v6468_v2 = vshll.u32 %v6248_v46, 16  ;;  %v11552_v41 = vcombine.low %v6405_v31, %v6415_v33  ;;  %v6456_v42 = vrot.slane %v6454_v50, 4  ;;  %v14068_v46 = vld [vmem:[#allocation3 + $0xa0] sm:$0xff]   ;;  %v16772_v50 = vld [vmem:[#allocation2 + $0x80] sm:$0x1] }
 0x399   : > { %v6447_v21 = vor.u32 %v6446_v49, %v6443_v9  ;;  %v6474_v20 = vshll.u32 %v16740_v24, 16  ;;  %v6429_v17 = vsel %vm14471_vm2, %v6424_v44, %v6428_v10  ;;  %v6439_v11 = vsel %vm14471_vm2, %v6434_v62, %v6438_v63  ;;  %12917 = vmatmul.mubr.bf16.gmra.mrb[4].mxu1 %v16723_v53  ;;  %v16769_v33 = vld [vmem:[#allocation2 + $0x7c] sm:$0xf] }
 0x39a   : > { %v6467_v22 = vrot.slane %v6465_v30, 4  ;;  %v6470_v61 = vrot.slane %v6468_v2, 5  ;;  %v6457_v45 = vor.u32 %v6456_v42, %v6452_v54  ;;  %v6462_v47 = vrot.slane %v6460_v23, 5  ;;  %12920 = vmatprep.mubr.bf16.mxu1 %v11551_v16  ;;  %12949 = vmatpush3.bf16.msra.mxu1 %v14066_v6  ;;  %v14069_v23 = vld [vmem:[#allocation3 + $0xa8] sm:$0xff]  }
 0x39b   : > { %v6448_v56 = vrot.slane %v6447_v21, 4  ;;  %v6476_v26 = vrot.slane %v6474_v20, 5  ;;  %v6478_v52 = vshrl.u32 %v16740_v24, 16  ;;  %v6484_v59 = vshll.u32 %v16748_v3, 16  ;;  %12950 = vmatprep.subr.bf16.mxu1 %v14067_v27 }
 0x39c   : > { %v6471_v14 = vor.u32 %v6470_v61, %v6467_v22  ;;  %v6489_v18 = vshrl.u32 %v6251_v58, 16  ;;  %v11553_v39 = vcombine.low %v6429_v17, %v6439_v11  ;;  %v6458_v28 = vrot.slane %v6457_v45, 4  ;;  %v6257_v22 = vld [vmem:[#allocation2 + $0x84] sm:$0xf] }
 0x39d   : > { %v6492_v10 = vshll.u32 %v6251_v58, 16  ;;  %v6498_v53 = vshll.u32 %v16756_v55, 16  ;;  %v6453_v37 = vsel %vm14471_vm2, %v6448_v56, %v6452_v54  ;;  %v6480_v6 = vrot.slane %v6478_v52, 4 }
 0x39e   : > { %v6472_v16 = vrot.slane %v6471_v14, 4  ;;  %v6491_v7 = vrot.slane %v6489_v18, 4  ;;  %v6463_v31 = vsel %vm14471_vm2, %v6458_v28, %v6462_v47  ;;  %v6502_v19 = vshrl.u32 %v16756_v55, 16  ;;  %12951 = vmatpush3.bf16.msra.mxu1 %v14067_v27  ;;  %v14070_v18 = vld [vmem:[#allocation3 + $0xb0] sm:$0xff]  }
 0x39f   : > { %v6494_v43 = vrot.slane %v6492_v10, 5  ;;  %v6500_v36 = vrot.slane %v6498_v53, 5  ;;  %v11554_v13 = vcombine.low %v6453_v37, %v6463_v31  ;;  %v6481_v63 = vor.u32 %v6480_v6, %v6476_v26  ;;  %12952 = vmatprep.subr.bf16.mxu1 %v14068_v46  ;;  %v16785_v10 = vld [vmem:[#allocation2 + $0x8c] sm:$0x1] }
 0x3a0   : > { %v6486_v9 = vrot.slane %v6484_v59, 5  ;;  %v6508_v44 = vshll.u32 %v16761_v0, 16  ;;  %v6504_v54 = vrot.slane %v6502_v19, 4  ;;  %v6513_v58 = vshrl.u32 %v6254_v60, 16 }
 0x3a1   : > { %v6495_v49 = vor.u32 %v6494_v43, %v6491_v7  ;;  %v6516_v62 = vshll.u32 %v6254_v60, 16  ;;  %v6477_v30 = vsel %vm14471_vm2, %v6472_v16, %v6476_v26  ;;  %v6482_v2 = vrot.slane %v6481_v63, 4  ;;  %12921 = vmatmul.mubr.bf16.gmra.mrb[8].mxu1 %v11552_v41  ;;  %v16781_v26 = vld [vmem:[#allocation2 + $0x88] sm:$0xf]  ;;  %v6260_v60 = vld [vmem:[#allocation2 + $0x90] sm:$0xf] }
 0x3a2   : > { %v6522_v21 = vshll.u32 %v16769_v33, 16  ;;  %v6526_v42 = vshrl.u32 %v16769_v33, 16  ;;  %v6505_v20 = vor.u32 %v6504_v54, %v6500_v36  ;;  %v6515_v17 = vrot.slane %v6513_v58, 4  ;;  %12924 = vmatprep.mubr.bf16.mxu1 %v11553_v39  ;;  %12953 = vmatpush3.bf16.msra.mxu1 %v14068_v46  ;;  %v14071_v58 = vld [vmem:[#allocation3 + $0xb8] sm:$0xff]  }
 0x3a3   : > { %v6496_v27 = vrot.slane %v6495_v49, 4  ;;  %v6518_v11 = vrot.slane %v6516_v62, 5  ;;  %v6487_v61 = vsel %vm14471_vm2, %v6482_v2, %v6486_v9  ;;  %v6532_v47 = vshll.u32 %v16772_v50, 16  ;;  %12954 = vmatprep.subr.bf16.mxu1 %v14069_v23  ;;  %v16791_v9 = vld [vmem:[#allocation2 + $0x94] sm:$0xf] }
 0x3a4   : > { %v6524_v56 = vrot.slane %v6522_v21, 5  ;;  %v6528_v45 = vrot.slane %v6526_v42, 4  ;;  %v11555_v14 = vcombine.low %v6477_v30, %v6487_v61  ;;  %v6506_v52 = vrot.slane %v6505_v20, 4  ;;  %v16796_v2 = vld [vmem:[#allocation2 + $0x98] sm:$0x1] }
 0x3a5   : > { %v6510_v59 = vrot.slane %v6508_v44, 5  ;;  %v6519_v41 = vor.u32 %v6518_v11, %v6515_v17  ;;  %v6501_v28 = vsel %vm14471_vm2, %v6496_v27, %v6500_v36  ;;  %v6537_v53 = vshrl.u32 %v6257_v22, 16  ;;  %v6263_v27 = vld [vmem:[#allocation2 + $0x9c] sm:$0xf] }
 0x3a6   : > { %v6529_v39 = vor.u32 %v6528_v45, %v6524_v56  ;;  %v6540_v37 = vshll.u32 %v6257_v22, 16  ;;  %v6546_v6 = vshll.u32 %v16781_v26, 16  ;;  %v6550_v7 = vshrl.u32 %v16781_v26, 16  ;;  %12955 = vmatpush3.bf16.msra.mxu1 %v14069_v23 }
 0x3a7   : > { %v6511_v16 = vsel %vm14471_vm2, %v6506_v52, %v6510_v59  ;;  %v6520_v46 = vrot.slane %v6519_v41, 4  ;;  %v6534_v43 = vrot.slane %v6532_v47, 5  ;;  %v6539_v19 = vrot.slane %v6537_v53, 4  ;;  %12956 = vmatprep.subr.bf16.mxu1 %v14070_v18  ;;  %v16802_v47 = vld [vmem:[#allocation2 + $0xa0] sm:$0xf] }
 0x3a8   : > { %v6530_v31 = vrot.slane %v6529_v39, 4  ;;  %v6542_v63 = vrot.slane %v6540_v37, 5  ;;  %v11556_v36 = vcombine.low %v6501_v28, %v6511_v16  ;;  %v6548_v44 = vrot.slane %v6546_v6, 5  ;;  %v16805_v28 = vld [vmem:[#allocation3 + $0xc0] sm:$0xff]  }
 0x3a9   : > { %v6552_v49 = vrot.slane %v6550_v7, 4  ;;  %v6556_v54 = vshll.u32 %v16785_v10, 16  ;;  %v6525_v62 = vsel %vm14471_vm2, %v6520_v46, %v6524_v56  ;;  %v6561_v21 = vshrl.u32 %v6260_v60, 16  ;;  %12925 = vmatmul.mubr.bf16.gmra.mrb[12].mxu1 %v11554_v13  ;;  %v6266_v46 = vld [vmem:[#allocation2 + $0xa8] sm:$0xf] }
 0x3aa   : > { %v6543_v30 = vor.u32 %v6542_v63, %v6539_v19  ;;  %v6564_v42 = vshll.u32 %v6260_v60, 16  ;;  %v6535_v23 = vsel %vm14471_vm2, %v6530_v31, %v6534_v43  ;;  %v6570_v11 = vshll.u32 %v16791_v9, 16  ;;  %12928 = vmatprep.mubr.bf16.mxu1 %v11555_v14  ;;  %12957 = vmatpush3.bf16.msra.mxu1 %v14070_v18  ;;  %v16807_v14 = vld [vmem:[#allocation2 + $0xa4] sm:$0x1] }
 0x3ab   : > { %v6553_v20 = vor.u32 %v6552_v49, %v6548_v44  ;;  %v6558_v17 = vrot.slane %v6556_v54, 5  ;;  %v6563_v61 = vrot.slane %v6561_v21, 4  ;;  %v6574_v56 = vshrl.u32 %v16791_v9, 16  ;;  %12958 = vmatprep.subr.bf16.mxu1 %v14071_v58  ;;  %v16814_v49 = vld [vmem:[#allocation2 + $0xac] sm:$0xf] }
 0x3ac   : > { %v6544_v22 = vrot.slane %v6543_v30, 4  ;;  %v6566_v45 = vrot.slane %v6564_v42, 5  ;;  %v6572_v59 = vrot.slane %v6570_v11, 5  ;;  %v6580_v13 = vshll.u32 %v16796_v2, 16 }
 0x3ad   : > { %v6554_v52 = vrot.slane %v6553_v20, 4  ;;  %v6585_v41 = vshrl.u32 %v6263_v27, 16  ;;  %v11557_v39 = vcombine.low %v6525_v62, %v6535_v23  ;;  %v6576_v37 = vrot.slane %v6574_v56, 4  ;;  %v16819_v23 = vld [vmem:[#allocation2 + $0xb0] sm:$0x1] }
 0x3ae   : > { %v6567_v53 = vor.u32 %v6566_v45, %v6563_v61  ;;  %v6588_v16 = vshll.u32 %v6263_v27, 16  ;;  %v6549_v6 = vsel %vm14471_vm2, %v6544_v22, %v6548_v44  ;;  %v6594_v60 = vshll.u32 %v16802_v47, 16  ;;  %12959 = vmatpush3.bf16.msra.mxu1 %v14071_v58  ;;  %v6269_v61 = vld [vmem:[#allocation2 + $0xb4] sm:$0xf] }
 0x3af   : > { %v6559_v18 = vsel %vm14471_vm2, %v6554_v52, %v6558_v17  ;;  %v6587_v7 = vrot.slane %v6585_v41, 4  ;;  %v6577_v43 = vor.u32 %v6576_v37, %v6572_v59  ;;  %v6582_v19 = vrot.slane %v6580_v13, 5  ;;  %12992 = vmatprep.subr.bf16.mxu1 %v16805_v28  ;;  %v16827_v41 = vld [vmem:[#allocation2 + $0xb8] sm:$0xf] }
 0x3b0   : > { %v6568_v31 = vrot.slane %v6567_v53, 4  ;;  %v6590_v63 = vrot.slane %v6588_v16, 5  ;;  %v6596_v54 = vrot.slane %v6594_v60, 5  ;;  %v6598_v62 = vshrl.u32 %v16802_v47, 16 }
 0x3b1   : > { %v6604_v30 = vshll.u32 %v16807_v14, 16  ;;  %v6609_v21 = vshrl.u32 %v6266_v46, 16  ;;  %v11558_v44 = vcombine.low %v6549_v6, %v6559_v18  ;;  %v6578_v42 = vrot.slane %v6577_v43, 4  ;;  %12929 = vmatmul.mubr.bf16.gmra.mrb[16].mxu1 %v11556_v36  ;;  %v16830_v18 = vld [vmem:[#allocation2 + $0xbc] sm:$0x1] }
 0x3b2   : > { %v6591_v27 = vor.u32 %v6590_v63, %v6587_v7  ;;  %v6612_v20 = vshll.u32 %v6266_v46, 16  ;;  %v6573_v17 = vsel %vm14471_vm2, %v6568_v31, %v6572_v59  ;;  %v6600_v11 = vrot.slane %v6598_v62, 4  ;;  %12932 = vmatprep.mubr.bf16.mxu1 %v11557_v39 }
 0x3b3   : > { %v6611_v58 = vrot.slane %v6609_v21, 4  ;;  %v6618_v22 = vshll.u32 %v16814_v49, 16  ;;  %v6583_v45 = vsel %vm14471_vm2, %v6578_v42, %v6582_v19  ;;  %v6622_v13 = vshrl.u32 %v16814_v49, 16  ;;  %v6977_v21 = vld [vmem:[#allocation2] sm:$0xe] }
 0x3b4   : > { %v6592_v56 = vrot.slane %v6591_v27, 4  ;;  %v6614_v52 = vrot.slane %v6612_v20, 5  ;;  %v11559_v53 = vcombine.low %v6573_v17, %v6583_v45  ;;  %v6601_v36 = vor.u32 %v6600_v11, %v6596_v54 }
 0x3b5   : > { %v6606_v37 = vrot.slane %v6604_v30, 5  ;;  %v6620_v16 = vrot.slane %v6618_v22, 5  ;;  %v6624_v46 = vrot.slane %v6622_v13, 4  ;;  %v6628_v6 = vshll.u32 %v16819_v23, 16  ;;  %v14167_v13 = vld [vmem:[#allocation2 + $0x4] sm:$0xf] }
 0x3b6   : > { %v6615_v59 = vor.u32 %v6614_v52, %v6611_v58  ;;  %v6633_v39 = vshrl.u32 %v6269_v61, 16  ;;  %v6597_v7 = vsel %vm14471_vm2, %v6592_v56, %v6596_v54  ;;  %v6602_v60 = vrot.slane %v6601_v36, 4 }
 0x3b7   : > { %v6636_v31 = vshll.u32 %v6269_v61, 16  ;;  %v6642_v43 = vshll.u32 %v16827_v41, 16  ;;  %v6625_v63 = vor.u32 %v6624_v46, %v6620_v16  ;;  %v6646_v30 = vshrl.u32 %v16827_v41, 16  ;;  %v6978_v61 = vld [vmem:[#allocation2 + $0xc] sm:$0xe] }
 0x3b8   : > { %v6616_v19 = vrot.slane %v6615_v59, 4  ;;  %v6635_v62 = vrot.slane %v6633_v39, 4  ;;  %v6607_v42 = vsel %vm14471_vm2, %v6602_v60, %v6606_v37  ;;  %v6652_v17 = vshll.u32 %v16830_v18, 16  ;;  %v14168_v39 = vld [vmem:[#allocation2 + $0x8] sm:$0x1] }
 0x3b9   : > { %v6638_v27 = vrot.slane %v6636_v31, 5  ;;  %v6644_v20 = vrot.slane %v6642_v43, 5  ;;  %v11560_v11 = vcombine.low %v6597_v7, %v6607_v42  ;;  %v6626_v58 = vrot.slane %v6625_v63, 4  ;;  %12933 = vmatmul.mubr.bf16.gmra.mrb[20].mxu1 %v11558_v44  ;;  %v6979_v60 = vld [vmem:[#allocation2 + $0x18] sm:$0xe] }
 0x3ba   : > { %v6630_v54 = vrot.slane %v6628_v6, 5  ;;  %v6648_v22 = vrot.slane %v6646_v30, 4  ;;  %v6621_v45 = vsel %vm14471_vm2, %v6616_v19, %v6620_v16  ;;  %v11571_v52 = vrot.slane %v6977_v21, 9  ;;  %12936 = vmatprep.mubr.bf16.mxu1 %v11559_v53 }
 0x3bb   : > { %v6639_v56 = vor.u32 %v6638_v27, %v6635_v62  ;;  %v7043_v36 = vrot.slane %v14167_v13, 5  ;;  %v6654_v46 = vrot.slane %v6652_v17, 5  ;;  %v7046_v7 = vrot.slane %v14168_v39, 5  ;;  %v6980_v27 = vld [vmem:[#allocation2 + $0x24] sm:$0xe] }
 0x3bc   : > { %v6631_v37 = vsel %vm14471_vm2, %v6626_v58, %v6630_v54  ;;  %v6649_v59 = vor.u32 %v6648_v22, %v6644_v20  ;;  %v11572_v16 = vrot.slane %v6978_v61, 9  ;;  %v7050_v63 = vrot.slane %v16653_v32, 5  ;;  %v6981_v22 = vld [vmem:[#allocation2 + $0x30] sm:$0xe]  ;;  %v6982_v13 = vld [vmem:[#allocation2 + $0x3c] sm:$0xe] }
 0x3bd   : > { %v6640_v6 = vrot.slane %v6639_v56, 4  ;;  %v16845_v44 = vsel %vm14813_vm5, %v11571_v52, %v7043_v36  ;;  %v7045_v31 = vrot.slane %v7043_v36, 4  ;;  %v11561_v43 = vcombine.low %v6621_v45, %v6631_v37  ;;  %v6983_v39 = vld [vmem:[#allocation2 + $0x48] sm:$0xe] }
 0x3be   : > { %v6650_v19 = vrot.slane %v6649_v59, 4  ;;  %v7053_v53 = vrot.slane %v16655_v48, 5  ;;  %v11573_v21 = vrot.slane %v6979_v60, 9  ;;  %v7057_v42 = vrot.slane %v16664_v12, 5 }
 0x3bf   : > { %v6645_v62 = vsel %vm14471_vm2, %v6640_v6, %v6644_v20  ;;  %v7047_v30 = vsel %vm14813_vm5, %v7045_v31, %v7046_v7  ;;  %v7052_v54 = vrot.slane %v7050_v63, 4  ;;  %v7060_v32 = vrot.slane %v16666_v38, 5 }
 0x3c0   : > { %v6655_v17 = vsel %vm14471_vm2, %v6650_v19, %v6654_v46  ;;  %v11587_v58 = vcombine.low %v16845_v44, %v7047_v30  ;;  %v16860_v20 = vsel %vm14813_vm5, %v11572_v16, %v7050_v63  ;;  %v16864_v61 = vsel %vm14813_vm5, %v11573_v21, %v7057_v42  ;;  %v6984_v63 = vld [vmem:[#allocation2 + $0x54] sm:$0xe]  ;;  %v6985_v30 = vld [vmem:[#allocation2 + $0x60] sm:$0xe]  ;;  %v6986_v21 = vld [vmem:[#allocation2 + $0x6c] sm:$0xe] }
 0x3c1   : > { %v11562_v48 = vcombine.low %v6645_v62, %v6655_v17  ;;  %v7059_v12 = vrot.slane %v7057_v42, 4  ;;  %v16868_v45 = vsel %vm14813_vm5, %v7052_v54, %v7053_v53  ;;  %v11574_v56 = vrot.slane %v6980_v27, 9  ;;  %12937 = vmatmul.mubr.bf16.gmra.mrb[24].mxu1 %v11560_v11  ;;  %v6987_v17 = vld [vmem:[#allocation2 + $0x78] sm:$0xe] }
 0x3c2   : > { %v7064_v52 = vrot.slane %v16672_v1, 5  ;;  %v7067_v38 = vrot.slane %v16681_v57, 5  ;;  %v11588_v36 = vcombine.low %v16860_v20, %v16868_v45  ;;  %v11575_v59 = vrot.slane %v6981_v22, 9  ;;  %12940 = vmatprep.mubr.bf16.mxu1 %v11561_v43 }
 0x3c3   : > { %v16876_v37 = vsel %vm14813_vm5, %v7059_v12, %v7060_v32  ;;  %v7071_v46 = vrot.slane %v16696_v29, 5  ;;  %v7074_v11 = vrot.slane %v16700_v40, 5  ;;  %v11576_v44 = vrot.slane %v6982_v13, 9 }
 0x3c4   : > { %v11589_v7 = vcombine.low %v16864_v61, %v16876_v37  ;;  %v16883_v1 = vsel %vm14813_vm5, %v11574_v56, %v7064_v52  ;;  %v7066_v57 = vrot.slane %v7064_v52, 4  ;;  %v7078_v29 = vrot.slane %v16708_v5, 5 }
 0x3c5   : > { %v16888_v60 = vsel %vm14813_vm5, %v11575_v59, %v7071_v46  ;;  %v7073_v6 = vrot.slane %v7071_v46, 4  ;;  %v7081_v16 = vrot.slane %v16715_v51, 5  ;;  %v11577_v43 = vrot.slane %v6983_v39, 9 }
 0x3c6   : > { %v16893_v31 = vsel %vm14813_vm5, %v7066_v57, %v7067_v38  ;;  %v7085_v19 = vrot.slane %v16717_v8, 5  ;;  %v7080_v62 = vrot.slane %v7078_v29, 4  ;;  %v7088_v5 = vrot.slane %v16725_v34, 5 }
 0x3c7   : > { %v11590_v40 = vcombine.low %v16883_v1, %v16893_v31  ;;  %v16901_v53 = vsel %vm14813_vm5, %v7073_v6, %v7074_v11  ;;  %v16908_v51 = vsel %vm14813_vm5, %v11576_v44, %v7078_v29  ;;  %v11578_v34 = vrot.slane %v6984_v63, 9  ;;  %v14078_v1 = vld [vmem:[#allocation3 + $0xf0] sm:$0xff]   ;;  %v14082_v31 = vld [vmem:[#allocation3 + $0x100] sm:$0xff]  }
 0x3c8   : > { %v11591_v42 = vcombine.low %v16888_v60, %v16901_v53  ;;  %v16912_v8 = vsel %vm14813_vm5, %v11577_v43, %v7085_v19  ;;  %v7087_v27 = vrot.slane %v7085_v19, 4  ;;  %v16916_v54 = vsel %vm14813_vm5, %v7080_v62, %v7081_v16  ;;  %v6990_v19 = vld [vmem:[#allocation2 + $0x9c] sm:$0xe]  ;;  %v14079_v60 = vld [vmem:[#allocation3 + $0xf8] sm:$0xff]   ;;  %v7859_v53 = vld [vmem:[#allocation2 + $0xc] sm:$0xf] }
 0x3c9   : > { %v7092_v32 = vrot.slane %v16734_v25, 5  ;;  %v7095_v22 = vrot.slane %v16736_v35, 5  ;;  %v11592_v12 = vcombine.low %v16908_v51, %v16916_v54  ;;  %v11579_v52 = vrot.slane %v6985_v30, 9  ;;  %12941 = vmatmul.mubr.bf16.gmra.mrb[28].mxu1 %v11562_v48  ;;  %v6988_v48 = vld [vmem:[#allocation2 + $0x84] sm:$0xe] }
 0x3ca   : > { %v16924_v56 = vsel %vm14813_vm5, %v7087_v27, %v7088_v5  ;;  %v7099_v38 = vrot.slane %v16740_v24, 5  ;;  %v7102_v35 = vrot.slane %v16748_v3, 5  ;;  %12960 = vmatprep.mubr.bf16.mxu1 %v11587_v58  ;;  %v11580_v57 = vrot.slane %v6986_v21, 9  ;;  %v6989_v3 = vld [vmem:[#allocation2 + $0x90] sm:$0xe]  ;;  %v14073_v5 = vld [vmem:[#allocation3 + $0xc8] sm:$0xff]  }
 0x3cb   : > { %v11593_v13 = vcombine.low %v16912_v8, %v16924_v56  ;;  %v16931_v59 = vsel %vm14813_vm5, %v11578_v34, %v7092_v32  ;;  %v7094_v25 = vrot.slane %v7092_v32, 4  ;;  %v7106_v24 = vrot.slane %v16756_v55, 5  ;;  %v14085_v51 = vld [vmem:[#allocation3 + $0x108] sm:$0xff]   ;;  %v17035_v8 = vld [vmem:[#allocation2 + $0x10] sm:$0xf] }
 0x3cc   : > { %v16936_v46 = vsel %vm14813_vm5, %v11579_v52, %v7099_v38  ;;  %v7101_v39 = vrot.slane %v7099_v38, 4  ;;  %v7109_v6 = vrot.slane %v16761_v0, 5  ;;  %v11581_v44 = vrot.slane %v6987_v17, 9  ;;  %v6991_v17 = vld [vmem:[#allocation2 + $0xa8] sm:$0xe] }
 0x3cd   : > { %v16941_v11 = vsel %vm14813_vm5, %v7094_v25, %v7095_v22  ;;  %v7113_v29 = vrot.slane %v16769_v33, 5  ;;  %v7108_v43 = vrot.slane %v7106_v24, 4  ;;  %v7116_v55 = vrot.slane %v16772_v50, 5  ;;  %v14083_v54 = vld [vmem:[#allocation2 + $0x24] sm:$0xff]  }
 0x3ce   : > { %v11594_v58 = vcombine.low %v16931_v59, %v16941_v11  ;;  %v16949_v16 = vsel %vm14813_vm5, %v7101_v39, %v7102_v35  ;;  %v16956_v0 = vsel %vm14813_vm5, %v11580_v57, %v7106_v24  ;;  %v11582_v21 = vrot.slane %v6988_v48, 9  ;;  %v14088_v11 = vld [vmem:[#allocation3 + $0x110] sm:$0xff]  }
 0x3cf   : > { %v11595_v63 = vcombine.low %v16936_v46, %v16949_v16  ;;  %v16960_v33 = vsel %vm14813_vm5, %v11581_v44, %v7113_v29  ;;  %v7115_v62 = vrot.slane %v7113_v29, 4  ;;  %v16964_v30 = vsel %vm14813_vm5, %v7108_v43, %v7109_v6  ;;  %v14075_v29 = vld [vmem:[#allocation3 + $0xd8] sm:$0xff]   ;;  %v7862_v46 = vld [vmem:[#allocation2 + $0x18] sm:$0xf] }
 0x3d0   : > { %v7120_v50 = vrot.slane %v16781_v26, 5  ;;  %v7123_v27 = vrot.slane %v16785_v10, 5  ;;  %v11596_v34 = vcombine.low %v16956_v0, %v16964_v30  ;;  %v11583_v22 = vrot.slane %v6989_v3, 9  ;;  %v17041_v0 = vld [vmem:[#allocation2 + $0x1c] sm:$0xf] }
 0x3d1   : > { %v16972_v32 = vsel %vm14813_vm5, %v7115_v62, %v7116_v55  ;;  %v7127_v52 = vrot.slane %v16791_v9, 5  ;;  %v7130_v35 = vrot.slane %v16796_v2, 5  ;;  %12961 = vmatmul.mubr.bf16.vlgmr.msra.gmra.mrb[0].mxu1 %v11588_v36  ;;  %v11584_v39 = vrot.slane %v6990_v19, 9  ;;  %v14074_v9 = vld [vmem:[#allocation3 + $0xd0] sm:$0xff]  }
 0x3d2   : > { %v11597_v38 = vcombine.low %v16960_v33, %v16972_v32  ;;  %v7122_v25 = vrot.slane %v7120_v50, 4  ;;  %v7121_v26 = vsel %vm14813_vm5, %v11582_v21, %v7120_v50  ;;  %v7134_v57 = vrot.slane %v16802_v47, 5  ;;  %12964 = vmatprep.mubr.bf16.mxu1 %v11589_v7  ;;  %12993 = vmatpush3.bf16.msra.mxu1 %v16805_v28  ;;  %v6992_v7 = vld [vmem:[#allocation2 + $0xb4] sm:$0xe] }
 0x3d3   : > { %v7129_v10 = vrot.slane %v7127_v52, 4  ;;  %v7128_v20 = vsel %vm14813_vm5, %v11583_v22, %v7127_v52  ;;  %v7137_v45 = vrot.slane %v16807_v14, 5  ;;  %v7141_v36 = vrot.slane %v16814_v49, 5  ;;  %12994 = vmatprep.subr.bf16.mxu1 %v14073_v5  ;;  %v14084_v32 = vld [vmem:[#allocation2 + $0x30] sm:$0xff]   ;;  %v14086_v52 = vld [vmem:[#allocation2 + $0x3c] sm:$0xff]  }
 0x3d4   : > { %v7124_v2 = vsel %vm14813_vm5, %v7122_v25, %v7123_v27  ;;  %v7136_v61 = vrot.slane %v7134_v57, 4  ;;  %v11585_v37 = vrot.slane %v6991_v17, 9  ;;  %v7144_v6 = vrot.slane %v16819_v23, 5  ;;  %v14076_v27 = vld [vmem:[#allocation3 + $0xe0] sm:$0xff]   ;;  %v14091_v22 = vld [vmem:[#allocation3 + $0x118] sm:$0xff]  }
 0x3d5   : > { %v11598_v24 = vcombine.low %v7121_v26, %v7124_v2  ;;  %v7131_v47 = vsel %vm14813_vm5, %v7129_v10, %v7130_v35  ;;  %v7143_v48 = vrot.slane %v7141_v36, 4  ;;  %v7135_v44 = vsel %vm14813_vm5, %v11584_v39, %v7134_v57  ;;  %v17052_v57 = vld [vmem:[#allocation2 + $0x24] sm:$0xf]  ;;  %v17055_v2 = vld [vmem:[#allocation2 + $0x28] sm:$0xf] }
 0x3d6   : > { %v11599_v28 = vcombine.low %v7128_v20, %v7131_v47  ;;  %v7138_v14 = vsel %vm14813_vm5, %v7136_v61, %v7137_v45  ;;  %v7148_v49 = vrot.slane %v16827_v41, 5  ;;  %12995 = vmatpush3.bf16.msra.mxu1 %v14073_v5  ;;  %v7142_v43 = vsel %vm14813_vm5, %v11585_v37, %v7141_v36  ;;  %v17057_v20 = vld [vmem:[#allocation2 + $0x2c] sm:$0x1]  ;;  %v14094_v45 = vld [vmem:[#allocation3 + $0x120] sm:$0xff]   ;;  %v17059_v36 = vld [vmem:[#allocation2 + $0x30] sm:$0xf] }
 0x3d7   : > { %v11600_v3 = vcombine.low %v7135_v44, %v7138_v14  ;;  %v7145_v55 = vsel %vm14813_vm5, %v7143_v48, %v7144_v6  ;;  %v11586_v19 = vrot.slane %v6992_v7, 9  ;;  %12996 = vmatprep.subr.bf16.mxu1 %v14074_v9  ;;  %v7151_v21 = vrot.slane %v16830_v18, 5  ;;  %v14077_v18 = vld [vmem:[#allocation3 + $0xe8] sm:$0xff]   ;;  %v14087_v6 = vld [vmem:[#allocation2 + $0x48] sm:$0xff]  }
 0x3d8   : > { %v11601_v23 = vcombine.low %v7142_v43, %v7145_v55  ;;  %v7150_v62 = vrot.slane %v7148_v49, 4  ;;  %v7911_v56 = vshll.u32 %v7859_v53, 16  ;;  %v7921_v59 = vshrl.u32 %v17035_v8, 16  ;;  %v8614_v48 = vld [vmem:[#allocation2 + $0x24] sm:$0xe]  ;;  %v14089_v55 = vld [vmem:[#allocation2 + $0x54] sm:$0xff]  }
 0x3d9   : > { %12965 = vmatmul.mubr.bf16.gmra.mrb[4].mxu1 %v11590_v40  ;;  %v7149_v41 = vsel %vm14813_vm5, %v11586_v19, %v7148_v49  ;;  %v14080_v40 = vld [vmem:[#allocation2 + $0xc] sm:$0xff]   ;;  %v7932_v33 = vshrl.u32 %v7862_v46, 16  ;;  %v7935_v30 = vshll.u32 %v7862_v46, 16  ;;  %v7941_v35 = vshll.u32 %v17041_v0, 16  ;;  %v14097_v19 = vld [vmem:[#allocation3 + $0x128] sm:$0xff]  }
 0x3da   : > { %v7152_v5 = vsel %vm14813_vm5, %v7150_v62, %v7151_v21  ;;  %12968 = vmatprep.mubr.bf16.mxu1 %v11591_v42  ;;  %12997 = vmatpush3.bf16.msra.mxu1 %v14074_v9  ;;  %v14081_v42 = vld [vmem:[#allocation2 + $0x18] sm:$0xff]   ;;  %v7913_v16 = vrot.slane %v7911_v56, 5  ;;  %v7945_v39 = vshrl.u32 %v17041_v0, 16  ;;  %v8615_v43 = vld [vmem:[#allocation2 + $0x30] sm:$0xe] }
 0x3db   : > { %v11602_v50 = vcombine.low %v7149_v41, %v7152_v5  ;;  %12998 = vmatprep.subr.bf16.mxu1 %v14075_v29  ;;  %v17047_v26 = vrot.slane %v7932_v33, 4  ;;  %v17049_v10 = vrot.slane %v7935_v30, 5  ;;  %v17067_v37 = vrot.slane %v7941_v35, 5  ;;  %v17085_v5 = vld [vmem:[#allocation2 + $0x44] sm:$0x1] }
 0x3dc   : > { %v17074_v14 = vrot.slane %v7945_v39, 4  ;;  %v17096_v56 = vld [vmem:[#allocation2 + $0x58] sm:$0xf]  ;;  %v8709_v35 = vrot.slane %v17085_v5, 5  ;;  %v17164_v41 = vld [vmem:[#allocation2 + $0x8c] sm:$0x1] }
 0x3dd   : > { %v8623_v21 = vld [vmem:[#allocation2 + $0x90] sm:$0xe]  ;;  %v17196_v62 = vld [vmem:[#allocation2 + $0xa0] sm:$0xf] }
 0x3de   : > { %12999 = vmatpush3.bf16.msra.mxu1 %v14075_v29  ;;  %v17077_v29 = vld [vmem:[#allocation2 + $0x40] sm:$0xf] }
 0x3df   : > { %13000 = vmatprep.subr.bf16.mxu1 %v14076_v27 }
 0x3e1   : > { %12969 = vmatmul.mubr.bf16.gmra.mrb[8].mxu1 %v11592_v12  ;;  %v7908_v12 = vshrl.u32 %v7859_v53, 16  ;;  %v8620_v53 = vld [vmem:[#allocation2 + $0x6c] sm:$0xe] }
 0x3e2   : > { %12972 = vmatprep.mubr.bf16.mxu1 %v11593_v13  ;;  %13001 = vmatpush3.bf16.msra.mxu1 %v14076_v27  ;;  %v7917_v13 = vshll.u32 %v17035_v8, 16  ;;  %v17089_v27 = vld [vmem:[#allocation2 + $0x50] sm:$0x1] }
 0x3e3   : > { %13002 = vmatprep.subr.bf16.mxu1 %v14077_v18 }
 0x3e4   : > { %v17043_v17 = vrot.slane %v7917_v13, 5  ;;  %v17098_v13 = vld [vmem:[#allocation2 + $0x5c] sm:$0x1] }
 0x3e5   : > { %v8723_v33 = vrot.slane %v17098_v13, 5 }
 0x3e6   : > { %13003 = vmatpush3.bf16.msra.mxu1 %v14077_v18  ;;  %v11661_v18 = vrot.slane %v8614_v48, 9 }
 0x3e7   : > { %13004 = vmatprep.subr.bf16.mxu1 %v14078_v1 }
 0x3e9   : > { %12973 = vmatmul.mubr.bf16.gmra.mrb[12].mxu1 %v11594_v58  ;;  %v7910_v58 = vrot.slane %v7908_v12, 4  ;;  %v8617_v12 = vld [vmem:[#allocation2 + $0x48] sm:$0xe] }
 0x3ea   : > { %12976 = vmatprep.mubr.bf16.mxu1 %v11595_v63  ;;  %13005 = vmatpush3.bf16.msra.mxu1 %v14078_v1  ;;  %v17039_v63 = vld [vmem:[#allocation2 + $0x14] sm:$0x1]  ;;  %v11664_v39 = vrot.slane %v8617_v12, 9 }
 0x3eb   : > { %13006 = vmatprep.subr.bf16.mxu1 %v14079_v60  ;;  %v7927_v25 = vshll.u32 %v17039_v63, 16 }
 0x3ed   : > { %v17065_v61 = vrot.slane %v7927_v25, 5 }
 0x3ee   : > { %13007 = vmatpush3.bf16.msra.mxu1 %v14079_v60  ;;  %v8695_v60 = vrot.slane %v17057_v20, 5 }
 0x3ef   : > { %13040 = vmatprep.subr.bf16.mxu1 %v14082_v31 }
 0x3f1   : > { %12977 = vmatmul.mubr.bf16.gmra.mrb[16].mxu1 %v11596_v34  ;;  %v7923_v34 = vrot.slane %v7921_v59, 4 }
 0x3f2   : > { %12980 = vmatprep.mubr.bf16.mxu1 %v11597_v38  ;;  %v7914_v38 = vor.u32 %v7913_v16, %v7910_v58  ;;  %v17109_v16 = vld [vmem:[#allocation2 + $0x64] sm:$0xf] }
 0x3f3   : > { %v7924_v9 = vor.u32 %v7923_v34, %v17043_v17  ;;  %v8727_v44 = vrot.slane %v17109_v16, 5 }
 0x3f4   : > { %v17063_v47 = vrot.slane %v7914_v38, 4  ;;  %v17118_v38 = vld [vmem:[#allocation2 + $0x68] sm:$0x1] }
 0x3f5   : > { %v8729_v7 = vrot.slane %v8727_v44, 4 }
 0x3f9   : > { %12981 = vmatmul.mubr.bf16.gmra.mrb[20].mxu1 %v11598_v24  ;;  %v17061_v24 = vld [vmem:[#allocation2 + $0x34] sm:$0xf] }
 0x3fa   : > { %12984 = vmatprep.mubr.bf16.mxu1 %v11599_v28  ;;  %v17070_v28 = vld [vmem:[#allocation2 + $0x38] sm:$0x1] }
 0x3fb   : > { %v8702_v58 = vrot.slane %v17070_v28, 5 }
 0x401   : > { %12985 = vmatmul.mubr.bf16.gmra.mrb[24].mxu1 %v11600_v3  ;;  %v8692_v3 = vrot.slane %v17055_v2, 5 }
 0x402   : > { %12988 = vmatprep.mubr.bf16.mxu1 %v11601_v23  ;;  %v17080_v23 = vrot.slane %v7924_v9, 4 }
 0x403   : > { %v8694_v1 = vrot.slane %v8692_v3, 4  ;;  %v17102_v59 = vsel %vm14813_vm5, %v11661_v18, %v8692_v3  ;;  %v8716_v3 = vrot.slane %v17089_v27, 5  ;;  %v14090_v18 = vld [vmem:[#allocation2 + $0x60] sm:$0xff]  }
 0x404   : > { %18456 = vst [vmem:[#allocation14_spill] sm:$0xff] %v17102_v59  ;;  %v7871_v59 = vld [vmem:[#allocation2 + $0x3c] sm:$0xf] }
 0x405   : > { %v17106_v46 = vsel %vm14813_vm5, %v8694_v1, %v8695_v60  ;;  %v17132_v1 = vld [vmem:[#allocation2 + $0x74] sm:$0x1]  ;;  %v17134_v60 = vld [vmem:[#allocation2 + $0x7c] sm:$0xf] }
 0x406   : > { %18457 = vst [vmem:[#allocation16_spill] sm:$0xff] %v17106_v46 }
 0x409   : > { %12989 = vmatmul.mubr.bf16.gmra.mrb[28].mxu1 %v11602_v50  ;;  %v17087_v50 = vld [vmem:[#allocation2 + $0x4c] sm:$0xf] }
 0x40a   : > { %13008 = vmatprep.mubr.bf16.mxu1 %v14080_v40  ;;  %v8616_v40 = vld [vmem:[#allocation2 + $0x3c] sm:$0xe]  ;;  %v8713_v9 = vrot.slane %v17087_v50, 5 }
 0x40b   : > { %v11663_v34 = vrot.slane %v8616_v40, 9 }
 0x40c   : > { %v17142_v40 = vsel %vm14813_vm5, %v11664_v39, %v8713_v9 }
 0x40d   : > { %18461 = vst [vmem:[#allocation23_spill] sm:$0xff] %v17142_v40 }
 0x411   : > { %13009 = vmatmul.mubr.bf16.vlgmr.msra.gmra.mrb[0].mxu1 %v14081_v42 }
 0x412   : > { %13012 = vmatprep.mubr.bf16.mxu1 %v14083_v54  ;;  %13041 = vmatpush3.bf16.msra.mxu1 %v14082_v31  ;;  %v8699_v31 = vrot.slane %v17061_v24, 5  ;;  %v11662_v54 = vrot.slane %v8615_v43, 9  ;;  %v8720_v43 = vrot.slane %v17096_v56, 5 }
 0x413   : > { %13042 = vmatprep.subr.bf16.mxu1 %v14085_v51 }
 0x414   : > { %v17115_v30 = vsel %vm14813_vm5, %v11662_v54, %v8699_v31  ;;  %v8715_v54 = vrot.slane %v8713_v9, 4  ;;  %v8722_v48 = vrot.slane %v8720_v43, 4  ;;  %v8621_v9 = vld [vmem:[#allocation2 + $0x78] sm:$0xe] }
 0x415   : > { %18458 = vst [vmem:[#allocation24_spill] sm:$0xff] %v17115_v30  ;;  %v11668_v42 = vrot.slane %v8621_v9, 9 }
 0x416   : > { %13043 = vmatpush3.bf16.msra.mxu1 %v14085_v51  ;;  %v17170_v39 = vsel %vm14813_vm5, %v8722_v48, %v8723_v33  ;;  %v8622_v51 = vld [vmem:[#allocation2 + $0x84] sm:$0xe]  ;;  %v17182_v33 = vld [vmem:[#allocation2 + $0x98] sm:$0x1] }
 0x417   : > { %13044 = vmatprep.subr.bf16.mxu1 %v14088_v11  ;;  %18465 = vst [vmem:[#allocation10_spill] sm:$0xff] %v17170_v39 }
 0x419   : > { %13013 = vmatmul.mubr.bf16.gmra.mrb[4].mxu1 %v14084_v32  ;;  %v8706_v32 = vrot.slane %v17077_v29, 5 }
 0x41a   : > { %13016 = vmatprep.mubr.bf16.mxu1 %v14086_v52  ;;  %13045 = vmatpush3.bf16.msra.mxu1 %v14088_v11  ;;  %v8701_v11 = vrot.slane %v8699_v31, 4  ;;  %v14100_v52 = vld [vmem:[#allocation3 + $0x130] sm:$0xff]  }
 0x41b   : > { %13046 = vmatprep.subr.bf16.mxu1 %v14091_v22  ;;  %v17138_v31 = vsel %vm14813_vm5, %v11663_v34, %v8706_v32  ;;  %v14103_v34 = vld [vmem:[#allocation3 + $0x138] sm:$0xff]  }
 0x41c   : > { %v17122_v25 = vsel %vm14813_vm5, %v8701_v11, %v8702_v58  ;;  %18460 = vst [vmem:[#allocation25_spill] sm:$0xff] %v17138_v31  ;;  %v14092_v11 = vld [vmem:[#allocation2 + $0x6c] sm:$0xff]   ;;  %v14095_v31 = vld [vmem:[#allocation2 + $0x84] sm:$0xff]  }
 0x41d   : > { %18459 = vst [vmem:[#allocation27_spill] sm:$0xff] %v17122_v25  ;;  %v8626_v25 = vld [vmem:[#allocation2 + $0xb4] sm:$0xe] }
 0x41e   : > { %13047 = vmatpush3.bf16.msra.mxu1 %v14091_v22  ;;  %v8618_v22 = vld [vmem:[#allocation2 + $0x54] sm:$0xe] }
 0x41f   : > { %13048 = vmatprep.subr.bf16.mxu1 %v14094_v45  ;;  %v11665_v12 = vrot.slane %v8618_v22, 9 }
 0x421   : > { %13017 = vmatmul.mubr.bf16.gmra.mrb[8].mxu1 %v14087_v6  ;;  %v8708_v6 = vrot.slane %v8706_v32, 4  ;;  %v17150_v32 = vld [vmem:[#allocation2 + $0x80] sm:$0x1]  ;;  %v17160_v22 = vsel %vm14813_vm5, %v11665_v12, %v8720_v43  ;;  %v11667_v12 = vrot.slane %v8620_v53, 9  ;;  %v8741_v43 = vrot.slane %v17134_v60, 5 }
 0x422   : > { %13020 = vmatprep.mubr.bf16.mxu1 %v14089_v55  ;;  %13049 = vmatpush3.bf16.msra.mxu1 %v14094_v45  ;;  %v17126_v45 = vld [vmem:[#allocation2 + $0x70] sm:$0xf]  ;;  %v8619_v55 = vld [vmem:[#allocation2 + $0x60] sm:$0xe]  ;;  %18464 = vst [vmem:[#allocation9_spill] sm:$0xff] %v17160_v22  ;;  %v11669_v53 = vrot.slane %v8622_v51, 9 }
 0x423   : > { %13050 = vmatprep.subr.bf16.mxu1 %v14097_v19  ;;  %v17146_v58 = vsel %vm14813_vm5, %v8708_v6, %v8709_v35  ;;  %v11666_v35 = vrot.slane %v8619_v55, 9  ;;  %v17162_v6 = vld [vmem:[#allocation2 + $0x88] sm:$0xf]  ;;  %v8734_v49 = vrot.slane %v17126_v45, 5  ;;  %v8743_v39 = vrot.slane %v8741_v43, 4 }
 0x424   : > { %18462 = vst [vmem:[#allocation26_spill] sm:$0xff] %v17146_v58  ;;  %v8624_v58 = vld [vmem:[#allocation2 + $0x9c] sm:$0xe] }
 0x425   : > { %v17179_v55 = vsel %vm14813_vm5, %v11666_v35, %v8727_v44  ;;  %v17190_v44 = vld [vmem:[#allocation3 + $0x140] sm:$0xff]   ;;  %v8736_v35 = vrot.slane %v8734_v49, 4  ;;  %v17202_v9 = vsel %vm14813_vm5, %v11667_v12, %v8734_v49  ;;  %v17214_v49 = vld [vmem:[#allocation2 + $0xac] sm:$0xf]  ;;  %v11670_v12 = vrot.slane %v8623_v21, 9 }
 0x426   : > { %13051 = vmatpush3.bf16.msra.mxu1 %v14097_v19  ;;  %v17156_v19 = vsel %vm14813_vm5, %v8715_v54, %v8716_v3  ;;  %v8730_v3 = vrot.slane %v17118_v38, 5  ;;  %v17173_v54 = vld [vmem:[#allocation2 + $0x94] sm:$0xf]  ;;  %18466 = vst [vmem:[#allocation11_spill] sm:$0xff] %v17179_v55  ;;  %18468 = vst [vmem:[#allocation12_spill] sm:$0xff] %v17202_v9  ;;  %v8762_v9 = vrot.slane %v17196_v62, 5 }
 0x427   : > { %13052 = vmatprep.subr.bf16.mxu1 %v14100_v52  ;;  %18463 = vst [vmem:[#allocation15_spill] sm:$0xff] %v17156_v19  ;;  %v8751_v19 = vrot.slane %v17164_v41, 5  ;;  %v8755_v40 = vrot.slane %v17173_v54, 5  ;;  %v8769_v21 = vrot.slane %v17214_v49, 5 }
 0x428   : > { %v17186_v48 = vsel %vm14813_vm5, %v8729_v7, %v8730_v3  ;;  %v17198_v7 = vld [vmem:[#allocation2 + $0xa4] sm:$0x1]  ;;  %v17206_v3 = vsel %vm14813_vm5, %v11668_v42, %v8741_v43 }
 0x429   : > { %13021 = vmatmul.mubr.bf16.gmra.mrb[12].mxu1 %v14090_v18  ;;  %18467 = vst [vmem:[#allocation13_spill] sm:$0xff] %v17186_v48  ;;  %v8737_v18 = vrot.slane %v17132_v1, 5  ;;  %18469 = vst [vmem:[#allocation18_spill] sm:$0xff] %v17206_v3  ;;  %v14093_v48 = vld [vmem:[#allocation2 + $0x78] sm:$0xff]  }
 0x42a   : > { %13024 = vmatprep.mubr.bf16.mxu1 %v14092_v11  ;;  %13053 = vmatpush3.bf16.msra.mxu1 %v14100_v52  ;;  %v8744_v52 = vrot.slane %v17150_v32, 5  ;;  %v8748_v11 = vrot.slane %v17162_v6, 5 }
 0x42b   : > { %13054 = vmatprep.subr.bf16.mxu1 %v14103_v34  ;;  %v17210_v55 = vsel %vm14813_vm5, %v8736_v35, %v8737_v18  ;;  %v8625_v18 = vld [vmem:[#allocation2 + $0xa8] sm:$0xe]  ;;  %v17227_v35 = vld [vmem:[#allocation2 + $0xb0] sm:$0x1] }
 0x42c   : > { %18470 = vst [vmem:[#allocation17_spill] sm:$0xff] %v17210_v55  ;;  %v8750_v22 = vrot.slane %v8748_v11, 4  ;;  %v17220_v51 = vsel %vm14813_vm5, %v8743_v39, %v8744_v52  ;;  %v17224_v43 = vsel %vm14813_vm5, %v11669_v53, %v8748_v11  ;;  %v8757_v39 = vrot.slane %v8755_v40, 4  ;;  %v17238_v53 = vld [vmem:[#allocation2 + $0xbc] sm:$0x1] }
 0x42d   : > { %18471 = vst [vmem:[#allocation19_spill] sm:$0xff] %v17220_v51  ;;  %18472 = vst [vmem:[#allocation20_spill] sm:$0xff] %v17224_v43  ;;  %v8758_v52 = vrot.slane %v17182_v33, 5  ;;  %v17244_v11 = vsel %vm14813_vm5, %v11670_v12, %v8755_v40  ;;  %v11671_v55 = vrot.slane %v8624_v58, 9  ;;  %v17247_v51 = vld [vmem:[#allocation2 + $0xc4] sm:$0xf] }
 0x42e   : > { %13055 = vmatpush3.bf16.msra.mxu1 %v14103_v34  ;;  %v17229_v34 = vld [vmem:[#allocation2 + $0xb8] sm:$0xf]  ;;  %v17235_v42 = vsel %vm14813_vm5, %v8750_v22, %v8751_v19  ;;  %18474 = vst [vmem:[#allocation28_spill] sm:$0xff] %v17244_v11  ;;  %v8765_v22 = vrot.slane %v17198_v7, 5  ;;  %v11672_v3 = vrot.slane %v8625_v18, 9  ;;  %v8764_v58 = vrot.slane %v8762_v9, 4 }
 0x42f   : > { %13088 = vmatprep.subr.bf16.mxu1 %v17190_v44  ;;  %18473 = vst [vmem:[#allocation21_spill] sm:$0xff] %v17235_v42  ;;  %v17251_v19 = vsel %vm14813_vm5, %v8757_v39, %v8758_v52  ;;  %v8772_v12 = vrot.slane %v17227_v35, 5  ;;  %v8627_v42 = vld [vmem:[#allocation2 + $0xc0] sm:$0xe]  ;;  %v17259_v43 = vld [vmem:[#allocation2 + $0xc8] sm:$0x1]  ;;  %v17263_v39 = vsel %vm14813_vm5, %v11671_v55, %v8762_v9 }
 0x430   : > { %18475 = vst [vmem:[#allocation29_spill] sm:$0xff] %v17251_v19  ;;  %18476 = vst [vmem:[#allocation30_spill] sm:$0xff] %v17263_v39  ;;  %v17267_v18 = vsel %vm14813_vm5, %v11672_v3, %v8769_v21  ;;  %v11673_v52 = vrot.slane %v8626_v25, 9  ;;  %v17271_v40 = vsel %vm14813_vm5, %v8764_v58, %v8765_v22  ;;  %v8779_v11 = vrot.slane %v17238_v53, 5  ;;  %v17285_v3 = vld [vmem:[#allocation2 + $0x20] sm:$0x1] }
 0x431   : > { %13025 = vmatmul.mubr.bf16.gmra.mrb[16].mxu1 %v14093_v48  ;;  %v8776_v48 = vrot.slane %v17229_v34, 5  ;;  %18477 = vst [vmem:[#allocation31_spill] sm:$0xff] %v17267_v18  ;;  %18478 = vst [vmem:[#allocation32_spill] sm:$0xff] %v17271_v40  ;;  %v8783_v30 = vrot.slane %v17247_v51, 5  ;;  %v11674_v25 = vrot.slane %v8627_v42, 9  ;;  %v8786_v46 = vrot.slane %v17259_v43, 5 }
 0x432   : > { %13028 = vmatprep.mubr.bf16.mxu1 %v14095_v31  ;;  %v8771_v31 = vrot.slane %v8769_v21, 4  ;;  %18481 = vst [vmem:[#allocation35_spill] sm:$0xff] %v17285_v3  ;;  %v14096_v40 = vld [vmem:[#allocation2 + $0x90] sm:$0xff]   ;;  %v18484_v42 = vshrl.u32 %v17055_v2, 16  ;;  %v18486_v18 = vshrl.u32 %v17061_v24, 16 }
 0x433   : > { %v8778_v19 = vrot.slane %v8776_v48, 4  ;;  %v17283_v9 = vsel %vm14813_vm5, %v11673_v52, %v8776_v48  ;;  %v8785_v58 = vrot.slane %v8783_v30, 4  ;;  %v18483_v48 = vshll.u32 %v17055_v2, 16 }
 0x434   : > { %v17279_v55 = vsel %vm14813_vm5, %v8771_v31, %v8772_v12  ;;  %18480 = vst [vmem:[#allocation34_spill] sm:$0xff] %v17283_v9  ;;  %v7948_v12 = vor.u32 %v17074_v14, %v17067_v37  ;;  %v7971_v52 = vrot.slane %v18484_v42, 4  ;;  %v7995_v39 = vrot.slane %v18486_v18, 4 }
 0x435   : > { %18479 = vst [vmem:[#allocation33_spill] sm:$0xff] %v17279_v55  ;;  %v17291_v22 = vsel %vm14813_vm5, %v8778_v19, %v8779_v11  ;;  %v17298_v31 = vrot.slane %v18483_v48, 5  ;;  %v14098_v55 = vld [vmem:[#allocation2 + $0x9c] sm:$0xff]   ;;  %v18485_v11 = vshll.u32 %v17061_v24, 16  ;;  %v17312_v14 = vsel %vm14813_vm5, %v11674_v25, %v8783_v30 }
 0x436   : > { %18482 = vst [vmem:[#allocation36_spill] sm:$0xff] %v17291_v22  ;;  %18487 = vst [vmem:[#allocation37_spill] sm:$0xff] %v17312_v14  ;;  %v17316_v2 = vsel %vm14813_vm5, %v8785_v58, %v8786_v46  ;;  %v7951_v48 = vshll.u32 %v17285_v3, 16  ;;  %v18489_v42 = vshrl.u32 %v17052_v57, 16  ;;  %v7920_v30 = vsel %vm14471_vm2, %v17063_v47, %v17043_v17  ;;  %v7874_v17 = vld [vmem:[#allocation2 + $0x48] sm:$0xf] }
 0x437   : > { %v17306_v19 = vrot.slane %v18485_v11, 5  ;;  %18488 = vst [vmem:[#allocation38_spill] sm:$0xff] %v17316_v2  ;;  %v18490_v11 = vshll.u32 %v17052_v57, 16  ;;  %v7930_v46 = vsel %vm14471_vm2, %v17080_v23, %v17065_v61  ;;  %v18492_v57 = vshll.u32 %v17059_v36, 16 }
 0x438   : > { %v7958_v21 = vrot.slane %v18489_v42, 4  ;;  %v18493_v58 = vor.u32 %v17049_v10, %v17047_v26  ;;  %v7972_v42 = vor.u32 %v7971_v52, %v17298_v31  ;;  %v8007_v24 = vshll.u32 %v7871_v59, 16 }
 0x439   : > { %13029 = vmatmul.mubr.bf16.gmra.mrb[20].mxu1 %v14096_v40  ;;  %v7961_v22 = vrot.slane %v18490_v11, 5  ;;  %v18491_v40 = vshrl.u32 %v17059_v36, 16  ;;  %v7985_v25 = vrot.slane %v18492_v57, 5  ;;  %v8004_v11 = vshrl.u32 %v7871_v59, 16 }
 0x43a   : > { %13032 = vmatprep.mubr.bf16.mxu1 %v14098_v55  ;;  %v7939_v55 = vrot.slane %v18493_v58, 4  ;;  %v7949_v47 = vrot.slane %v7948_v12, 4  ;;  %v7996_v2 = vor.u32 %v7995_v39, %v17306_v19  ;;  %v8013_v61 = vshll.u32 %v17077_v29, 16  ;;  %v14099_v58 = vld [vmem:[#allocation2 + $0xa8] sm:$0xff]  }
 0x43b   : > { %v7982_v18 = vrot.slane %v18491_v40, 4  ;;  %v8017_v23 = vshrl.u32 %v17077_v29, 16  ;;  %v11635_v40 = vcombine.low %v7920_v30, %v7930_v46  ;;  %v7953_v14 = vrot.slane %v7951_v48, 5 }
 0x43c   : > { %v7962_v36 = vor.u32 %v7961_v22, %v7958_v21  ;;  %v7975_v57 = vshll.u32 %v17057_v20, 16  ;;  %v7999_v26 = vshll.u32 %v17070_v28, 16  ;;  %v8028_v10 = vshrl.u32 %v7874_v17, 16 }
 0x43d   : > { %v7986_v9 = vor.u32 %v7985_v25, %v7982_v18  ;;  %v8031_v52 = vshll.u32 %v7874_v17, 16  ;;  %v7944_v59 = vsel %vm14471_vm2, %v7939_v55, %v17067_v37  ;;  %v7973_v39 = vrot.slane %v7972_v42, 4  ;;  %v7877_v18 = vld [vmem:[#allocation2 + $0x54] sm:$0xf] }
 0x43e   : > { %v8006_v12 = vrot.slane %v8004_v11, 4  ;;  %v8009_v3 = vrot.slane %v8007_v24, 5  ;;  %v7954_v29 = vsel %vm14471_vm2, %v7949_v47, %v7953_v14  ;;  %v7997_v21 = vrot.slane %v7996_v2, 4 }
 0x43f   : > { %v17351_v22 = vrot.slane %v8013_v61, 5  ;;  %v8019_v20 = vrot.slane %v8017_v23, 4  ;;  %v7963_v28 = vrot.slane %v7962_v36, 4  ;;  %v7977_v48 = vrot.slane %v7975_v57, 5  ;;  %v7880_v57 = vld [vmem:[#allocation2 + $0x60] sm:$0xf] }
 0x440   : > { %v8037_v30 = vshll.u32 %v17087_v50, 16  ;;  %v8041_v46 = vshrl.u32 %v17087_v50, 16  ;;  %v7987_v37 = vrot.slane %v7986_v9, 4  ;;  %v8001_v25 = vrot.slane %v7999_v26, 5 }
 0x441   : > { %13033 = vmatmul.mubr.bf16.gmra.mrb[24].mxu1 %v14099_v58  ;;  %v8030_v24 = vrot.slane %v8028_v10, 4  ;;  %v8033_v55 = vrot.slane %v8031_v52, 5  ;;  %v17355_v42 = vcombine.low %v7944_v59, %v7954_v29  ;;  %v7978_v14 = vsel %vm14471_vm2, %v7973_v39, %v7977_v48  ;;  %v14102_v52 = vld [vmem:[#allocation2 + $0xc0] sm:$0xff]  }
 0x442   : > { %13036 = vmatprep.mubr.bf16.mxu1 %v14101_v15  ;;  %v8010_v2 = vor.u32 %v8009_v3, %v8006_v12  ;;  %v8023_v11 = vshll.u32 %v17085_v5, 16  ;;  %v8002_v17 = vsel %vm14471_vm2, %v7997_v21, %v8001_v25  ;;  %v8020_v47 = vor.u32 %v8019_v20, %v17351_v22 }
 0x443   : > { %v8052_v50 = vshrl.u32 %v7877_v18, 16  ;;  %v8055_v61 = vshll.u32 %v7877_v18, 16  ;;  %v17363_v15 = vrot.slane %v8037_v30, 5  ;;  %v8043_v9 = vrot.slane %v8041_v46, 4 }
 0x444   : > { %v8061_v23 = vshll.u32 %v17096_v56, 16  ;;  %v8065_v36 = vshrl.u32 %v17096_v56, 16  ;;  %v7968_v3 = vsel %vm14471_vm2, %v7963_v28, %v17298_v31  ;;  %v7992_v5 = vsel %vm14471_vm2, %v7987_v37, %v17306_v19  ;;  %v7883_v37 = vld [vmem:[#allocation2 + $0x6c] sm:$0xf] }
 0x445   : > { %v8034_v26 = vor.u32 %v8033_v55, %v8030_v24  ;;  %v8047_v10 = vshll.u32 %v17089_v27, 16  ;;  %v11637_v58 = vcombine.low %v7968_v3, %v7978_v14  ;;  %v17374_v59 = vcombine.low %v7992_v5, %v8002_v17  ;;  %v7886_v55 = vld [vmem:[#allocation2 + $0x78] sm:$0xf]  ;;  %v14105_v3 = vld [vmem:[#allocation3 + $0x148] sm:$0xff]  }
 0x446   : > { %v8011_v39 = vrot.slane %v8010_v2, 4  ;;  %v8025_v12 = vrot.slane %v8023_v11, 5  ;;  %v8054_v29 = vrot.slane %v8052_v50, 4  ;;  %v8057_v56 = vrot.slane %v8055_v61, 5 }
 0x447   : > { %v8076_v21 = vshrl.u32 %v7880_v57, 16  ;;  %v8079_v20 = vshll.u32 %v7880_v57, 16  ;;  %v8021_v48 = vrot.slane %v8020_v47, 4  ;;  %v8044_v31 = vor.u32 %v8043_v9, %v17363_v15 }
 0x448   : > { %v17377_v28 = vrot.slane %v8061_v23, 5  ;;  %v8067_v19 = vrot.slane %v8065_v36, 4  ;;  %v8035_v30 = vrot.slane %v8034_v26, 4  ;;  %v8049_v27 = vrot.slane %v8047_v10, 5 }
 0x449   : > { %13037 = vmatmul.mubr.bf16.gmra.mrb[28].mxu1 %v14102_v52  ;;  %v8085_v46 = vshll.u32 %v17109_v16, 16  ;;  %v8089_v18 = vshrl.u32 %v17109_v16, 16  ;;  %v8109_v25 = vshll.u32 %v17126_v45, 16  ;;  %v8113_v24 = vshrl.u32 %v17126_v45, 16 }
 0x44a   : > { %13056 = vmatprep.mubr.bf16.mxu1 %v11635_v40  ;;  %v8133_v14 = vshll.u32 %v17134_v60, 16  ;;  %v8137_v2 = vshrl.u32 %v17134_v60, 16  ;;  %v8058_v11 = vor.u32 %v8057_v56, %v8054_v29  ;;  %v8071_v17 = vshll.u32 %v17098_v13, 16 }
 0x44b   : > { %v8078_v40 = vrot.slane %v8076_v21, 4  ;;  %v8081_v47 = vrot.slane %v8079_v20, 5  ;;  %v8045_v50 = vrot.slane %v8044_v31, 4  ;;  %v8068_v61 = vor.u32 %v8067_v19, %v17377_v28 }
 0x44c   : > { %v8100_v9 = vshrl.u32 %v7883_v37, 16  ;;  %v8103_v16 = vshll.u32 %v7883_v37, 16  ;;  %v17387_v23 = vrot.slane %v8085_v46, 5  ;;  %v8091_v36 = vrot.slane %v8089_v18, 4  ;;  %v14106_v46 = vld [vmem:[#allocation3 + $0x150] sm:$0xff]  }
 0x44d   : > { %v8124_v57 = vshrl.u32 %v7886_v55, 16  ;;  %v8127_v45 = vshll.u32 %v7886_v55, 16  ;;  %v17389_v5 = vrot.slane %v8109_v25, 5  ;;  %v8115_v26 = vrot.slane %v8113_v24, 4 }
 0x44e   : > { %v17391_v60 = vrot.slane %v8133_v14, 5  ;;  %v8139_v10 = vrot.slane %v8137_v2, 4  ;;  %v8016_v13 = vsel %vm14471_vm2, %v8011_v39, %v17351_v22  ;;  %v8026_v52 = vsel %vm14471_vm2, %v8021_v48, %v8025_v12  ;;  %v7892_v2 = vld [vmem:[#allocation2 + $0x90] sm:$0xf] }
 0x44f   : > { %v8059_v29 = vrot.slane %v8058_v11, 4  ;;  %v8082_v56 = vor.u32 %v8081_v47, %v8078_v40  ;;  %v8050_v21 = vsel %vm14471_vm2, %v8045_v50, %v8049_v27  ;;  %v8069_v20 = vrot.slane %v8068_v61, 4  ;;  %v14107_v61 = vld [vmem:[#allocation3 + $0x158] sm:$0xff]  }
 0x450   : > { %v8102_v31 = vrot.slane %v8100_v9, 4  ;;  %v8105_v19 = vrot.slane %v8103_v16, 5  ;;  %v8040_v22 = vsel %vm14471_vm2, %v8035_v30, %v17363_v15  ;;  %v8092_v39 = vor.u32 %v8091_v36, %v17387_v23 }
 0x451   : > { %13057 = vmatmul.mubr.bf16.vlgmr.msra.gmra.mrb[0].mxu1 %v17355_v42  ;;  %v8126_v12 = vrot.slane %v8124_v57, 4  ;;  %v8129_v48 = vrot.slane %v8127_v45, 5  ;;  %v8073_v42 = vrot.slane %v8071_v17, 5  ;;  %v8095_v18 = vshll.u32 %v17118_v38, 16 }
 0x452   : > { %13060 = vmatprep.mubr.bf16.mxu1 %v11637_v58  ;;  %13089 = vmatpush3.bf16.msra.mxu1 %v17190_v44  ;;  %v8116_v27 = vor.u32 %v8115_v26, %v17389_v5  ;;  %v8140_v37 = vor.u32 %v8139_v10, %v17391_v60  ;;  %v7889_v58 = vld [vmem:[#allocation2 + $0x84] sm:$0xf]  ;;  %v11639_v25 = vcombine.low %v8016_v13, %v8026_v52  ;;  %v8083_v30 = vrot.slane %v8082_v56, 4 }
 0x453   : > { %13090 = vmatprep.subr.bf16.mxu1 %v14105_v3  ;;  %v17409_v44 = vcombine.low %v8040_v22, %v8050_v21  ;;  %v8064_v15 = vsel %vm14471_vm2, %v8059_v29, %v17377_v28  ;;  %v8074_v24 = vsel %vm14471_vm2, %v8069_v20, %v8073_v42  ;;  %v8106_v55 = vor.u32 %v8105_v19, %v8102_v31  ;;  %v14108_v21 = vld [vmem:[#allocation3 + $0x160] sm:$0xff]  }
 0x454   : > { %v8119_v14 = vshll.u32 %v17132_v1, 16  ;;  %v8143_v38 = vshll.u32 %v17150_v32, 16  ;;  %v8093_v11 = vrot.slane %v8092_v39, 4  ;;  %v8130_v17 = vor.u32 %v8129_v48, %v8126_v12 }
 0x455   : > { %v8148_v40 = vshrl.u32 %v7889_v58, 16  ;;  %v8151_v47 = vshll.u32 %v7889_v58, 16  ;;  %v8097_v50 = vrot.slane %v8095_v18, 5  ;;  %v8117_v9 = vrot.slane %v8116_v27, 4 }
 0x456   : > { %13091 = vmatpush3.bf16.msra.mxu1 %v14105_v3  ;;  %v8141_v28 = vrot.slane %v8140_v37, 4  ;;  %v8157_v16 = vshll.u32 %v17162_v6, 16  ;;  %v11641_v36 = vcombine.low %v8064_v15, %v8074_v24  ;;  %v8161_v57 = vshrl.u32 %v17162_v6, 16 }
 0x457   : > { %13092 = vmatprep.subr.bf16.mxu1 %v14106_v46  ;;  %v8172_v45 = vshrl.u32 %v7892_v2, 16  ;;  %v8175_v1 = vshll.u32 %v7892_v2, 16  ;;  %v8088_v32 = vsel %vm14471_vm2, %v8083_v30, %v17387_v23  ;;  %v8107_v3 = vrot.slane %v8106_v55, 4 }
 0x458   : > { %v8121_v26 = vrot.slane %v8119_v14, 5  ;;  %v8145_v10 = vrot.slane %v8143_v38, 5  ;;  %v8098_v13 = vsel %vm14471_vm2, %v8093_v11, %v8097_v50  ;;  %v8131_v52 = vrot.slane %v8130_v17, 4 }
 0x459   : > { %13061 = vmatmul.mubr.bf16.gmra.mrb[4].mxu1 %v17374_v59  ;;  %v8150_v29 = vrot.slane %v8148_v40, 4  ;;  %v8153_v56 = vrot.slane %v8151_v47, 5  ;;  %v17430_v23 = vrot.slane %v8157_v16, 5  ;;  %v8167_v20 = vshll.u32 %v17164_v41, 16  ;;  %v7901_v40 = vld [vmem:[#allocation2 + $0xb4] sm:$0xf] }
 0x45a   : > { %13064 = vmatprep.mubr.bf16.mxu1 %v11639_v25  ;;  %13093 = vmatpush3.bf16.msra.mxu1 %v14106_v46  ;;  %v8122_v6 = vsel %vm14471_vm2, %v8117_v9, %v8121_v26  ;;  %v8146_v59 = vsel %vm14471_vm2, %v8141_v28, %v8145_v10  ;;  %v8163_v31 = vrot.slane %v8161_v57, 4  ;;  %v8174_v19 = vrot.slane %v8172_v45, 4  ;;  %v7895_v46 = vld [vmem:[#allocation2 + $0x9c] sm:$0xf]  ;;  %v14110_v57 = vld [vmem:[#allocation3 + $0x170] sm:$0xff]  }
 0x45b   : > { %13094 = vmatprep.subr.bf16.mxu1 %v14107_v61  ;;  %v8177_v22 = vrot.slane %v8175_v1, 5  ;;  %v8181_v39 = vshll.u32 %v17173_v54, 16  ;;  %v8112_v12 = vsel %vm14471_vm2, %v8107_v3, %v17389_v5  ;;  %v8185_v48 = vshrl.u32 %v17173_v54, 16  ;;  %v14109_v5 = vld [vmem:[#allocation3 + $0x168] sm:$0xff]   ;;  %v7898_v54 = vld [vmem:[#allocation2 + $0xa8] sm:$0xf] }
 0x45c   : > { %v8205_v42 = vshll.u32 %v17196_v62, 16  ;;  %v8209_v18 = vshrl.u32 %v17196_v62, 16  ;;  %v11642_v27 = vcombine.low %v8088_v32, %v8098_v13  ;;  %v11643_v37 = vcombine.low %v8112_v12, %v8122_v6  ;;  %v7904_v3 = vld [vmem:[#allocation2 + $0xc0] sm:$0xf] }
 0x45d   : > { %v8136_v41 = vsel %vm14471_vm2, %v8131_v52, %v17391_v60  ;;  %v8154_v58 = vor.u32 %v8153_v56, %v8150_v29  ;;  %v17445_v15 = vrot.slane %v8167_v20, 5  ;;  %v8229_v30 = vshll.u32 %v17214_v49, 16 }
 0x45e   : > { %13095 = vmatpush3.bf16.msra.mxu1 %v14107_v61  ;;  %v17443_v25 = vcombine.low %v8136_v41, %v8146_v59  ;;  %v8233_v24 = vshrl.u32 %v17214_v49, 16  ;;  %v8164_v62 = vor.u32 %v8163_v31, %v17430_v23  ;;  %v8178_v55 = vor.u32 %v8177_v22, %v8174_v19  ;;  %v14111_v31 = vld [vmem:[#allocation3 + $0x178] sm:$0xff]  }
 0x45f   : > { %13096 = vmatprep.subr.bf16.mxu1 %v14108_v21  ;;  %v17450_v14 = vrot.slane %v8181_v39, 5  ;;  %v8196_v38 = vshrl.u32 %v7895_v46, 16  ;;  %v8187_v60 = vrot.slane %v8185_v48, 4  ;;  %v8199_v2 = vshll.u32 %v7895_v46, 16 }
 0x460   : > { %v17453_v11 = vrot.slane %v8205_v42, 5  ;;  %v8211_v17 = vrot.slane %v8209_v18, 4  ;;  %v8220_v47 = vshrl.u32 %v7898_v54, 16  ;;  %v8223_v50 = vshll.u32 %v7898_v54, 16 }
 0x461   : > { %13065 = vmatmul.mubr.bf16.gmra.mrb[8].mxu1 %v17409_v44  ;;  %v8253_v49 = vshll.u32 %v17229_v34, 16  ;;  %v8257_v61 = vshrl.u32 %v17229_v34, 16  ;;  %v8155_v9 = vrot.slane %v8154_v58, 4  ;;  %v8191_v28 = vshll.u32 %v17182_v33, 16 }
 0x462   : > { %13068 = vmatprep.mubr.bf16.mxu1 %v11641_v36  ;;  %13097 = vmatpush3.bf16.msra.mxu1 %v14108_v21  ;;  %v17458_v16 = vrot.slane %v8229_v30, 5  ;;  %v8235_v44 = vrot.slane %v8233_v24, 4  ;;  %v8165_v45 = vrot.slane %v8164_v62, 4  ;;  %v17460_v1 = vrot.slane %v8178_v55, 4  ;;  %v17476_v62 = vld [vmem:[#allocation3 + $0x180] sm:$0xff]  }
 0x463   : > { %13098 = vmatprep.subr.bf16.mxu1 %v14109_v5  ;;  %v8244_v32 = vshrl.u32 %v7901_v40, 16  ;;  %v8247_v36 = vshll.u32 %v7901_v40, 16  ;;  %v8188_v26 = vor.u32 %v8187_v60, %v17450_v14  ;;  %v8198_v10 = vrot.slane %v8196_v38, 4 }
 0x464   : > { %v8201_v13 = vrot.slane %v8199_v2, 5  ;;  %v8212_v34 = vor.u32 %v8211_v17, %v17453_v11  ;;  %v8222_v52 = vrot.slane %v8220_v47, 4  ;;  %v8225_v33 = vrot.slane %v8223_v50, 5 }
 0x465   : > { %v17464_v29 = vrot.slane %v8253_v49, 5  ;;  %v8259_v56 = vrot.slane %v8257_v61, 4  ;;  %v8193_v6 = vrot.slane %v8191_v28, 5  ;;  %v8236_v59 = vor.u32 %v8235_v44, %v17458_v16  ;;  %v8612_v44 = vld [vmem:[#allocation2 + $0xc] sm:$0xe] }
 0x466   : > { %13099 = vmatpush3.bf16.msra.mxu1 %v14109_v5  ;;  %v8268_v21 = vshrl.u32 %v7904_v3, 16  ;;  %v8271_v20 = vshll.u32 %v7904_v3, 16  ;;  %v8246_v19 = vrot.slane %v8244_v32, 4  ;;  %v8249_v22 = vrot.slane %v8247_v36, 5  ;;  %v17501_v32 = vld [vmem:[#allocation2 + $0x1c] sm:$0xf] }
 0x467   : > { %13100 = vmatprep.subr.bf16.mxu1 %v14110_v57  ;;  %v8277_v39 = vshll.u32 %v17247_v51, 16  ;;  %v8281_v12 = vshrl.u32 %v17247_v51, 16  ;;  %v8170_v48 = vsel %vm14471_vm2, %v8165_v45, %v17445_v15  ;;  %v8202_v46 = vor.u32 %v8201_v13, %v8198_v10  ;;  %v8613_v10 = vld [vmem:[#allocation2 + $0x18] sm:$0xe]  ;;  %v17509_v13 = vld [vmem:[#allocation2 + $0x20] sm:$0x1] }
 0x468   : > { %v8215_v42 = vshll.u32 %v17198_v7, 16  ;;  %v8239_v18 = vshll.u32 %v17227_v35, 16  ;;  %v8189_v41 = vrot.slane %v8188_v26, 4  ;;  %v8213_v58 = vrot.slane %v8212_v34, 4 }
 0x469   : > { %13069 = vmatmul.mubr.bf16.gmra.mrb[12].mxu1 %v11642_v27  ;;  %v8226_v5 = vor.u32 %v8225_v33, %v8222_v52  ;;  %v8260_v54 = vor.u32 %v8259_v56, %v17464_v29  ;;  %v8237_v30 = vrot.slane %v8236_v59, 4  ;;  %v8263_v51 = vshll.u32 %v17238_v53, 16  ;;  %v10248_v33 = vld [vmem:[#allocation2 + $0x18] sm:$0xe] }
 0x46a   : > { %13072 = vmatprep.mubr.bf16.mxu1 %v11643_v37  ;;  %13101 = vmatpush3.bf16.msra.mxu1 %v14110_v57  ;;  %v8270_v27 = vrot.slane %v8268_v21, 4  ;;  %v8273_v24 = vrot.slane %v8271_v20, 5  ;;  %v8250_v15 = vor.u32 %v8249_v22, %v8246_v19  ;;  %v17478_v55 = vrot.slane %v8277_v39, 5  ;;  %v17530_v22 = vld [vmem:[#allocation2 + $0x2c] sm:$0x1] }
 0x46b   : > { %13102 = vmatprep.subr.bf16.mxu1 %v14111_v31  ;;  %v8283_v7 = vrot.slane %v8281_v12, 4  ;;  %v8678_v35 = vrot.slane %v17035_v8, 5  ;;  %v8160_v37 = vsel %vm14471_vm2, %v8155_v9, %v17430_v23  ;;  %v8203_v38 = vrot.slane %v8202_v46, 4  ;;  %v18495_v39 = vld [vmem:[#allocation35_spill] sm:$0xff] }
 0x46c   : > { %v8217_v60 = vrot.slane %v8215_v42, 5  ;;  %v8241_v2 = vrot.slane %v8239_v18, 5  ;;  %v11645_v17 = vcombine.low %v8160_v37, %v8170_v48  ;;  %v8194_v53 = vsel %vm14471_vm2, %v8189_v41, %v8193_v6  ;;  %v10249_v18 = vld [vmem:[#allocation2 + $0x24] sm:$0xe]  ;;  %v9513_v6 = vld [vmem:[#allocation2 + $0x60] sm:$0xf] }
 0x46d   : > { %v8227_v40 = vrot.slane %v8226_v5, 4  ;;  %v8261_v47 = vrot.slane %v8260_v54, 4  ;;  %v8184_v50 = vsel %vm14471_vm2, %v17460_v1, %v17450_v14  ;;  %v8274_v49 = vor.u32 %v8273_v24, %v8270_v27  ;;  %v17541_v54 = vld [vmem:[#allocation2 + $0x38] sm:$0x1]  ;;  %v17546_v24 = vld [vmem:[#allocation2 + $0x40] sm:$0xf] }
 0x46e   : > { %13103 = vmatpush3.bf16.msra.mxu1 %v14111_v31  ;;  %v8218_v8 = vsel %vm14471_vm2, %v8213_v58, %v8217_v60  ;;  %v8242_v23 = vsel %vm14471_vm2, %v8237_v30, %v8241_v2  ;;  %v8251_v61 = vrot.slane %v8250_v15, 4  ;;  %v8265_v9 = vrot.slane %v8263_v51, 5  ;;  %v10250_v51 = vld [vmem:[#allocation2 + $0x30] sm:$0xe]  ;;  %v17548_v15 = vld [vmem:[#allocation2 + $0x44] sm:$0x1] }
 0x46f   : > { %13136 = vmatprep.subr.bf16.mxu1 %v17476_v62  ;;  %v8284_v28 = vor.u32 %v8283_v7, %v17478_v55  ;;  %v8680_v57 = vrot.slane %v8678_v35, 4  ;;  %v11646_v45 = vcombine.low %v8184_v50, %v8194_v53  ;;  %v8208_v14 = vsel %vm14471_vm2, %v8203_v38, %v17453_v11  ;;  %v17563_v38 = vld [vmem:[#allocation2 + $0x4c] sm:$0xf]  ;;  %v10251_v53 = vld [vmem:[#allocation2 + $0x3c] sm:$0xe] }
 0x470   : > { %v8287_v1 = vshll.u32 %v17259_v43, 16  ;;  %v11647_v36 = vcombine.low %v8208_v14, %v8218_v8  ;;  %v8232_v3 = vsel %vm14471_vm2, %v8227_v40, %v17458_v16  ;;  %v8266_v26 = vsel %vm14471_vm2, %v8261_v47, %v8265_v9  ;;  %v17568_v40 = vld [vmem:[#allocation2 + $0x50] sm:$0x1]  ;;  %v17570_v47 = vld [vmem:[#allocation2 + $0x58] sm:$0xf] }
 0x471   : > { %13073 = vmatmul.mubr.bf16.gmra.mrb[16].mxu1 %v17443_v25  ;;  %v8681_v25 = vrot.slane %v17039_v63, 5  ;;  %v17511_v34 = vcombine.low %v8232_v3, %v8242_v23  ;;  %v8275_v11 = vrot.slane %v8274_v49, 4  ;;  %v11659_v43 = vrot.slane %v8612_v44, 9  ;;  %v17521_v63 = vld [vmem:[#allocation2 + $0x28] sm:$0xf] }
 0x472   : > { %13076 = vmatprep.mubr.bf16.mxu1 %v11645_v17  ;;  %v8685_v52 = vrot.slane %v17041_v0, 5  ;;  %v8256_v56 = vsel %vm14471_vm2, %v8251_v61, %v17464_v29  ;;  %v8285_v16 = vrot.slane %v8284_v28, 4  ;;  %v10314_v21 = vrot.slane %v17501_v32, 5  ;;  %v17532_v29 = vld [vmem:[#allocation2 + $0x34] sm:$0xf] }
 0x473   : > { %v17519_v59 = vsel %vm14813_vm5, %v8680_v57, %v8681_v25  ;;  %v17524_v20 = vcombine.low %v8256_v56, %v8266_v26  ;;  %v8289_v31 = vrot.slane %v8287_v1, 5  ;;  %v17528_v0 = vsel %vm14813_vm5, %v11659_v43, %v8678_v35  ;;  %v17579_v28 = vld [vmem:[#allocation2 + $0x5c] sm:$0x1]  ;;  %v17586_v14 = vld [vmem:[#allocation2 + $0x64] sm:$0xf] }
 0x474   : > { %v11660_v19 = vrot.slane %v8613_v10, 9  ;;  %v8688_v12 = vrot.slane %v18495_v39, 5  ;;  %v11747_v48 = vrot.slane %v10248_v33, 9  ;;  %v10316_v46 = vrot.slane %v10314_v21, 4  ;;  %v10253_v25 = vld [vmem:[#allocation2 + $0x54] sm:$0xe] }
 0x475   : > { %v10317_v42 = vrot.slane %v17509_v13, 5  ;;  %v8280_v41 = vsel %vm14471_vm2, %v8275_v11, %v17478_v55  ;;  %v8687_v5 = vrot.slane %v8685_v52, 4  ;;  %v10321_v30 = vrot.slane %v17521_v63, 5  ;;  %v17600_v10 = vld [vmem:[#allocation2 + $0x68] sm:$0x1] }
 0x476   : > { %v8290_v27 = vsel %vm14471_vm2, %v8285_v16, %v8289_v31  ;;  %v17552_v7 = vsel %vm14813_vm5, %v11747_v48, %v10314_v21  ;;  %v10328_v35 = vrot.slane %v17532_v29, 5  ;;  %v17561_v37 = vsel %vm14813_vm5, %v11660_v19, %v8685_v52  ;;  %v10254_v56 = vld [vmem:[#allocation2 + $0x60] sm:$0xe]  ;;  %v17607_v16 = vld [vmem:[#allocation2 + $0x70] sm:$0xf] }
 0x477   : > { %v17556_v55 = vsel %vm14813_vm5, %v10316_v46, %v10317_v42  ;;  %v11748_v2 = vrot.slane %v10249_v18, 9  ;;  %v10324_v17 = vrot.slane %v17530_v22, 5  ;;  %v10323_v50 = vrot.slane %v10321_v30, 4  ;;  %v17689_v11 = vld [vmem:[#allocation2 + $0xac] sm:$0xf] }
 0x478   : > { %v11749_v8 = vrot.slane %v10250_v51, 9  ;;  %v10330_v23 = vrot.slane %v10328_v35, 4  ;;  %v10331_v49 = vrot.slane %v17541_v54, 5  ;;  %v17573_v61 = vcombine.low %v8280_v41, %v8290_v27  ;;  %v17623_v41 = vld [vmem:[#allocation2 + $0x7c] sm:$0xf] }
 0x479   : > { %13077 = vmatmul.mubr.bf16.gmra.mrb[20].mxu1 %v11646_v45  ;;  %v17577_v9 = vsel %vm14813_vm5, %v8687_v5, %v8688_v12  ;;  %v17583_v44 = vsel %vm14813_vm5, %v11748_v2, %v10321_v30  ;;  %v10335_v57 = vrot.slane %v17546_v24, 5  ;;  %v10252_v45 = vld [vmem:[#allocation2 + $0x48] sm:$0xe]  ;;  %v17590_v1 = vsel %vm14813_vm5, %v10323_v50, %v10324_v17  ;;  %v17615_v12 = vld [vmem:[#allocation2 + $0x74] sm:$0x1] }
 0x47a   : > { %13080 = vmatprep.mubr.bf16.mxu1 %v11647_v36  ;;  %18496 = vst [vmem:[#allocation22_spill] sm:$0xff] %v17583_v44  ;;  %18497 = vst [vmem:[#allocation35_spill] sm:$0xff] %v17590_v1  ;;  %v17594_v36 = vsel %vm14813_vm5, %v11749_v8, %v10328_v35  ;;  %v17598_v3 = vsel %vm14813_vm5, %v10330_v23, %v10331_v49  ;;  %v11750_v26 = vrot.slane %v10251_v53, 9  ;;  %v10338_v33 = vrot.slane %v17548_v15, 5  ;;  %v10255_v35 = vld [vmem:[#allocation2 + $0x6c] sm:$0xe] }
 0x47b   : > { %18498 = vst [vmem:[#allocation39_spill] sm:$0xff] %v17594_v36  ;;  %18499 = vst [vmem:[#allocation40_spill] sm:$0xff] %v17598_v3  ;;  %v10337_v52 = vrot.slane %v10335_v57, 4  ;;  %v11751_v31 = vrot.slane %v10252_v45, 9  ;;  %v10342_v19 = vrot.slane %v17563_v38, 5  ;;  %v10349_v39 = vrot.slane %v17570_v47, 5 }
 0x47c   : > { %v17611_v21 = vsel %vm14813_vm5, %v11750_v26, %v10335_v57  ;;  %v10345_v46 = vrot.slane %v17568_v40, 5  ;;  %v11752_v42 = vrot.slane %v10253_v25, 9  ;;  %v10356_v18 = vrot.slane %v17586_v14, 5  ;;  %v17629_v2 = vld [vmem:[#allocation2 + $0x80] sm:$0x1]  ;;  %v14142_v1 = vld [vmem:[#allocation2 + $0xcc] sm:$0xff]  }
 0x47d   : > { %18500 = vst [vmem:[#allocation41_spill] sm:$0xff] %v17611_v21  ;;  %v17619_v48 = vsel %vm14813_vm5, %v10337_v52, %v10338_v33  ;;  %v10344_v30 = vrot.slane %v10342_v19, 4  ;;  %v10352_v51 = vrot.slane %v17579_v28, 5  ;;  %v11753_v27 = vrot.slane %v10254_v56, 9  ;;  %v17631_v17 = vld [vmem:[#allocation2 + $0x88] sm:$0xf] }
 0x47e   : > { %18501 = vst [vmem:[#allocation42_spill] sm:$0xff] %v17619_v48  ;;  %v17635_v53 = vsel %vm14813_vm5, %v11751_v31, %v10342_v19  ;;  %v10351_v50 = vrot.slane %v10349_v39, 4  ;;  %v10358_v8 = vrot.slane %v10356_v18, 4  ;;  %v10359_v23 = vrot.slane %v17600_v10, 5  ;;  %v17639_v49 = vld [vmem:[#allocation2 + $0x8c] sm:$0x1] }
 0x47f   : > { %18502 = vst [vmem:[#allocation43_spill] sm:$0xff] %v17635_v53  ;;  %v17643_v57 = vsel %vm14813_vm5, %v10344_v30, %v10345_v46  ;;  %v17651_v45 = vsel %vm14813_vm5, %v11753_v27, %v10356_v18  ;;  %v10363_v26 = vrot.slane %v17607_v16, 5  ;;  %v10256_v25 = vld [vmem:[#allocation2 + $0x78] sm:$0xe]  ;;  %v17654_v52 = vld [vmem:[#allocation2 + $0x94] sm:$0xf] }
 0x480   : > { %18503 = vst [vmem:[#allocation44_spill] sm:$0xff] %v17643_v57  ;;  %18505 = vst [vmem:[#allocation46_spill] sm:$0xff] %v17651_v45  ;;  %v17660_v33 = vsel %vm14813_vm5, %v10351_v50, %v10352_v51  ;;  %v17664_v56 = vsel %vm14813_vm5, %v10358_v8, %v10359_v23  ;;  %v11754_v31 = vrot.slane %v10255_v35, 9  ;;  %v10257_v19 = vld [vmem:[#allocation2 + $0x84] sm:$0xe]  ;;  %v10366_v30 = vrot.slane %v17615_v12, 5 }
 0x481   : > { %13081 = vmatmul.mubr.bf16.gmra.mrb[24].mxu1 %v17511_v34  ;;  %v17647_v34 = vsel %vm14813_vm5, %v11752_v42, %v10349_v39  ;;  %18506 = vst [vmem:[#allocation47_spill] sm:$0xff] %v17660_v33  ;;  %18507 = vst [vmem:[#allocation48_spill] sm:$0xff] %v17664_v56  ;;  %v17666_v39 = vld [vmem:[#allocation2 + $0x98] sm:$0x1]  ;;  %v10365_v18 = vrot.slane %v10363_v26, 4  ;;  %v11755_v35 = vrot.slane %v10256_v25, 9 }
 0x482   : > { %13084 = vmatprep.mubr.bf16.mxu1 %v17524_v20  ;;  %18504 = vst [vmem:[#allocation45_spill] sm:$0xff] %v17647_v34  ;;  %v10258_v27 = vld [vmem:[#allocation2 + $0x90] sm:$0xe]  ;;  %v17673_v51 = vld [vmem:[#allocation2 + $0xa0] sm:$0xf]  ;;  %v17677_v50 = vsel %vm14813_vm5, %v11754_v31, %v10363_v26  ;;  %v10370_v8 = vrot.slane %v17623_v41, 5 }
 0x483   : > { %18508 = vst [vmem:[#allocation49_spill] sm:$0xff] %v17677_v50  ;;  %v10377_v23 = vrot.slane %v17631_v17, 5  ;;  %v17681_v20 = vld [vmem:[#allocation2 + $0xa4] sm:$0x1]  ;;  %v17685_v42 = vsel %vm14813_vm5, %v10365_v18, %v10366_v30  ;;  %v10373_v46 = vrot.slane %v17629_v2, 5  ;;  %v11756_v5 = vrot.slane %v10257_v19, 9 }
 0x484   : > { %18509 = vst [vmem:[#allocation50_spill] sm:$0xff] %v17685_v42  ;;  %v10384_v43 = vrot.slane %v17654_v52, 5  ;;  %v10372_v25 = vrot.slane %v10370_v8, 4  ;;  %v10380_v31 = vrot.slane %v17639_v49, 5  ;;  %v11757_v60 = vrot.slane %v10258_v27, 9 }
 0x485   : > { %v10259_v58 = vld [vmem:[#allocation2 + $0x9c] sm:$0xe]  ;;  %v17694_v56 = vld [vmem:[#allocation2 + $0xb0] sm:$0x1]  ;;  %v17698_v18 = vsel %vm14813_vm5, %v11755_v35, %v10370_v8  ;;  %v10379_v30 = vrot.slane %v10377_v23, 4  ;;  %v10387_v45 = vrot.slane %v17666_v39, 5  ;;  %v17710_v27 = vsel %vm14813_vm5, %v11756_v5, %v10377_v23 }
 0x486   : > { %18510 = vst [vmem:[#allocation51_spill] sm:$0xff] %v17698_v18  ;;  %v10386_v19 = vrot.slane %v10384_v43, 4  ;;  %v17702_v33 = vld [vmem:[#allocation2 + $0xb8] sm:$0xf]  ;;  %v17706_v26 = vsel %vm14813_vm5, %v10372_v25, %v10373_v46  ;;  %18512 = vst [vmem:[#allocation53_spill] sm:$0xff] %v17710_v27  ;;  %v17714_v35 = vsel %vm14813_vm5, %v11757_v60, %v10384_v43  ;;  %v10391_v8 = vrot.slane %v17673_v51, 5 }
 0x487   : > { %18511 = vst [vmem:[#allocation52_spill] sm:$0xff] %v17706_v26  ;;  %18513 = vst [vmem:[#allocation54_spill] sm:$0xff] %v17714_v35  ;;  %v10260_v42 = vld [vmem:[#allocation2 + $0xa8] sm:$0xe]  ;;  %v17720_v50 = vld [vmem:[#allocation2 + $0xbc] sm:$0x1]  ;;  %v17728_v5 = vsel %vm14813_vm5, %v10379_v30, %v10380_v31  ;;  %v11676_v31 = vcombine.low %v17561_v37, %v17577_v9 }
 0x488   : > { %v17722_v34 = vld [vmem:[#allocation2 + $0xc4] sm:$0xf]  ;;  %18515 = vst [vmem:[#allocation55_spill] sm:$0xff] %v17728_v5  ;;  %v17732_v60 = vsel %vm14813_vm5, %v10386_v19, %v10387_v45  ;;  %v11758_v43 = vrot.slane %v10259_v58, 9  ;;  %v17734_v23 = vld [vmem:[#allocation2 + $0xc8] sm:$0x1] }
 0x489   : > { %13085 = vmatmul.mubr.bf16.gmra.mrb[28].mxu1 %v17573_v61  ;;  %v18514_v61 = vcombine.low %v17528_v0, %v17519_v59  ;;  %18516 = vst [vmem:[#allocation56_spill] sm:$0xff] %v17732_v60  ;;  %v10393_v25 = vrot.slane %v10391_v8, 4  ;;  %v10261_v46 = vld [vmem:[#allocation2 + $0xb4] sm:$0xe]  ;;  %v11759_v30 = vrot.slane %v10260_v42, 9  ;;  %v10398_v45 = vrot.slane %v17689_v11, 5 }
 0x48a   : > { %v10405_v58 = vrot.slane %v17702_v33, 5  ;;  %v10262_v19 = vld [vmem:[#allocation2 + $0xc0] sm:$0xe]  ;;  %v17747_v26 = vsel %vm14813_vm5, %v11758_v43, %v10391_v8  ;;  %v10401_v59 = vrot.slane %v17694_v56, 5  ;;  %v10412_v60 = vrot.slane %v17722_v34, 5  ;;  %v18577_v4 = vld [vmem:[#allocation43_spill] sm:$0xff] }
 0x48b   : > { %13104 = vmatprep.mubr.bf16.mxu1 %v18514_v61  ;;  %v10394_v61 = vrot.slane %v17681_v20, 5  ;;  %18517 = vst [vmem:[#allocation57_spill] sm:$0xff] %v17747_v26  ;;  %v10400_v9 = vrot.slane %v10398_v45, 4  ;;  %v11760_v42 = vrot.slane %v10261_v46, 9  ;;  %v10408_v35 = vrot.slane %v17720_v50, 5  ;;  %v14113_v5 = vld [vmem:[#allocation3 + $0x188] sm:$0xff]  }
 0x48c   : > { %v10407_v27 = vrot.slane %v10405_v58, 4  ;;  %v11761_v18 = vrot.slane %v10262_v19, 9  ;;  %v10414_v8 = vrot.slane %v10412_v60, 4  ;;  %v10415_v43 = vrot.slane %v17734_v23, 5  ;;  %v9507_v53 = vld [vmem:[#allocation2 + $0x48] sm:$0xf] }
 0x48d   : > { %v17751_v0 = vsel %vm14813_vm5, %v10393_v25, %v10394_v61  ;;  %v17761_v25 = vsel %vm14813_vm5, %v11759_v30, %v10398_v45  ;;  %v17765_v61 = vsel %vm14813_vm5, %v10400_v9, %v10401_v59  ;;  %v17769_v37 = vsel %vm14813_vm5, %v11760_v42, %v10405_v58  ;;  %v18525_v45 = vld [vmem:[#allocation14_spill] sm:$0xff]  ;;  %v18526_v9 = vld [vmem:[#allocation16_spill] sm:$0xff]  ;;  %v18529_v42 = vld [vmem:[#allocation27_spill] sm:$0xff] }
 0x48e   : > { %18518 = vst [vmem:[#allocation58_spill] sm:$0xff] %v17751_v0  ;;  %18519 = vst [vmem:[#allocation59_spill] sm:$0xff] %v17761_v25  ;;  %v17775_v19 = vsel %vm14813_vm5, %v10407_v27, %v10408_v35  ;;  %v17779_v30 = vsel %vm14813_vm5, %v11761_v18, %v10412_v60  ;;  %v17783_v59 = vsel %vm14813_vm5, %v10414_v8, %v10415_v43  ;;  %v14114_v35 = vld [vmem:[#allocation3 + $0x190] sm:$0xff]   ;;  %v14115_v18 = vld [vmem:[#allocation3 + $0x198] sm:$0xff]  }
 0x48f   : > { %18520 = vst [vmem:[#allocation60_spill] sm:$0xff] %v17765_v61  ;;  %18521 = vst [vmem:[#allocation61_spill] sm:$0xff] %v17769_v37  ;;  %v18527_v58 = vcombine.low %v18525_v45, %v18526_v9  ;;  %v18528_v60 = vld [vmem:[#allocation24_spill] sm:$0xff]  ;;  %v18531_v43 = vld [vmem:[#allocation25_spill] sm:$0xff] }
 0x490   : > { %18522 = vst [vmem:[#allocation62_spill] sm:$0xff] %v17775_v19  ;;  %18523 = vst [vmem:[#allocation63_spill] sm:$0xff] %v17779_v30  ;;  %v18530_v8 = vcombine.low %v18528_v60, %v18529_v42  ;;  %v18532_v45 = vld [vmem:[#allocation26_spill] sm:$0xff]  ;;  %v18534_v27 = vld [vmem:[#allocation23_spill] sm:$0xff] }
 0x491   : > { %13105 = vmatmul.mubr.bf16.vlgmr.msra.gmra.mrb[0].mxu1 %v11676_v31  ;;  %18524 = vst [vmem:[#allocation64_spill] sm:$0xff] %v17783_v59  ;;  %v18533_v9 = vcombine.low %v18531_v43, %v18532_v45  ;;  %v18535_v31 = vld [vmem:[#allocation15_spill] sm:$0xff]  ;;  %v18538_v59 = vld [vmem:[#allocation10_spill] sm:$0xff]  ;;  %v14119_v42 = vld [vmem:[#allocation3 + $0x1b8] sm:$0xff]  }
 0x492   : > { %13108 = vmatprep.mubr.bf16.mxu1 %v18527_v58  ;;  %13137 = vmatpush3.bf16.msra.mxu1 %v17476_v62  ;;  %v14116_v62 = vld [vmem:[#allocation3 + $0x1a0] sm:$0xff]   ;;  %v14117_v58 = vld [vmem:[#allocation3 + $0x1a8] sm:$0xff]   ;;  %v18536_v46 = vcombine.low %v18534_v27, %v18535_v31  ;;  %v14118_v60 = vld [vmem:[#allocation3 + $0x1b0] sm:$0xff]  }
 0x493   : > { %13138 = vmatprep.subr.bf16.mxu1 %v14113_v5  ;;  %v18544_v45 = vld [vmem:[#allocation17_spill] sm:$0xff]  ;;  %v18549_v27 = vld [vmem:[#allocation20_spill] sm:$0xff]  ;;  %v18561_v19 = vld [vmem:[#allocation34_spill] sm:$0xff] }
 0x494   : > { %v18562_v37 = vld [vmem:[#allocation36_spill] sm:$0xff]  ;;  %v14136_v61 = vld [vmem:[#allocation2 + $0x9c] sm:$0xff]   ;;  %v10263_v48 = vld [vmem:[#allocation2 + $0xcc] sm:$0xe] }
 0x496   : > { %13139 = vmatpush3.bf16.msra.mxu1 %v14113_v5  ;;  %v18537_v5 = vld [vmem:[#allocation9_spill] sm:$0xff] }
 0x497   : > { %13140 = vmatprep.subr.bf16.mxu1 %v14114_v35  ;;  %v18539_v30 = vcombine.low %v18537_v5, %v18538_v59  ;;  %v18547_v59 = vld [vmem:[#allocation19_spill] sm:$0xff]  ;;  %v18552_v5 = vld [vmem:[#allocation28_spill] sm:$0xff] }
 0x499   : > { %13109 = vmatmul.mubr.bf16.gmra.mrb[4].mxu1 %v18530_v8  ;;  %v18541_v8 = vld [vmem:[#allocation13_spill] sm:$0xff] }
 0x49a   : > { %13112 = vmatprep.mubr.bf16.mxu1 %v18533_v9  ;;  %13141 = vmatpush3.bf16.msra.mxu1 %v14114_v35  ;;  %v18540_v35 = vld [vmem:[#allocation11_spill] sm:$0xff] }
 0x49b   : > { %13142 = vmatprep.subr.bf16.mxu1 %v14115_v18  ;;  %v18542_v43 = vcombine.low %v18540_v35, %v18541_v8  ;;  %v18553_v35 = vld [vmem:[#allocation29_spill] sm:$0xff] }
 0x49c   : > { %v18554_v8 = vcombine.low %v18552_v5, %v18553_v35  ;;  %v14125_v5 = vld [vmem:[#allocation3 + $0x1c8] sm:$0xff]   ;;  %v14123_v35 = vld [vmem:[#allocation2 + $0x30] sm:$0xff]  }
 0x49e   : > { %13143 = vmatpush3.bf16.msra.mxu1 %v14115_v18  ;;  %v18543_v18 = vld [vmem:[#allocation12_spill] sm:$0xff] }
 0x49f   : > { %13144 = vmatprep.subr.bf16.mxu1 %v14116_v62  ;;  %v18545_v9 = vcombine.low %v18543_v18, %v18544_v45  ;;  %v18556_v18 = vld [vmem:[#allocation32_spill] sm:$0xff] }
 0x4a1   : > { %13113 = vmatmul.mubr.bf16.gmra.mrb[8].mxu1 %v18536_v46  ;;  %v14122_v46 = vld [vmem:[#allocation3 + $0x1c0] sm:$0xff]  }
 0x4a2   : > { %13116 = vmatprep.mubr.bf16.mxu1 %v18539_v30  ;;  %13145 = vmatpush3.bf16.msra.mxu1 %v14116_v62  ;;  %v18546_v30 = vld [vmem:[#allocation18_spill] sm:$0xff]  ;;  %v18550_v62 = vld [vmem:[#allocation21_spill] sm:$0xff] }
 0x4a3   : > { %13146 = vmatprep.subr.bf16.mxu1 %v14117_v58  ;;  %v18548_v31 = vcombine.low %v18546_v30, %v18547_v59  ;;  %v18563_v30 = vcombine.low %v18561_v19, %v18562_v37  ;;  %v14120_v59 = vld [vmem:[#allocation2 + $0x18] sm:$0xff]   ;;  %v14126_v37 = vld [vmem:[#allocation2 + $0x48] sm:$0xff]  }
 0x4a4   : > { %v14134_v19 = vld [vmem:[#allocation3 + $0x1e0] sm:$0xff]  }
 0x4a6   : > { %13147 = vmatpush3.bf16.msra.mxu1 %v14117_v58  ;;  %v18551_v58 = vcombine.low %v18549_v27, %v18550_v62  ;;  %v18565_v27 = vld [vmem:[#allocation38_spill] sm:$0xff] }
 0x4a7   : > { %13148 = vmatprep.subr.bf16.mxu1 %v14118_v60 }
 0x4a9   : > { %13117 = vmatmul.mubr.bf16.gmra.mrb[12].mxu1 %v18542_v43  ;;  %v18555_v43 = vld [vmem:[#allocation30_spill] sm:$0xff] }
 0x4aa   : > { %13120 = vmatprep.mubr.bf16.mxu1 %v18545_v9  ;;  %13149 = vmatpush3.bf16.msra.mxu1 %v14118_v60  ;;  %v18557_v45 = vcombine.low %v18555_v43, %v18556_v18  ;;  %v18558_v60 = vld [vmem:[#allocation31_spill] sm:$0xff]  ;;  %v18559_v9 = vld [vmem:[#allocation33_spill] sm:$0xff]  ;;  %v14131_v18 = vld [vmem:[#allocation3 + $0x1d8] sm:$0xff]  }
 0x4ab   : > { %13150 = vmatprep.subr.bf16.mxu1 %v14119_v42  ;;  %v14124_v43 = vld [vmem:[#allocation2 + $0x3c] sm:$0xff]  }
 0x4ae   : > { %13151 = vmatpush3.bf16.msra.mxu1 %v14119_v42  ;;  %v18560_v42 = vcombine.low %v18558_v60, %v18559_v9  ;;  %v14137_v60 = vld [vmem:[#allocation3 + $0x1e8] sm:$0xff]  }
 0x4af   : > { %13184 = vmatprep.subr.bf16.mxu1 %v14122_v46  ;;  %v14129_v9 = vld [vmem:[#allocation2 + $0x60] sm:$0xff]  }
 0x4b1   : > { %13121 = vmatmul.mubr.bf16.gmra.mrb[16].mxu1 %v18548_v31  ;;  %v18564_v31 = vld [vmem:[#allocation37_spill] sm:$0xff] }
 0x4b2   : > { %13124 = vmatprep.mubr.bf16.mxu1 %v18551_v58  ;;  %v18566_v62 = vcombine.low %v18564_v31, %v18565_v27  ;;  %v14121_v58 = vld [vmem:[#allocation2 + $0x24] sm:$0xff]   ;;  %v9495_v31 = vld [vmem:[#allocation2 + $0x18] sm:$0xf] }
 0x4b3   : > { %v17832_v27 = vld [vmem:[#allocation3 + $0x200] sm:$0xff]  }
 0x4b9   : > { %13125 = vmatmul.mubr.bf16.gmra.mrb[20].mxu1 %v18554_v8  ;;  %v14128_v8 = vld [vmem:[#allocation3 + $0x1d0] sm:$0xff]  }
 0x4ba   : > { %13128 = vmatprep.mubr.bf16.mxu1 %v18557_v45  ;;  %v14127_v45 = vld [vmem:[#allocation2 + $0x54] sm:$0xff]  }
 0x4c1   : > { %13129 = vmatmul.mubr.bf16.gmra.mrb[24].mxu1 %v18560_v42  ;;  %v14130_v42 = vld [vmem:[#allocation2 + $0x6c] sm:$0xff]  }
 0x4c2   : > { %13132 = vmatprep.mubr.bf16.mxu1 %v18563_v30  ;;  %v14143_v30 = vld [vmem:[#allocation3 + $0x1f8] sm:$0xff]  }
 0x4c9   : > { %13133 = vmatmul.mubr.bf16.gmra.mrb[28].mxu1 %v18566_v62  ;;  %v9544_v62 = vshrl.u32 %v9495_v31, 16 }
 0x4ca   : > { %13152 = vmatprep.mubr.bf16.mxu1 %v14120_v59  ;;  %v14132_v59 = vld [vmem:[#allocation2 + $0x78] sm:$0xff]  }
 0x4d1   : > { %13153 = vmatmul.mubr.bf16.vlgmr.msra.gmra.mrb[0].mxu1 %v14121_v58  ;;  %v9547_v58 = vshll.u32 %v9495_v31, 16  ;;  %v9501_v31 = vld [vmem:[#allocation2 + $0x30] sm:$0xf] }
 0x4d2   : > { %13156 = vmatprep.mubr.bf16.mxu1 %v14123_v35  ;;  %13185 = vmatpush3.bf16.msra.mxu1 %v14122_v46  ;;  %v14140_v46 = vld [vmem:[#allocation3 + $0x1f0] sm:$0xff]   ;;  %v14135_v35 = vld [vmem:[#allocation2 + $0x90] sm:$0xff]  }
 0x4d3   : > { %13186 = vmatprep.subr.bf16.mxu1 %v14125_v5 }
 0x4d6   : > { %13187 = vmatpush3.bf16.msra.mxu1 %v14125_v5  ;;  %v14133_v5 = vld [vmem:[#allocation2 + $0x84] sm:$0xff]  }
 0x4d7   : > { %13188 = vmatprep.subr.bf16.mxu1 %v14128_v8 }
 0x4d9   : > { %13157 = vmatmul.mubr.bf16.gmra.mrb[4].mxu1 %v14124_v43  ;;  %v9557_v43 = vshrl.u32 %v17501_v32, 16 }
 0x4da   : > { %13160 = vmatprep.mubr.bf16.mxu1 %v14126_v37  ;;  %13189 = vmatpush3.bf16.msra.mxu1 %v14128_v8  ;;  %v9553_v8 = vshll.u32 %v17501_v32, 16  ;;  %v9546_v37 = vrot.slane %v9544_v62, 4  ;;  %v9601_v32 = vshll.u32 %v17532_v29, 16  ;;  %v14138_v62 = vld [vmem:[#allocation2 + $0xa8] sm:$0xff]  }
 0x4db   : > { %13190 = vmatprep.subr.bf16.mxu1 %v14131_v18 }
 0x4de   : > { %13191 = vmatpush3.bf16.msra.mxu1 %v14131_v18  ;;  %v9498_v18 = vld [vmem:[#allocation2 + $0x24] sm:$0xf] }
 0x4df   : > { %13192 = vmatprep.subr.bf16.mxu1 %v14134_v19 }
 0x4e1   : > { %13161 = vmatmul.mubr.bf16.gmra.mrb[8].mxu1 %v14127_v45  ;;  %v9568_v45 = vshrl.u32 %v9498_v18, 16 }
 0x4e2   : > { %13164 = vmatprep.mubr.bf16.mxu1 %v14129_v9  ;;  %13193 = vmatpush3.bf16.msra.mxu1 %v14134_v19  ;;  %v9549_v19 = vrot.slane %v9547_v58, 5  ;;  %v17837_v9 = vrot.slane %v9553_v8, 5 }
 0x4e3   : > { %13194 = vmatprep.subr.bf16.mxu1 %v14137_v60  ;;  %v9570_v25 = vrot.slane %v9568_v45, 4 }
 0x4e6   : > { %13195 = vmatpush3.bf16.msra.mxu1 %v14137_v60  ;;  %v9571_v60 = vshll.u32 %v9498_v18, 16  ;;  %v9595_v18 = vshll.u32 %v9501_v31, 16 }
 0x4e7   : > { %13196 = vmatprep.subr.bf16.mxu1 %v14140_v46 }
 0x4e8   : > { %v9573_v0 = vrot.slane %v9571_v60, 5  ;;  %v17848_v60 = vrot.slane %v9601_v32, 5 }
 0x4e9   : > { %13165 = vmatmul.mubr.bf16.gmra.mrb[12].mxu1 %v14130_v42  ;;  %v9577_v42 = vshll.u32 %v17521_v63, 16 }
 0x4ea   : > { %13168 = vmatprep.mubr.bf16.mxu1 %v14132_v59  ;;  %13197 = vmatpush3.bf16.msra.mxu1 %v14140_v46  ;;  %v9559_v46 = vrot.slane %v9557_v43, 4  ;;  %v9550_v59 = vor.u32 %v9549_v19, %v9546_v37  ;;  %v9592_v43 = vshrl.u32 %v9501_v31, 16  ;;  %v9563_v37 = vshll.u32 %v17509_v13, 16 }
 0x4eb   : > { %13198 = vmatprep.subr.bf16.mxu1 %v14143_v30  ;;  %v9587_v19 = vshll.u32 %v17530_v22, 16  ;;  %v9574_v45 = vor.u32 %v9573_v0, %v9570_v25  ;;  %v14139_v22 = vld [vmem:[#allocation2 + $0xb4] sm:$0xff]  }
 0x4ec   : > { %v9560_v58 = vor.u32 %v9559_v46, %v17837_v9 }
 0x4ed   : > { %v17854_v31 = vrot.slane %v9587_v19, 5  ;;  %v9575_v0 = vrot.slane %v9574_v45, 4  ;;  %v9649_v19 = vshll.u32 %v17563_v38, 16  ;;  %v17863_v45 = vld [vmem:[#allocation2 + $0xd0] sm:$0xf] }
 0x4ee   : > { %13199 = vmatpush3.bf16.msra.mxu1 %v14143_v30  ;;  %v9581_v30 = vshrl.u32 %v17521_v63, 16  ;;  %v9551_v63 = vrot.slane %v9550_v59, 4  ;;  %v9561_v57 = vrot.slane %v9560_v58, 4  ;;  %v9565_v59 = vrot.slane %v9563_v37, 5 }
 0x4ef   : > { %13232 = vmatprep.subr.bf16.mxu1 %v17832_v27  ;;  %v9611_v58 = vshll.u32 %v17541_v54, 16  ;;  %v9653_v54 = vshrl.u32 %v17563_v38, 16  ;;  %v9673_v38 = vshll.u32 %v17570_v47, 16 }
 0x4f0   : > { %v9583_v8 = vrot.slane %v9581_v30, 4  ;;  %v9556_v30 = vsel %vm14471_vm2, %v9551_v63, %v17837_v9  ;;  %v9566_v9 = vsel %vm14471_vm2, %v9561_v57, %v9565_v59 }
 0x4f1   : > { %13169 = vmatmul.mubr.bf16.gmra.mrb[16].mxu1 %v14133_v5  ;;  %v9605_v5 = vshrl.u32 %v17532_v29, 16  ;;  %v9504_v29 = vld [vmem:[#allocation2 + $0x3c] sm:$0xf] }
 0x4f2   : > { %13172 = vmatprep.mubr.bf16.mxu1 %v14135_v35  ;;  %v17844_v35 = vrot.slane %v9577_v42, 5  ;;  %v9597_v42 = vrot.slane %v9595_v18, 5  ;;  %v9616_v13 = vshrl.u32 %v9504_v29, 16  ;;  %v9619_v32 = vshll.u32 %v9504_v29, 16 }
 0x4f3   : > { %v9607_v26 = vrot.slane %v9605_v5, 4  ;;  %v9625_v5 = vshll.u32 %v17546_v24, 16  ;;  %v9643_v18 = vshll.u32 %v9507_v53, 16 }
 0x4f4   : > { %v9584_v46 = vor.u32 %v9583_v8, %v17844_v35  ;;  %v9629_v8 = vshrl.u32 %v17546_v24, 16  ;;  %v9618_v29 = vrot.slane %v9616_v13, 4  ;;  %v10419_v24 = vrot.slane %v17863_v45, 5 }
 0x4f5   : > { %v9608_v25 = vor.u32 %v9607_v26, %v17848_v60  ;;  %v17865_v26 = vld [vmem:[#allocation2 + $0xd4] sm:$0x1]  ;;  %v9621_v21 = vrot.slane %v9619_v32, 5  ;;  %v17870_v57 = vrot.slane %v9625_v5, 5  ;;  %v9645_v3 = vrot.slane %v9643_v18, 5 }
 0x4f6   : > { %v9585_v63 = vrot.slane %v9584_v46, 4  ;;  %v9510_v46 = vld [vmem:[#allocation2 + $0x54] sm:$0xf]  ;;  %v10421_v36 = vrot.slane %v10419_v24, 4  ;;  %v9677_v13 = vshrl.u32 %v17570_v47, 16  ;;  %v9613_v18 = vrot.slane %v9611_v58, 5 }
 0x4f7   : > { %v9664_v32 = vshrl.u32 %v9510_v46, 16  ;;  %v9667_v5 = vshll.u32 %v9510_v46, 16  ;;  %v9580_v47 = vsel %vm14471_vm2, %v9575_v0, %v17844_v35  ;;  %v9635_v46 = vshll.u32 %v17548_v15, 16 }
 0x4f8   : > { %v17896_v58 = vrot.slane %v9673_v38, 5 }
 0x4f9   : > { %13173 = vmatmul.mubr.bf16.gmra.mrb[20].mxu1 %v14136_v61  ;;  %v9594_v61 = vrot.slane %v9592_v43, 4  ;;  %v9640_v43 = vshrl.u32 %v9507_v53, 16  ;;  %v10422_v53 = vrot.slane %v17865_v26, 5  ;;  %v9666_v0 = vrot.slane %v9664_v32, 4 }
 0x4fa   : > { %13176 = vmatprep.mubr.bf16.mxu1 %v14138_v62  ;;  %v14141_v62 = vld [vmem:[#allocation2 + $0xc0] sm:$0xff]  }
 0x4fb   : > { %v9598_v37 = vor.u32 %v9597_v42, %v9594_v61  ;;  %v11762_v61 = vrot.slane %v10263_v48, 9  ;;  %v9631_v42 = vrot.slane %v9629_v8, 4  ;;  %v9642_v59 = vrot.slane %v9640_v43, 4 }
 0x4fc   : > { %v17882_v48 = vsel %vm14813_vm5, %v10421_v36, %v10422_v53  ;;  %v11723_v8 = vcombine.low %v9556_v30, %v9566_v9  ;;  %v9679_v9 = vrot.slane %v9677_v13, 4  ;;  %v9669_v53 = vrot.slane %v9667_v5, 5 }
 0x4fd   : > { %v17878_v44 = vsel %vm14813_vm5, %v11762_v61, %v10419_v24  ;;  %v9599_v43 = vrot.slane %v9598_v37, 4  ;;  %v9622_v24 = vor.u32 %v9621_v21, %v9618_v29  ;;  %v9632_v30 = vor.u32 %v9631_v42, %v17870_v57  ;;  %v9516_v42 = vld [vmem:[#allocation2 + $0x6c] sm:$0xf] }
 0x4fe   : > { %v9646_v37 = vor.u32 %v9645_v3, %v9642_v59  ;;  %v9691_v21 = vshll.u32 %v9513_v6, 16  ;;  %v9659_v61 = vshll.u32 %v17568_v40, 16  ;;  %v9680_v3 = vor.u32 %v9679_v9, %v17896_v58  ;;  %v9519_v9 = vld [vmem:[#allocation2 + $0x78] sm:$0xf] }
 0x4ff   : > { %v9604_v15 = vsel %vm14471_vm2, %v9599_v43, %v17848_v60  ;;  %v9623_v29 = vrot.slane %v9622_v24, 4  ;;  %v9633_v38 = vrot.slane %v9632_v30, 4  ;;  %v9697_v59 = vshll.u32 %v17586_v14, 16 }
 0x500   : > { %v9701_v13 = vshrl.u32 %v17586_v14, 16  ;;  %v9670_v5 = vor.u32 %v9669_v53, %v9666_v0  ;;  %v9683_v60 = vshll.u32 %v17579_v28, 16  ;;  %v9661_v24 = vrot.slane %v9659_v61, 5  ;;  %v14146_v0 = vld [vmem:[#allocation3 + $0x210] sm:$0xff]  }
 0x501   : > { %13177 = vmatmul.mubr.bf16.gmra.mrb[24].mxu1 %v14139_v22  ;;  %v9609_v22 = vrot.slane %v9608_v25, 4  ;;  %v9655_v25 = vrot.slane %v9653_v54, 4  ;;  %v9590_v54 = vsel %vm14471_vm2, %v9585_v63, %v17854_v31  ;;  %v9628_v40 = vsel %vm14471_vm2, %v9623_v29, %v17870_v57 }
 0x502   : > { %13180 = vmatprep.mubr.bf16.mxu1 %v14141_v62  ;;  %v17872_v62 = vrot.slane %v9649_v19, 5  ;;  %v11778_v19 = vcombine.low %v17878_v44, %v17882_v48  ;;  %v11724_v31 = vcombine.low %v9580_v47, %v9590_v54  ;;  %v9712_v47 = vshrl.u32 %v9516_v42, 16 }
 0x503   : > { %v9614_v36 = vsel %vm14471_vm2, %v9609_v22, %v9613_v18  ;;  %v9637_v22 = vrot.slane %v9635_v46, 5  ;;  %v9693_v18 = vrot.slane %v9691_v21, 5  ;;  %v9715_v54 = vshll.u32 %v9516_v42, 16 }
 0x504   : > { %v9656_v35 = vor.u32 %v9655_v25, %v17872_v62  ;;  %v11725_v63 = vcombine.low %v9604_v15, %v9614_v36  ;;  %v9647_v25 = vrot.slane %v9646_v37, 4  ;;  %v9721_v46 = vshll.u32 %v17607_v16, 16 }
 0x505   : > { %v9638_v14 = vsel %vm14471_vm2, %v9633_v38, %v9637_v22  ;;  %v9681_v36 = vrot.slane %v9680_v3, 4  ;;  %v17914_v28 = vrot.slane %v9697_v59, 5  ;;  %v9703_v30 = vrot.slane %v9701_v13, 4 }
 0x506   : > { %v9657_v32 = vrot.slane %v9656_v35, 4  ;;  %v9652_v57 = vsel %vm14471_vm2, %v9647_v25, %v17872_v62  ;;  %v9685_v35 = vrot.slane %v9683_v60, 5  ;;  %v9714_v15 = vrot.slane %v9712_v47, 4 }
 0x507   : > { %v17923_v21 = vrot.slane %v9721_v46, 5  ;;  %v9739_v29 = vshll.u32 %v9519_v9, 16  ;;  %v9704_v22 = vor.u32 %v9703_v30, %v17914_v28  ;;  %v9745_v61 = vshll.u32 %v17623_v41, 16 }
 0x508   : > { %v9662_v37 = vsel %vm14471_vm2, %v9657_v32, %v9661_v24  ;;  %v9686_v62 = vsel %vm14471_vm2, %v9681_v36, %v9685_v35  ;;  %v9749_v42 = vshrl.u32 %v17623_v41, 16  ;;  %v11726_v38 = vcombine.low %v9628_v40, %v9638_v14  ;;  %v14147_v32 = vld [vmem:[#allocation3 + $0x218] sm:$0xff]   ;;  %v14148_v14 = vld [vmem:[#allocation3 + $0x220] sm:$0xff]  }
 0x509   : > { %13181 = vmatmul.mubr.bf16.gmra.mrb[28].mxu1 %v14142_v1  ;;  %v9688_v1 = vshrl.u32 %v9513_v6, 16  ;;  %v9725_v6 = vshrl.u32 %v17607_v16, 16  ;;  %v9671_v16 = vrot.slane %v9670_v5, 4  ;;  %v11727_v3 = vcombine.low %v9652_v57, %v9662_v37  ;;  %v9522_v5 = vld [vmem:[#allocation2 + $0x84] sm:$0xf] }
 0x50a   : > { %13200 = vmatprep.mubr.bf16.mxu1 %v11723_v8  ;;  %v14145_v8 = vld [vmem:[#allocation3 + $0x208] sm:$0xff]   ;;  %v9731_v25 = vshll.u32 %v17615_v12, 16  ;;  %v9741_v47 = vrot.slane %v9739_v29, 5  ;;  %v9525_v41 = vld [vmem:[#allocation2 + $0x90] sm:$0xf]  ;;  %v17935_v40 = vrot.slane %v9745_v61, 5 }
 0x50b   : > { %v9690_v43 = vrot.slane %v9688_v1, 4  ;;  %v9717_v1 = vrot.slane %v9715_v54, 5  ;;  %v9705_v54 = vrot.slane %v9704_v22, 4  ;;  %v9751_v24 = vrot.slane %v9749_v42, 4  ;;  %v9528_v29 = vld [vmem:[#allocation2 + $0x9c] sm:$0xf] }
 0x50c   : > { %v9763_v46 = vshll.u32 %v9522_v5, 16  ;;  %v9769_v12 = vshll.u32 %v17631_v17, 16  ;;  %v9784_v36 = vshrl.u32 %v9525_v41, 16  ;;  %v9787_v30 = vshll.u32 %v9525_v41, 16  ;;  %v14149_v42 = vld [vmem:[#allocation3 + $0x228] sm:$0xff]  }
 0x50d   : > { %v9694_v53 = vor.u32 %v9693_v18, %v9690_v43  ;;  %v9797_v57 = vshrl.u32 %v17654_v52, 16  ;;  %v9733_v35 = vrot.slane %v9731_v25, 5 }
 0x50f   : > { %v9695_v59 = vrot.slane %v9694_v53, 4  ;;  %v9799_v61 = vrot.slane %v9797_v57, 4 }
 0x511   : > { %13201 = vmatmul.mubr.bf16.vlgmr.msra.gmra.mrb[0].mxu1 %v11724_v31  ;;  %v9707_v31 = vshll.u32 %v17600_v10, 16  ;;  %v9676_v10 = vsel %vm14471_vm2, %v9671_v16, %v17896_v58  ;;  %v9760_v58 = vshrl.u32 %v9522_v5, 16  ;;  %v9700_v37 = vsel %vm14471_vm2, %v9695_v59, %v17914_v28 }
 0x512   : > { %13204 = vmatprep.mubr.bf16.mxu1 %v11725_v63  ;;  %13233 = vmatpush3.bf16.msra.mxu1 %v17832_v27  ;;  %v9727_v63 = vrot.slane %v9725_v6, 4  ;;  %v9736_v27 = vshrl.u32 %v9519_v9, 16  ;;  %v11728_v60 = vcombine.low %v9676_v10, %v9686_v62  ;;  %v9773_v6 = vshrl.u32 %v17631_v17, 16 }
 0x513   : > { %13234 = vmatprep.subr.bf16.mxu1 %v14145_v8  ;;  %v9709_v13 = vrot.slane %v9707_v31, 5  ;;  %v9793_v9 = vshll.u32 %v17654_v52, 16  ;;  %v9752_v17 = vor.u32 %v9751_v24, %v17935_v40  ;;  %v9786_v28 = vrot.slane %v9784_v36, 4 }
 0x514   : > { %v9728_v43 = vor.u32 %v9727_v63, %v17923_v21  ;;  %v9738_v18 = vrot.slane %v9736_v27, 4  ;;  %v9765_v63 = vrot.slane %v9763_v46, 5  ;;  %v17948_v27 = vrot.slane %v9769_v12, 5 }
 0x515   : > { %v9710_v53 = vsel %vm14471_vm2, %v9705_v54, %v9709_v13  ;;  %v9775_v52 = vrot.slane %v9773_v6, 4  ;;  %v9789_v62 = vrot.slane %v9787_v30, 5  ;;  %v17950_v22 = vrot.slane %v9793_v9, 5  ;;  %v14150_v54 = vld [vmem:[#allocation3 + $0x230] sm:$0xff]  }
 0x516   : > { %13235 = vmatpush3.bf16.msra.mxu1 %v14145_v8  ;;  %v9718_v8 = vor.u32 %v9717_v1, %v9714_v15  ;;  %v9729_v16 = vrot.slane %v9728_v43, 4  ;;  %v9755_v15 = vshll.u32 %v17629_v2, 16  ;;  %v9762_v1 = vrot.slane %v9760_v58, 4  ;;  %v9531_v58 = vld [vmem:[#allocation2 + $0xa8] sm:$0xf] }
 0x517   : > { %13236 = vmatprep.subr.bf16.mxu1 %v14146_v0  ;;  %v9753_v59 = vrot.slane %v9752_v17, 4  ;;  %v9776_v25 = vor.u32 %v9775_v52, %v17948_v27  ;;  %v9811_v5 = vshll.u32 %v9528_v29, 16  ;;  %v9800_v41 = vor.u32 %v9799_v61, %v17950_v22 }
 0x518   : > { %v9719_v31 = vrot.slane %v9718_v8, 4  ;;  %v9766_v13 = vor.u32 %v9765_v63, %v9762_v1  ;;  %v9817_v8 = vshll.u32 %v17673_v51, 16  ;;  %v9821_v24 = vshrl.u32 %v17673_v51, 16  ;;  %v14151_v51 = vld [vmem:[#allocation3 + $0x238] sm:$0xff]  }
 0x519   : > { %13205 = vmatmul.mubr.bf16.gmra.mrb[4].mxu1 %v11726_v38  ;;  %v11729_v38 = vcombine.low %v9700_v37, %v9710_v53  ;;  %v9803_v12 = vshll.u32 %v17666_v39, 16  ;;  %v9841_v6 = vshll.u32 %v17689_v11, 16  ;;  %v9777_v30 = vrot.slane %v9776_v25, 4 }
 0x51a   : > { %13208 = vmatprep.mubr.bf16.mxu1 %v11727_v3  ;;  %13237 = vmatpush3.bf16.msra.mxu1 %v14146_v0  ;;  %v9742_v0 = vor.u32 %v9741_v47, %v9738_v18  ;;  %v9734_v3 = vsel %vm14471_vm2, %v9729_v16, %v9733_v35  ;;  %v9724_v2 = vsel %vm14471_vm2, %v9719_v31, %v17923_v21  ;;  %v9757_v18 = vrot.slane %v9755_v15, 5  ;;  %v9534_v15 = vld [vmem:[#allocation2 + $0xb4] sm:$0xf] }
 0x51b   : > { %13238 = vmatprep.subr.bf16.mxu1 %v14147_v32  ;;  %v11730_v43 = vcombine.low %v9724_v2, %v9734_v3  ;;  %v9790_v47 = vor.u32 %v9789_v62, %v9786_v28  ;;  %v9779_v21 = vshll.u32 %v17639_v49, 16  ;;  %v9767_v36 = vrot.slane %v9766_v13, 4  ;;  %v9537_v2 = vld [vmem:[#allocation2 + $0xc0] sm:$0xf] }
 0x51c   : > { %v9743_v10 = vrot.slane %v9742_v0, 4  ;;  %v9758_v46 = vsel %vm14471_vm2, %v9753_v59, %v9757_v18  ;;  %v9801_v57 = vrot.slane %v9800_v41, 4  ;;  %v9832_v37 = vshrl.u32 %v9531_v58, 16 }
 0x51d   : > { %v9791_v49 = vrot.slane %v9790_v47, 4  ;;  %v9835_v16 = vshll.u32 %v9531_v58, 16  ;;  %v9781_v0 = vrot.slane %v9779_v21, 5  ;;  %v17970_v53 = vrot.slane %v9817_v8, 5 }
 0x51e   : > { %13239 = vmatpush3.bf16.msra.mxu1 %v14147_v32  ;;  %v9808_v32 = vshrl.u32 %v9528_v29, 16  ;;  %v9823_v39 = vrot.slane %v9821_v24, 4  ;;  %v9805_v31 = vrot.slane %v9803_v12, 5  ;;  %v17972_v17 = vrot.slane %v9841_v6, 5 }
 0x51f   : > { %13240 = vmatprep.subr.bf16.mxu1 %v14148_v14  ;;  %v9772_v1 = vsel %vm14471_vm2, %v9767_v36, %v17948_v27  ;;  %v9782_v63 = vsel %vm14471_vm2, %v9777_v30, %v9781_v0  ;;  %v9827_v29 = vshll.u32 %v17681_v20, 16  ;;  %v9796_v28 = vsel %vm14471_vm2, %v9791_v49, %v17950_v22 }
 0x520   : > { %v9810_v9 = vrot.slane %v9808_v32, 4  ;;  %v9806_v62 = vsel %vm14471_vm2, %v9801_v57, %v9805_v31  ;;  %v9834_v61 = vrot.slane %v9832_v37, 4  ;;  %v9856_v27 = vshrl.u32 %v9534_v15, 16 }
 0x521   : > { %13209 = vmatmul.mubr.bf16.gmra.mrb[8].mxu1 %v11728_v60  ;;  %v9748_v60 = vsel %vm14471_vm2, %v9743_v10, %v17935_v40  ;;  %v9813_v40 = vrot.slane %v9811_v5, 5  ;;  %v9865_v3 = vshll.u32 %v17702_v33, 16  ;;  %v9869_v10 = vshrl.u32 %v17702_v33, 16 }
 0x522   : > { %13212 = vmatprep.mubr.bf16.mxu1 %v11729_v38  ;;  %13241 = vmatpush3.bf16.msra.mxu1 %v14148_v14  ;;  %v9845_v14 = vshrl.u32 %v17689_v11, 16  ;;  %v11731_v35 = vcombine.low %v9748_v60, %v9758_v46  ;;  %v9824_v38 = vor.u32 %v9823_v39, %v17970_v53  ;;  %v9859_v59 = vshll.u32 %v9534_v15, 16  ;;  %v9540_v60 = vld [vmem:[#allocation2 + $0xcc] sm:$0xf] }
 0x523   : > { %13242 = vmatprep.subr.bf16.mxu1 %v14149_v42  ;;  %v9814_v52 = vor.u32 %v9813_v40, %v9810_v9  ;;  %v9889_v13 = vshll.u32 %v17722_v34, 16  ;;  %v9893_v22 = vshrl.u32 %v17722_v34, 16  ;;  %v11732_v25 = vcombine.low %v9772_v1, %v9782_v63 }
 0x524   : > { %v9847_v11 = vrot.slane %v9845_v14, 4  ;;  %v11733_v32 = vcombine.low %v9796_v28, %v9806_v62  ;;  %v9851_v47 = vshll.u32 %v17694_v56, 16  ;;  %v9880_v41 = vshrl.u32 %v9537_v2, 16 }
 0x525   : > { %v9815_v5 = vrot.slane %v9814_v52, 4  ;;  %v9825_v33 = vrot.slane %v9824_v38, 4  ;;  %v9858_v21 = vrot.slane %v9856_v27, 4  ;;  %v9867_v8 = vrot.slane %v9865_v3, 5 }
 0x526   : > { %13243 = vmatpush3.bf16.msra.mxu1 %v14149_v42  ;;  %v9837_v42 = vrot.slane %v9835_v16, 5  ;;  %v9848_v20 = vor.u32 %v9847_v11, %v17972_v17  ;;  %v9871_v24 = vrot.slane %v9869_v10, 4  ;;  %v9861_v46 = vrot.slane %v9859_v59, 5 }
 0x527   : > { %13244 = vmatprep.subr.bf16.mxu1 %v14150_v54  ;;  %v9891_v12 = vrot.slane %v9889_v13, 5  ;;  %v9895_v34 = vrot.slane %v9893_v22, 4  ;;  %v9904_v6 = vshrl.u32 %v9540_v60, 16  ;;  %v9907_v14 = vshll.u32 %v9540_v60, 16  ;;  %v18571_v60 = vld [vmem:[#allocation39_spill] sm:$0xff] }
 0x528   : > { %v9838_v18 = vor.u32 %v9837_v42, %v9834_v61  ;;  %v9849_v58 = vrot.slane %v9848_v20, 4  ;;  %v9913_v36 = vshll.u32 %v17863_v45, 16  ;;  %v9917_v30 = vshrl.u32 %v17863_v45, 16 }
 0x529   : > { %13213 = vmatmul.mubr.bf16.gmra.mrb[12].mxu1 %v11730_v43  ;;  %v9829_v43 = vrot.slane %v9827_v29, 5  ;;  %v9853_v9 = vrot.slane %v9851_v47, 5  ;;  %v9882_v40 = vrot.slane %v9880_v41, 4  ;;  %v9820_v57 = vsel %vm14471_vm2, %v9815_v5, %v17970_v53  ;;  %v18568_v47 = vld [vmem:[#allocation22_spill] sm:$0xff]  ;;  %v18569_v41 = vld [vmem:[#allocation35_spill] sm:$0xff] }
 0x52a   : > { %13216 = vmatprep.mubr.bf16.mxu1 %v11731_v35  ;;  %13245 = vmatpush3.bf16.msra.mxu1 %v14150_v54  ;;  %v9883_v54 = vshll.u32 %v9537_v2, 16  ;;  %v9839_v56 = vrot.slane %v9838_v18, 4  ;;  %v9872_v16 = vor.u32 %v9871_v24, %v9867_v8  ;;  %v9862_v35 = vor.u32 %v9861_v46, %v9858_v21  ;;  %v18575_v24 = vld [vmem:[#allocation42_spill] sm:$0xff]  ;;  %v18578_v46 = vld [vmem:[#allocation44_spill] sm:$0xff] }
 0x52b   : > { %13246 = vmatprep.subr.bf16.mxu1 %v14151_v51  ;;  %v9830_v37 = vsel %vm14471_vm2, %v9825_v33, %v9829_v43  ;;  %v9875_v0 = vshll.u32 %v17720_v50, 16  ;;  %v9896_v39 = vor.u32 %v9895_v34, %v9891_v12  ;;  %v9906_v45 = vrot.slane %v9904_v6, 4  ;;  %v18572_v33 = vld [vmem:[#allocation40_spill] sm:$0xff]  ;;  %v18580_v34 = vld [vmem:[#allocation45_spill] sm:$0xff]  ;;  %v18583_v6 = vld [vmem:[#allocation46_spill] sm:$0xff] }
 0x52c   : > { %v9885_v49 = vrot.slane %v9883_v54, 5  ;;  %v9909_v31 = vrot.slane %v9907_v14, 5  ;;  %v9915_v11 = vrot.slane %v9913_v36, 5  ;;  %v9919_v15 = vrot.slane %v9917_v30, 4  ;;  %v18584_v14 = vld [vmem:[#allocation48_spill] sm:$0xff]  ;;  %v18586_v30 = vld [vmem:[#allocation49_spill] sm:$0xff] }
 0x52d   : > { %v11734_v1 = vcombine.low %v9820_v57, %v9830_v37  ;;  %v9844_v53 = vsel %vm14471_vm2, %v9839_v56, %v17972_v17  ;;  %v9899_v52 = vshll.u32 %v17734_v23, 16  ;;  %v9873_v28 = vrot.slane %v9872_v16, 4  ;;  %v18587_v56 = vld [vmem:[#allocation50_spill] sm:$0xff]  ;;  %v18592_v37 = vld [vmem:[#allocation53_spill] sm:$0xff]  ;;  %v18593_v16 = vld [vmem:[#allocation55_spill] sm:$0xff] }
 0x52e   : > { %13247 = vmatpush3.bf16.msra.mxu1 %v14151_v51  ;;  %v9854_v51 = vsel %vm14471_vm2, %v9849_v58, %v9853_v9  ;;  %v9886_v63 = vor.u32 %v9885_v49, %v9882_v40  ;;  %v9877_v62 = vrot.slane %v9875_v0, 5  ;;  %v9897_v61 = vrot.slane %v9896_v39, 4  ;;  %v18589_v40 = vld [vmem:[#allocation51_spill] sm:$0xff]  ;;  %v18590_v49 = vld [vmem:[#allocation52_spill] sm:$0xff] }
 0x52f   : > { %v11735_v29 = vcombine.low %v9844_v53, %v9854_v51  ;;  %v9863_v50 = vrot.slane %v9862_v35, 4  ;;  %v9910_v42 = vor.u32 %v9909_v31, %v9906_v45  ;;  %v9920_v38 = vor.u32 %v9919_v15, %v9915_v11  ;;  %v18595_v35 = vld [vmem:[#allocation54_spill] sm:$0xff]  ;;  %v18596_v0 = vld [vmem:[#allocation56_spill] sm:$0xff]  ;;  %v18598_v45 = vld [vmem:[#allocation57_spill] sm:$0xff] }
 0x530   : > { %v9923_v27 = vshll.u32 %v17865_v26, 16  ;;  %v9887_v3 = vrot.slane %v9886_v63, 4  ;;  %v9901_v10 = vrot.slane %v9899_v52, 5  ;;  %v9878_v2 = vsel %vm14471_vm2, %v9873_v28, %v9877_v62  ;;  %v18599_v31 = vld [vmem:[#allocation58_spill] sm:$0xff]  ;;  %v18601_v15 = vld [vmem:[#allocation59_spill] sm:$0xff]  ;;  %v18604_v63 = vld [vmem:[#allocation61_spill] sm:$0xff] }
 0x531   : > { %13217 = vmatmul.mubr.bf16.gmra.mrb[16].mxu1 %v11732_v25  ;;  %v9868_v23 = vsel %vm14471_vm2, %v9863_v50, %v9867_v8  ;;  %v9911_v20 = vrot.slane %v9910_v42, 4  ;;  %v9921_v59 = vrot.slane %v9920_v38, 4  ;;  %v18567_v18 = vcombine.low %v17552_v7, %v17556_v55  ;;  %v18574_v8 = vld [vmem:[#allocation41_spill] sm:$0xff]  ;;  %v18581_v7 = vld [vmem:[#allocation47_spill] sm:$0xff]  ;;  %v18605_v52 = vld [vmem:[#allocation62_spill] sm:$0xff] }
 0x532   : > { %13220 = vmatprep.mubr.bf16.mxu1 %v11733_v32  ;;  %v9902_v17 = vsel %vm14471_vm2, %v9897_v61, %v9901_v10  ;;  %v9925_v13 = vrot.slane %v9923_v27, 5  ;;  %v11736_v22 = vcombine.low %v9868_v23, %v9878_v2  ;;  %v9892_v25 = vsel %vm14471_vm2, %v9887_v3, %v9891_v12  ;;  %v18607_v28 = vld [vmem:[#allocation63_spill] sm:$0xff]  ;;  %v18608_v62 = vld [vmem:[#allocation64_spill] sm:$0xff]  ;;  %v18070_v50 = vld [vmem:[%s18181_s4] ss:$0 sm:$0xff] }
 0x533   : > { %v11737_v32 = vcombine.low %v9892_v25, %v9902_v17  ;;  %v9916_v26 = vsel %vm14471_vm2, %v9911_v20, %v9915_v11  ;;  %v18570_v54 = vcombine.low %v18568_v47, %v18569_v41  ;;  %v18573_v21 = vcombine.low %v18571_v60, %v18572_v33 }
 0x534   : > { %v9926_v5 = vsel %vm14471_vm2, %v9921_v59, %v9925_v13  ;;  %v18576_v58 = vcombine.low %v18574_v8, %v18575_v24  ;;  %v18579_v12 = vcombine.low %v18577_v4, %v18578_v46  ;;  %v18582_v55 = vcombine.low %v18580_v34, %v18581_v7 }
 0x535   : > { %v11738_v43 = vcombine.low %v9916_v26, %v9926_v5  ;;  %v18585_v36 = vcombine.low %v18583_v6, %v18584_v14  ;;  %v18588_v9 = vcombine.low %v18586_v30, %v18587_v56  ;;  %v18591_v57 = vcombine.low %v18589_v40, %v18590_v49 }
 0x536   : > { %v18594_v51 = vcombine.low %v18592_v37, %v18593_v16  ;;  %v18597_v39 = vcombine.low %v18595_v35, %v18596_v0  ;;  %v18600_v11 = vcombine.low %v18598_v45, %v18599_v31  ;;  %v18609_v61 = vcombine.low %v18607_v28, %v18608_v62 }
 0x539   : > { %13221 = vmatmul.mubr.bf16.gmra.mrb[20].mxu1 %v11734_v1  ;;  %v18602_v1 = vld [vmem:[#allocation60_spill] sm:$0xff] }
 0x53a   : > { %13224 = vmatprep.mubr.bf16.mxu1 %v11735_v29  ;;  %v18603_v53 = vcombine.low %v18601_v15, %v18602_v1  ;;  %v18606_v29 = vcombine.low %v18604_v63, %v18605_v52 }
 0x541   : > { %13225 = vmatmul.mubr.bf16.gmra.mrb[24].mxu1 %v11736_v22 }
 0x542   : > { %13228 = vmatprep.mubr.bf16.mxu1 %v11737_v32 }
 0x549   : > { %13229 = vmatmul.mubr.bf16.gmra.mrb[28].mxu1 %v11738_v43 }
 0x54a   : > { %13248 = vmatprep.mubr.bf16.mxu1 %v18567_v18 }
 0x551   : > { %13249 = vmatmul.mubr.bf16.vlgmr.msra.gmra.mrb[0].mxu1 %v18570_v54 }
 0x552   : > { %13252 = vmatprep.mubr.bf16.mxu1 %v18573_v21 }
 0x559   : > { %13253 = vmatmul.mubr.bf16.gmra.mrb[4].mxu1 %v18576_v58 }
 0x55a   : > { %13256 = vmatprep.mubr.bf16.mxu1 %v18579_v12 }
 0x561   : > { %13257 = vmatmul.mubr.bf16.gmra.mrb[8].mxu1 %v18582_v55 }
 0x562   : > { %13260 = vmatprep.mubr.bf16.mxu1 %v18585_v36 }
 0x569   : > { %13261 = vmatmul.mubr.bf16.gmra.mrb[12].mxu1 %v18588_v9 }
 0x56a   : > { %13264 = vmatprep.mubr.bf16.mxu1 %v18591_v57 }
 0x571   : > { %13265 = vmatmul.mubr.bf16.gmra.mrb[16].mxu1 %v18594_v51 }
 0x572   : > { %13268 = vmatprep.mubr.bf16.mxu1 %v18597_v39 }
 0x579   : > { %13269 = vmatmul.mubr.bf16.gmra.mrb[20].mxu1 %v18600_v11 }
 0x57a   : > { %13272 = vmatprep.mubr.bf16.mxu1 %v18603_v53 }
 0x581   : > { %13273 = vmatmul.mubr.bf16.gmra.mrb[24].mxu1 %v18606_v29 }
 0x582   : > { %13276 = vmatprep.mubr.bf16.mxu1 %v18609_v61 }
 0x589   : > { %13277 = vmatmul.mubr.bf16.gmra.mrb[28].mxu1 %v11778_v19 }
 0x624   : > { %v13250_v42 = vpop.f32.mrb[0].mxu1 }
 0x625   : > { %v13312_v38 = vadd.f32 %v13250_v42, %v18070_v50  ;;  %v10586_v27 = vpop.f32.mrb[1].mxu1 }
 0x626   : > { %v13313_v3 = vadd.f32 %v18070_v50, %v10586_v27  ;;  %v13251_v10 = vpop.f32.mrb[2].mxu1 }
 0x627   : > { %v13314_v2 = vadd.f32 %v13251_v10, %v18070_v50  ;;  %v10589_v17 = vpop.f32.mrb[3].mxu1  ;;  %v10747_v48 = vmax.f32 %v13312_v38, 0.0 }
 0x628   : > { %v13315_v44 = vadd.f32 %v18070_v50, %v10589_v17  ;;  %v10745_v23 = vmax.f32 %v13313_v3, 0.0 }
 0x629   : > { %v10748_v19 = vmax.f32 %v13314_v2, 0.0 }
 0x62a   : > { %v10746_v20 = vmax.f32 %v13315_v44, 0.0 }
 0x62b   : > { %v11897_v59 = vpack.c.bf16 %v10748_v19, %v10747_v48 }
 0x62c   : > { %v11892_v13 = vpack.c.bf16 %v10746_v20, %v10745_v23  ;;  %v13254_v22 = vpop.f32.mrb[4].mxu1 }
 0x62d   : > { %11969 = vst [vmem:[%s18079_s8 + $0x8] sm:$0xff] %v11897_v59   ;;  %v13316_v25 = vadd.f32 %v13254_v22, %v18070_v50  ;;  %v10602_v32 = vpop.f32.mrb[5].mxu1 }
 0x62e   : > { %11893 = vst [vmem:[%s18079_s8] sm:$0xff] %v11892_v13   ;;  %v13317_v26 = vadd.f32 %v18070_v50, %v10602_v32  ;;  %v13255_v5 = vpop.f32.mrb[6].mxu1 }
 0x62f   : > { %v13318_v43 = vadd.f32 %v13255_v5, %v18070_v50  ;;  %v10605_v18 = vpop.f32.mrb[7].mxu1  ;;  %v10751_v41 = vmax.f32 %v13316_v25, 0.0 }
 0x630   : > { %v13319_v47 = vadd.f32 %v18070_v50, %v10605_v18  ;;  %v10749_v60 = vmax.f32 %v13317_v26, 0.0 }
 0x631   : > { %v10752_v54 = vmax.f32 %v13318_v43, 0.0 }
 0x632   : > { %v10750_v33 = vmax.f32 %v13319_v47, 0.0 }
 0x633   : > { %v11907_v21 = vpack.c.bf16 %v10752_v54, %v10751_v41 }
 0x634   : > { %v11902_v8 = vpack.c.bf16 %v10750_v33, %v10749_v60  ;;  %v13258_v24 = vpop.f32.mrb[8].mxu1 }
 0x635   : > { %11971 = vst [vmem:[%s18079_s8 + $0x18] sm:$0xff] %v11907_v21   ;;  %v13320_v58 = vadd.f32 %v13258_v24, %v18070_v50  ;;  %v10618_v4 = vpop.f32.mrb[9].mxu1 }
 0x636   : > { %11970 = vst [vmem:[%s18079_s8 + $0x10] sm:$0xff] %v11902_v8   ;;  %v13321_v46 = vadd.f32 %v18070_v50, %v10618_v4  ;;  %v13259_v12 = vpop.f32.mrb[10].mxu1 }
 0x637   : > { %v13322_v34 = vadd.f32 %v13259_v12, %v18070_v50  ;;  %v10621_v7 = vpop.f32.mrb[11].mxu1  ;;  %v10755_v6 = vmax.f32 %v13320_v58, 0.0 }
 0x638   : > { %v13323_v55 = vadd.f32 %v18070_v50, %v10621_v7  ;;  %v10753_v36 = vmax.f32 %v13321_v46, 0.0 }
 0x639   : > { %v10756_v14 = vmax.f32 %v13322_v34, 0.0 }
 0x63a   : > { %v10754_v30 = vmax.f32 %v13323_v55, 0.0 }
 0x63b   : > { %v11917_v56 = vpack.c.bf16 %v10756_v14, %v10755_v6 }
 0x63c   : > { %v11912_v9 = vpack.c.bf16 %v10754_v30, %v10753_v36  ;;  %v13262_v40 = vpop.f32.mrb[12].mxu1 }
 0x63d   : > { %11973 = vst [vmem:[%s18079_s8 + $0x28] sm:$0xff] %v11917_v56   ;;  %v13324_v49 = vadd.f32 %v13262_v40, %v18070_v50  ;;  %v10634_v57 = vpop.f32.mrb[13].mxu1 }
 0x63e   : > { %11972 = vst [vmem:[%s18079_s8 + $0x20] sm:$0xff] %v11912_v9   ;;  %v13325_v37 = vadd.f32 %v18070_v50, %v10634_v57  ;;  %v13263_v16 = vpop.f32.mrb[14].mxu1 }
 0x63f   : > { %v13326_v51 = vadd.f32 %v13263_v16, %v18070_v50  ;;  %v10637_v35 = vpop.f32.mrb[15].mxu1  ;;  %v10759_v39 = vmax.f32 %v13324_v49, 0.0 }
 0x640   : > { %v13327_v0 = vadd.f32 %v18070_v50, %v10637_v35  ;;  %v10757_v31 = vmax.f32 %v13325_v37, 0.0 }
 0x641   : > { %v10760_v45 = vmax.f32 %v13326_v51, 0.0 }
 0x642   : > { %v10758_v11 = vmax.f32 %v13327_v0, 0.0 }
 0x643   : > { %v11927_v15 = vpack.c.bf16 %v10760_v45, %v10759_v39 }
 0x644   : > { %v11922_v1 = vpack.c.bf16 %v10758_v11, %v10757_v31  ;;  %v13266_v53 = vpop.f32.mrb[16].mxu1 }
 0x645   : > { %11975 = vst [vmem:[%s18079_s8 + $0x38] sm:$0xff] %v11927_v15   ;;  %v13328_v63 = vadd.f32 %v13266_v53, %v18070_v50  ;;  %v10650_v52 = vpop.f32.mrb[17].mxu1 }
 0x646   : > { %11974 = vst [vmem:[%s18079_s8 + $0x30] sm:$0xff] %v11922_v1   ;;  %v13329_v29 = vadd.f32 %v18070_v50, %v10650_v52  ;;  %v13267_v28 = vpop.f32.mrb[18].mxu1 }
 0x647   : > { %v13330_v62 = vadd.f32 %v13267_v28, %v18070_v50  ;;  %v10653_v61 = vpop.f32.mrb[19].mxu1  ;;  %v10763_v38 = vmax.f32 %v13328_v63, 0.0 }
 0x648   : > { %v13331_v42 = vadd.f32 %v18070_v50, %v10653_v61  ;;  %v10761_v3 = vmax.f32 %v13329_v29, 0.0 }
 0x649   : > { %v10764_v27 = vmax.f32 %v13330_v62, 0.0 }
 0x64a   : > { %v10762_v10 = vmax.f32 %v13331_v42, 0.0 }
 0x64b   : > { %v11937_v2 = vpack.c.bf16 %v10764_v27, %v10763_v38 }
 0x64c   : > { %v11932_v17 = vpack.c.bf16 %v10762_v10, %v10761_v3  ;;  %v13270_v44 = vpop.f32.mrb[20].mxu1 }
 0x64d   : > { %11977 = vst [vmem:[%s18079_s8 + $0x48] sm:$0xff] %v11937_v2   ;;  %v13332_v48 = vadd.f32 %v13270_v44, %v18070_v50  ;;  %v10666_v19 = vpop.f32.mrb[21].mxu1 }
 0x64e   : > { %11976 = vst [vmem:[%s18079_s8 + $0x40] sm:$0xff] %v11932_v17   ;;  %v13333_v23 = vadd.f32 %v18070_v50, %v10666_v19  ;;  %v13271_v20 = vpop.f32.mrb[22].mxu1 }
 0x64f   : > { %v13334_v59 = vadd.f32 %v13271_v20, %v18070_v50  ;;  %v10669_v13 = vpop.f32.mrb[23].mxu1  ;;  %v10767_v25 = vmax.f32 %v13332_v48, 0.0 }
 0x650   : > { %v13335_v22 = vadd.f32 %v18070_v50, %v10669_v13  ;;  %v10765_v26 = vmax.f32 %v13333_v23, 0.0 }
 0x651   : > { %v10768_v32 = vmax.f32 %v13334_v59, 0.0 }
 0x652   : > { %v10766_v5 = vmax.f32 %v13335_v22, 0.0 }
 0x653   : > { %v11947_v43 = vpack.c.bf16 %v10768_v32, %v10767_v25 }
 0x654   : > { %v11942_v18 = vpack.c.bf16 %v10766_v5, %v10765_v26  ;;  %v13274_v47 = vpop.f32.mrb[24].mxu1 }
 0x655   : > { %11979 = vst [vmem:[%s18079_s8 + $0x58] sm:$0xff] %v11947_v43   ;;  %v13336_v41 = vadd.f32 %v13274_v47, %v18070_v50  ;;  %v10682_v54 = vpop.f32.mrb[25].mxu1 }
 0x656   : > { %11978 = vst [vmem:[%s18079_s8 + $0x50] sm:$0xff] %v11942_v18   ;;  %v13337_v60 = vadd.f32 %v18070_v50, %v10682_v54  ;;  %v13275_v33 = vpop.f32.mrb[26].mxu1 }
 0x657   : > { %v13338_v21 = vadd.f32 %v13275_v33, %v18070_v50  ;;  %v10685_v8 = vpop.f32.mrb[27].mxu1  ;;  %v10771_v58 = vmax.f32 %v13336_v41, 0.0 }
 0x658   : > { %v13339_v24 = vadd.f32 %v18070_v50, %v10685_v8  ;;  %v10769_v46 = vmax.f32 %v13337_v60, 0.0 }
 0x659   : > { %v10772_v4 = vmax.f32 %v13338_v21, 0.0 }
 0x65a   : > { %v10770_v12 = vmax.f32 %v13339_v24, 0.0 }
 0x65b   : > { %v11957_v34 = vpack.c.bf16 %v10772_v4, %v10771_v58 }
 0x65c   : > { %v11952_v7 = vpack.c.bf16 %v10770_v12, %v10769_v46  ;;  %v13278_v55 = vpop.f32.mrb[28].mxu1 }
 0x65d   : > { %11981 = vst [vmem:[%s18079_s8 + $0x68] sm:$0xff] %v11957_v34   ;;  %v13340_v6 = vadd.f32 %v13278_v55, %v18070_v50  ;;  %v10698_v14 = vpop.f32.mrb[29].mxu1 }
 0x65e   : > { %11980 = vst [vmem:[%s18079_s8 + $0x60] sm:$0xff] %v11952_v7   ;;  %v13341_v36 = vadd.f32 %v18070_v50, %v10698_v14  ;;  %v13279_v30 = vpop.f32.mrb[30].mxu1 }
 0x65f   : > { %v13342_v56 = vadd.f32 %v13279_v30, %v18070_v50  ;;  %v10701_v9 = vpop.f32.mrb[31].mxu1  ;;  %v10775_v49 = vmax.f32 %v13340_v6, 0.0 }
 0x660   : > { %v13343_v40 = vadd.f32 %v18070_v50, %v10701_v9  ;;  %v10773_v37 = vmax.f32 %v13341_v36, 0.0 }
 0x661   : > { %v10776_v57 = vmax.f32 %v13342_v56, 0.0 }
 0x662   : > { %v10774_v16 = vmax.f32 %v13343_v40, 0.0 }
 0x663   : > { %v11967_v51 = vpack.c.bf16 %v10776_v57, %v10775_v49 }
 0x664   : > { %v11962_v35 = vpack.c.bf16 %v10774_v16, %v10773_v37 }
 0x665   : > { %11983 = vst [vmem:[%s18079_s8 + $0x78] sm:$0xff] %v11967_v51  }
 0x666   : > { %11982 = vst [vmem:[%s18079_s8 + $0x70] sm:$0xff] %v11962_v35  }
 0x667   : > { %14210 = shalt.err (!%p14207_p7)
}
 0x668   : > { %s14211_s15 = scalar_lea.hbm %s18128_s13, 2048  ;;  %s14215_s6 = scalar_lea.hbm %s18182_s5, 4096 }
 0x669   : > { %p14212_p8 = scmp.ne.s32.totalorder %s18128_s13, %s14211_s15  ;;  %p14216_p1 = scmp.lt.u32.totalorder %s18128_s13, %s18182_s5 }
 0x66a   : > { %p14217_p0 = scmp.lt.u32.totalorder %s14215_s6, %s14211_s15  ;;  %p14219_p6 = scmp.lt.u32.totalorder %s14211_s15, %s18128_s13 }
 0x66b   : > { %p14213_p11 = pnand %p14212_p8, %p18610_p9 }
 0x66c   : > { %p14218_p5 = por %p14217_p0, %p14216_p1 }
 0x66d   : > { %p14214_p13 = pneg %p14213_p11 }
 0x66e   : > { %p14220_p10 = por %p14219_p6, %p14218_p5 }
 0x670   : > { %p14221_p12 = pnand %p14220_p10, %p14214_p13 }
 0x672   : > { %14224 = shalt.err (!%p14221_p12)
}
 0x673   : > { %s14270_s8 = smov 64   ;;  %s14271_s11 = smov 4  }
 0x674   : > { %13861 = dma.vmem_to_hbm [thread:$0]  (%p18610_p9), %s18130_s30, 2048, %s18128_s13, %s18136_s22, %s14270_s8, %s14270_s8, %s14271_s11  }
 0x675 PF: > { %p13873_p2 = scmp.ge.s32.totalorder %s14263_s21, 2  ;;  %s10966_s7 = sand.u32 1, %s14251_s18  }
 0x676   : > { %p18611_p3 = scmp.ne.s32.totalorder %s18297_s29, 0  ;;  %s10967_s12 = scalar_lea.sflag [#allocation5], %s10966_s7 }
 0x678   : > { %p13868_p4 = pnand %p13873_p2, %p18611_p3 }
 0x67a   : > { %14246 = dma.done.wait (!%p13868_p4), %s10967_s12, 2048  }
 0x67b   : > { %14248 = vsyncadd (!%p13868_p4), %s10967_s12, 4294965248  ;;  %p16_p7 = scmp.ge.s32.totalorder %s14327_s24, 4   ;;  %s18612_s18 = smov %s14255_s19 }
 0x67c   : > { %s18613_s19 = smov %s14259_s20  ;;  %s18614_s20 = smov %s14338_s27 }
 0x67d   : > { %s18615_s21 = smov %s14327_s24  ;;  %18 = sbr.rel (!%p16_p7) target bundleno = 4 (0x4), region = 85 }
 0x684   :  { %10972 = vsyncpa [#allocation4], 1 }
 0x685   :  { %10974 = vsyncpa [#allocation4 + $0x1], 1 }
 0x686   :  { %10975 = vsyncpa [#allocation5], 1 }
 0x687   :  { %10977 = vsyncpa [#allocation5 + $0x1], 1 }

</bundles_post_ra>
